<compile_context>
chip_gen: v6e
topology: v6e:2x2x1
jax: 0.10.0
libtpu: 0.0.40
codegen_flags: <defaults>
</compile_context>

<pallas_src>
import jax
import jax.numpy as jnp
from jax.experimental import pallas as pl
from jax.experimental.pallas import tpu as pltpu

HP = 128          # hidden (=5) padded to one full lane tile
SUBLANES = 8      # batch padded to a full sublane group


# ----------------------------------------------------------------------------
# Fused kernel: 2-layer LSTM over the sequence + lin1 + out.
# ----------------------------------------------------------------------------
def seira_fused_kernel(x_ref, wih0_ref, whh0_ref, b0_ref, w1cat_ref, b1_ref,
                       wl1_ref, bl1_ref, wout_ref, bout_ref, out_ref):
    Hp = whh0_ref.shape[0]          # 128 (padded hidden)
    Bp = out_ref.shape[0]           # 8   (padded batch)
    TB, _ = x_ref.shape
    T = TB // Bp

    whh0 = whh0_ref[...]
    w1cat = w1cat_ref[...]

    # Hoisted layer-0 input projection (+ bias) for ALL timesteps: one MXU call
    # instead of T tiny latency-bound matmuls on the serial recurrence path.
    xg0_all = (jnp.dot(x_ref[...], wih0_ref[...],
                       preferred_element_type=jnp.float32)
               + b0_ref[...])                              # (T*Bp, 4*Hp)

    b1b = jnp.broadcast_to(b1_ref[...], (Bp, 4 * Hp))      # hoisted broadcast

    def gates(pre):
        # Gate blocks are 128-lane aligned -> free slices, no XLU relayout.
        i = jax.nn.sigmoid(pre[:, 0 * Hp:1 * Hp])
        f = jax.nn.sigmoid(pre[:, 1 * Hp:2 * Hp])
        g = jnp.tanh(pre[:, 2 * Hp:3 * Hp])
        o = jax.nn.sigmoid(pre[:, 3 * Hp:4 * Hp])
        return i, f, g, o

    z = jnp.zeros((Bp, Hp), jnp.float32)
    h1, c1, h2, c2 = z, z, z, z

    feats = []
    for t in range(T):              # fully unrolled: T is static and small
        # ---- layer 0: only the recurrent matmul remains in the loop --------
        g0 = xg0_all[t * Bp:(t + 1) * Bp, :] + jnp.dot(
            h1, whh0, preferred_element_type=jnp.float32)
        i0, f0, gg0, o0 = gates(g0)
        c1 = f0 * c1 + i0 * gg0
        h1 = o0 * jnp.tanh(c1)

        # ---- layer 1 (dropout between layers = identity in eval mode) ------
        # [h1 | h2] @ [[W_ih1]; [W_hh1]] merges the two matmuls into one.
        hcat = jnp.concatenate([h1, h2], axis=1)           # (Bp, 2*Hp)
        g1 = jnp.dot(hcat, w1cat, preferred_element_type=jnp.float32) + b1b
        i1, f1, gg1, o1 = gates(g1)
        c2 = f1 * c2 + i1 * gg1
        h2 = o1 * jnp.tanh(c2)

        feats.append(h2)

    # (Bp, T*Hp): lane-tile aligned concat.  Matches torch's (B, T*H) flatten
    # because w_lin1 rows were scattered into this padded T*Hp layout at init
    # (padded lanes of h2 are exactly zero, padded w_lin1 rows are zero).
    feat = jnp.concatenate(feats, axis=1)

    hmid = (jnp.dot(feat, wl1_ref[...], preferred_element_type=jnp.float32)
            + bl1_ref[...])
    y = (jnp.dot(hmid, wout_ref[...], preferred_element_type=jnp.float32)
         + bout_ref[...])
    out_ref[...] = y.astype(out_ref.dtype)                 # lane-dense store


def _vmem_spec():
    return pl.BlockSpec(memory_space=pltpu.MemorySpace.VMEM)


def seira_net_forward(x, params, *, n_output):
    """x: (B, n_window, n_input) f32 -> (B, n_window * n_output) f32."""
    B, T, D = x.shape
    Bp = ((B + SUBLANES - 1) // SUBLANES) * SUBLANES
    d2p = params["w_out"].shape[1]
    d2 = T * n_output

    # Time-major + batch pad + flatten to (T*Bp, D).  Tiny (few hundred bytes),
    # fuses into one XLA op; the whole model then runs in a single pallas_call.
    x_p = jnp.pad(jnp.transpose(x, (1, 0, 2)),
                  ((0, 0), (0, Bp - B), (0, 0))).reshape(T * Bp, D)

    out_p = pl.pallas_call(
        seira_fused_kernel,
        out_shape=jax.ShapeDtypeStruct((Bp, d2p), jnp.float32),
        in_specs=[_vmem_spec()] * 10,
        out_specs=_vmem_spec(),
    )(x_p, params["wih0"], params["whh0"], params["b0"],
      params["w1cat"], params["b1"],
      params["w_lin1"], params["b_lin1"], params["w_out"], params["b_out"])

    return out_p[:B, :d2]


def init_params(key, n_input, n_output, n_window, hidden=5, hp=HP):
    """Deterministic init; uniform(-1/sqrt(fan), 1/sqrt(fan)) like PyTorch.
    Weights are stored pre-transposed and pre-padded into the lane-aligned
    layouts the fused kernel consumes (done once, at init time)."""
    ks = jax.random.split(key, 12)
    H = hidden
    T = n_window

    def u(k, shape, fan):
        bound = 1.0 / jnp.sqrt(jnp.float32(fan))
        return jax.random.uniform(k, shape, jnp.float32, -bound, bound)

    def pad_gate_w(w, rows_pad):
        # w: (rows_in, 4*H) -> (rows_pad, 4*hp); gate g valid in cols [g*hp, g*hp+H)
        rows_in = w.shape[0]
        out = jnp.zeros((rows_pad, 4 * hp), jnp.float32)
        for g in range(4):
            out = out.at[:rows_in, g * hp:g * hp + H].set(w[:, g * H:(g + 1) * H])
        return out

    def pad_gate_b(b):
        out = jnp.zeros((1, 4 * hp), jnp.float32)
        for g in range(4):
            out = out.at[:, g * hp:g * hp + H].set(b[:, g * H:(g + 1) * H])
        return out

    # LSTM layer 0 (n_input -> H), layer 1 (H -> H); stored transposed for x @ W.
    wih0 = pad_gate_w(u(ks[0], (n_input, 4 * H), H), n_input)
    whh0 = pad_gate_w(u(ks[1], (H, 4 * H), H), hp)
    b0 = pad_gate_b(u(ks[2], (1, 4 * H), H) + u(ks[3], (1, 4 * H), H))  # b_ih + b_hh
    wih1 = pad_gate_w(u(ks[4], (H, 4 * H), H), hp)
    whh1 = pad_gate_w(u(ks[5], (H, 4 * H), H), hp)
    b1 = pad_gate_b(u(ks[6], (1, 4 * H), H) + u(ks[7], (1, 4 * H), H))
    w1cat = jnp.concatenate([wih1, whh1], axis=0)           # (2*hp, 4*hp)

    # lin1: (T*H -> T*96), out: (T*96 -> T*n_output)
    d1_in, d1_out = T * H, T * 96
    d2_out = T * n_output
    d2_pad = ((d2_out + 127) // 128) * 128
    w_lin1_raw = u(ks[8], (d1_in, d1_out), d1_in)
    b_lin1 = u(ks[9], (1, d1_out), d1_in)
    w_out_raw = u(ks[10], (d1_out, d2_out), d1_out)
    b_out_raw = u(ks[11], (1, d2_out), d1_out)

    # Scatter lin1 rows into the padded (T*hp) feature layout the kernel emits.
    w_lin1 = jnp.zeros((T * hp, d1_out), jnp.float32)
    for t in range(T):
        w_lin1 = w_lin1.at[t * hp:t * hp + H, :].set(w_lin1_raw[t * H:(t + 1) * H, :])

    # Zero-pad the final projection to a lane-dense (..., 128) output.
    w_out = jnp.zeros((d1_out, d2_pad), jnp.float32).at[:, :d2_out].set(w_out_raw)
    b_out = jnp.zeros((1, d2_pad), jnp.float32).at[:, :d2_out].set(b_out_raw)

    return dict(wih0=wih0, whh0=whh0, b0=b0, w1cat=w1cat, b1=b1,
                w_lin1=w_lin1, b_lin1=b_lin1, w_out=w_out, b_out=b_out)


if __name__ == "__main__":
    # Small shapes consistent with the module:
    #   n_input=4, n_output=3, n_window=8, batch=2, hidden=5
    n_input, n_output, n_window, batch = 4, 3, 8, 2

    key = jax.random.PRNGKey(0)
    k_x, k_p = jax.random.split(key)
    x = jax.random.normal(k_x, (batch, n_window, n_input), jnp.float32)
    params = init_params(k_p, n_input, n_output, n_window)

    fwd = jax.jit(seira_net_forward, static_argnames=("n_output",))
    y = fwd(x, params, n_output=n_output)
    y = jax.block_until_ready(y)
    assert y.shape == (batch, n_window * n_output), y.shape
    print("KERNEL_OK")
</pallas_src>

<mosaic_0001>
module attributes {stable_mosaic.version = 11 : i64} {
  func.func @seira_fused_kernel(%arg0: memref<64x4xf32, #tpu.memory_space<vmem>>, %arg1: memref<4x512xf32, #tpu.memory_space<vmem>>, %arg2: memref<128x512xf32, #tpu.memory_space<vmem>>, %arg3: memref<1x512xf32, #tpu.memory_space<vmem>>, %arg4: memref<256x512xf32, #tpu.memory_space<vmem>>, %arg5: memref<1x512xf32, #tpu.memory_space<vmem>>, %arg6: memref<1024x768xf32, #tpu.memory_space<vmem>>, %arg7: memref<1x768xf32, #tpu.memory_space<vmem>>, %arg8: memref<768x128xf32, #tpu.memory_space<vmem>>, %arg9: memref<1x128xf32, #tpu.memory_space<vmem>>, %arg10: memref<8x128xf32, #tpu.memory_space<vmem>>) attributes {dimension_semantics = [], scalar_prefetch = 0 : i64, scratch_operands = 0 : i64, tpu.core_type = #tpu.core_type<tc>} {
    %c0 = arith.constant 0 : index
    %c0_0 = arith.constant 0 : index
    %0 = vector.load %arg2[%c0, %c0_0] : memref<128x512xf32, #tpu.memory_space<vmem>>, vector<128x512xf32>
    %c0_1 = arith.constant 0 : index
    %c0_2 = arith.constant 0 : index
    %1 = vector.load %arg4[%c0_1, %c0_2] : memref<256x512xf32, #tpu.memory_space<vmem>>, vector<256x512xf32>
    %c0_3 = arith.constant 0 : index
    %c0_4 = arith.constant 0 : index
    %2 = vector.load %arg0[%c0_3, %c0_4] : memref<64x4xf32, #tpu.memory_space<vmem>>, vector<64x4xf32>
    %c0_5 = arith.constant 0 : index
    %c0_6 = arith.constant 0 : index
    %3 = vector.load %arg1[%c0_5, %c0_6] : memref<4x512xf32, #tpu.memory_space<vmem>>, vector<4x512xf32>
    %cst = arith.constant dense<0.000000e+00> : vector<64x512xf32>
    %4 = tpu.matmul %2, %3, %cst {dimension_numbers = #tpu.dot_dimension_numbers<[1], [0], [0], [1], [0, 0, 1, 1], [], []>} : vector<64x4xf32>, vector<4x512xf32>, vector<64x512xf32> -> vector<64x512xf32>
    %c0_7 = arith.constant 0 : index
    %c0_8 = arith.constant 0 : index
    %5 = vector.load %arg3[%c0_7, %c0_8] : memref<1x512xf32, #tpu.memory_space<vmem>>, vector<1x512xf32>
    %6 = vector.broadcast %5 : vector<1x512xf32> to vector<64x512xf32>
    %7 = arith.addf %4, %6 : vector<64x512xf32>
    %c0_9 = arith.constant 0 : index
    %c0_10 = arith.constant 0 : index
    %8 = vector.load %arg5[%c0_9, %c0_10] : memref<1x512xf32, #tpu.memory_space<vmem>>, vector<1x512xf32>
    %9 = vector.shape_cast %8 : vector<1x512xf32> to vector<1x512xf32>
    %10 = vector.broadcast %9 : vector<1x512xf32> to vector<8x512xf32>
    %cst_11 = arith.constant 0.000000e+00 : f32
    %11 = vector.broadcast %cst_11 : f32 to vector<8x128xf32>
    %12 = vector.extract_strided_slice %7 {offsets = [0, 0], sizes = [8, 512], strides = [1, 1]} : vector<64x512xf32> to vector<8x512xf32>
    %cst_12 = arith.constant dense<0.000000e+00> : vector<8x512xf32>
    %13 = tpu.matmul %11, %0, %cst_12 {dimension_numbers = #tpu.dot_dimension_numbers<[1], [0], [0], [1], [0, 0, 1, 1], [], []>} : vector<8x128xf32>, vector<128x512xf32>, vector<8x512xf32> -> vector<8x512xf32>
    %14 = arith.addf %12, %13 : vector<8x512xf32>
    %15 = vector.extract_strided_slice %14 {offsets = [0, 0], sizes = [8, 128], strides = [1, 1]} : vector<8x512xf32> to vector<8x128xf32>
    %16 = arith.negf %15 : vector<8x128xf32>
    %17 = math.exp %16 : vector<8x128xf32>
    %cst_13 = arith.constant 1.000000e+00 : f32
    %18 = vector.broadcast %cst_13 : f32 to vector<8x128xf32>
    %19 = arith.addf %18, %17 : vector<8x128xf32>
    %20 = arith.divf %18, %19 : vector<8x128xf32>
    %21 = vector.extract_strided_slice %14 {offsets = [0, 128], sizes = [8, 128], strides = [1, 1]} : vector<8x512xf32> to vector<8x128xf32>
    %22 = arith.negf %21 : vector<8x128xf32>
    %23 = math.exp %22 : vector<8x128xf32>
    %cst_14 = arith.constant 1.000000e+00 : f32
    %24 = vector.broadcast %cst_14 : f32 to vector<8x128xf32>
    %25 = arith.addf %24, %23 : vector<8x128xf32>
    %26 = arith.divf %24, %25 : vector<8x128xf32>
    %27 = vector.extract_strided_slice %14 {offsets = [0, 256], sizes = [8, 128], strides = [1, 1]} : vector<8x512xf32> to vector<8x128xf32>
    %28 = math.tanh %27 : vector<8x128xf32>
    %29 = vector.extract_strided_slice %14 {offsets = [0, 384], sizes = [8, 128], strides = [1, 1]} : vector<8x512xf32> to vector<8x128xf32>
    %30 = arith.negf %29 : vector<8x128xf32>
    %31 = math.exp %30 : vector<8x128xf32>
    %cst_15 = arith.constant 1.000000e+00 : f32
    %32 = vector.broadcast %cst_15 : f32 to vector<8x128xf32>
    %33 = arith.addf %32, %31 : vector<8x128xf32>
    %34 = arith.divf %32, %33 : vector<8x128xf32>
    %35 = arith.mulf %26, %11 : vector<8x128xf32>
    %36 = arith.mulf %20, %28 : vector<8x128xf32>
    %37 = arith.addf %35, %36 : vector<8x128xf32>
    %38 = math.tanh %37 : vector<8x128xf32>
    %39 = arith.mulf %34, %38 : vector<8x128xf32>
    %40 = tpu.concatenate %39, %11 in 1 : vector<8x128xf32>, vector<8x128xf32> -> vector<8x256xf32>
    %cst_16 = arith.constant dense<0.000000e+00> : vector<8x512xf32>
    %41 = tpu.matmul %40, %1, %cst_16 {dimension_numbers = #tpu.dot_dimension_numbers<[1], [0], [0], [1], [0, 0, 1, 1], [], []>} : vector<8x256xf32>, vector<256x512xf32>, vector<8x512xf32> -> vector<8x512xf32>
    %42 = arith.addf %41, %10 : vector<8x512xf32>
    %43 = vector.extract_strided_slice %42 {offsets = [0, 0], sizes = [8, 128], strides = [1, 1]} : vector<8x512xf32> to vector<8x128xf32>
    %44 = arith.negf %43 : vector<8x128xf32>
    %45 = math.exp %44 : vector<8x128xf32>
    %cst_17 = arith.constant 1.000000e+00 : f32
    %46 = vector.broadcast %cst_17 : f32 to vector<8x128xf32>
    %47 = arith.addf %46, %45 : vector<8x128xf32>
    %48 = arith.divf %46, %47 : vector<8x128xf32>
    %49 = vector.extract_strided_slice %42 {offsets = [0, 128], sizes = [8, 128], strides = [1, 1]} : vector<8x512xf32> to vector<8x128xf32>
    %50 = arith.negf %49 : vector<8x128xf32>
    %51 = math.exp %50 : vector<8x128xf32>
    %cst_18 = arith.constant 1.000000e+00 : f32
    %52 = vector.broadcast %cst_18 : f32 to vector<8x128xf32>
    %53 = arith.addf %52, %51 : vector<8x128xf32>
    %54 = arith.divf %52, %53 : vector<8x128xf32>
    %55 = vector.extract_strided_slice %42 {offsets = [0, 256], sizes = [8, 128], strides = [1, 1]} : vector<8x512xf32> to vector<8x128xf32>
    %56 = math.tanh %55 : vector<8x128xf32>
    %57 = vector.extract_strided_slice %42 {offsets = [0, 384], sizes = [8, 128], strides = [1, 1]} : vector<8x512xf32> to vector<8x128xf32>
    %58 = arith.negf %57 : vector<8x128xf32>
    %59 = math.exp %58 : vector<8x128xf32>
    %cst_19 = arith.constant 1.000000e+00 : f32
    %60 = vector.broadcast %cst_19 : f32 to vector<8x128xf32>
    %61 = arith.addf %60, %59 : vector<8x128xf32>
    %62 = arith.divf %60, %61 : vector<8x128xf32>
    %63 = arith.mulf %54, %11 : vector<8x128xf32>
    %64 = arith.mulf %48, %56 : vector<8x128xf32>
    %65 = arith.addf %63, %64 : vector<8x128xf32>
    %66 = math.tanh %65 : vector<8x128xf32>
    %67 = arith.mulf %62, %66 : vector<8x128xf32>
    %68 = vector.extract_strided_slice %7 {offsets = [8, 0], sizes = [8, 512], strides = [1, 1]} : vector<64x512xf32> to vector<8x512xf32>
    %cst_20 = arith.constant dense<0.000000e+00> : vector<8x512xf32>
    %69 = tpu.matmul %39, %0, %cst_20 {dimension_numbers = #tpu.dot_dimension_numbers<[1], [0], [0], [1], [0, 0, 1, 1], [], []>} : vector<8x128xf32>, vector<128x512xf32>, vector<8x512xf32> -> vector<8x512xf32>
    %70 = arith.addf %68, %69 : vector<8x512xf32>
    %71 = vector.extract_strided_slice %70 {offsets = [0, 0], sizes = [8, 128], strides = [1, 1]} : vector<8x512xf32> to vector<8x128xf32>
    %72 = arith.negf %71 : vector<8x128xf32>
    %73 = math.exp %72 : vector<8x128xf32>
    %cst_21 = arith.constant 1.000000e+00 : f32
    %74 = vector.broadcast %cst_21 : f32 to vector<8x128xf32>
    %75 = arith.addf %74, %73 : vector<8x128xf32>
    %76 = arith.divf %74, %75 : vector<8x128xf32>
    %77 = vector.extract_strided_slice %70 {offsets = [0, 128], sizes = [8, 128], strides = [1, 1]} : vector<8x512xf32> to vector<8x128xf32>
    %78 = arith.negf %77 : vector<8x128xf32>
    %79 = math.exp %78 : vector<8x128xf32>
    %cst_22 = arith.constant 1.000000e+00 : f32
    %80 = vector.broadcast %cst_22 : f32 to vector<8x128xf32>
    %81 = arith.addf %80, %79 : vector<8x128xf32>
    %82 = arith.divf %80, %81 : vector<8x128xf32>
    %83 = vector.extract_strided_slice %70 {offsets = [0, 256], sizes = [8, 128], strides = [1, 1]} : vector<8x512xf32> to vector<8x128xf32>
    %84 = math.tanh %83 : vector<8x128xf32>
    %85 = vector.extract_strided_slice %70 {offsets = [0, 384], sizes = [8, 128], strides = [1, 1]} : vector<8x512xf32> to vector<8x128xf32>
    %86 = arith.negf %85 : vector<8x128xf32>
    %87 = math.exp %86 : vector<8x128xf32>
    %cst_23 = arith.constant 1.000000e+00 : f32
    %88 = vector.broadcast %cst_23 : f32 to vector<8x128xf32>
    %89 = arith.addf %88, %87 : vector<8x128xf32>
    %90 = arith.divf %88, %89 : vector<8x128xf32>
    %91 = arith.mulf %82, %37 : vector<8x128xf32>
    %92 = arith.mulf %76, %84 : vector<8x128xf32>
    %93 = arith.addf %91, %92 : vector<8x128xf32>
    %94 = math.tanh %93 : vector<8x128xf32>
    %95 = arith.mulf %90, %94 : vector<8x128xf32>
    %96 = tpu.concatenate %95, %67 in 1 : vector<8x128xf32>, vector<8x128xf32> -> vector<8x256xf32>
    %cst_24 = arith.constant dense<0.000000e+00> : vector<8x512xf32>
    %97 = tpu.matmul %96, %1, %cst_24 {dimension_numbers = #tpu.dot_dimension_numbers<[1], [0], [0], [1], [0, 0, 1, 1], [], []>} : vector<8x256xf32>, vector<256x512xf32>, vector<8x512xf32> -> vector<8x512xf32>
    %98 = arith.addf %97, %10 : vector<8x512xf32>
    %99 = vector.extract_strided_slice %98 {offsets = [0, 0], sizes = [8, 128], strides = [1, 1]} : vector<8x512xf32> to vector<8x128xf32>
    %100 = arith.negf %99 : vector<8x128xf32>
    %101 = math.exp %100 : vector<8x128xf32>
    %cst_25 = arith.constant 1.000000e+00 : f32
    %102 = vector.broadcast %cst_25 : f32 to vector<8x128xf32>
    %103 = arith.addf %102, %101 : vector<8x128xf32>
    %104 = arith.divf %102, %103 : vector<8x128xf32>
    %105 = vector.extract_strided_slice %98 {offsets = [0, 128], sizes = [8, 128], strides = [1, 1]} : vector<8x512xf32> to vector<8x128xf32>
    %106 = arith.negf %105 : vector<8x128xf32>
    %107 = math.exp %106 : vector<8x128xf32>
    %cst_26 = arith.constant 1.000000e+00 : f32
    %108 = vector.broadcast %cst_26 : f32 to vector<8x128xf32>
    %109 = arith.addf %108, %107 : vector<8x128xf32>
    %110 = arith.divf %108, %109 : vector<8x128xf32>
    %111 = vector.extract_strided_slice %98 {offsets = [0, 256], sizes = [8, 128], strides = [1, 1]} : vector<8x512xf32> to vector<8x128xf32>
    %112 = math.tanh %111 : vector<8x128xf32>
    %113 = vector.extract_strided_slice %98 {offsets = [0, 384], sizes = [8, 128], strides = [1, 1]} : vector<8x512xf32> to vector<8x128xf32>
    %114 = arith.negf %113 : vector<8x128xf32>
    %115 = math.exp %114 : vector<8x128xf32>
    %cst_27 = arith.constant 1.000000e+00 : f32
    %116 = vector.broadcast %cst_27 : f32 to vector<8x128xf32>
    %117 = arith.addf %116, %115 : vector<8x128xf32>
    %118 = arith.divf %116, %117 : vector<8x128xf32>
    %119 = arith.mulf %110, %65 : vector<8x128xf32>
    %120 = arith.mulf %104, %112 : vector<8x128xf32>
    %121 = arith.addf %119, %120 : vector<8x128xf32>
    %122 = math.tanh %121 : vector<8x128xf32>
    %123 = arith.mulf %118, %122 : vector<8x128xf32>
    %124 = vector.extract_strided_slice %7 {offsets = [16, 0], sizes = [8, 512], strides = [1, 1]} : vector<64x512xf32> to vector<8x512xf32>
    %cst_28 = arith.constant dense<0.000000e+00> : vector<8x512xf32>
    %125 = tpu.matmul %95, %0, %cst_28 {dimension_numbers = #tpu.dot_dimension_numbers<[1], [0], [0], [1], [0, 0, 1, 1], [], []>} : vector<8x128xf32>, vector<128x512xf32>, vector<8x512xf32> -> vector<8x512xf32>
    %126 = arith.addf %124, %125 : vector<8x512xf32>
    %127 = vector.extract_strided_slice %126 {offsets = [0, 0], sizes = [8, 128], strides = [1, 1]} : vector<8x512xf32> to vector<8x128xf32>
    %128 = arith.negf %127 : vector<8x128xf32>
    %129 = math.exp %128 : vector<8x128xf32>
    %cst_29 = arith.constant 1.000000e+00 : f32
    %130 = vector.broadcast %cst_29 : f32 to vector<8x128xf32>
    %131 = arith.addf %130, %129 : vector<8x128xf32>
    %132 = arith.divf %130, %131 : vector<8x128xf32>
    %133 = vector.extract_strided_slice %126 {offsets = [0, 128], sizes = [8, 128], strides = [1, 1]} : vector<8x512xf32> to vector<8x128xf32>
    %134 = arith.negf %133 : vector<8x128xf32>
    %135 = math.exp %134 : vector<8x128xf32>
    %cst_30 = arith.constant 1.000000e+00 : f32
    %136 = vector.broadcast %cst_30 : f32 to vector<8x128xf32>
    %137 = arith.addf %136, %135 : vector<8x128xf32>
    %138 = arith.divf %136, %137 : vector<8x128xf32>
    %139 = vector.extract_strided_slice %126 {offsets = [0, 256], sizes = [8, 128], strides = [1, 1]} : vector<8x512xf32> to vector<8x128xf32>
    %140 = math.tanh %139 : vector<8x128xf32>
    %141 = vector.extract_strided_slice %126 {offsets = [0, 384], sizes = [8, 128], strides = [1, 1]} : vector<8x512xf32> to vector<8x128xf32>
    %142 = arith.negf %141 : vector<8x128xf32>
    %143 = math.exp %142 : vector<8x128xf32>
    %cst_31 = arith.constant 1.000000e+00 : f32
    %144 = vector.broadcast %cst_31 : f32 to vector<8x128xf32>
    %145 = arith.addf %144, %143 : vector<8x128xf32>
    %146 = arith.divf %144, %145 : vector<8x128xf32>
    %147 = arith.mulf %138, %93 : vector<8x128xf32>
    %148 = arith.mulf %132, %140 : vector<8x128xf32>
    %149 = arith.addf %147, %148 : vector<8x128xf32>
    %150 = math.tanh %149 : vector<8x128xf32>
    %151 = arith.mulf %146, %150 : vector<8x128xf32>
    %152 = tpu.concatenate %151, %123 in 1 : vector<8x128xf32>, vector<8x128xf32> -> vector<8x256xf32>
    %cst_32 = arith.constant dense<0.000000e+00> : vector<8x512xf32>
    %153 = tpu.matmul %152, %1, %cst_32 {dimension_numbers = #tpu.dot_dimension_numbers<[1], [0], [0], [1], [0, 0, 1, 1], [], []>} : vector<8x256xf32>, vector<256x512xf32>, vector<8x512xf32> -> vector<8x512xf32>
    %154 = arith.addf %153, %10 : vector<8x512xf32>
    %155 = vector.extract_strided_slice %154 {offsets = [0, 0], sizes = [8, 128], strides = [1, 1]} : vector<8x512xf32> to vector<8x128xf32>
    %156 = arith.negf %155 : vector<8x128xf32>
    %157 = math.exp %156 : vector<8x128xf32>
    %cst_33 = arith.constant 1.000000e+00 : f32
    %158 = vector.broadcast %cst_33 : f32 to vector<8x128xf32>
    %159 = arith.addf %158, %157 : vector<8x128xf32>
    %160 = arith.divf %158, %159 : vector<8x128xf32>
    %161 = vector.extract_strided_slice %154 {offsets = [0, 128], sizes = [8, 128], strides = [1, 1]} : vector<8x512xf32> to vector<8x128xf32>
    %162 = arith.negf %161 : vector<8x128xf32>
    %163 = math.exp %162 : vector<8x128xf32>
    %cst_34 = arith.constant 1.000000e+00 : f32
    %164 = vector.broadcast %cst_34 : f32 to vector<8x128xf32>
    %165 = arith.addf %164, %163 : vector<8x128xf32>
    %166 = arith.divf %164, %165 : vector<8x128xf32>
    %167 = vector.extract_strided_slice %154 {offsets = [0, 256], sizes = [8, 128], strides = [1, 1]} : vector<8x512xf32> to vector<8x128xf32>
    %168 = math.tanh %167 : vector<8x128xf32>
    %169 = vector.extract_strided_slice %154 {offsets = [0, 384], sizes = [8, 128], strides = [1, 1]} : vector<8x512xf32> to vector<8x128xf32>
    %170 = arith.negf %169 : vector<8x128xf32>
    %171 = math.exp %170 : vector<8x128xf32>
    %cst_35 = arith.constant 1.000000e+00 : f32
    %172 = vector.broadcast %cst_35 : f32 to vector<8x128xf32>
    %173 = arith.addf %172, %171 : vector<8x128xf32>
    %174 = arith.divf %172, %173 : vector<8x128xf32>
    %175 = arith.mulf %166, %121 : vector<8x128xf32>
    %176 = arith.mulf %160, %168 : vector<8x128xf32>
    %177 = arith.addf %175, %176 : vector<8x128xf32>
    %178 = math.tanh %177 : vector<8x128xf32>
    %179 = arith.mulf %174, %178 : vector<8x128xf32>
    %180 = vector.extract_strided_slice %7 {offsets = [24, 0], sizes = [8, 512], strides = [1, 1]} : vector<64x512xf32> to vector<8x512xf32>
    %cst_36 = arith.constant dense<0.000000e+00> : vector<8x512xf32>
    %181 = tpu.matmul %151, %0, %cst_36 {dimension_numbers = #tpu.dot_dimension_numbers<[1], [0], [0], [1], [0, 0, 1, 1], [], []>} : vector<8x128xf32>, vector<128x512xf32>, vector<8x512xf32> -> vector<8x512xf32>
    %182 = arith.addf %180, %181 : vector<8x512xf32>
    %183 = vector.extract_strided_slice %182 {offsets = [0, 0], sizes = [8, 128], strides = [1, 1]} : vector<8x512xf32> to vector<8x128xf32>
    %184 = arith.negf %183 : vector<8x128xf32>
    %185 = math.exp %184 : vector<8x128xf32>
    %cst_37 = arith.constant 1.000000e+00 : f32
    %186 = vector.broadcast %cst_37 : f32 to vector<8x128xf32>
    %187 = arith.addf %186, %185 : vector<8x128xf32>
    %188 = arith.divf %186, %187 : vector<8x128xf32>
    %189 = vector.extract_strided_slice %182 {offsets = [0, 128], sizes = [8, 128], strides = [1, 1]} : vector<8x512xf32> to vector<8x128xf32>
    %190 = arith.negf %189 : vector<8x128xf32>
    %191 = math.exp %190 : vector<8x128xf32>
    %cst_38 = arith.constant 1.000000e+00 : f32
    %192 = vector.broadcast %cst_38 : f32 to vector<8x128xf32>
    %193 = arith.addf %192, %191 : vector<8x128xf32>
    %194 = arith.divf %192, %193 : vector<8x128xf32>
    %195 = vector.extract_strided_slice %182 {offsets = [0, 256], sizes = [8, 128], strides = [1, 1]} : vector<8x512xf32> to vector<8x128xf32>
    %196 = math.tanh %195 : vector<8x128xf32>
    %197 = vector.extract_strided_slice %182 {offsets = [0, 384], sizes = [8, 128], strides = [1, 1]} : vector<8x512xf32> to vector<8x128xf32>
    %198 = arith.negf %197 : vector<8x128xf32>
    %199 = math.exp %198 : vector<8x128xf32>
    %cst_39 = arith.constant 1.000000e+00 : f32
    %200 = vector.broadcast %cst_39 : f32 to vector<8x128xf32>
    %201 = arith.addf %200, %199 : vector<8x128xf32>
    %202 = arith.divf %200, %201 : vector<8x128xf32>
    %203 = arith.mulf %194, %149 : vector<8x128xf32>
    %204 = arith.mulf %188, %196 : vector<8x128xf32>
    %205 = arith.addf %203, %204 : vector<8x128xf32>
    %206 = math.tanh %205 : vector<8x128xf32>
    %207 = arith.mulf %202, %206 : vector<8x128xf32>
    %208 = tpu.concatenate %207, %179 in 1 : vector<8x128xf32>, vector<8x128xf32> -> vector<8x256xf32>
    %cst_40 = arith.constant dense<0.000000e+00> : vector<8x512xf32>
    %209 = tpu.matmul %208, %1, %cst_40 {dimension_numbers = #tpu.dot_dimension_numbers<[1], [0], [0], [1], [0, 0, 1, 1], [], []>} : vector<8x256xf32>, vector<256x512xf32>, vector<8x512xf32> -> vector<8x512xf32>
    %210 = arith.addf %209, %10 : vector<8x512xf32>
    %211 = vector.extract_strided_slice %210 {offsets = [0, 0], sizes = [8, 128], strides = [1, 1]} : vector<8x512xf32> to vector<8x128xf32>
    %212 = arith.negf %211 : vector<8x128xf32>
    %213 = math.exp %212 : vector<8x128xf32>
    %cst_41 = arith.constant 1.000000e+00 : f32
    %214 = vector.broadcast %cst_41 : f32 to vector<8x128xf32>
    %215 = arith.addf %214, %213 : vector<8x128xf32>
    %216 = arith.divf %214, %215 : vector<8x128xf32>
    %217 = vector.extract_strided_slice %210 {offsets = [0, 128], sizes = [8, 128], strides = [1, 1]} : vector<8x512xf32> to vector<8x128xf32>
    %218 = arith.negf %217 : vector<8x128xf32>
    %219 = math.exp %218 : vector<8x128xf32>
    %cst_42 = arith.constant 1.000000e+00 : f32
    %220 = vector.broadcast %cst_42 : f32 to vector<8x128xf32>
    %221 = arith.addf %220, %219 : vector<8x128xf32>
    %222 = arith.divf %220, %221 : vector<8x128xf32>
    %223 = vector.extract_strided_slice %210 {offsets = [0, 256], sizes = [8, 128], strides = [1, 1]} : vector<8x512xf32> to vector<8x128xf32>
    %224 = math.tanh %223 : vector<8x128xf32>
    %225 = vector.extract_strided_slice %210 {offsets = [0, 384], sizes = [8, 128], strides = [1, 1]} : vector<8x512xf32> to vector<8x128xf32>
    %226 = arith.negf %225 : vector<8x128xf32>
    %227 = math.exp %226 : vector<8x128xf32>
    %cst_43 = arith.constant 1.000000e+00 : f32
    %228 = vector.broadcast %cst_43 : f32 to vector<8x128xf32>
    %229 = arith.addf %228, %227 : vector<8x128xf32>
    %230 = arith.divf %228, %229 : vector<8x128xf32>
    %231 = arith.mulf %222, %177 : vector<8x128xf32>
    %232 = arith.mulf %216, %224 : vector<8x128xf32>
    %233 = arith.addf %231, %232 : vector<8x128xf32>
    %234 = math.tanh %233 : vector<8x128xf32>
    %235 = arith.mulf %230, %234 : vector<8x128xf32>
    %236 = vector.extract_strided_slice %7 {offsets = [32, 0], sizes = [8, 512], strides = [1, 1]} : vector<64x512xf32> to vector<8x512xf32>
    %cst_44 = arith.constant dense<0.000000e+00> : vector<8x512xf32>
    %237 = tpu.matmul %207, %0, %cst_44 {dimension_numbers = #tpu.dot_dimension_numbers<[1], [0], [0], [1], [0, 0, 1, 1], [], []>} : vector<8x128xf32>, vector<128x512xf32>, vector<8x512xf32> -> vector<8x512xf32>
    %238 = arith.addf %236, %237 : vector<8x512xf32>
    %239 = vector.extract_strided_slice %238 {offsets = [0, 0], sizes = [8, 128], strides = [1, 1]} : vector<8x512xf32> to vector<8x128xf32>
    %240 = arith.negf %239 : vector<8x128xf32>
    %241 = math.exp %240 : vector<8x128xf32>
    %cst_45 = arith.constant 1.000000e+00 : f32
    %242 = vector.broadcast %cst_45 : f32 to vector<8x128xf32>
    %243 = arith.addf %242, %241 : vector<8x128xf32>
    %244 = arith.divf %242, %243 : vector<8x128xf32>
    %245 = vector.extract_strided_slice %238 {offsets = [0, 128], sizes = [8, 128], strides = [1, 1]} : vector<8x512xf32> to vector<8x128xf32>
    %246 = arith.negf %245 : vector<8x128xf32>
    %247 = math.exp %246 : vector<8x128xf32>
    %cst_46 = arith.constant 1.000000e+00 : f32
    %248 = vector.broadcast %cst_46 : f32 to vector<8x128xf32>
    %249 = arith.addf %248, %247 : vector<8x128xf32>
    %250 = arith.divf %248, %249 : vector<8x128xf32>
    %251 = vector.extract_strided_slice %238 {offsets = [0, 256], sizes = [8, 128], strides = [1, 1]} : vector<8x512xf32> to vector<8x128xf32>
    %252 = math.tanh %251 : vector<8x128xf32>
    %253 = vector.extract_strided_slice %238 {offsets = [0, 384], sizes = [8, 128], strides = [1, 1]} : vector<8x512xf32> to vector<8x128xf32>
    %254 = arith.negf %253 : vector<8x128xf32>
    %255 = math.exp %254 : vector<8x128xf32>
    %cst_47 = arith.constant 1.000000e+00 : f32
    %256 = vector.broadcast %cst_47 : f32 to vector<8x128xf32>
    %257 = arith.addf %256, %255 : vector<8x128xf32>
    %258 = arith.divf %256, %257 : vector<8x128xf32>
    %259 = arith.mulf %250, %205 : vector<8x128xf32>
    %260 = arith.mulf %244, %252 : vector<8x128xf32>
    %261 = arith.addf %259, %260 : vector<8x128xf32>
    %262 = math.tanh %261 : vector<8x128xf32>
    %263 = arith.mulf %258, %262 : vector<8x128xf32>
    %264 = tpu.concatenate %263, %235 in 1 : vector<8x128xf32>, vector<8x128xf32> -> vector<8x256xf32>
    %cst_48 = arith.constant dense<0.000000e+00> : vector<8x512xf32>
    %265 = tpu.matmul %264, %1, %cst_48 {dimension_numbers = #tpu.dot_dimension_numbers<[1], [0], [0], [1], [0, 0, 1, 1], [], []>} : vector<8x256xf32>, vector<256x512xf32>, vector<8x512xf32> -> vector<8x512xf32>
    %266 = arith.addf %265, %10 : vector<8x512xf32>
    %267 = vector.extract_strided_slice %266 {offsets = [0, 0], sizes = [8, 128], strides = [1, 1]} : vector<8x512xf32> to vector<8x128xf32>
    %268 = arith.negf %267 : vector<8x128xf32>
    %269 = math.exp %268 : vector<8x128xf32>
    %cst_49 = arith.constant 1.000000e+00 : f32
    %270 = vector.broadcast %cst_49 : f32 to vector<8x128xf32>
    %271 = arith.addf %270, %269 : vector<8x128xf32>
    %272 = arith.divf %270, %271 : vector<8x128xf32>
    %273 = vector.extract_strided_slice %266 {offsets = [0, 128], sizes = [8, 128], strides = [1, 1]} : vector<8x512xf32> to vector<8x128xf32>
    %274 = arith.negf %273 : vector<8x128xf32>
    %275 = math.exp %274 : vector<8x128xf32>
    %cst_50 = arith.constant 1.000000e+00 : f32
    %276 = vector.broadcast %cst_50 : f32 to vector<8x128xf32>
    %277 = arith.addf %276, %275 : vector<8x128xf32>
    %278 = arith.divf %276, %277 : vector<8x128xf32>
    %279 = vector.extract_strided_slice %266 {offsets = [0, 256], sizes = [8, 128], strides = [1, 1]} : vector<8x512xf32> to vector<8x128xf32>
    %280 = math.tanh %279 : vector<8x128xf32>
    %281 = vector.extract_strided_slice %266 {offsets = [0, 384], sizes = [8, 128], strides = [1, 1]} : vector<8x512xf32> to vector<8x128xf32>
    %282 = arith.negf %281 : vector<8x128xf32>
    %283 = math.exp %282 : vector<8x128xf32>
    %cst_51 = arith.constant 1.000000e+00 : f32
    %284 = vector.broadcast %cst_51 : f32 to vector<8x128xf32>
    %285 = arith.addf %284, %283 : vector<8x128xf32>
    %286 = arith.divf %284, %285 : vector<8x128xf32>
    %287 = arith.mulf %278, %233 : vector<8x128xf32>
    %288 = arith.mulf %272, %280 : vector<8x128xf32>
    %289 = arith.addf %287, %288 : vector<8x128xf32>
    %290 = math.tanh %289 : vector<8x128xf32>
    %291 = arith.mulf %286, %290 : vector<8x128xf32>
    %292 = vector.extract_strided_slice %7 {offsets = [40, 0], sizes = [8, 512], strides = [1, 1]} : vector<64x512xf32> to vector<8x512xf32>
    %cst_52 = arith.constant dense<0.000000e+00> : vector<8x512xf32>
    %293 = tpu.matmul %263, %0, %cst_52 {dimension_numbers = #tpu.dot_dimension_numbers<[1], [0], [0], [1], [0, 0, 1, 1], [], []>} : vector<8x128xf32>, vector<128x512xf32>, vector<8x512xf32> -> vector<8x512xf32>
    %294 = arith.addf %292, %293 : vector<8x512xf32>
    %295 = vector.extract_strided_slice %294 {offsets = [0, 0], sizes = [8, 128], strides = [1, 1]} : vector<8x512xf32> to vector<8x128xf32>
    %296 = arith.negf %295 : vector<8x128xf32>
    %297 = math.exp %296 : vector<8x128xf32>
    %cst_53 = arith.constant 1.000000e+00 : f32
    %298 = vector.broadcast %cst_53 : f32 to vector<8x128xf32>
    %299 = arith.addf %298, %297 : vector<8x128xf32>
    %300 = arith.divf %298, %299 : vector<8x128xf32>
    %301 = vector.extract_strided_slice %294 {offsets = [0, 128], sizes = [8, 128], strides = [1, 1]} : vector<8x512xf32> to vector<8x128xf32>
    %302 = arith.negf %301 : vector<8x128xf32>
    %303 = math.exp %302 : vector<8x128xf32>
    %cst_54 = arith.constant 1.000000e+00 : f32
    %304 = vector.broadcast %cst_54 : f32 to vector<8x128xf32>
    %305 = arith.addf %304, %303 : vector<8x128xf32>
    %306 = arith.divf %304, %305 : vector<8x128xf32>
    %307 = vector.extract_strided_slice %294 {offsets = [0, 256], sizes = [8, 128], strides = [1, 1]} : vector<8x512xf32> to vector<8x128xf32>
    %308 = math.tanh %307 : vector<8x128xf32>
    %309 = vector.extract_strided_slice %294 {offsets = [0, 384], sizes = [8, 128], strides = [1, 1]} : vector<8x512xf32> to vector<8x128xf32>
    %310 = arith.negf %309 : vector<8x128xf32>
    %311 = math.exp %310 : vector<8x128xf32>
    %cst_55 = arith.constant 1.000000e+00 : f32
    %312 = vector.broadcast %cst_55 : f32 to vector<8x128xf32>
    %313 = arith.addf %312, %311 : vector<8x128xf32>
    %314 = arith.divf %312, %313 : vector<8x128xf32>
    %315 = arith.mulf %306, %261 : vector<8x128xf32>
    %316 = arith.mulf %300, %308 : vector<8x128xf32>
    %317 = arith.addf %315, %316 : vector<8x128xf32>
    %318 = math.tanh %317 : vector<8x128xf32>
    %319 = arith.mulf %314, %318 : vector<8x128xf32>
    %320 = tpu.concatenate %319, %291 in 1 : vector<8x128xf32>, vector<8x128xf32> -> vector<8x256xf32>
    %cst_56 = arith.constant dense<0.000000e+00> : vector<8x512xf32>
    %321 = tpu.matmul %320, %1, %cst_56 {dimension_numbers = #tpu.dot_dimension_numbers<[1], [0], [0], [1], [0, 0, 1, 1], [], []>} : vector<8x256xf32>, vector<256x512xf32>, vector<8x512xf32> -> vector<8x512xf32>
    %322 = arith.addf %321, %10 : vector<8x512xf32>
    %323 = vector.extract_strided_slice %322 {offsets = [0, 0], sizes = [8, 128], strides = [1, 1]} : vector<8x512xf32> to vector<8x128xf32>
    %324 = arith.negf %323 : vector<8x128xf32>
    %325 = math.exp %324 : vector<8x128xf32>
    %cst_57 = arith.constant 1.000000e+00 : f32
    %326 = vector.broadcast %cst_57 : f32 to vector<8x128xf32>
    %327 = arith.addf %326, %325 : vector<8x128xf32>
    %328 = arith.divf %326, %327 : vector<8x128xf32>
    %329 = vector.extract_strided_slice %322 {offsets = [0, 128], sizes = [8, 128], strides = [1, 1]} : vector<8x512xf32> to vector<8x128xf32>
    %330 = arith.negf %329 : vector<8x128xf32>
    %331 = math.exp %330 : vector<8x128xf32>
    %cst_58 = arith.constant 1.000000e+00 : f32
    %332 = vector.broadcast %cst_58 : f32 to vector<8x128xf32>
    %333 = arith.addf %332, %331 : vector<8x128xf32>
    %334 = arith.divf %332, %333 : vector<8x128xf32>
    %335 = vector.extract_strided_slice %322 {offsets = [0, 256], sizes = [8, 128], strides = [1, 1]} : vector<8x512xf32> to vector<8x128xf32>
    %336 = math.tanh %335 : vector<8x128xf32>
    %337 = vector.extract_strided_slice %322 {offsets = [0, 384], sizes = [8, 128], strides = [1, 1]} : vector<8x512xf32> to vector<8x128xf32>
    %338 = arith.negf %337 : vector<8x128xf32>
    %339 = math.exp %338 : vector<8x128xf32>
    %cst_59 = arith.constant 1.000000e+00 : f32
    %340 = vector.broadcast %cst_59 : f32 to vector<8x128xf32>
    %341 = arith.addf %340, %339 : vector<8x128xf32>
    %342 = arith.divf %340, %341 : vector<8x128xf32>
    %343 = arith.mulf %334, %289 : vector<8x128xf32>
    %344 = arith.mulf %328, %336 : vector<8x128xf32>
    %345 = arith.addf %343, %344 : vector<8x128xf32>
    %346 = math.tanh %345 : vector<8x128xf32>
    %347 = arith.mulf %342, %346 : vector<8x128xf32>
    %348 = vector.extract_strided_slice %7 {offsets = [48, 0], sizes = [8, 512], strides = [1, 1]} : vector<64x512xf32> to vector<8x512xf32>
    %cst_60 = arith.constant dense<0.000000e+00> : vector<8x512xf32>
    %349 = tpu.matmul %319, %0, %cst_60 {dimension_numbers = #tpu.dot_dimension_numbers<[1], [0], [0], [1], [0, 0, 1, 1], [], []>} : vector<8x128xf32>, vector<128x512xf32>, vector<8x512xf32> -> vector<8x512xf32>
    %350 = arith.addf %348, %349 : vector<8x512xf32>
    %351 = vector.extract_strided_slice %350 {offsets = [0, 0], sizes = [8, 128], strides = [1, 1]} : vector<8x512xf32> to vector<8x128xf32>
    %352 = arith.negf %351 : vector<8x128xf32>
    %353 = math.exp %352 : vector<8x128xf32>
    %cst_61 = arith.constant 1.000000e+00 : f32
    %354 = vector.broadcast %cst_61 : f32 to vector<8x128xf32>
    %355 = arith.addf %354, %353 : vector<8x128xf32>
    %356 = arith.divf %354, %355 : vector<8x128xf32>
    %357 = vector.extract_strided_slice %350 {offsets = [0, 128], sizes = [8, 128], strides = [1, 1]} : vector<8x512xf32> to vector<8x128xf32>
    %358 = arith.negf %357 : vector<8x128xf32>
    %359 = math.exp %358 : vector<8x128xf32>
    %cst_62 = arith.constant 1.000000e+00 : f32
    %360 = vector.broadcast %cst_62 : f32 to vector<8x128xf32>
    %361 = arith.addf %360, %359 : vector<8x128xf32>
    %362 = arith.divf %360, %361 : vector<8x128xf32>
    %363 = vector.extract_strided_slice %350 {offsets = [0, 256], sizes = [8, 128], strides = [1, 1]} : vector<8x512xf32> to vector<8x128xf32>
    %364 = math.tanh %363 : vector<8x128xf32>
    %365 = vector.extract_strided_slice %350 {offsets = [0, 384], sizes = [8, 128], strides = [1, 1]} : vector<8x512xf32> to vector<8x128xf32>
    %366 = arith.negf %365 : vector<8x128xf32>
    %367 = math.exp %366 : vector<8x128xf32>
    %cst_63 = arith.constant 1.000000e+00 : f32
    %368 = vector.broadcast %cst_63 : f32 to vector<8x128xf32>
    %369 = arith.addf %368, %367 : vector<8x128xf32>
    %370 = arith.divf %368, %369 : vector<8x128xf32>
    %371 = arith.mulf %362, %317 : vector<8x128xf32>
    %372 = arith.mulf %356, %364 : vector<8x128xf32>
    %373 = arith.addf %371, %372 : vector<8x128xf32>
    %374 = math.tanh %373 : vector<8x128xf32>
    %375 = arith.mulf %370, %374 : vector<8x128xf32>
    %376 = tpu.concatenate %375, %347 in 1 : vector<8x128xf32>, vector<8x128xf32> -> vector<8x256xf32>
    %cst_64 = arith.constant dense<0.000000e+00> : vector<8x512xf32>
    %377 = tpu.matmul %376, %1, %cst_64 {dimension_numbers = #tpu.dot_dimension_numbers<[1], [0], [0], [1], [0, 0, 1, 1], [], []>} : vector<8x256xf32>, vector<256x512xf32>, vector<8x512xf32> -> vector<8x512xf32>
    %378 = arith.addf %377, %10 : vector<8x512xf32>
    %379 = vector.extract_strided_slice %378 {offsets = [0, 0], sizes = [8, 128], strides = [1, 1]} : vector<8x512xf32> to vector<8x128xf32>
    %380 = arith.negf %379 : vector<8x128xf32>
    %381 = math.exp %380 : vector<8x128xf32>
    %cst_65 = arith.constant 1.000000e+00 : f32
    %382 = vector.broadcast %cst_65 : f32 to vector<8x128xf32>
    %383 = arith.addf %382, %381 : vector<8x128xf32>
    %384 = arith.divf %382, %383 : vector<8x128xf32>
    %385 = vector.extract_strided_slice %378 {offsets = [0, 128], sizes = [8, 128], strides = [1, 1]} : vector<8x512xf32> to vector<8x128xf32>
    %386 = arith.negf %385 : vector<8x128xf32>
    %387 = math.exp %386 : vector<8x128xf32>
    %cst_66 = arith.constant 1.000000e+00 : f32
    %388 = vector.broadcast %cst_66 : f32 to vector<8x128xf32>
    %389 = arith.addf %388, %387 : vector<8x128xf32>
    %390 = arith.divf %388, %389 : vector<8x128xf32>
    %391 = vector.extract_strided_slice %378 {offsets = [0, 256], sizes = [8, 128], strides = [1, 1]} : vector<8x512xf32> to vector<8x128xf32>
    %392 = math.tanh %391 : vector<8x128xf32>
    %393 = vector.extract_strided_slice %378 {offsets = [0, 384], sizes = [8, 128], strides = [1, 1]} : vector<8x512xf32> to vector<8x128xf32>
    %394 = arith.negf %393 : vector<8x128xf32>
    %395 = math.exp %394 : vector<8x128xf32>
    %cst_67 = arith.constant 1.000000e+00 : f32
    %396 = vector.broadcast %cst_67 : f32 to vector<8x128xf32>
    %397 = arith.addf %396, %395 : vector<8x128xf32>
    %398 = arith.divf %396, %397 : vector<8x128xf32>
    %399 = arith.mulf %390, %345 : vector<8x128xf32>
    %400 = arith.mulf %384, %392 : vector<8x128xf32>
    %401 = arith.addf %399, %400 : vector<8x128xf32>
    %402 = math.tanh %401 : vector<8x128xf32>
    %403 = arith.mulf %398, %402 : vector<8x128xf32>
    %404 = vector.extract_strided_slice %7 {offsets = [56, 0], sizes = [8, 512], strides = [1, 1]} : vector<64x512xf32> to vector<8x512xf32>
    %cst_68 = arith.constant dense<0.000000e+00> : vector<8x512xf32>
    %405 = tpu.matmul %375, %0, %cst_68 {dimension_numbers = #tpu.dot_dimension_numbers<[1], [0], [0], [1], [0, 0, 1, 1], [], []>} : vector<8x128xf32>, vector<128x512xf32>, vector<8x512xf32> -> vector<8x512xf32>
    %406 = arith.addf %404, %405 : vector<8x512xf32>
    %407 = vector.extract_strided_slice %406 {offsets = [0, 0], sizes = [8, 128], strides = [1, 1]} : vector<8x512xf32> to vector<8x128xf32>
    %408 = arith.negf %407 : vector<8x128xf32>
    %409 = math.exp %408 : vector<8x128xf32>
    %cst_69 = arith.constant 1.000000e+00 : f32
    %410 = vector.broadcast %cst_69 : f32 to vector<8x128xf32>
    %411 = arith.addf %410, %409 : vector<8x128xf32>
    %412 = arith.divf %410, %411 : vector<8x128xf32>
    %413 = vector.extract_strided_slice %406 {offsets = [0, 128], sizes = [8, 128], strides = [1, 1]} : vector<8x512xf32> to vector<8x128xf32>
    %414 = arith.negf %413 : vector<8x128xf32>
    %415 = math.exp %414 : vector<8x128xf32>
    %cst_70 = arith.constant 1.000000e+00 : f32
    %416 = vector.broadcast %cst_70 : f32 to vector<8x128xf32>
    %417 = arith.addf %416, %415 : vector<8x128xf32>
    %418 = arith.divf %416, %417 : vector<8x128xf32>
    %419 = vector.extract_strided_slice %406 {offsets = [0, 256], sizes = [8, 128], strides = [1, 1]} : vector<8x512xf32> to vector<8x128xf32>
    %420 = math.tanh %419 : vector<8x128xf32>
    %421 = vector.extract_strided_slice %406 {offsets = [0, 384], sizes = [8, 128], strides = [1, 1]} : vector<8x512xf32> to vector<8x128xf32>
    %422 = arith.negf %421 : vector<8x128xf32>
    %423 = math.exp %422 : vector<8x128xf32>
    %cst_71 = arith.constant 1.000000e+00 : f32
    %424 = vector.broadcast %cst_71 : f32 to vector<8x128xf32>
    %425 = arith.addf %424, %423 : vector<8x128xf32>
    %426 = arith.divf %424, %425 : vector<8x128xf32>
    %427 = arith.mulf %418, %373 : vector<8x128xf32>
    %428 = arith.mulf %412, %420 : vector<8x128xf32>
    %429 = arith.addf %427, %428 : vector<8x128xf32>
    %430 = math.tanh %429 : vector<8x128xf32>
    %431 = arith.mulf %426, %430 : vector<8x128xf32>
    %432 = tpu.concatenate %431, %403 in 1 : vector<8x128xf32>, vector<8x128xf32> -> vector<8x256xf32>
    %cst_72 = arith.constant dense<0.000000e+00> : vector<8x512xf32>
    %433 = tpu.matmul %432, %1, %cst_72 {dimension_numbers = #tpu.dot_dimension_numbers<[1], [0], [0], [1], [0, 0, 1, 1], [], []>} : vector<8x256xf32>, vector<256x512xf32>, vector<8x512xf32> -> vector<8x512xf32>
    %434 = arith.addf %433, %10 : vector<8x512xf32>
    %435 = vector.extract_strided_slice %434 {offsets = [0, 0], sizes = [8, 128], strides = [1, 1]} : vector<8x512xf32> to vector<8x128xf32>
    %436 = arith.negf %435 : vector<8x128xf32>
    %437 = math.exp %436 : vector<8x128xf32>
    %cst_73 = arith.constant 1.000000e+00 : f32
    %438 = vector.broadcast %cst_73 : f32 to vector<8x128xf32>
    %439 = arith.addf %438, %437 : vector<8x128xf32>
    %440 = arith.divf %438, %439 : vector<8x128xf32>
    %441 = vector.extract_strided_slice %434 {offsets = [0, 128], sizes = [8, 128], strides = [1, 1]} : vector<8x512xf32> to vector<8x128xf32>
    %442 = arith.negf %441 : vector<8x128xf32>
    %443 = math.exp %442 : vector<8x128xf32>
    %cst_74 = arith.constant 1.000000e+00 : f32
    %444 = vector.broadcast %cst_74 : f32 to vector<8x128xf32>
    %445 = arith.addf %444, %443 : vector<8x128xf32>
    %446 = arith.divf %444, %445 : vector<8x128xf32>
    %447 = vector.extract_strided_slice %434 {offsets = [0, 256], sizes = [8, 128], strides = [1, 1]} : vector<8x512xf32> to vector<8x128xf32>
    %448 = math.tanh %447 : vector<8x128xf32>
    %449 = vector.extract_strided_slice %434 {offsets = [0, 384], sizes = [8, 128], strides = [1, 1]} : vector<8x512xf32> to vector<8x128xf32>
    %450 = arith.negf %449 : vector<8x128xf32>
    %451 = math.exp %450 : vector<8x128xf32>
    %cst_75 = arith.constant 1.000000e+00 : f32
    %452 = vector.broadcast %cst_75 : f32 to vector<8x128xf32>
    %453 = arith.addf %452, %451 : vector<8x128xf32>
    %454 = arith.divf %452, %453 : vector<8x128xf32>
    %455 = arith.mulf %446, %401 : vector<8x128xf32>
    %456 = arith.mulf %440, %448 : vector<8x128xf32>
    %457 = arith.addf %455, %456 : vector<8x128xf32>
    %458 = math.tanh %457 : vector<8x128xf32>
    %459 = arith.mulf %454, %458 : vector<8x128xf32>
    %460 = tpu.concatenate %67, %123, %179, %235, %291, %347, %403, %459 in 1 : vector<8x128xf32>, vector<8x128xf32>, vector<8x128xf32>, vector<8x128xf32>, vector<8x128xf32>, vector<8x128xf32>, vector<8x128xf32>, vector<8x128xf32> -> vector<8x1024xf32>
    %c0_76 = arith.constant 0 : index
    %c0_77 = arith.constant 0 : index
    %461 = vector.load %arg6[%c0_76, %c0_77] : memref<1024x768xf32, #tpu.memory_space<vmem>>, vector<1024x768xf32>
    %cst_78 = arith.constant dense<0.000000e+00> : vector<8x768xf32>
    %462 = tpu.matmul %460, %461, %cst_78 {dimension_numbers = #tpu.dot_dimension_numbers<[1], [0], [0], [1], [0, 0, 1, 1], [], []>} : vector<8x1024xf32>, vector<1024x768xf32>, vector<8x768xf32> -> vector<8x768xf32>
    %c0_79 = arith.constant 0 : index
    %c0_80 = arith.constant 0 : index
    %463 = vector.load %arg7[%c0_79, %c0_80] : memref<1x768xf32, #tpu.memory_space<vmem>>, vector<1x768xf32>
    %464 = vector.broadcast %463 : vector<1x768xf32> to vector<8x768xf32>
    %465 = arith.addf %462, %464 : vector<8x768xf32>
    %c0_81 = arith.constant 0 : index
    %c0_82 = arith.constant 0 : index
    %466 = vector.load %arg8[%c0_81, %c0_82] : memref<768x128xf32, #tpu.memory_space<vmem>>, vector<768x128xf32>
    %cst_83 = arith.constant dense<0.000000e+00> : vector<8x128xf32>
    %467 = tpu.matmul %465, %466, %cst_83 {dimension_numbers = #tpu.dot_dimension_numbers<[1], [0], [0], [1], [0, 0, 1, 1], [], []>} : vector<8x768xf32>, vector<768x128xf32>, vector<8x128xf32> -> vector<8x128xf32>
    %c0_84 = arith.constant 0 : index
    %c0_85 = arith.constant 0 : index
    %468 = vector.load %arg9[%c0_84, %c0_85] : memref<1x128xf32, #tpu.memory_space<vmem>>, vector<1x128xf32>
    %469 = vector.broadcast %468 : vector<1x128xf32> to vector<8x128xf32>
    %470 = arith.addf %467, %469 : vector<8x128xf32>
    %c0_86 = arith.constant 0 : index
    %c0_87 = arith.constant 0 : index
    %471 = vector.load %arg10[%c0_86, %c0_87] : memref<8x128xf32, #tpu.memory_space<vmem>>, vector<8x128xf32>
    tpu.vector_store %arg10[%c0_86, %c0_87], %470 {strides = array<i32>} : memref<8x128xf32, #tpu.memory_space<vmem>>, vector<8x128xf32>,
    return
  }
}

</mosaic_0001>

<bundles_post_ra>
// kernel: seira_net_forward.1
= control target key start
LH: loop header
LB: loop body
LE: loop exit
PB: predicated region body
PF: predicated region fallthrough
CT: control target
= control target key end

     0   :  { %15 = vsyncpa [#allocation3], 0  ;;  %s10073_s0 = inlined_call_operand.vmem [shape: f32[64,4], index: 0, kind: input, shape index: {}]   ;;  %s10074_s1 = inlined_call_operand.hbm [shape: f32[4,512], index: 1, kind: input, shape index: {}]   ;;  %s10075_s2 = inlined_call_operand.hbm [shape: f32[128,512], index: 2, kind: input, shape index: {}]   ;;  %s10076_s3 = inlined_call_operand.hbm [shape: f32[1,512], index: 3, kind: input, shape index: {}]   ;;  %s10077_s4 = inlined_call_operand.hbm [shape: f32[256,512], index: 4, kind: input, shape index: {}]   ;;  %s10078_s5 = inlined_call_operand.hbm [shape: f32[1,512], index: 5, kind: input, shape index: {}]   ;;  %s10079_s6 = inlined_call_operand.hbm [shape: f32[1024,768], index: 6, kind: input, shape index: {}]   ;;  %s10080_s7 = inlined_call_operand.hbm [shape: f32[1,768], index: 7, kind: input, shape index: {}]   ;;  %s10081_s8 = inlined_call_operand.hbm [shape: f32[768,128], index: 8, kind: input, shape index: {}]   ;;  %s10082_s9 = inlined_call_operand.hbm [shape: f32[1,128], index: 9, kind: input, shape index: {}]   ;;  %s10083_s10 = inlined_call_operand.vmem [shape: f32[8,128], index: 10, kind: output, shape index: {}]  }
   0x1   :  { %16 = vsyncpa [#allocation5], 0 }
   0x2   :  { %17 = vsyncpa [#allocation8], 0 }
   0x3   :  { %18 = vsyncpa [#allocation11], 0 }
   0x4   :  { %19 = vsyncpa [#allocation14], 0  ;;  %s6552_s13 = smov [#allocation4]  }
   0x5   :  { %s37_s14 = sshll.u32 %s6552_s13, 4  ;;  %s38_s14 = int_to_ptr.vmem [resolvable:$true] %s37_s14 }
   0x6   :  { %s6370_s15 = scalar_lea.vmem %s38_s14, 8192  ;;  %p6375_p1 = scmp.lt.s32.totalorder %s38_s14, %s38_s14 }
   0x7   :  { %p6371_p0 = scmp.ne.s32.totalorder %s38_s14, %s6370_s15  ;;  %p6376_p2 = scmp.lt.s32.totalorder %s6370_s15, %s6370_s15 }
   0x9   :  { %p6377_p3 = por %p6376_p2, %p6375_p1 }
   0xb   :  { %p6378_p4 = pnand %p6377_p3, %p6371_p0 }
   0xd   :  { %6381 = shalt.err (!%p6378_p4)
}
   0xe   :  { %s6553_s16 = smov 512   ;;  %s6554_s17 = smov 32  }
   0xf   :  { %43 = dma.hbm_to_vmem [thread:$0]  %s10075_s2, 8192, %s38_s14, [#allocation5], %s6553_s16, %s6553_s16, %s6554_s17  }
  0x10   :  { %s6555_s20 = smov [#allocation7]   ;;  %s6556_s22 = smov [#allocation10]  }
  0x11   :  { %s59_s21 = sshll.u32 %s6555_s20, 4  ;;  %s81_s23 = sshll.u32 %s6556_s22, 4  ;;  %s60_s21 = int_to_ptr.vmem [resolvable:$true] %s59_s21  ;;  %s82_s23 = int_to_ptr.vmem [resolvable:$true] %s81_s23 }
  0x12   :  { %s6390_s24 = scalar_lea.vmem %s60_s21, 16384  ;;  %p6395_p6 = scmp.lt.s32.totalorder %s60_s21, %s60_s21 }
  0x13   :  { %p6391_p5 = scmp.ne.s32.totalorder %s60_s21, %s6390_s24  ;;  %p6396_p7 = scmp.lt.s32.totalorder %s6390_s24, %s6390_s24 }
  0x15   :  { %p6397_p8 = por %p6396_p7, %p6395_p6 }
  0x17   :  { %p6398_p9 = pnand %p6397_p8, %p6391_p5 }
  0x19   :  { %6401 = shalt.err (!%p6398_p9)
}
  0x1a   :  { %65 = dma.hbm_to_vmem [thread:$0]  %s10077_s4, 16384, %s60_s21, [#allocation8], %s6553_s16, %s6553_s16, %s6554_s17  }
  0x1b   :  { %s6410_s27 = scalar_lea.vmem %s82_s23, 98304  ;;  %p6415_p11 = scmp.lt.s32.totalorder %s82_s23, %s82_s23 }
  0x1c   :  { %p6411_p10 = scmp.ne.s32.totalorder %s82_s23, %s6410_s27  ;;  %p6416_p12 = scmp.lt.s32.totalorder %s6410_s27, %s6410_s27 }
  0x1e   :  { %p6417_p13 = por %p6416_p12, %p6415_p11 }
  0x20   :  { %p6418_p0 = pnand %p6417_p13, %p6411_p10 }
  0x22   :  { %6421 = shalt.err (!%p6418_p0)
}
  0x23   :  { %s6557_s2 = smov 768   ;;  %s6558_s28 = smov 48  }
  0x24   :  { %87 = dma.hbm_to_vmem [thread:$0]  %s10079_s6, 98304, %s82_s23, [#allocation11], %s6557_s2, %s6557_s2, %s6558_s28  }
  0x25   :  { %s6559_s11 = smov [#allocation13]  }
  0x26   :  { %s103_s12 = sshll.u32 %s6559_s11, 4  ;;  %s104_s12 = int_to_ptr.vmem [resolvable:$true] %s103_s12 }
  0x27   :  { %s6430_s13 = scalar_lea.vmem %s104_s12, 12288  ;;  %p6435_p2 = scmp.lt.s32.totalorder %s104_s12, %s104_s12 }
  0x28   :  { %p6431_p1 = scmp.ne.s32.totalorder %s104_s12, %s6430_s13  ;;  %p6436_p3 = scmp.lt.s32.totalorder %s6430_s13, %s6430_s13 }
  0x2a   :  { %p6437_p4 = por %p6436_p3, %p6435_p2 }
  0x2c   :  { %p6438_p5 = pnand %p6437_p4, %p6431_p1 }
  0x2e   :  { %6441 = shalt.err (!%p6438_p5)
}
  0x2f   :  { %s6560_s4 = smov 128   ;;  %s6561_s14 = smov 8  }
  0x30   :  { %109 = dma.hbm_to_vmem [thread:$0]  %s10081_s8, 12288, %s104_s12, [#allocation14], %s6560_s4, %s6560_s4, %s6561_s14  }
  0x31   :  { %s6562_s17 = smov [#allocation2]   ;;  %s6563_s19 = smov [#allocation6]  }
  0x32   :  { %s28_s18 = sshll.u32 %s6562_s17, 4  ;;  %s50_s6 = sshll.u32 %s6563_s19, 4  ;;  %s29_s18 = int_to_ptr.vmem [resolvable:$true] %s28_s18  ;;  %s51_s6 = int_to_ptr.vmem [resolvable:$true] %s50_s6 }
  0x33   :  { %s6450_s20 = scalar_lea.vmem %s29_s18, 256  ;;  %p6455_p7 = scmp.lt.s32.totalorder %s29_s18, %s29_s18 }
  0x34   :  { %p6451_p6 = scmp.ne.s32.totalorder %s29_s18, %s6450_s20  ;;  %p6456_p8 = scmp.lt.s32.totalorder %s6450_s20, %s6450_s20 }
  0x36   :  { %p6457_p9 = por %p6456_p8, %p6455_p7 }
  0x38   :  { %p6458_p10 = pnand %p6457_p9, %p6451_p6 }
  0x3a   :  { %6461 = shalt.err (!%p6458_p10)
}
  0x3b   :  { %31 = dma.hbm_to_vmem [thread:$0]  %s10074_s1, 256, %s29_s18, [#allocation3]  }
  0x3c   :  { %s6470_s23 = scalar_lea.vmem %s51_s6, 64  ;;  %p6475_p12 = scmp.lt.s32.totalorder %s51_s6, %s51_s6 }
  0x3d   :  { %p6471_p11 = scmp.ne.s32.totalorder %s51_s6, %s6470_s23  ;;  %p6476_p13 = scmp.lt.s32.totalorder %s6470_s23, %s6470_s23 }
  0x3f   :  { %p6477_p0 = por %p6476_p13, %p6475_p12 }
  0x41   :  { %p6478_p1 = pnand %p6477_p0, %p6471_p11 }
  0x43   :  { %6481 = shalt.err (!%p6478_p1)
}
  0x44   :  { %53 = dma.hbm_to_vmem [thread:$0]  %s10076_s3, 64, %s51_s6, [#allocation5]  }
  0x45   :  { %s6564_s25 = smov [#allocation9]   ;;  %s6565_s27 = smov [#allocation12]  }
  0x46   :  { %s72_s26 = sshll.u32 %s6564_s25, 4  ;;  %s94_s2 = sshll.u32 %s6565_s27, 4  ;;  %s73_s26 = int_to_ptr.vmem [resolvable:$true] %s72_s26  ;;  %s95_s2 = int_to_ptr.vmem [resolvable:$true] %s94_s2 }
  0x47   :  { %s6490_s28 = scalar_lea.vmem %s73_s26, 64  ;;  %p6495_p3 = scmp.lt.s32.totalorder %s73_s26, %s73_s26 }
  0x48   :  { %p6491_p2 = scmp.ne.s32.totalorder %s73_s26, %s6490_s28  ;;  %p6496_p4 = scmp.lt.s32.totalorder %s6490_s28, %s6490_s28 }
  0x4a   :  { %p6497_p5 = por %p6496_p4, %p6495_p3 }
  0x4c   :  { %p6498_p6 = pnand %p6497_p5, %p6491_p2 }
  0x4e   :  { %6501 = shalt.err (!%p6498_p6)
}
  0x4f   :  { %75 = dma.hbm_to_vmem [thread:$0]  %s10078_s5, 64, %s73_s26, [#allocation8]  }
  0x50   :  { %s6510_s30 = scalar_lea.vmem %s95_s2, 96  ;;  %p6515_p8 = scmp.lt.s32.totalorder %s95_s2, %s95_s2 }
  0x51   :  { %p6511_p7 = scmp.ne.s32.totalorder %s95_s2, %s6510_s30  ;;  %p6516_p9 = scmp.lt.s32.totalorder %s6510_s30, %s6510_s30 }
  0x53   :  { %p6517_p10 = por %p6516_p9, %p6515_p8 }
  0x55   :  { %p6518_p11 = pnand %p6517_p10, %p6511_p7 }
  0x57   :  { %6521 = shalt.err (!%p6518_p11)
}
  0x58   :  { %97 = dma.hbm_to_vmem [thread:$0]  %s10080_s7, 96, %s95_s2, [#allocation11]  }
  0x59   :  { %s6566_s12 = smov [#allocation15]  }
  0x5a   :  { %s116_s13 = sshll.u32 %s6566_s12, 4  ;;  %s117_s13 = int_to_ptr.vmem [resolvable:$true] %s116_s13 }
  0x5b   :  { %s6530_s4 = scalar_lea.vmem %s117_s13, 16  ;;  %s6534_s14 = scalar_lea.vmem %s117_s13, 32 }
  0x5c   :  { %p6531_p12 = scmp.ne.s32.totalorder %s117_s13, %s6530_s4  ;;  %p6535_p13 = scmp.lt.s32.totalorder %s117_s13, %s117_s13 }
  0x5d   :  { %p6536_p0 = scmp.lt.s32.totalorder %s6534_s14, %s6530_s4 }
  0x5f   :  { %p6537_p1 = por %p6536_p0, %p6535_p13 }
  0x61   :  { %p6538_p2 = pnand %p6537_p1, %p6531_p12 }
  0x63   :  { %6541 = shalt.err (!%p6538_p2)
}
  0x64   :  { %119 = dma.hbm_to_vmem [thread:$0]  %s10082_s9, 16, %s117_s13, [#allocation14]  }
  0x65   :  { %6542 = dma.done.wait [#allocation3], 256  }
  0x66   :  { %6543 = vsyncadd [#allocation3], 4294967040 }
  0x67   :  { %6544 = dma.done.wait [#allocation5], 8256  }
  0x68   :  { %6545 = vsyncadd [#allocation5], 4294959040 }
  0x69   :  { %6546 = dma.done.wait [#allocation8], 16448  }
  0x6a   :  { %6547 = vsyncadd [#allocation8], 4294950848 }
  0x6b   :  { %6548 = dma.done.wait [#allocation11], 98400  }
  0x6c   :  { %6549 = vsyncadd [#allocation11], 4294868896 }
  0x6d   :  { %6550 = dma.done.wait [#allocation14], 12304  }
  0x6e   :  { %6551 = vsyncadd [#allocation14], 4294954992  ;;  %v10084_v0 = vmov 0.0   ;;  %v347_v1 = vld [vmem:[#allocation2] sm:$0xff]  ;;  %vm400_vm0 = vcmask 1043456   ;;  %v348_v2 = vld [vmem:[#allocation2 + $0x8] sm:$0xff] }
  0x6f   :  { %473 = vmatprep.mubr.f32.mxu0 %v10084_v0  ;;  %586 = vmatprep.mubr.f32.mxu1 %v10084_v0  ;;  %v373_v3 = vcombine.high %v347_v1, %v347_v1  ;;  %v374_v4 = vcombine.high %v348_v2, %v348_v2  ;;  %v339_v5 = vld [vmem:[%s10073_s0] sm:$0xff]  ;;  %vm375_vm1 = vcmask 31744   ;;  %v6655_v6 = vld [vmem:[#allocation4 + $0x1e8] sm:$0xff]  ;;  %v6657_v7 = vld [vmem:[#allocation4 + $0x1f8] sm:$0xff] }
  0x70   :  { %v207_v8 = vld [vmem:[#allocation4 + $0x1e0] sm:$0xff]  ;;  %v209_v9 = vld [vmem:[#allocation4 + $0x1f0] sm:$0xff]  ;;  %v204_v10 = vld [vmem:[#allocation4 + $0x1c8] sm:$0xff] }
  0x71   :  { %5320 = vmatprep.subr.msk.mxu0 %vm400_vm0, %v373_v3  ;;  %5330 = vmatprep.subr.msk.mxu1 %vm400_vm0, %v374_v4  ;;  %v206_v11 = vld [vmem:[#allocation4 + $0x1d8] sm:$0xff]  ;;  %v203_v12 = vld [vmem:[#allocation4 + $0x1c0] sm:$0xff]  ;;  %v205_v13 = vld [vmem:[#allocation4 + $0x1d0] sm:$0xff] }
  0x72   :  { %5321 = vmatpush1.msk.msra.mxu0 %vm400_vm0, %v347_v1  ;;  %5331 = vmatpush1.msk.msra.mxu1 %vm400_vm0, %v348_v2  ;;  %v340_v14 = vld [vmem:[%s10073_s0 + $0x8] sm:$0xff]  ;;  %v200_v15 = vld [vmem:[#allocation4 + $0x1a8] sm:$0xff]  ;;  %v199_v17 = vld [vmem:[#allocation4 + $0x1a0] sm:$0xff] }
  0x73   :  { %5322 = vmatmul.mubr.msk.f32.vlgmr.msra.gmra.mxu0 %vm375_vm1, %v339_v5  ;;  %5332 = vmatmul.mubr.msk.f32.vlgmr.msra.gmra.mxu1 %vm375_vm1, %v339_v5  ;;  %v202_v16 = vld [vmem:[#allocation4 + $0x1b8] sm:$0xff]  ;;  %v201_v18 = vld [vmem:[#allocation4 + $0x1b0] sm:$0xff]  ;;  %v196_v19 = vld [vmem:[#allocation4 + $0x188] sm:$0xff] }
  0x74   :  { %657 = vmatprep.subr.mxu0 %v6655_v6  ;;  %728 = vmatprep.subr.mxu1 %v6657_v7  ;;  %v198_v20 = vld [vmem:[#allocation4 + $0x198] sm:$0xff]  ;;  %v195_v21 = vld [vmem:[#allocation4 + $0x180] sm:$0xff]  ;;  %v197_v22 = vld [vmem:[#allocation4 + $0x190] sm:$0xff] }
  0x75   :  { %658 = vmatpush1.msra.mxu0 %v207_v8  ;;  %729 = vmatpush1.msra.mxu1 %v209_v9  ;;  %v341_v23 = vld [vmem:[%s10073_s0 + $0x10] sm:$0xff]  ;;  %v192_v24 = vld [vmem:[#allocation4 + $0x168] sm:$0xff]  ;;  %v194_v25 = vld [vmem:[#allocation4 + $0x178] sm:$0xff] }
  0x76   :  { %659 = vmatprep.subr.mxu0 %v204_v10  ;;  %730 = vmatprep.subr.mxu1 %v206_v11  ;;  %v191_v26 = vld [vmem:[#allocation4 + $0x160] sm:$0xff]  ;;  %v193_v27 = vld [vmem:[#allocation4 + $0x170] sm:$0xff]  ;;  %v6677_v28 = vld [vmem:[#allocation4 + $0x148] sm:$0xff] }
  0x77   :  { %479 = vmatprep.mubr.f32.mxu0 %v10084_v0  ;;  %592 = vmatprep.mubr.f32.mxu1 %v10084_v0  ;;  %v6679_v29 = vld [vmem:[#allocation4 + $0x158] sm:$0xff]  ;;  %v6681_v30 = vld [vmem:[#allocation4 + $0x140] sm:$0xff]  ;;  %v6683_v31 = vld [vmem:[#allocation4 + $0x150] sm:$0xff] }
  0x78   :  { %660 = vmatpush1.msra.mxu0 %v203_v12  ;;  %731 = vmatpush1.msra.mxu1 %v205_v13  ;;  %v342_v32 = vld [vmem:[%s10073_s0 + $0x18] sm:$0xff]  ;;  %v6694_v34 = vld [vmem:[#allocation4 + $0x138] sm:$0xff]  ;;  %v6698_v35 = vld [vmem:[#allocation4 + $0x120] sm:$0xff] }
  0x79   :  { %5323 = vmatmul.mubr.msk.f32.gmra.mxu0 %vm375_vm1, %v340_v14  ;;  %5333 = vmatmul.mubr.msk.f32.gmra.mxu1 %vm375_vm1, %v340_v14  ;;  %v6692_v33 = vld [vmem:[#allocation4 + $0x128] sm:$0xff]  ;;  %v6700_v36 = vld [vmem:[#allocation4 + $0x130] sm:$0xff]  ;;  %v6706_v38 = vld [vmem:[#allocation4 + $0x118] sm:$0xff] }
  0x7a   :  { %661 = vmatprep.subr.mxu0 %v200_v15  ;;  %732 = vmatprep.subr.mxu1 %v202_v16  ;;  %v6704_v37 = vld [vmem:[#allocation4 + $0x108] sm:$0xff]  ;;  %v6712_v39 = vld [vmem:[#allocation4 + $0x100] sm:$0xff]  ;;  %v6714_v40 = vld [vmem:[#allocation4 + $0x110] sm:$0xff] }
  0x7b   :  { %662 = vmatpush1.msra.mxu0 %v199_v17  ;;  %733 = vmatpush1.msra.mxu1 %v201_v18  ;;  %v343_v41 = vld [vmem:[%s10073_s0 + $0x20] sm:$0xff]  ;;  %v6723_v42 = vld [vmem:[#allocation4 + $0xe8] sm:$0xff]  ;;  %v6725_v43 = vld [vmem:[#allocation4 + $0xf8] sm:$0xff] }
  0x7c   :  { %663 = vmatprep.subr.mxu0 %v196_v19  ;;  %734 = vmatprep.subr.mxu1 %v198_v20  ;;  %v6729_v44 = vld [vmem:[#allocation4 + $0xe0] sm:$0xff]  ;;  %v6731_v45 = vld [vmem:[#allocation4 + $0xf0] sm:$0xff]  ;;  %v6735_v46 = vld [vmem:[#allocation4 + $0xc8] sm:$0xff] }
  0x7d   :  { %485 = vmatprep.mubr.f32.mxu0 %v10084_v0  ;;  %598 = vmatprep.mubr.f32.mxu1 %v10084_v0  ;;  %v6737_v47 = vld [vmem:[#allocation4 + $0xd8] sm:$0xff]  ;;  %v6743_v48 = vld [vmem:[#allocation4 + $0xc0] sm:$0xff]  ;;  %v6745_v49 = vld [vmem:[#allocation4 + $0xd0] sm:$0xff] }
  0x7e   :  { %664 = vmatpush1.msra.mxu0 %v195_v21  ;;  %735 = vmatpush1.msra.mxu1 %v197_v22  ;;  %v344_v50 = vld [vmem:[%s10073_s0 + $0x28] sm:$0xff]  ;;  %v6754_v51 = vld [vmem:[#allocation4 + $0xa8] sm:$0xff]  ;;  %v6760_v53 = vld [vmem:[#allocation4 + $0xa0] sm:$0xff] }
  0x7f   :  { %5324 = vmatmul.mubr.msk.f32.gmra.mxu0 %vm375_vm1, %v341_v23  ;;  %5334 = vmatmul.mubr.msk.f32.gmra.mxu1 %vm375_vm1, %v341_v23  ;;  %v6756_v52 = vld [vmem:[#allocation4 + $0xb8] sm:$0xff]  ;;  %v6762_v54 = vld [vmem:[#allocation4 + $0xb0] sm:$0xff]  ;;  %v6766_v55 = vld [vmem:[#allocation4 + $0x88] sm:$0xff] }
  0x80   :  { %665 = vmatprep.subr.mxu0 %v192_v24  ;;  %736 = vmatprep.subr.mxu1 %v194_v25  ;;  %v6768_v56 = vld [vmem:[#allocation4 + $0x98] sm:$0xff]  ;;  %v6774_v57 = vld [vmem:[#allocation4 + $0x80] sm:$0xff]  ;;  %v6776_v58 = vld [vmem:[#allocation4 + $0x90] sm:$0xff] }
  0x81   :  { %666 = vmatpush1.msra.mxu0 %v191_v26  ;;  %737 = vmatpush1.msra.mxu1 %v193_v27  ;;  %v345_v59 = vld [vmem:[%s10073_s0 + $0x30] sm:$0xff]  ;;  %v6785_v60 = vld [vmem:[#allocation4 + $0x68] sm:$0xff]  ;;  %v6787_v61 = vld [vmem:[#allocation4 + $0x78] sm:$0xff] }
  0x82   :  { %667 = vmatprep.subr.mxu0 %v6677_v28  ;;  %738 = vmatprep.subr.mxu1 %v6679_v29  ;;  %v6791_v62 = vld [vmem:[#allocation4 + $0x60] sm:$0xff]  ;;  %v6793_v63 = vld [vmem:[#allocation4 + $0x70] sm:$0xff]  ;;  %v6797_v1 = vld [vmem:[#allocation4 + $0x48] sm:$0xff] }
  0x83   :  { %491 = vmatprep.mubr.f32.mxu0 %v10084_v0  ;;  %604 = vmatprep.mubr.f32.mxu1 %v10084_v0  ;;  %v6799_v2 = vld [vmem:[#allocation4 + $0x58] sm:$0xff]  ;;  %v6805_v3 = vld [vmem:[#allocation4 + $0x40] sm:$0xff]  ;;  %v6807_v4 = vld [vmem:[#allocation4 + $0x50] sm:$0xff] }
  0x84   :  { %668 = vmatpush1.msra.mxu0 %v6681_v30  ;;  %739 = vmatpush1.msra.mxu1 %v6683_v31  ;;  %v346_v5 = vld [vmem:[%s10073_s0 + $0x38] sm:$0xff]  ;;  %v6818_v9 = vld [vmem:[#allocation4 + $0x38] sm:$0xff]  ;;  %v6822_v10 = vld [vmem:[#allocation4 + $0x20] sm:$0xff] }
  0x85   :  { %5325 = vmatmul.mubr.msk.f32.gmra.mxu0 %vm375_vm1, %v342_v32  ;;  %5335 = vmatmul.mubr.msk.f32.gmra.mxu1 %vm375_vm1, %v342_v32  ;;  %v6816_v8 = vld [vmem:[#allocation4 + $0x28] sm:$0xff]  ;;  %v6824_v11 = vld [vmem:[#allocation4 + $0x30] sm:$0xff]  ;;  %v6830_v13 = vld [vmem:[#allocation4 + $0x18] sm:$0xff] }
  0x86   :  { %669 = vmatprep.subr.mxu0 %v6692_v33  ;;  %740 = vmatprep.subr.mxu1 %v6694_v34  ;;  %v6828_v12 = vld [vmem:[#allocation4 + $0x8] sm:$0xff]  ;;  %v6834_v14 = vld [vmem:[#allocation4] sm:$0xff]  ;;  %v6838_v15 = vld [vmem:[#allocation4 + $0x10] sm:$0xff] }
  0x87   :  { %670 = vmatpush1.msra.mxu0 %v6698_v35  ;;  %741 = vmatpush1.msra.mxu1 %v6700_v36  ;;  %10645 = vst [vmem:[#allocation21_spill] sm:$0xff] %v6834_v14  ;;  %10646 = vst [vmem:[#allocation22_spill] sm:$0xff] %v6838_v15  ;;  %v6850_v16 = vld [vmem:[#allocation7 + $0x1e8] sm:$0xff]  ;;  %v6852_v17 = vld [vmem:[#allocation7 + $0x1f8] sm:$0xff] }
  0x88   :  { %671 = vmatprep.subr.mxu0 %v6704_v37  ;;  %742 = vmatprep.subr.mxu1 %v6706_v38  ;;  %10647 = vst [vmem:[#allocation23_spill] sm:$0xff] %v6850_v16  ;;  %10648 = vst [vmem:[#allocation24_spill] sm:$0xff] %v6852_v17  ;;  %v6854_v18 = vld [vmem:[#allocation7 + $0x1e0] sm:$0xff]  ;;  %v6858_v19 = vld [vmem:[#allocation7 + $0x1f0] sm:$0xff] }
  0x89   :  { %497 = vmatprep.mubr.f32.mxu0 %v10084_v0  ;;  %610 = vmatprep.mubr.f32.mxu1 %v10084_v0  ;;  %10649 = vst [vmem:[#allocation25_spill] sm:$0xff] %v6854_v18  ;;  %10650 = vst [vmem:[#allocation26_spill] sm:$0xff] %v6858_v19  ;;  %v6862_v20 = vld [vmem:[#allocation7 + $0x1c8] sm:$0xff]  ;;  %v6864_v21 = vld [vmem:[#allocation7 + $0x1d8] sm:$0xff] }
  0x8a   :  { %672 = vmatpush1.msra.mxu0 %v6712_v39  ;;  %743 = vmatpush1.msra.mxu1 %v6714_v40  ;;  %10651 = vst [vmem:[#allocation27_spill] sm:$0xff] %v6862_v20  ;;  %10652 = vst [vmem:[#allocation28_spill] sm:$0xff] %v6864_v21  ;;  %v6866_v22 = vld [vmem:[#allocation7 + $0x1c0] sm:$0xff]  ;;  %v6870_v23 = vld [vmem:[#allocation7 + $0x1d0] sm:$0xff] }
  0x8b   :  { %5326 = vmatmul.mubr.msk.f32.gmra.mxu0 %vm375_vm1, %v343_v41  ;;  %5336 = vmatmul.mubr.msk.f32.gmra.mxu1 %vm375_vm1, %v343_v41  ;;  %10653 = vst [vmem:[#allocation29_spill] sm:$0xff] %v6866_v22  ;;  %10654 = vst [vmem:[#allocation30_spill] sm:$0xff] %v6870_v23  ;;  %v6874_v24 = vld [vmem:[#allocation7 + $0x1a8] sm:$0xff]  ;;  %v6876_v25 = vld [vmem:[#allocation7 + $0x1b8] sm:$0xff] }
  0x8c   :  { %673 = vmatprep.subr.mxu0 %v6723_v42  ;;  %744 = vmatprep.subr.mxu1 %v6725_v43  ;;  %10655 = vst [vmem:[#allocation31_spill] sm:$0xff] %v6874_v24  ;;  %10656 = vst [vmem:[#allocation32_spill] sm:$0xff] %v6876_v25  ;;  %v6878_v26 = vld [vmem:[#allocation7 + $0x1a0] sm:$0xff]  ;;  %v6882_v27 = vld [vmem:[#allocation7 + $0x1b0] sm:$0xff] }
  0x8d   :  { %674 = vmatpush1.msra.mxu0 %v6729_v44  ;;  %745 = vmatpush1.msra.mxu1 %v6731_v45  ;;  %10657 = vst [vmem:[#allocation33_spill] sm:$0xff] %v6878_v26  ;;  %10658 = vst [vmem:[#allocation34_spill] sm:$0xff] %v6882_v27  ;;  %v6886_v32 = vld [vmem:[#allocation7 + $0x188] sm:$0xff]  ;;  %v6888_v41 = vld [vmem:[#allocation7 + $0x198] sm:$0xff] }
  0x8e   :  { %675 = vmatprep.subr.mxu0 %v6735_v46  ;;  %746 = vmatprep.subr.mxu1 %v6737_v47  ;;  %10659 = vst [vmem:[#allocation35_spill] sm:$0xff] %v6886_v32  ;;  %10660 = vst [vmem:[#allocation36_spill] sm:$0xff] %v6888_v41 }
  0x8f   :  { %503 = vmatprep.mubr.f32.mxu0 %v10084_v0  ;;  %616 = vmatprep.mubr.f32.mxu1 %v10084_v0 }
  0x90   :  { %676 = vmatpush1.msra.mxu0 %v6743_v48  ;;  %747 = vmatpush1.msra.mxu1 %v6745_v49 }
  0x91   :  { %5327 = vmatmul.mubr.msk.f32.gmra.mxu0 %vm375_vm1, %v344_v50  ;;  %5337 = vmatmul.mubr.msk.f32.gmra.mxu1 %vm375_vm1, %v344_v50  ;;  %v6890_v50 = vld [vmem:[#allocation7 + $0x180] sm:$0xff] }
  0x92   :  { %677 = vmatprep.subr.mxu0 %v6754_v51  ;;  %748 = vmatprep.subr.mxu1 %v6756_v52  ;;  %10661 = vst [vmem:[#allocation37_spill] sm:$0xff] %v6890_v50 }
  0x93   :  { %678 = vmatpush1.msra.mxu0 %v6760_v53  ;;  %749 = vmatpush1.msra.mxu1 %v6762_v54 }
  0x94   :  { %679 = vmatprep.subr.mxu0 %v6766_v55  ;;  %750 = vmatprep.subr.mxu1 %v6768_v56 }
  0x95   :  { %509 = vmatprep.mubr.f32.mxu0 %v10084_v0  ;;  %622 = vmatprep.mubr.f32.mxu1 %v10084_v0 }
  0x96   :  { %680 = vmatpush1.msra.mxu0 %v6774_v57  ;;  %751 = vmatpush1.msra.mxu1 %v6776_v58 }
  0x97   :  { %5328 = vmatmul.mubr.msk.f32.gmra.mxu0 %vm375_vm1, %v345_v59  ;;  %5338 = vmatmul.mubr.msk.f32.gmra.mxu1 %vm375_vm1, %v345_v59  ;;  %v6894_v59 = vld [vmem:[#allocation7 + $0x190] sm:$0xff] }
  0x98   :  { %681 = vmatprep.subr.mxu0 %v6785_v60  ;;  %752 = vmatprep.subr.mxu1 %v6787_v61  ;;  %10662 = vst [vmem:[#allocation38_spill] sm:$0xff] %v6894_v59 }
  0x99   :  { %682 = vmatpush1.msra.mxu0 %v6791_v62  ;;  %753 = vmatpush1.msra.mxu1 %v6793_v63 }
  0x9a   :  { %683 = vmatprep.subr.mxu0 %v6797_v1  ;;  %754 = vmatprep.subr.mxu1 %v6799_v2 }
  0x9b   :  { %515 = vmatprep.mubr.f32.mxu0 %v10084_v0  ;;  %628 = vmatprep.mubr.f32.mxu1 %v10084_v0 }
  0x9c   :  { %684 = vmatpush1.msra.mxu0 %v6805_v3  ;;  %755 = vmatpush1.msra.mxu1 %v6807_v4 }
  0x9d   :  { %5329 = vmatmul.mubr.msk.f32.gmra.mxu0 %vm375_vm1, %v346_v5  ;;  %5339 = vmatmul.mubr.msk.f32.gmra.mxu1 %vm375_vm1, %v346_v5  ;;  %v6898_v5 = vld [vmem:[#allocation7 + $0x168] sm:$0xff] }
  0x9e   :  { %685 = vmatprep.subr.mxu0 %v6816_v8  ;;  %756 = vmatprep.subr.mxu1 %v6818_v9  ;;  %10663 = vst [vmem:[#allocation39_spill] sm:$0xff] %v6898_v5 }
  0x9f   :  { %686 = vmatpush1.msra.mxu0 %v6822_v10  ;;  %757 = vmatpush1.msra.mxu1 %v6824_v11 }
  0xa0   :  { %687 = vmatprep.subr.mxu0 %v6828_v12  ;;  %758 = vmatprep.subr.mxu1 %v6830_v13 }
  0xa1   :  { %688 = vmatpush1.msra.mxu0 %v6834_v14  ;;  %721 = vmatprep.mubr.f32.mxu0 %v10084_v0 }
  0xa2   :  { %759 = vmatpush1.msra.mxu1 %v6838_v15  ;;  %792 = vmatprep.mubr.f32.mxu1 %v10084_v0 }
  0xa3   :  { %722 = vmatmul.mubr.f32.vlgmr.msra.gmra.mxu0 %v10084_v0  ;;  %793 = vmatmul.mubr.f32.vlgmr.msra.gmra.mxu1 %v10084_v0 }
  0xa4   :  { %891 = vmatprep.mubr.f32.mxu0 %v10084_v0  ;;  %962 = vmatprep.mubr.f32.mxu1 %v10084_v0  ;;  %v6900_v0 = vld [vmem:[#allocation7 + $0x178] sm:$0xff] }
  0xa5   :  { %827 = vmatprep.subr.mxu0 %v6850_v16  ;;  %898 = vmatprep.subr.mxu1 %v6852_v17  ;;  %10664 = vst [vmem:[#allocation40_spill] sm:$0xff] %v6900_v0 }
  0xa6   :  { %828 = vmatpush1.msra.mxu0 %v6854_v18  ;;  %899 = vmatpush1.msra.mxu1 %v6858_v19 }
  0xa7   :  { %829 = vmatprep.subr.mxu0 %v6862_v20  ;;  %900 = vmatprep.subr.mxu1 %v6864_v21 }
  0xa8   :  { %830 = vmatpush1.msra.mxu0 %v6866_v22  ;;  %901 = vmatpush1.msra.mxu1 %v6870_v23  ;;  %v7188_v23 = vld [vmem:[#allocation7 + $0x260] sm:$0xff] }
  0xa9   :  { %831 = vmatprep.subr.mxu0 %v6874_v24  ;;  %902 = vmatprep.subr.mxu1 %v6876_v25  ;;  %v7164_v25 = vld [vmem:[#allocation7 + $0x2a0] sm:$0xff]  ;;  %v7172_v24 = vld [vmem:[#allocation7 + $0x298] sm:$0xff]  ;;  %10761 = vst [vmem:[#allocation137_spill] sm:$0xff] %v7188_v23 }
  0xaa   :  { %832 = vmatpush1.msra.mxu0 %v6878_v26  ;;  %903 = vmatpush1.msra.mxu1 %v6882_v27  ;;  %v6904_v27 = vld [vmem:[#allocation7 + $0x160] sm:$0xff]  ;;  %v6906_v26 = vld [vmem:[#allocation7 + $0x170] sm:$0xff]  ;;  %10753 = vst [vmem:[#allocation129_spill] sm:$0xff] %v7164_v25  ;;  %10756 = vst [vmem:[#allocation132_spill] sm:$0xff] %v7172_v24 }
  0xab   :  { %833 = vmatprep.subr.mxu0 %v6886_v32  ;;  %904 = vmatprep.subr.mxu1 %v6888_v41  ;;  %10665 = vst [vmem:[#allocation41_spill] sm:$0xff] %v6904_v27  ;;  %10666 = vst [vmem:[#allocation42_spill] sm:$0xff] %v6906_v26  ;;  %v6910_v41 = vld [vmem:[#allocation7 + $0x148] sm:$0xff]  ;;  %v7156_v32 = vld [vmem:[#allocation7 + $0x2d0] sm:$0xff] }
  0xac   :  { %834 = vmatpush1.msra.mxu0 %v6890_v50  ;;  %905 = vmatpush1.msra.mxu1 %v6894_v59  ;;  %10667 = vst [vmem:[#allocation43_spill] sm:$0xff] %v6910_v41  ;;  %v6912_v50 = vld [vmem:[#allocation7 + $0x158] sm:$0xff]  ;;  %v6916_v59 = vld [vmem:[#allocation7 + $0x140] sm:$0xff]  ;;  %10750 = vst [vmem:[#allocation126_spill] sm:$0xff] %v7156_v32 }
  0xad   :  { %835 = vmatprep.subr.mxu0 %v6898_v5  ;;  %906 = vmatprep.subr.mxu1 %v6900_v0  ;;  %10668 = vst [vmem:[#allocation44_spill] sm:$0xff] %v6912_v50  ;;  %10669 = vst [vmem:[#allocation45_spill] sm:$0xff] %v6916_v59  ;;  %v6918_v5 = vld [vmem:[#allocation7 + $0x150] sm:$0xff]  ;;  %v6922_v0 = vld [vmem:[#allocation7 + $0x128] sm:$0xff] }
  0xae   :  { %836 = vmatpush1.msra.mxu0 %v6904_v27  ;;  %907 = vmatpush1.msra.mxu1 %v6906_v26  ;;  %10670 = vst [vmem:[#allocation46_spill] sm:$0xff] %v6918_v5  ;;  %10671 = vst [vmem:[#allocation47_spill] sm:$0xff] %v6922_v0  ;;  %v6924_v27 = vld [vmem:[#allocation7 + $0x138] sm:$0xff]  ;;  %v6928_v26 = vld [vmem:[#allocation7 + $0x120] sm:$0xff] }
  0xaf   :  { %837 = vmatprep.subr.mxu0 %v6910_v41  ;;  %908 = vmatprep.subr.mxu1 %v6912_v50  ;;  %10672 = vst [vmem:[#allocation48_spill] sm:$0xff] %v6924_v27  ;;  %10673 = vst [vmem:[#allocation49_spill] sm:$0xff] %v6928_v26  ;;  %v6930_v41 = vld [vmem:[#allocation7 + $0x130] sm:$0xff]  ;;  %v6934_v50 = vld [vmem:[#allocation7 + $0x108] sm:$0xff] }
  0xb0   :  { %838 = vmatpush1.msra.mxu0 %v6916_v59  ;;  %909 = vmatpush1.msra.mxu1 %v6918_v5  ;;  %10674 = vst [vmem:[#allocation50_spill] sm:$0xff] %v6930_v41  ;;  %10675 = vst [vmem:[#allocation51_spill] sm:$0xff] %v6934_v50  ;;  %v6936_v59 = vld [vmem:[#allocation7 + $0x118] sm:$0xff]  ;;  %v6940_v5 = vld [vmem:[#allocation7 + $0x100] sm:$0xff] }
  0xb1   :  { %839 = vmatprep.subr.mxu0 %v6922_v0  ;;  %910 = vmatprep.subr.mxu1 %v6924_v27  ;;  %10676 = vst [vmem:[#allocation52_spill] sm:$0xff] %v6936_v59  ;;  %10677 = vst [vmem:[#allocation53_spill] sm:$0xff] %v6940_v5  ;;  %v6942_v0 = vld [vmem:[#allocation7 + $0x110] sm:$0xff]  ;;  %v6946_v27 = vld [vmem:[#allocation7 + $0xe8] sm:$0xff] }
  0xb2   :  { %840 = vmatpush1.msra.mxu0 %v6928_v26  ;;  %911 = vmatpush1.msra.mxu1 %v6930_v41  ;;  %10678 = vst [vmem:[#allocation54_spill] sm:$0xff] %v6942_v0  ;;  %10679 = vst [vmem:[#allocation55_spill] sm:$0xff] %v6946_v27  ;;  %v6948_v26 = vld [vmem:[#allocation7 + $0xf8] sm:$0xff]  ;;  %v6952_v41 = vld [vmem:[#allocation7 + $0xe0] sm:$0xff] }
  0xb3   :  { %841 = vmatprep.subr.mxu0 %v6934_v50  ;;  %912 = vmatprep.subr.mxu1 %v6936_v59  ;;  %10680 = vst [vmem:[#allocation56_spill] sm:$0xff] %v6948_v26  ;;  %10681 = vst [vmem:[#allocation57_spill] sm:$0xff] %v6952_v41  ;;  %v6954_v50 = vld [vmem:[#allocation7 + $0xf0] sm:$0xff]  ;;  %v6958_v59 = vld [vmem:[#allocation7 + $0xc8] sm:$0xff] }
  0xb4   :  { %842 = vmatpush1.msra.mxu0 %v6940_v5  ;;  %913 = vmatpush1.msra.mxu1 %v6942_v0  ;;  %10682 = vst [vmem:[#allocation58_spill] sm:$0xff] %v6954_v50  ;;  %10683 = vst [vmem:[#allocation59_spill] sm:$0xff] %v6958_v59  ;;  %v6960_v5 = vld [vmem:[#allocation7 + $0xd8] sm:$0xff]  ;;  %v6964_v0 = vld [vmem:[#allocation7 + $0xc0] sm:$0xff] }
  0xb5   :  { %843 = vmatprep.subr.mxu0 %v6946_v27  ;;  %914 = vmatprep.subr.mxu1 %v6948_v26  ;;  %10684 = vst [vmem:[#allocation60_spill] sm:$0xff] %v6960_v5  ;;  %10685 = vst [vmem:[#allocation61_spill] sm:$0xff] %v6964_v0  ;;  %v6966_v27 = vld [vmem:[#allocation7 + $0xd0] sm:$0xff]  ;;  %v6970_v26 = vld [vmem:[#allocation7 + $0xa8] sm:$0xff] }
  0xb6   :  { %844 = vmatpush1.msra.mxu0 %v6952_v41  ;;  %915 = vmatpush1.msra.mxu1 %v6954_v50  ;;  %10686 = vst [vmem:[#allocation62_spill] sm:$0xff] %v6966_v27  ;;  %10687 = vst [vmem:[#allocation63_spill] sm:$0xff] %v6970_v26  ;;  %v6972_v41 = vld [vmem:[#allocation7 + $0xb8] sm:$0xff]  ;;  %v6976_v50 = vld [vmem:[#allocation7 + $0xa0] sm:$0xff] }
  0xb7   :  { %845 = vmatprep.subr.mxu0 %v6958_v59  ;;  %916 = vmatprep.subr.mxu1 %v6960_v5  ;;  %10688 = vst [vmem:[#allocation64_spill] sm:$0xff] %v6972_v41  ;;  %10689 = vst [vmem:[#allocation65_spill] sm:$0xff] %v6976_v50  ;;  %v6978_v59 = vld [vmem:[#allocation7 + $0xb0] sm:$0xff]  ;;  %v6982_v5 = vld [vmem:[#allocation7 + $0x88] sm:$0xff] }
  0xb8   :  { %846 = vmatpush1.msra.mxu0 %v6964_v0  ;;  %917 = vmatpush1.msra.mxu1 %v6966_v27  ;;  %10690 = vst [vmem:[#allocation66_spill] sm:$0xff] %v6978_v59  ;;  %10691 = vst [vmem:[#allocation67_spill] sm:$0xff] %v6982_v5  ;;  %v6984_v0 = vld [vmem:[#allocation7 + $0x98] sm:$0xff]  ;;  %v6988_v27 = vld [vmem:[#allocation7 + $0x80] sm:$0xff] }
  0xb9   :  { %847 = vmatprep.subr.mxu0 %v6970_v26  ;;  %918 = vmatprep.subr.mxu1 %v6972_v41  ;;  %10692 = vst [vmem:[#allocation68_spill] sm:$0xff] %v6984_v0  ;;  %10693 = vst [vmem:[#allocation69_spill] sm:$0xff] %v6988_v27  ;;  %v6990_v26 = vld [vmem:[#allocation7 + $0x90] sm:$0xff]  ;;  %v6994_v41 = vld [vmem:[#allocation7 + $0x68] sm:$0xff] }
  0xba   :  { %848 = vmatpush1.msra.mxu0 %v6976_v50  ;;  %919 = vmatpush1.msra.mxu1 %v6978_v59  ;;  %10694 = vst [vmem:[#allocation70_spill] sm:$0xff] %v6990_v26  ;;  %10695 = vst [vmem:[#allocation71_spill] sm:$0xff] %v6994_v41  ;;  %v6996_v50 = vld [vmem:[#allocation7 + $0x78] sm:$0xff]  ;;  %v7000_v59 = vld [vmem:[#allocation7 + $0x60] sm:$0xff] }
  0xbb   :  { %849 = vmatprep.subr.mxu0 %v6982_v5  ;;  %920 = vmatprep.subr.mxu1 %v6984_v0  ;;  %10696 = vst [vmem:[#allocation72_spill] sm:$0xff] %v6996_v50  ;;  %10697 = vst [vmem:[#allocation73_spill] sm:$0xff] %v7000_v59  ;;  %v7002_v5 = vld [vmem:[#allocation7 + $0x70] sm:$0xff]  ;;  %v7006_v0 = vld [vmem:[#allocation7 + $0x48] sm:$0xff] }
  0xbc   :  { %850 = vmatpush1.msra.mxu0 %v6988_v27  ;;  %921 = vmatpush1.msra.mxu1 %v6990_v26  ;;  %10698 = vst [vmem:[#allocation74_spill] sm:$0xff] %v7002_v5  ;;  %10699 = vst [vmem:[#allocation75_spill] sm:$0xff] %v7006_v0  ;;  %v7008_v27 = vld [vmem:[#allocation7 + $0x58] sm:$0xff]  ;;  %v7012_v26 = vld [vmem:[#allocation7 + $0x40] sm:$0xff] }
  0xbd   :  { %851 = vmatprep.subr.mxu0 %v6994_v41  ;;  %922 = vmatprep.subr.mxu1 %v6996_v50  ;;  %10700 = vst [vmem:[#allocation76_spill] sm:$0xff] %v7008_v27  ;;  %10701 = vst [vmem:[#allocation77_spill] sm:$0xff] %v7012_v26  ;;  %v7014_v41 = vld [vmem:[#allocation7 + $0x50] sm:$0xff]  ;;  %v7018_v50 = vld [vmem:[#allocation7 + $0x28] sm:$0xff] }
  0xbe   :  { %852 = vmatpush1.msra.mxu0 %v7000_v59  ;;  %923 = vmatpush1.msra.mxu1 %v7002_v5  ;;  %10702 = vst [vmem:[#allocation78_spill] sm:$0xff] %v7014_v41  ;;  %10703 = vst [vmem:[#allocation79_spill] sm:$0xff] %v7018_v50  ;;  %v7020_v59 = vld [vmem:[#allocation7 + $0x38] sm:$0xff]  ;;  %v7024_v5 = vld [vmem:[#allocation7 + $0x20] sm:$0xff] }
  0xbf   :  { %853 = vmatprep.subr.mxu0 %v7006_v0  ;;  %924 = vmatprep.subr.mxu1 %v7008_v27  ;;  %10704 = vst [vmem:[#allocation80_spill] sm:$0xff] %v7020_v59  ;;  %10705 = vst [vmem:[#allocation81_spill] sm:$0xff] %v7024_v5  ;;  %v7026_v0 = vld [vmem:[#allocation7 + $0x30] sm:$0xff]  ;;  %v7030_v27 = vld [vmem:[#allocation7 + $0x8] sm:$0xff] }
  0xc0   :  { %854 = vmatpush1.msra.mxu0 %v7012_v26  ;;  %925 = vmatpush1.msra.mxu1 %v7014_v41  ;;  %10706 = vst [vmem:[#allocation82_spill] sm:$0xff] %v7026_v0  ;;  %10707 = vst [vmem:[#allocation83_spill] sm:$0xff] %v7030_v27  ;;  %v7032_v26 = vld [vmem:[#allocation7 + $0x18] sm:$0xff]  ;;  %v7036_v41 = vld [vmem:[#allocation7] sm:$0xff] }
  0xc1   :  { %855 = vmatprep.subr.mxu0 %v7018_v50  ;;  %926 = vmatprep.subr.mxu1 %v7020_v59  ;;  %10708 = vst [vmem:[#allocation84_spill] sm:$0xff] %v7032_v26  ;;  %10709 = vst [vmem:[#allocation85_spill] sm:$0xff] %v7036_v41  ;;  %v7038_v50 = vld [vmem:[#allocation7 + $0x10] sm:$0xff]  ;;  %v7042_v59 = vld [vmem:[#allocation7 + $0x3e8] sm:$0xff] }
  0xc2   :  { %856 = vmatpush1.msra.mxu0 %v7024_v5  ;;  %927 = vmatpush1.msra.mxu1 %v7026_v0  ;;  %10710 = vst [vmem:[#allocation86_spill] sm:$0xff] %v7038_v50  ;;  %10711 = vst [vmem:[#allocation87_spill] sm:$0xff] %v7042_v59  ;;  %v7044_v5 = vld [vmem:[#allocation7 + $0x3f8] sm:$0xff]  ;;  %v7048_v0 = vld [vmem:[#allocation7 + $0x3e0] sm:$0xff] }
  0xc3   :  { %857 = vmatprep.subr.mxu0 %v7030_v27  ;;  %928 = vmatprep.subr.mxu1 %v7032_v26  ;;  %10712 = vst [vmem:[#allocation88_spill] sm:$0xff] %v7044_v5  ;;  %10713 = vst [vmem:[#allocation89_spill] sm:$0xff] %v7048_v0  ;;  %v7050_v27 = vld [vmem:[#allocation7 + $0x3f0] sm:$0xff]  ;;  %v7054_v26 = vld [vmem:[#allocation7 + $0x3c8] sm:$0xff] }
  0xc4   :  { %858 = vmatpush1.msra.mxu0 %v7036_v41  ;;  %929 = vmatpush1.msra.mxu1 %v7038_v50  ;;  %10714 = vst [vmem:[#allocation90_spill] sm:$0xff] %v7050_v27  ;;  %10715 = vst [vmem:[#allocation91_spill] sm:$0xff] %v7054_v26  ;;  %v7056_v41 = vld [vmem:[#allocation7 + $0x3d8] sm:$0xff]  ;;  %v7060_v50 = vld [vmem:[#allocation7 + $0x3c0] sm:$0xff] }
  0xc5   :  { %859 = vmatprep.subr.mxu0 %v7042_v59  ;;  %930 = vmatprep.subr.mxu1 %v7044_v5  ;;  %10716 = vst [vmem:[#allocation92_spill] sm:$0xff] %v7056_v41  ;;  %10717 = vst [vmem:[#allocation93_spill] sm:$0xff] %v7060_v50  ;;  %v7062_v59 = vld [vmem:[#allocation7 + $0x3d0] sm:$0xff]  ;;  %v7066_v5 = vld [vmem:[#allocation7 + $0x3a8] sm:$0xff] }
  0xc6   :  { %860 = vmatpush2.msra.mxu0 %v7048_v0  ;;  %931 = vmatpush2.msra.mxu1 %v7050_v27  ;;  %10718 = vst [vmem:[#allocation94_spill] sm:$0xff] %v7062_v59  ;;  %10719 = vst [vmem:[#allocation95_spill] sm:$0xff] %v7066_v5  ;;  %v7068_v0 = vld [vmem:[#allocation7 + $0x3b8] sm:$0xff]  ;;  %v7072_v27 = vld [vmem:[#allocation7 + $0x3a0] sm:$0xff] }
  0xc7   :  { %861 = vmatprep.subr.mxu0 %v7054_v26  ;;  %932 = vmatprep.subr.mxu1 %v7056_v41  ;;  %10720 = vst [vmem:[#allocation96_spill] sm:$0xff] %v7068_v0  ;;  %10721 = vst [vmem:[#allocation97_spill] sm:$0xff] %v7072_v27  ;;  %v7074_v26 = vld [vmem:[#allocation7 + $0x3b0] sm:$0xff]  ;;  %v7078_v41 = vld [vmem:[#allocation7 + $0x388] sm:$0xff] }
  0xc8   :  { %862 = vmatpush2.msra.mxu0 %v7060_v50  ;;  %933 = vmatpush2.msra.mxu1 %v7062_v59  ;;  %10722 = vst [vmem:[#allocation98_spill] sm:$0xff] %v7074_v26  ;;  %10723 = vst [vmem:[#allocation99_spill] sm:$0xff] %v7078_v41  ;;  %v7080_v50 = vld [vmem:[#allocation7 + $0x398] sm:$0xff]  ;;  %v7084_v59 = vld [vmem:[#allocation7 + $0x380] sm:$0xff] }
  0xc9   :  { %863 = vmatprep.subr.mxu0 %v7066_v5  ;;  %934 = vmatprep.subr.mxu1 %v7068_v0  ;;  %10724 = vst [vmem:[#allocation100_spill] sm:$0xff] %v7080_v50  ;;  %10725 = vst [vmem:[#allocation101_spill] sm:$0xff] %v7084_v59  ;;  %v7086_v5 = vld [vmem:[#allocation7 + $0x390] sm:$0xff]  ;;  %v7090_v0 = vld [vmem:[#allocation7 + $0x368] sm:$0xff] }
  0xca   :  { %864 = vmatpush2.msra.mxu0 %v7072_v27  ;;  %935 = vmatpush2.msra.mxu1 %v7074_v26  ;;  %10726 = vst [vmem:[#allocation102_spill] sm:$0xff] %v7086_v5  ;;  %10727 = vst [vmem:[#allocation103_spill] sm:$0xff] %v7090_v0  ;;  %v7092_v27 = vld [vmem:[#allocation7 + $0x378] sm:$0xff]  ;;  %v7096_v26 = vld [vmem:[#allocation7 + $0x360] sm:$0xff] }
  0xcb   :  { %865 = vmatprep.subr.mxu0 %v7078_v41  ;;  %936 = vmatprep.subr.mxu1 %v7080_v50  ;;  %10728 = vst [vmem:[#allocation104_spill] sm:$0xff] %v7092_v27  ;;  %10729 = vst [vmem:[#allocation105_spill] sm:$0xff] %v7096_v26  ;;  %v7098_v41 = vld [vmem:[#allocation7 + $0x370] sm:$0xff]  ;;  %v7102_v50 = vld [vmem:[#allocation7 + $0x348] sm:$0xff] }
  0xcc   :  { %866 = vmatpush2.msra.mxu0 %v7084_v59  ;;  %937 = vmatpush2.msra.mxu1 %v7086_v5  ;;  %10730 = vst [vmem:[#allocation106_spill] sm:$0xff] %v7098_v41  ;;  %10731 = vst [vmem:[#allocation107_spill] sm:$0xff] %v7102_v50  ;;  %v7104_v59 = vld [vmem:[#allocation7 + $0x358] sm:$0xff]  ;;  %v7108_v5 = vld [vmem:[#allocation7 + $0x340] sm:$0xff] }
  0xcd   :  { %867 = vmatprep.subr.mxu0 %v7090_v0  ;;  %938 = vmatprep.subr.mxu1 %v7092_v27  ;;  %10732 = vst [vmem:[#allocation108_spill] sm:$0xff] %v7104_v59  ;;  %10733 = vst [vmem:[#allocation109_spill] sm:$0xff] %v7108_v5  ;;  %v7110_v0 = vld [vmem:[#allocation7 + $0x350] sm:$0xff]  ;;  %v7114_v27 = vld [vmem:[#allocation7 + $0x328] sm:$0xff] }
  0xce   :  { %868 = vmatpush2.msra.mxu0 %v7096_v26  ;;  %939 = vmatpush2.msra.mxu1 %v7098_v41  ;;  %10734 = vst [vmem:[#allocation110_spill] sm:$0xff] %v7110_v0  ;;  %10735 = vst [vmem:[#allocation111_spill] sm:$0xff] %v7114_v27  ;;  %v7116_v26 = vld [vmem:[#allocation7 + $0x338] sm:$0xff]  ;;  %v7120_v41 = vld [vmem:[#allocation7 + $0x320] sm:$0xff] }
  0xcf   :  { %869 = vmatprep.subr.mxu0 %v7102_v50  ;;  %940 = vmatprep.subr.mxu1 %v7104_v59  ;;  %10736 = vst [vmem:[#allocation112_spill] sm:$0xff] %v7116_v26  ;;  %10737 = vst [vmem:[#allocation113_spill] sm:$0xff] %v7120_v41  ;;  %v7122_v50 = vld [vmem:[#allocation7 + $0x330] sm:$0xff]  ;;  %v7126_v59 = vld [vmem:[#allocation7 + $0x308] sm:$0xff] }
  0xd0   :  { %870 = vmatpush2.msra.mxu0 %v7108_v5  ;;  %941 = vmatpush2.msra.mxu1 %v7110_v0  ;;  %10738 = vst [vmem:[#allocation114_spill] sm:$0xff] %v7122_v50  ;;  %10739 = vst [vmem:[#allocation115_spill] sm:$0xff] %v7126_v59  ;;  %v7128_v5 = vld [vmem:[#allocation7 + $0x318] sm:$0xff]  ;;  %v7132_v0 = vld [vmem:[#allocation7 + $0x300] sm:$0xff] }
  0xd1   :  { %871 = vmatprep.subr.mxu0 %v7114_v27  ;;  %942 = vmatprep.subr.mxu1 %v7116_v26  ;;  %10740 = vst [vmem:[#allocation116_spill] sm:$0xff] %v7128_v5  ;;  %10741 = vst [vmem:[#allocation117_spill] sm:$0xff] %v7132_v0  ;;  %v7134_v27 = vld [vmem:[#allocation7 + $0x310] sm:$0xff]  ;;  %v7138_v26 = vld [vmem:[#allocation7 + $0x2e8] sm:$0xff] }
  0xd2   :  { %872 = vmatpush2.msra.mxu0 %v7120_v41  ;;  %943 = vmatpush2.msra.mxu1 %v7122_v50  ;;  %10742 = vst [vmem:[#allocation118_spill] sm:$0xff] %v7134_v27  ;;  %10743 = vst [vmem:[#allocation119_spill] sm:$0xff] %v7138_v26  ;;  %v7140_v41 = vld [vmem:[#allocation7 + $0x2f8] sm:$0xff]  ;;  %v7144_v50 = vld [vmem:[#allocation7 + $0x2e0] sm:$0xff] }
  0xd3   :  { %873 = vmatprep.subr.mxu0 %v7126_v59  ;;  %944 = vmatprep.subr.mxu1 %v7128_v5  ;;  %10744 = vst [vmem:[#allocation120_spill] sm:$0xff] %v7140_v41  ;;  %10745 = vst [vmem:[#allocation121_spill] sm:$0xff] %v7144_v50  ;;  %v7146_v59 = vld [vmem:[#allocation7 + $0x2f0] sm:$0xff]  ;;  %v7148_v5 = vld [vmem:[#allocation7 + $0x2c8] sm:$0xff] }
  0xd4   :  { %874 = vmatpush2.msra.mxu0 %v7132_v0  ;;  %945 = vmatpush2.msra.mxu1 %v7134_v27  ;;  %10746 = vst [vmem:[#allocation122_spill] sm:$0xff] %v7146_v59  ;;  %10747 = vst [vmem:[#allocation123_spill] sm:$0xff] %v7148_v5  ;;  %v7152_v0 = vld [vmem:[#allocation7 + $0x2d8] sm:$0xff]  ;;  %v7154_v27 = vld [vmem:[#allocation7 + $0x2c0] sm:$0xff] }
  0xd5   :  { %875 = vmatprep.subr.mxu0 %v7138_v26  ;;  %946 = vmatprep.subr.mxu1 %v7140_v41  ;;  %10748 = vst [vmem:[#allocation124_spill] sm:$0xff] %v7152_v0  ;;  %10749 = vst [vmem:[#allocation125_spill] sm:$0xff] %v7154_v27  ;;  %v7160_v41 = vld [vmem:[#allocation7 + $0x2a8] sm:$0xff]  ;;  %v7162_v26 = vld [vmem:[#allocation7 + $0x2b8] sm:$0xff] }
  0xd6   :  { %876 = vmatpush2.msra.mxu0 %v7144_v50  ;;  %947 = vmatpush2.msra.mxu1 %v7146_v59  ;;  %10751 = vst [vmem:[#allocation127_spill] sm:$0xff] %v7160_v41  ;;  %10752 = vst [vmem:[#allocation128_spill] sm:$0xff] %v7162_v26  ;;  %v7168_v59 = vld [vmem:[#allocation7 + $0x2b0] sm:$0xff]  ;;  %v7170_v50 = vld [vmem:[#allocation7 + $0x288] sm:$0xff] }
  0xd7   :  { %877 = vmatprep.subr.mxu0 %v7148_v5  ;;  %948 = vmatprep.subr.mxu1 %v7152_v0  ;;  %10754 = vst [vmem:[#allocation130_spill] sm:$0xff] %v7168_v59  ;;  %10755 = vst [vmem:[#allocation131_spill] sm:$0xff] %v7170_v50  ;;  %v7176_v0 = vld [vmem:[#allocation7 + $0x280] sm:$0xff]  ;;  %v7178_v5 = vld [vmem:[#allocation7 + $0x290] sm:$0xff] }
  0xd8   :  { %878 = vmatpush2.msra.mxu0 %v7154_v27  ;;  %949 = vmatpush2.msra.mxu1 %v7156_v32  ;;  %10757 = vst [vmem:[#allocation133_spill] sm:$0xff] %v7176_v0  ;;  %10758 = vst [vmem:[#allocation134_spill] sm:$0xff] %v7178_v5  ;;  %v7182_v27 = vld [vmem:[#allocation7 + $0x268] sm:$0xff]  ;;  %v7184_v32 = vld [vmem:[#allocation7 + $0x278] sm:$0xff] }
  0xd9   :  { %879 = vmatprep.subr.mxu0 %v7160_v41  ;;  %950 = vmatprep.subr.mxu1 %v7162_v26  ;;  %10759 = vst [vmem:[#allocation135_spill] sm:$0xff] %v7182_v27  ;;  %10760 = vst [vmem:[#allocation136_spill] sm:$0xff] %v7184_v32  ;;  %v7190_v41 = vld [vmem:[#allocation7 + $0x270] sm:$0xff]  ;;  %v7194_v26 = vld [vmem:[#allocation7 + $0x248] sm:$0xff] }
  0xda   :  { %880 = vmatpush2.msra.mxu0 %v7164_v25  ;;  %951 = vmatpush2.msra.mxu1 %v7168_v59  ;;  %10762 = vst [vmem:[#allocation138_spill] sm:$0xff] %v7190_v41  ;;  %10763 = vst [vmem:[#allocation139_spill] sm:$0xff] %v7194_v26  ;;  %v7196_v25 = vld [vmem:[#allocation7 + $0x258] sm:$0xff]  ;;  %v7200_v59 = vld [vmem:[#allocation7 + $0x240] sm:$0xff] }
  0xdb   :  { %881 = vmatprep.subr.mxu0 %v7170_v50  ;;  %952 = vmatprep.subr.mxu1 %v7172_v24  ;;  %10764 = vst [vmem:[#allocation140_spill] sm:$0xff] %v7196_v25  ;;  %10765 = vst [vmem:[#allocation141_spill] sm:$0xff] %v7200_v59  ;;  %v7202_v50 = vld [vmem:[#allocation7 + $0x250] sm:$0xff]  ;;  %v7206_v24 = vld [vmem:[#allocation7 + $0x228] sm:$0xff] }
  0xdc   :  { %882 = vmatpush2.msra.mxu0 %v7176_v0  ;;  %953 = vmatpush2.msra.mxu1 %v7178_v5  ;;  %10766 = vst [vmem:[#allocation142_spill] sm:$0xff] %v7202_v50  ;;  %10767 = vst [vmem:[#allocation143_spill] sm:$0xff] %v7206_v24  ;;  %v7208_v0 = vld [vmem:[#allocation7 + $0x238] sm:$0xff]  ;;  %v7212_v5 = vld [vmem:[#allocation7 + $0x220] sm:$0xff] }
  0xdd   :  { %883 = vmatprep.subr.mxu0 %v7182_v27  ;;  %954 = vmatprep.subr.mxu1 %v7184_v32  ;;  %10768 = vst [vmem:[#allocation144_spill] sm:$0xff] %v7208_v0  ;;  %10769 = vst [vmem:[#allocation145_spill] sm:$0xff] %v7212_v5  ;;  %v7214_v27 = vld [vmem:[#allocation7 + $0x230] sm:$0xff]  ;;  %v7218_v32 = vld [vmem:[#allocation7 + $0x208] sm:$0xff] }
  0xde   :  { %884 = vmatpush2.msra.mxu0 %v7188_v23  ;;  %955 = vmatpush2.msra.mxu1 %v7190_v41  ;;  %10770 = vst [vmem:[#allocation146_spill] sm:$0xff] %v7214_v27  ;;  %10771 = vst [vmem:[#allocation147_spill] sm:$0xff] %v7218_v32  ;;  %v7220_v23 = vld [vmem:[#allocation7 + $0x218] sm:$0xff]  ;;  %v7224_v41 = vld [vmem:[#allocation7 + $0x200] sm:$0xff] }
  0xdf   :  { %885 = vmatprep.subr.mxu0 %v7194_v26  ;;  %956 = vmatprep.subr.mxu1 %v7196_v25  ;;  %10772 = vst [vmem:[#allocation148_spill] sm:$0xff] %v7220_v23  ;;  %10773 = vst [vmem:[#allocation149_spill] sm:$0xff] %v7224_v41  ;;  %v7226_v26 = vld [vmem:[#allocation7 + $0x210] sm:$0xff] }
  0xe0   :  { %886 = vmatpush2.msra.mxu0 %v7200_v59  ;;  %957 = vmatpush2.msra.mxu1 %v7202_v50  ;;  %10774 = vst [vmem:[#allocation150_spill] sm:$0xff] %v7226_v26 }
  0xe1   :  { %887 = vmatprep.subr.mxu0 %v7206_v24  ;;  %958 = vmatprep.subr.mxu1 %v7208_v0  ;;  %v351_v0 = vlaneseq }
  0xe2   :  { %888 = vmatpush2.msra.mxu0 %v7212_v5  ;;  %959 = vmatpush2.msra.mxu1 %v7214_v27 }
  0xe3   :  { %889 = vmatprep.subr.mxu0 %v7218_v32  ;;  %960 = vmatprep.subr.mxu1 %v7220_v23  ;;  %v7236_v24 = vshrl.u32 %v351_v0, 7 }
  0xe4   :  { %890 = vmatpush2.msra.mxu0 %v7224_v41  ;;  %961 = vmatpush2.msra.mxu1 %v7226_v26  ;;  %v349_v41 = vld [vmem:[#allocation6] sm:$0xf] }
  0xe5   :  { %993 = vmatprep.subr.mxu0 %v6655_v6  ;;  %1064 = vmatprep.subr.mxu1 %v6657_v7  ;;  %10775 = vst [vmem:[#allocation151_spill] sm:$0xff] %v7236_v24  ;;  %v7243_v27 = vsub.s32 0, %v7236_v24  ;;  %v7246_v23 = vsub.s32 2, %v7236_v24  ;;  %v7253_v6 = vsub.s32 1, %v7236_v24  ;;  %v7256_v0 = vsub.s32 3, %v7236_v24 }
  0xe7   :  { %10776 = vst [vmem:[#allocation152_spill] sm:$0xff] %v7243_v27  ;;  %10777 = vst [vmem:[#allocation153_spill] sm:$0xff] %v7246_v23  ;;  %v354_v7 = vrot.slane %v349_v41, %v7243_v27  ;;  %v7260_v59 = vrot.slane %v349_v41, %v7246_v23  ;;  %v358_v21 = vrot.slane %v349_v41, %v7253_v6 }
  0xe8   :  { %10778 = vst [vmem:[#allocation154_spill] sm:$0xff] %v7253_v6  ;;  %10779 = vst [vmem:[#allocation155_spill] sm:$0xff] %v7256_v0  ;;  %v7264_v20 = vrot.slane %v349_v41, %v7256_v0 }
 0x133   :  { %v7238_v50 = vpop.f32.mrf.mxu0  ;;  %v7240_v5 = vpop.f32.mrf.mxu1 }
 0x135   :  { %v7248_v32 = vpop.f32.mrf.mxu0  ;;  %v7250_v26 = vpop.f32.mrf.mxu1 }
 0x139   :  { %v481_v25 = vpop.f32.mrf.mxu0  ;;  %v594_v22 = vpop.f32.mrf.mxu1 }
 0x13a   :  { %v7266_v19 = vadd.f32 %v481_v25, %v354_v7  ;;  %v7269_v18 = vadd.f32 %v594_v22, %v7260_v59 }
 0x13b   :  { %v483_v17 = vpop.f32.mrf.mxu0  ;;  %v596_v24 = vpop.f32.mrf.mxu1 }
 0x13c   :  { %10780 = vst [vmem:[#allocation156_spill] sm:$0xff] %v7266_v19  ;;  %10781 = vst [vmem:[#allocation157_spill] sm:$0xff] %v7269_v18  ;;  %v7271_v16 = vadd.f32 %v483_v17, %v358_v21  ;;  %v7274_v27 = vadd.f32 %v596_v24, %v7264_v20 }
 0x13e   :  { %10782 = vst [vmem:[#allocation158_spill] sm:$0xff] %v7271_v16  ;;  %10783 = vst [vmem:[#allocation159_spill] sm:$0xff] %v7274_v27 }
 0x13f   :  { %v487_v23 = vpop.f32.mrf.mxu0  ;;  %v600_v15 = vpop.f32.mrf.mxu1 }
 0x140   :  { %v7276_v14 = vadd.f32 %v487_v23, %v354_v7  ;;  %v7279_v6 = vadd.f32 %v600_v15, %v7260_v59 }
 0x141   :  { %v489_v41 = vpop.f32.mrf.mxu0  ;;  %v602_v25 = vpop.f32.mrf.mxu1 }
 0x142   :  { %10784 = vst [vmem:[#allocation160_spill] sm:$0xff] %v7276_v14  ;;  %10785 = vst [vmem:[#allocation161_spill] sm:$0xff] %v7279_v6  ;;  %v7281_v19 = vadd.f32 %v489_v41, %v358_v21  ;;  %v7284_v22 = vadd.f32 %v602_v25, %v7264_v20 }
 0x144   :  { %10786 = vst [vmem:[#allocation162_spill] sm:$0xff] %v7281_v19  ;;  %10787 = vst [vmem:[#allocation163_spill] sm:$0xff] %v7284_v22 }
 0x145   :  { %v493_v18 = vpop.f32.mrf.mxu0  ;;  %v606_v17 = vpop.f32.mrf.mxu1 }
 0x146   :  { %v7286_v16 = vadd.f32 %v493_v18, %v354_v7  ;;  %v7289_v24 = vadd.f32 %v606_v17, %v7260_v59 }
 0x147   :  { %v495_v27 = vpop.f32.mrf.mxu0  ;;  %v608_v23 = vpop.f32.mrf.mxu1 }
 0x148   :  { %10788 = vst [vmem:[#allocation164_spill] sm:$0xff] %v7286_v16  ;;  %10789 = vst [vmem:[#allocation165_spill] sm:$0xff] %v7289_v24  ;;  %v7291_v14 = vadd.f32 %v495_v27, %v358_v21  ;;  %v7294_v15 = vadd.f32 %v608_v23, %v7264_v20 }
 0x14a   :  { %10790 = vst [vmem:[#allocation166_spill] sm:$0xff] %v7291_v14  ;;  %10791 = vst [vmem:[#allocation167_spill] sm:$0xff] %v7294_v15 }
 0x14b   :  { %v499_v6 = vpop.f32.mrf.mxu0  ;;  %v612_v41 = vpop.f32.mrf.mxu1 }
 0x14c   :  { %v7296_v19 = vadd.f32 %v499_v6, %v354_v7  ;;  %v7299_v25 = vadd.f32 %v612_v41, %v7260_v59 }
 0x14d   :  { %v501_v22 = vpop.f32.mrf.mxu0  ;;  %v614_v18 = vpop.f32.mrf.mxu1 }
 0x14e   :  { %10792 = vst [vmem:[#allocation168_spill] sm:$0xff] %v7296_v19  ;;  %10793 = vst [vmem:[#allocation169_spill] sm:$0xff] %v7299_v25  ;;  %v7301_v16 = vadd.f32 %v501_v22, %v358_v21  ;;  %v7304_v17 = vadd.f32 %v614_v18, %v7264_v20 }
 0x150   :  { %10794 = vst [vmem:[#allocation170_spill] sm:$0xff] %v7301_v16  ;;  %10795 = vst [vmem:[#allocation171_spill] sm:$0xff] %v7304_v17 }
 0x151   :  { %v505_v24 = vpop.f32.mrf.mxu0  ;;  %v618_v27 = vpop.f32.mrf.mxu1 }
 0x152   :  { %v7306_v14 = vadd.f32 %v505_v24, %v354_v7  ;;  %v7309_v23 = vadd.f32 %v618_v27, %v7260_v59 }
 0x153   :  { %v507_v15 = vpop.f32.mrf.mxu0  ;;  %v620_v6 = vpop.f32.mrf.mxu1 }
 0x154   :  { %10796 = vst [vmem:[#allocation172_spill] sm:$0xff] %v7306_v14  ;;  %10797 = vst [vmem:[#allocation173_spill] sm:$0xff] %v7309_v23  ;;  %v7311_v19 = vadd.f32 %v507_v15, %v358_v21  ;;  %v7314_v41 = vadd.f32 %v620_v6, %v7264_v20 }
 0x156   :  { %10798 = vst [vmem:[#allocation174_spill] sm:$0xff] %v7311_v19  ;;  %10799 = vst [vmem:[#allocation175_spill] sm:$0xff] %v7314_v41 }
 0x157   :  { %v511_v25 = vpop.f32.mrf.mxu0  ;;  %v624_v22 = vpop.f32.mrf.mxu1 }
 0x158   :  { %v7316_v16 = vadd.f32 %v511_v25, %v354_v7  ;;  %v7319_v18 = vadd.f32 %v624_v22, %v7260_v59 }
 0x159   :  { %v513_v17 = vpop.f32.mrf.mxu0  ;;  %v626_v24 = vpop.f32.mrf.mxu1 }
 0x15a   :  { %10800 = vst [vmem:[#allocation176_spill] sm:$0xff] %v7316_v16  ;;  %10801 = vst [vmem:[#allocation177_spill] sm:$0xff] %v7319_v18  ;;  %v7321_v14 = vadd.f32 %v513_v17, %v358_v21  ;;  %v7324_v27 = vadd.f32 %v626_v24, %v7264_v20  ;;  %v476_v17 = vadd.f32 %v7238_v50, %v354_v7 }
 0x15b   :  { %v478_v24 = vadd.f32 %v7248_v32, %v358_v21 }
 0x15c   :  { %10802 = vst [vmem:[#allocation178_spill] sm:$0xff] %v7321_v14  ;;  %10803 = vst [vmem:[#allocation179_spill] sm:$0xff] %v7324_v27 }
 0x15d   :  { %v517_v23 = vpop.f32.mrf.mxu0  ;;  %v630_v15 = vpop.f32.mrf.mxu1 }
 0x15e   :  { %v7326_v19 = vadd.f32 %v517_v23, %v354_v7  ;;  %v7329_v6 = vadd.f32 %v630_v15, %v7260_v59 }
 0x15f   :  { %v519_v41 = vpop.f32.mrf.mxu0  ;;  %v632_v25 = vpop.f32.mrf.mxu1 }
 0x160   :  { %10804 = vst [vmem:[#allocation180_spill] sm:$0xff] %v7326_v19  ;;  %10805 = vst [vmem:[#allocation181_spill] sm:$0xff] %v7329_v6  ;;  %v7331_v16 = vadd.f32 %v519_v41, %v358_v21  ;;  %v7334_v22 = vadd.f32 %v632_v25, %v7264_v20  ;;  %v591_v41 = vadd.f32 %v7250_v26, %v7264_v20 }
 0x161   :  { %v589_v25 = vadd.f32 %v7240_v5, %v7260_v59  ;;  %v7349_v5 = vld [vmem:[#allocation4 + $0x1e0] sm:$0xff] }
 0x162   :  { %10806 = vst [vmem:[#allocation182_spill] sm:$0xff] %v7331_v16  ;;  %10807 = vst [vmem:[#allocation183_spill] sm:$0xff] %v7334_v22 }
 0x163   :  { %v723_v18 = vpop.f32.mrf.mxu0  ;;  %v794_v19 = vpop.f32.mrf.mxu1 }
 0x164   :  { %v799_v27 = vadd.f32 %v723_v18, %v476_v17  ;;  %v801_v22 = vadd.f32 %v794_v19, %v589_v25  ;;  %v7364_v25 = vld [vmem:[#allocation4 + $0x1d0] sm:$0xff] }
 0x165   :  { %v725_v14 = vpop.f32.mrf.mxu0  ;;  %v796_v6 = vpop.f32.mrf.mxu1 }
 0x166   :  { %v5340_v0 = vmul.f32 -1.442695, %v799_v27  ;;  %v800_v23 = vadd.f32 %v725_v14, %v478_v24  ;;  %v802_v16 = vadd.f32 %v796_v6, %v591_v41  ;;  %v7361_v41 = vld [vmem:[#allocation4 + $0x1c0] sm:$0xff] }
 0x168   :  { %5512 = vpow2.f32 %v5340_v0  ;;  %v5341_v15 = vmul.f32 -1.442695, %v800_v23  ;;  %v5342_v50 = vmul.f32 -1.442695, %v802_v16  ;;  %v7355_v23 = vld [vmem:[#allocation4 + $0x1c8] sm:$0xff] }
 0x16a   :  { %5514 = vpow2.f32 %v5341_v15  ;;  %v7358_v15 = vld [vmem:[#allocation4 + $0x1d8] sm:$0xff] }
 0x16b   :  { %5516 = vpow2.f32 %v5342_v50  ;;  %v7367_v50 = vld [vmem:[#allocation4 + $0x1a8] sm:$0xff] }
 0x175   :  { %v5513_v7 = vpop.eup %5512 }
 0x176   :  { %v806_v21 = vadd.f32 1.0, %v5513_v7  ;;  %v7370_v7 = vld [vmem:[#allocation4 + $0x1b8] sm:$0xff] }
 0x177   :  { %v5515_v32 = vpop.eup %5514 }
 0x178   :  { %5518 = vrcp.f32 %v806_v21  ;;  %v812_v14 = vadd.f32 1.0, %v5515_v32  ;;  %v5517_v0 = vpop.eup %5516  ;;  %v7373_v21 = vld [vmem:[#allocation4 + $0x1a0] sm:$0xff]  ;;  %v7376_v32 = vld [vmem:[#allocation4 + $0x1b0] sm:$0xff] }
 0x179   :  { %5520 = vtanh.f32 %v801_v22  ;;  %v819_v24 = vadd.f32 1.0, %v5517_v0  ;;  %v7352_v22 = vld [vmem:[#allocation4 + $0x1f0] sm:$0xff]  ;;  %v7382_v0 = vld [vmem:[#allocation4 + $0x198] sm:$0xff] }
 0x17a   :  { %5522 = vrcp.f32 %v812_v14  ;;  %v7379_v14 = vld [vmem:[#allocation4 + $0x188] sm:$0xff] }
 0x17b   :  { %5524 = vrcp.f32 %v819_v24  ;;  %v7394_v24 = vld [vmem:[#allocation4 + $0x178] sm:$0xff] }
 0x185   :  { %v5519_v18 = vpop.eup %5518 }
 0x186   :  { %v5521_v27 = vpop.eup %5520 }
 0x187   :  { %v5523_v17 = vpop.eup %5522  ;;  %v823_v26 = vmul.f32 %v5521_v27, %v5519_v18  ;;  %v7385_v18 = vld [vmem:[#allocation4 + $0x180] sm:$0xff]  ;;  %v7388_v27 = vld [vmem:[#allocation4 + $0x190] sm:$0xff] }
 0x188   :  { %v822_v20 = vmul.f32 0.0, %v5523_v17  ;;  %v5525_v16 = vpop.eup %5524  ;;  %v7391_v17 = vld [vmem:[#allocation4 + $0x168] sm:$0xff] }
 0x18a   :  { %v7342_v6 = vadd.f32 %v823_v26, %v822_v20  ;;  %v7397_v20 = vld [vmem:[#allocation4 + $0x160] sm:$0xff]  ;;  %v7400_v26 = vld [vmem:[#allocation4 + $0x170] sm:$0xff] }
 0x18c   :  { %5526 = vtanh.f32 %v7342_v6 }
 0x199   :  { %v5527_v19 = vpop.eup %5526 }
 0x19a   :  { %v7345_v59 = vmul.f32 %v5527_v19, %v5525_v16  ;;  %v10850_v16 = vld [vmem:[#allocation62_spill] sm:$0xff]  ;;  %v10851_v19 = vld [vmem:[#allocation63_spill] sm:$0xff] }
 0x19c   :  { %892 = vmatmul.mubr.f32.vlgmr.msra.gmra.mxu0 %v7345_v59  ;;  %963 = vmatmul.mubr.f32.vlgmr.msra.gmra.mxu1 %v7345_v59 }
 0x19d   :  { %994 = vmatpush1.msra.mxu0 %v7349_v5  ;;  %1065 = vmatpush1.msra.mxu1 %v7352_v22 }
 0x19e   :  { %995 = vmatprep.subr.mxu0 %v7355_v23  ;;  %1066 = vmatprep.subr.mxu1 %v7358_v15 }
 0x19f   :  { %996 = vmatpush1.msra.mxu0 %v7361_v41  ;;  %1067 = vmatpush1.msra.mxu1 %v7364_v25 }
 0x1a0   :  { %997 = vmatprep.subr.mxu0 %v7367_v50  ;;  %1068 = vmatprep.subr.mxu1 %v7370_v7 }
 0x1a1   :  { %998 = vmatpush1.msra.mxu0 %v7373_v21  ;;  %1069 = vmatpush1.msra.mxu1 %v7376_v32 }
 0x1a2   :  { %999 = vmatprep.subr.mxu0 %v7379_v14  ;;  %1070 = vmatprep.subr.mxu1 %v7382_v0 }
 0x1a3   :  { %1000 = vmatpush1.msra.mxu0 %v7385_v18  ;;  %1071 = vmatpush1.msra.mxu1 %v7388_v27 }
 0x1a4   :  { %1001 = vmatprep.subr.mxu0 %v7391_v17  ;;  %1072 = vmatprep.subr.mxu1 %v7394_v24 }
 0x1a5   :  { %1002 = vmatpush1.msra.mxu0 %v7397_v20  ;;  %1073 = vmatpush1.msra.mxu1 %v7400_v26 }
 0x1a6   :  { %1003 = vmatprep.subr.mxu0 %v6677_v28  ;;  %1074 = vmatprep.subr.mxu1 %v6679_v29  ;;  %v10808_v28 = vld [vmem:[#allocation21_spill] sm:$0xff]  ;;  %v10809_v29 = vmov 0.0  }
 0x1a7   :  { %1004 = vmatpush1.msra.mxu0 %v6681_v30  ;;  %1075 = vmatpush1.msra.mxu1 %v6683_v31  ;;  %v10810_v30 = vld [vmem:[#allocation22_spill] sm:$0xff]  ;;  %v10811_v31 = vld [vmem:[#allocation23_spill] sm:$0xff] }
 0x1a8   :  { %1005 = vmatprep.subr.mxu0 %v6692_v33  ;;  %1076 = vmatprep.subr.mxu1 %v6694_v34  ;;  %v10812_v33 = vld [vmem:[#allocation24_spill] sm:$0xff]  ;;  %v10813_v34 = vld [vmem:[#allocation25_spill] sm:$0xff] }
 0x1a9   :  { %1006 = vmatpush1.msra.mxu0 %v6698_v35  ;;  %1077 = vmatpush1.msra.mxu1 %v6700_v36  ;;  %v10814_v35 = vld [vmem:[#allocation26_spill] sm:$0xff]  ;;  %v10815_v36 = vld [vmem:[#allocation27_spill] sm:$0xff] }
 0x1aa   :  { %1007 = vmatprep.subr.mxu0 %v6704_v37  ;;  %1078 = vmatprep.subr.mxu1 %v6706_v38  ;;  %v10816_v37 = vld [vmem:[#allocation28_spill] sm:$0xff]  ;;  %v10817_v38 = vld [vmem:[#allocation29_spill] sm:$0xff] }
 0x1ab   :  { %1008 = vmatpush1.msra.mxu0 %v6712_v39  ;;  %1079 = vmatpush1.msra.mxu1 %v6714_v40  ;;  %v10818_v39 = vld [vmem:[#allocation30_spill] sm:$0xff]  ;;  %v10819_v40 = vld [vmem:[#allocation31_spill] sm:$0xff] }
 0x1ac   :  { %1009 = vmatprep.subr.mxu0 %v6723_v42  ;;  %1080 = vmatprep.subr.mxu1 %v6725_v43  ;;  %v10820_v42 = vld [vmem:[#allocation32_spill] sm:$0xff]  ;;  %v10821_v43 = vld [vmem:[#allocation33_spill] sm:$0xff] }
 0x1ad   :  { %1010 = vmatpush1.msra.mxu0 %v6729_v44  ;;  %1081 = vmatpush1.msra.mxu1 %v6731_v45  ;;  %v10822_v44 = vld [vmem:[#allocation34_spill] sm:$0xff]  ;;  %v10823_v45 = vld [vmem:[#allocation35_spill] sm:$0xff] }
 0x1ae   :  { %1011 = vmatprep.subr.mxu0 %v6735_v46  ;;  %1082 = vmatprep.subr.mxu1 %v6737_v47  ;;  %v10824_v46 = vld [vmem:[#allocation36_spill] sm:$0xff]  ;;  %v10825_v47 = vld [vmem:[#allocation37_spill] sm:$0xff] }
 0x1af   :  { %1012 = vmatpush1.msra.mxu0 %v6743_v48  ;;  %1083 = vmatpush1.msra.mxu1 %v6745_v49  ;;  %v10826_v48 = vld [vmem:[#allocation38_spill] sm:$0xff]  ;;  %v10827_v49 = vld [vmem:[#allocation39_spill] sm:$0xff] }
 0x1b0   :  { %1013 = vmatprep.subr.mxu0 %v6754_v51  ;;  %1084 = vmatprep.subr.mxu1 %v6756_v52  ;;  %v10828_v51 = vld [vmem:[#allocation40_spill] sm:$0xff]  ;;  %v10829_v52 = vld [vmem:[#allocation41_spill] sm:$0xff] }
 0x1b1   :  { %1014 = vmatpush1.msra.mxu0 %v6760_v53  ;;  %1085 = vmatpush1.msra.mxu1 %v6762_v54  ;;  %v10830_v53 = vld [vmem:[#allocation42_spill] sm:$0xff]  ;;  %v10831_v54 = vld [vmem:[#allocation43_spill] sm:$0xff] }
 0x1b2   :  { %1015 = vmatprep.subr.mxu0 %v6766_v55  ;;  %1086 = vmatprep.subr.mxu1 %v6768_v56  ;;  %v10832_v55 = vld [vmem:[#allocation44_spill] sm:$0xff]  ;;  %v10833_v56 = vld [vmem:[#allocation45_spill] sm:$0xff] }
 0x1b3   :  { %1016 = vmatpush1.msra.mxu0 %v6774_v57  ;;  %1087 = vmatpush1.msra.mxu1 %v6776_v58  ;;  %v10834_v57 = vld [vmem:[#allocation46_spill] sm:$0xff]  ;;  %v10835_v58 = vld [vmem:[#allocation47_spill] sm:$0xff] }
 0x1b4   :  { %1017 = vmatprep.subr.mxu0 %v6785_v60  ;;  %1088 = vmatprep.subr.mxu1 %v6787_v61  ;;  %v10836_v60 = vld [vmem:[#allocation48_spill] sm:$0xff]  ;;  %v10837_v61 = vld [vmem:[#allocation49_spill] sm:$0xff] }
 0x1b5   :  { %1018 = vmatpush1.msra.mxu0 %v6791_v62  ;;  %1089 = vmatpush1.msra.mxu1 %v6793_v63  ;;  %v10838_v62 = vld [vmem:[#allocation50_spill] sm:$0xff]  ;;  %v10839_v63 = vld [vmem:[#allocation51_spill] sm:$0xff] }
 0x1b6   :  { %1019 = vmatprep.subr.mxu0 %v6797_v1  ;;  %1090 = vmatprep.subr.mxu1 %v6799_v2  ;;  %v10840_v1 = vld [vmem:[#allocation52_spill] sm:$0xff]  ;;  %v10841_v2 = vld [vmem:[#allocation53_spill] sm:$0xff] }
 0x1b7   :  { %1020 = vmatpush1.msra.mxu0 %v6805_v3  ;;  %1091 = vmatpush1.msra.mxu1 %v6807_v4  ;;  %v10842_v3 = vld [vmem:[#allocation54_spill] sm:$0xff]  ;;  %v10843_v4 = vld [vmem:[#allocation55_spill] sm:$0xff] }
 0x1b8   :  { %1021 = vmatprep.subr.mxu0 %v6816_v8  ;;  %1092 = vmatprep.subr.mxu1 %v6818_v9  ;;  %v10844_v8 = vld [vmem:[#allocation56_spill] sm:$0xff]  ;;  %v10845_v9 = vld [vmem:[#allocation57_spill] sm:$0xff] }
 0x1b9   :  { %1022 = vmatpush1.msra.mxu0 %v6822_v10  ;;  %1093 = vmatpush1.msra.mxu1 %v6824_v11  ;;  %v10846_v10 = vld [vmem:[#allocation58_spill] sm:$0xff]  ;;  %v10847_v11 = vld [vmem:[#allocation59_spill] sm:$0xff] }
 0x1ba   :  { %1023 = vmatprep.subr.mxu0 %v6828_v12  ;;  %1094 = vmatprep.subr.mxu1 %v6830_v13  ;;  %v10848_v12 = vld [vmem:[#allocation60_spill] sm:$0xff]  ;;  %v10849_v13 = vld [vmem:[#allocation61_spill] sm:$0xff] }
 0x1bb   :  { %1024 = vmatpush1.msra.mxu0 %v10808_v28  ;;  %1057 = vmatprep.mubr.f32.mxu0 %v10809_v29  ;;  %v10853_v28 = vld [vmem:[#allocation65_spill] sm:$0xff] }
 0x1bc   :  { %1095 = vmatpush1.msra.mxu1 %v10810_v30  ;;  %1128 = vmatprep.mubr.f32.mxu1 %v10809_v29  ;;  %v10854_v30 = vld [vmem:[#allocation66_spill] sm:$0xff] }
 0x1bd   :  { %1058 = vmatmul.mubr.f32.vlgmr.msra.gmra.mxu0 %v7345_v59  ;;  %1129 = vmatmul.mubr.f32.vlgmr.msra.gmra.mxu1 %v7345_v59  ;;  %v10852_v59 = vld [vmem:[#allocation64_spill] sm:$0xff] }
 0x1be   :  { %1163 = vmatprep.subr.mxu0 %v10811_v31  ;;  %1234 = vmatprep.subr.mxu1 %v10812_v33  ;;  %v10855_v31 = vld [vmem:[#allocation67_spill] sm:$0xff]  ;;  %v10856_v33 = vld [vmem:[#allocation68_spill] sm:$0xff] }
 0x1bf   :  { %1164 = vmatpush1.msra.mxu0 %v10813_v34  ;;  %1235 = vmatpush1.msra.mxu1 %v10814_v35  ;;  %v10857_v34 = vld [vmem:[#allocation69_spill] sm:$0xff]  ;;  %v10858_v35 = vld [vmem:[#allocation70_spill] sm:$0xff] }
 0x1c0   :  { %1165 = vmatprep.subr.mxu0 %v10815_v36  ;;  %1236 = vmatprep.subr.mxu1 %v10816_v37  ;;  %v10859_v36 = vld [vmem:[#allocation71_spill] sm:$0xff]  ;;  %v10860_v37 = vld [vmem:[#allocation72_spill] sm:$0xff] }
 0x1c1   :  { %1166 = vmatpush1.msra.mxu0 %v10817_v38  ;;  %1237 = vmatpush1.msra.mxu1 %v10818_v39  ;;  %v10861_v38 = vld [vmem:[#allocation73_spill] sm:$0xff]  ;;  %v10862_v39 = vld [vmem:[#allocation74_spill] sm:$0xff] }
 0x1c2   :  { %1167 = vmatprep.subr.mxu0 %v10819_v40  ;;  %1238 = vmatprep.subr.mxu1 %v10820_v42  ;;  %v10863_v40 = vld [vmem:[#allocation75_spill] sm:$0xff]  ;;  %v10864_v42 = vld [vmem:[#allocation76_spill] sm:$0xff] }
 0x1c3   :  { %1168 = vmatpush1.msra.mxu0 %v10821_v43  ;;  %1239 = vmatpush1.msra.mxu1 %v10822_v44  ;;  %v10865_v43 = vld [vmem:[#allocation77_spill] sm:$0xff]  ;;  %v10866_v44 = vld [vmem:[#allocation78_spill] sm:$0xff] }
 0x1c4   :  { %1169 = vmatprep.subr.mxu0 %v10823_v45  ;;  %1240 = vmatprep.subr.mxu1 %v10824_v46  ;;  %v10867_v45 = vld [vmem:[#allocation79_spill] sm:$0xff]  ;;  %v10868_v46 = vld [vmem:[#allocation80_spill] sm:$0xff] }
 0x1c5   :  { %1170 = vmatpush1.msra.mxu0 %v10825_v47  ;;  %1241 = vmatpush1.msra.mxu1 %v10826_v48  ;;  %v10869_v47 = vld [vmem:[#allocation81_spill] sm:$0xff]  ;;  %v10870_v48 = vld [vmem:[#allocation82_spill] sm:$0xff] }
 0x1c6   :  { %1171 = vmatprep.subr.mxu0 %v10827_v49  ;;  %1242 = vmatprep.subr.mxu1 %v10828_v51  ;;  %v10871_v49 = vld [vmem:[#allocation83_spill] sm:$0xff]  ;;  %v10872_v51 = vld [vmem:[#allocation84_spill] sm:$0xff] }
 0x1c7   :  { %1172 = vmatpush1.msra.mxu0 %v10829_v52  ;;  %1243 = vmatpush1.msra.mxu1 %v10830_v53  ;;  %v10873_v52 = vld [vmem:[#allocation85_spill] sm:$0xff]  ;;  %v10874_v53 = vld [vmem:[#allocation86_spill] sm:$0xff] }
 0x1c8   :  { %1173 = vmatprep.subr.mxu0 %v10831_v54  ;;  %1244 = vmatprep.subr.mxu1 %v10832_v55  ;;  %v10875_v54 = vld [vmem:[#allocation87_spill] sm:$0xff]  ;;  %v10876_v55 = vld [vmem:[#allocation88_spill] sm:$0xff] }
 0x1c9   :  { %1174 = vmatpush1.msra.mxu0 %v10833_v56  ;;  %1245 = vmatpush1.msra.mxu1 %v10834_v57  ;;  %v10877_v56 = vld [vmem:[#allocation89_spill] sm:$0xff]  ;;  %v10878_v57 = vld [vmem:[#allocation90_spill] sm:$0xff] }
 0x1ca   :  { %1175 = vmatprep.subr.mxu0 %v10835_v58  ;;  %1246 = vmatprep.subr.mxu1 %v10836_v60  ;;  %v10879_v58 = vld [vmem:[#allocation91_spill] sm:$0xff]  ;;  %v10880_v60 = vld [vmem:[#allocation92_spill] sm:$0xff] }
 0x1cb   :  { %1176 = vmatpush1.msra.mxu0 %v10837_v61  ;;  %1247 = vmatpush1.msra.mxu1 %v10838_v62  ;;  %v10881_v61 = vld [vmem:[#allocation93_spill] sm:$0xff]  ;;  %v10882_v62 = vld [vmem:[#allocation94_spill] sm:$0xff] }
 0x1cc   :  { %1177 = vmatprep.subr.mxu0 %v10839_v63  ;;  %1248 = vmatprep.subr.mxu1 %v10840_v1  ;;  %v10883_v63 = vld [vmem:[#allocation95_spill] sm:$0xff]  ;;  %v10884_v1 = vld [vmem:[#allocation96_spill] sm:$0xff] }
 0x1cd   :  { %1178 = vmatpush1.msra.mxu0 %v10841_v2  ;;  %1249 = vmatpush1.msra.mxu1 %v10842_v3  ;;  %v10885_v2 = vld [vmem:[#allocation97_spill] sm:$0xff]  ;;  %v10886_v3 = vld [vmem:[#allocation98_spill] sm:$0xff] }
 0x1ce   :  { %1179 = vmatprep.subr.mxu0 %v10843_v4  ;;  %1250 = vmatprep.subr.mxu1 %v10844_v8  ;;  %v10887_v4 = vld [vmem:[#allocation99_spill] sm:$0xff]  ;;  %v10888_v8 = vld [vmem:[#allocation100_spill] sm:$0xff] }
 0x1cf   :  { %1180 = vmatpush1.msra.mxu0 %v10845_v9  ;;  %1251 = vmatpush1.msra.mxu1 %v10846_v10  ;;  %v10889_v9 = vld [vmem:[#allocation101_spill] sm:$0xff]  ;;  %v10890_v10 = vld [vmem:[#allocation102_spill] sm:$0xff] }
 0x1d0   :  { %1181 = vmatprep.subr.mxu0 %v10847_v11  ;;  %1252 = vmatprep.subr.mxu1 %v10848_v12  ;;  %v10891_v11 = vld [vmem:[#allocation103_spill] sm:$0xff]  ;;  %v10892_v12 = vld [vmem:[#allocation104_spill] sm:$0xff] }
 0x1d1   :  { %1182 = vmatpush1.msra.mxu0 %v10849_v13  ;;  %1253 = vmatpush1.msra.mxu1 %v10850_v16  ;;  %v10893_v13 = vld [vmem:[#allocation105_spill] sm:$0xff]  ;;  %v10894_v16 = vld [vmem:[#allocation106_spill] sm:$0xff] }
 0x1d2   :  { %1183 = vmatprep.subr.mxu0 %v10851_v19  ;;  %1254 = vmatprep.subr.mxu1 %v10852_v59  ;;  %v10895_v19 = vld [vmem:[#allocation107_spill] sm:$0xff]  ;;  %v10896_v59 = vld [vmem:[#allocation108_spill] sm:$0xff] }
 0x1d3   :  { %1184 = vmatpush1.msra.mxu0 %v10853_v28  ;;  %1255 = vmatpush1.msra.mxu1 %v10854_v30  ;;  %v10897_v28 = vld [vmem:[#allocation109_spill] sm:$0xff]  ;;  %v10898_v30 = vld [vmem:[#allocation110_spill] sm:$0xff] }
 0x1d4   :  { %1185 = vmatprep.subr.mxu0 %v10855_v31  ;;  %1256 = vmatprep.subr.mxu1 %v10856_v33  ;;  %v10899_v31 = vld [vmem:[#allocation111_spill] sm:$0xff]  ;;  %v10900_v33 = vld [vmem:[#allocation112_spill] sm:$0xff] }
 0x1d5   :  { %1186 = vmatpush1.msra.mxu0 %v10857_v34  ;;  %1257 = vmatpush1.msra.mxu1 %v10858_v35  ;;  %v10901_v34 = vld [vmem:[#allocation113_spill] sm:$0xff]  ;;  %v10902_v35 = vld [vmem:[#allocation114_spill] sm:$0xff] }
 0x1d6   :  { %1187 = vmatprep.subr.mxu0 %v10859_v36  ;;  %1258 = vmatprep.subr.mxu1 %v10860_v37  ;;  %v10903_v36 = vld [vmem:[#allocation115_spill] sm:$0xff]  ;;  %v10904_v37 = vld [vmem:[#allocation116_spill] sm:$0xff] }
 0x1d7   :  { %1188 = vmatpush1.msra.mxu0 %v10861_v38  ;;  %1259 = vmatpush1.msra.mxu1 %v10862_v39  ;;  %v10905_v38 = vld [vmem:[#allocation117_spill] sm:$0xff]  ;;  %v10906_v39 = vld [vmem:[#allocation118_spill] sm:$0xff] }
 0x1d8   :  { %1189 = vmatprep.subr.mxu0 %v10863_v40  ;;  %1260 = vmatprep.subr.mxu1 %v10864_v42  ;;  %v10907_v40 = vld [vmem:[#allocation119_spill] sm:$0xff]  ;;  %v10908_v42 = vld [vmem:[#allocation120_spill] sm:$0xff] }
 0x1d9   :  { %1190 = vmatpush1.msra.mxu0 %v10865_v43  ;;  %1261 = vmatpush1.msra.mxu1 %v10866_v44  ;;  %v10909_v43 = vld [vmem:[#allocation121_spill] sm:$0xff]  ;;  %v10910_v44 = vld [vmem:[#allocation122_spill] sm:$0xff] }
 0x1da   :  { %1191 = vmatprep.subr.mxu0 %v10867_v45  ;;  %1262 = vmatprep.subr.mxu1 %v10868_v46  ;;  %v10911_v45 = vld [vmem:[#allocation123_spill] sm:$0xff]  ;;  %v10912_v46 = vld [vmem:[#allocation124_spill] sm:$0xff] }
 0x1db   :  { %1192 = vmatpush1.msra.mxu0 %v10869_v47  ;;  %1263 = vmatpush1.msra.mxu1 %v10870_v48  ;;  %v10913_v47 = vld [vmem:[#allocation125_spill] sm:$0xff]  ;;  %v10914_v48 = vld [vmem:[#allocation126_spill] sm:$0xff] }
 0x1dc   :  { %1193 = vmatprep.subr.mxu0 %v10871_v49  ;;  %1264 = vmatprep.subr.mxu1 %v10872_v51  ;;  %v10915_v49 = vld [vmem:[#allocation127_spill] sm:$0xff]  ;;  %v10916_v51 = vld [vmem:[#allocation128_spill] sm:$0xff] }
 0x1dd   :  { %1194 = vmatpush1.msra.mxu0 %v10873_v52  ;;  %1265 = vmatpush1.msra.mxu1 %v10874_v53  ;;  %v10917_v52 = vld [vmem:[#allocation129_spill] sm:$0xff]  ;;  %v10918_v53 = vld [vmem:[#allocation130_spill] sm:$0xff] }
 0x1de   :  { %1195 = vmatprep.subr.mxu0 %v10875_v54  ;;  %1266 = vmatprep.subr.mxu1 %v10876_v55  ;;  %v10919_v54 = vld [vmem:[#allocation131_spill] sm:$0xff]  ;;  %v10920_v55 = vld [vmem:[#allocation132_spill] sm:$0xff] }
 0x1df   :  { %1196 = vmatpush2.msra.mxu0 %v10877_v56  ;;  %1267 = vmatpush2.msra.mxu1 %v10878_v57  ;;  %v10921_v56 = vld [vmem:[#allocation133_spill] sm:$0xff]  ;;  %v10922_v57 = vld [vmem:[#allocation134_spill] sm:$0xff] }
 0x1e0   :  { %1197 = vmatprep.subr.mxu0 %v10879_v58  ;;  %1268 = vmatprep.subr.mxu1 %v10880_v60  ;;  %v10923_v58 = vld [vmem:[#allocation135_spill] sm:$0xff]  ;;  %v10924_v60 = vld [vmem:[#allocation136_spill] sm:$0xff] }
 0x1e1   :  { %1198 = vmatpush2.msra.mxu0 %v10881_v61  ;;  %1269 = vmatpush2.msra.mxu1 %v10882_v62  ;;  %v10925_v61 = vld [vmem:[#allocation137_spill] sm:$0xff]  ;;  %v10926_v62 = vld [vmem:[#allocation138_spill] sm:$0xff] }
 0x1e2   :  { %1199 = vmatprep.subr.mxu0 %v10883_v63  ;;  %1270 = vmatprep.subr.mxu1 %v10884_v1  ;;  %v10927_v63 = vld [vmem:[#allocation139_spill] sm:$0xff]  ;;  %v10928_v1 = vld [vmem:[#allocation140_spill] sm:$0xff] }
 0x1e3   :  { %1200 = vmatpush2.msra.mxu0 %v10885_v2  ;;  %1271 = vmatpush2.msra.mxu1 %v10886_v3  ;;  %v10929_v2 = vld [vmem:[#allocation141_spill] sm:$0xff]  ;;  %v10930_v3 = vld [vmem:[#allocation142_spill] sm:$0xff] }
 0x1e4   :  { %1201 = vmatprep.subr.mxu0 %v10887_v4  ;;  %1272 = vmatprep.subr.mxu1 %v10888_v8  ;;  %v10931_v4 = vld [vmem:[#allocation143_spill] sm:$0xff]  ;;  %v10932_v8 = vld [vmem:[#allocation144_spill] sm:$0xff] }
 0x1e5   :  { %1202 = vmatpush2.msra.mxu0 %v10889_v9  ;;  %1273 = vmatpush2.msra.mxu1 %v10890_v10  ;;  %v10933_v9 = vld [vmem:[#allocation145_spill] sm:$0xff]  ;;  %v10934_v10 = vld [vmem:[#allocation146_spill] sm:$0xff] }
 0x1e6   :  { %1203 = vmatprep.subr.mxu0 %v10891_v11  ;;  %1274 = vmatprep.subr.mxu1 %v10892_v12  ;;  %v10935_v11 = vld [vmem:[#allocation147_spill] sm:$0xff]  ;;  %v10936_v12 = vld [vmem:[#allocation148_spill] sm:$0xff] }
 0x1e7   :  { %1204 = vmatpush2.msra.mxu0 %v10893_v13  ;;  %1275 = vmatpush2.msra.mxu1 %v10894_v16  ;;  %v10937_v13 = vld [vmem:[#allocation149_spill] sm:$0xff]  ;;  %v10938_v16 = vld [vmem:[#allocation150_spill] sm:$0xff] }
 0x1e8   :  { %1205 = vmatprep.subr.mxu0 %v10895_v19  ;;  %1276 = vmatprep.subr.mxu1 %v10896_v59  ;;  %v7579_v19 = vld [vmem:[#allocation4 + $0x1e8] sm:$0xff]  ;;  %v7582_v59 = vld [vmem:[#allocation4 + $0x1f8] sm:$0xff] }
 0x1e9   :  { %1206 = vmatpush2.msra.mxu0 %v10897_v28  ;;  %1277 = vmatpush2.msra.mxu1 %v10898_v30  ;;  %v635_v28 = vld [vmem:[#allocation9] sm:$0xf]  ;;  %v10939_v30 = vld [vmem:[#allocation152_spill] sm:$0xff] }
 0x1ea   :  { %1207 = vmatprep.subr.mxu0 %v10899_v31  ;;  %1278 = vmatprep.subr.mxu1 %v10900_v33  ;;  %v7586_v31 = vrot.slane %v635_v28, %v10939_v30  ;;  %v10941_v33 = vld [vmem:[#allocation154_spill] sm:$0xff]  ;;  %v7798_v30 = vld [vmem:[#allocation7 + $0x1a8] sm:$0xff] }
 0x1eb   :  { %1208 = vmatpush2.msra.mxu0 %v10901_v34  ;;  %1279 = vmatpush2.msra.mxu1 %v10902_v35  ;;  %v7589_v34 = vrot.slane %v635_v28, %v10941_v33  ;;  %10962 = vst [vmem:[#allocation36_spill] sm:$0xff] %v7798_v30  ;;  %v7801_v33 = vld [vmem:[#allocation7 + $0x1b8] sm:$0xff] }
 0x1ec   :  { %1209 = vmatprep.subr.mxu0 %v10903_v36  ;;  %1280 = vmatprep.subr.mxu1 %v10904_v37  ;;  %10940 = vst [vmem:[#allocation21_spill] sm:$0xff] %v7586_v31  ;;  %10963 = vst [vmem:[#allocation37_spill] sm:$0xff] %v7801_v33 }
 0x1ed   :  { %1210 = vmatpush2.msra.mxu0 %v10905_v38  ;;  %1281 = vmatpush2.msra.mxu1 %v10906_v39  ;;  %10942 = vst [vmem:[#allocation22_spill] sm:$0xff] %v7589_v34 }
 0x1ee   :  { %1211 = vmatprep.subr.mxu0 %v10907_v40  ;;  %1282 = vmatprep.subr.mxu1 %v10908_v42 }
 0x1ef   :  { %1212 = vmatpush2.msra.mxu0 %v10909_v43  ;;  %1283 = vmatpush2.msra.mxu1 %v10910_v44  ;;  %v10943_v43 = vld [vmem:[#allocation155_spill] sm:$0xff] }
 0x1f0   :  { %1213 = vmatprep.subr.mxu0 %v10911_v45  ;;  %1284 = vmatprep.subr.mxu1 %v10912_v46  ;;  %v7594_v44 = vrot.slane %v635_v28, %v10943_v43  ;;  %v7795_v43 = vld [vmem:[#allocation7 + $0x1d0] sm:$0xff] }
 0x1f1   :  { %1214 = vmatpush2.msra.mxu0 %v10913_v47  ;;  %1285 = vmatpush2.msra.mxu1 %v10914_v48  ;;  %v10945_v47 = vld [vmem:[#allocation153_spill] sm:$0xff]  ;;  %10961 = vst [vmem:[#allocation35_spill] sm:$0xff] %v7795_v43 }
 0x1f2   :  { %1215 = vmatprep.subr.mxu0 %v10915_v49  ;;  %1286 = vmatprep.subr.mxu1 %v10916_v51  ;;  %10944 = vst [vmem:[#allocation23_spill] sm:$0xff] %v7594_v44  ;;  %v7598_v48 = vrot.slane %v635_v28, %v10945_v47  ;;  %v10949_v28 = vld [vmem:[#allocation159_spill] sm:$0xff] }
 0x1f3   :  { %1216 = vmatpush2.msra.mxu0 %v10917_v52  ;;  %1287 = vmatpush2.msra.mxu1 %v10918_v53  ;;  %v7792_v47 = vld [vmem:[#allocation7 + $0x1c0] sm:$0xff] }
 0x1f4   :  { %1217 = vmatprep.subr.mxu0 %v10919_v54  ;;  %1288 = vmatprep.subr.mxu1 %v10920_v55  ;;  %10946 = vst [vmem:[#allocation24_spill] sm:$0xff] %v7598_v48  ;;  %10960 = vst [vmem:[#allocation34_spill] sm:$0xff] %v7792_v47 }
 0x1f5   :  { %1218 = vmatpush2.msra.mxu0 %v10921_v56  ;;  %1289 = vmatpush2.msra.mxu1 %v10922_v57 }
 0x1f6   :  { %1219 = vmatprep.subr.mxu0 %v10923_v58  ;;  %1290 = vmatprep.subr.mxu1 %v10924_v60  ;;  %v10947_v60 = vld [vmem:[#allocation156_spill] sm:$0xff] }
 0x1f7   :  { %1220 = vmatpush2.msra.mxu0 %v10925_v61  ;;  %1291 = vmatpush2.msra.mxu1 %v10926_v62 }
 0x1f8   :  { %1221 = vmatprep.subr.mxu0 %v10927_v63  ;;  %1292 = vmatprep.subr.mxu1 %v10928_v1 }
 0x1f9   :  { %1222 = vmatpush2.msra.mxu0 %v10929_v2  ;;  %1293 = vmatpush2.msra.mxu1 %v10930_v3 }
 0x1fa   :  { %1223 = vmatprep.subr.mxu0 %v10931_v4  ;;  %1294 = vmatprep.subr.mxu1 %v10932_v8  ;;  %v10948_v4 = vld [vmem:[#allocation158_spill] sm:$0xff] }
 0x1fb   :  { %1224 = vmatpush2.msra.mxu0 %v10933_v9  ;;  %1295 = vmatpush2.msra.mxu1 %v10934_v10 }
 0x1fc   :  { %1225 = vmatprep.subr.mxu0 %v10935_v11  ;;  %1296 = vmatprep.subr.mxu1 %v10936_v12 }
 0x1fd   :  { %1226 = vmatpush2.msra.mxu0 %v10937_v13  ;;  %1297 = vmatpush2.msra.mxu1 %v10938_v16 }
 0x1fe   :  { %1329 = vmatprep.subr.mxu0 %v7579_v19  ;;  %1400 = vmatprep.subr.mxu1 %v7582_v59 }
 0x25c   :  { %v893_v35 = vpop.f32.mrf.mxu0  ;;  %v964_v40 = vpop.f32.mrf.mxu1 }
 0x25d   :  { %v894_v36 = vadd.f32 %v893_v35, %v7586_v31  ;;  %v965_v52 = vadd.f32 %v964_v40, %v7598_v48 }
 0x25e   :  { %v895_v37 = vpop.f32.mrf.mxu0  ;;  %v966_v45 = vpop.f32.mrf.mxu1 }
 0x25f   :  { %v5343_v38 = vmul.f32 -1.442695, %v894_v36  ;;  %v896_v39 = vadd.f32 %v895_v37, %v7589_v34  ;;  %v967_v46 = vadd.f32 %v966_v45, %v7594_v44  ;;  %v10950_v36 = vld [vmem:[#allocation157_spill] sm:$0xff] }
 0x261   :  { %5528 = vpow2.f32 %v5343_v38  ;;  %v5344_v42 = vmul.f32 -1.442695, %v896_v39  ;;  %v5345_v49 = vmul.f32 -1.442695, %v967_v46 }
 0x263   :  { %5530 = vpow2.f32 %v5344_v42 }
 0x264   :  { %5532 = vpow2.f32 %v5345_v49 }
 0x26e   :  { %v5529_v51 = vpop.eup %5528 }
 0x26f   :  { %v972_v53 = vadd.f32 1.0, %v5529_v51 }
 0x270   :  { %v5531_v54 = vpop.eup %5530 }
 0x271   :  { %5534 = vrcp.f32 %v972_v53  ;;  %v978_v55 = vadd.f32 1.0, %v5531_v54  ;;  %v5533_v56 = vpop.eup %5532 }
 0x272   :  { %5536 = vtanh.f32 %v965_v52  ;;  %v985_v63 = vadd.f32 1.0, %v5533_v56 }
 0x273   :  { %5538 = vrcp.f32 %v978_v55 }
 0x27d   :  { %v1059_v57 = vpop.f32.mrf.mxu0  ;;  %v1130_v11 = vpop.f32.mrf.mxu1 }
 0x27e   :  { %v5535_v58 = vpop.eup %5534  ;;  %v1135_v61 = vadd.f32 %v1059_v57, %v10947_v60  ;;  %v1137_v37 = vadd.f32 %v1130_v11, %v10950_v36  ;;  %v7716_v11 = vld [vmem:[#allocation4 + $0x80] sm:$0xff]  ;;  %v7731_v36 = vld [vmem:[#allocation4 + $0x70] sm:$0xff] }
 0x27f   :  { %v5537_v62 = vpop.eup %5536  ;;  %v1061_v1 = vpop.f32.mrf.mxu0 }
 0x280   :  { %v5539_v2 = vpop.eup %5538  ;;  %v5346_v3 = vmul.f32 -1.442695, %v1135_v61  ;;  %v1136_v8 = vadd.f32 %v1061_v1, %v10948_v4  ;;  %v989_v10 = vmul.f32 %v5537_v62, %v5535_v58  ;;  %v1132_v16 = vpop.f32.mrf.mxu1  ;;  %v7695_v1 = vld [vmem:[#allocation4 + $0xd0] sm:$0xff]  ;;  %v7704_v4 = vld [vmem:[#allocation4 + $0xa0] sm:$0xff] }
 0x281   :  { %v988_v9 = vmul.f32 0.0, %v5539_v2  ;;  %v1138_v35 = vadd.f32 %v1132_v16, %v10949_v28  ;;  %v7698_v2 = vld [vmem:[#allocation4 + $0xa8] sm:$0xff]  ;;  %v7725_v28 = vld [vmem:[#allocation4 + $0x78] sm:$0xff] }
 0x282   :  { %5540 = vpow2.f32 %v5346_v3  ;;  %v5347_v12 = vmul.f32 -1.442695, %v1136_v8  ;;  %v7701_v3 = vld [vmem:[#allocation4 + $0xb8] sm:$0xff]  ;;  %v7707_v8 = vld [vmem:[#allocation4 + $0xb0] sm:$0xff]  ;;  %v7722_v16 = vld [vmem:[#allocation4 + $0x68] sm:$0xff] }
 0x283   :  { %v7603_v13 = vadd.f32 %v989_v10, %v988_v9  ;;  %5542 = vrcp.f32 %v985_v63  ;;  %v5348_v38 = vmul.f32 -1.442695, %v1138_v35  ;;  %v7710_v9 = vld [vmem:[#allocation4 + $0x88] sm:$0xff]  ;;  %v7713_v10 = vld [vmem:[#allocation4 + $0x98] sm:$0xff]  ;;  %v7728_v35 = vld [vmem:[#allocation4 + $0x60] sm:$0xff] }
 0x284   :  { %5544 = vpow2.f32 %v5347_v12  ;;  %v7719_v12 = vld [vmem:[#allocation4 + $0x90] sm:$0xff] }
 0x285   :  { %5546 = vtanh.f32 %v7603_v13 }
 0x286   :  { %5548 = vtanh.f32 %v1137_v37  ;;  %v7734_v37 = vld [vmem:[#allocation4 + $0x48] sm:$0xff] }
 0x287   :  { %5550 = vpow2.f32 %v5348_v38  ;;  %v7737_v38 = vld [vmem:[#allocation4 + $0x58] sm:$0xff] }
 0x28f   :  { %v5541_v39 = vpop.eup %5540 }
 0x290   :  { %v5543_v40 = vpop.eup %5542  ;;  %v1142_v42 = vadd.f32 1.0, %v5541_v39  ;;  %v7740_v39 = vld [vmem:[#allocation4 + $0x40] sm:$0xff] }
 0x291   :  { %v5545_v45 = vpop.eup %5544 }
 0x292   :  { %v5547_v46 = vpop.eup %5546  ;;  %5552 = vrcp.f32 %v1142_v42  ;;  %v1148_v49 = vadd.f32 1.0, %v5545_v45  ;;  %v7746_v42 = vld [vmem:[#allocation4 + $0x28] sm:$0xff]  ;;  %v7749_v45 = vld [vmem:[#allocation4 + $0x38] sm:$0xff] }
 0x293   :  { %v7608_v51 = vmul.f32 %v5547_v46, %v5543_v40  ;;  %v5549_v52 = vpop.eup %5548  ;;  %v7743_v40 = vld [vmem:[#allocation4 + $0x50] sm:$0xff]  ;;  %v7752_v46 = vld [vmem:[#allocation4 + $0x20] sm:$0xff] }
 0x294   :  { %5554 = vrcp.f32 %v1148_v49  ;;  %v5551_v53 = vpop.eup %5550  ;;  %v7755_v49 = vld [vmem:[#allocation4 + $0x30] sm:$0xff] }
 0x295   :  { %10951 = vst [vmem:[#allocation25_spill] sm:$0xff] %v7608_v51  ;;  %1227 = vmatprep.mubr.f32.mxu0 %v7608_v51  ;;  %1298 = vmatprep.mubr.f32.mxu1 %v7608_v51  ;;  %v1155_v57 = vadd.f32 1.0, %v5551_v53  ;;  %v7761_v53 = vld [vmem:[#allocation4 + $0x18] sm:$0xff]  ;;  %v7804_v51 = vld [vmem:[#allocation7 + $0x1a0] sm:$0xff] }
 0x296   :  { %10964 = vst [vmem:[#allocation38_spill] sm:$0xff] %v7804_v51 }
 0x297   :  { %5556 = vrcp.f32 %v1155_v57  ;;  %v7777_v57 = vld [vmem:[#allocation7 + $0x1f8] sm:$0xff] }
 0x298   :  { %10955 = vst [vmem:[#allocation29_spill] sm:$0xff] %v7777_v57 }
 0x29f   :  { %v5553_v54 = vpop.eup %5552 }
 0x2a0   :  { %v1159_v55 = vmul.f32 %v5553_v54, %v5549_v52  ;;  %v7758_v52 = vld [vmem:[#allocation4 + $0x8] sm:$0xff]  ;;  %v7764_v54 = vld [vmem:[#allocation4] sm:$0xff] }
 0x2a1   :  { %v5555_v56 = vpop.eup %5554  ;;  %10952 = vst [vmem:[#allocation26_spill] sm:$0xff] %v7764_v54 }
 0x2a2   :  { %v1158_v58 = vmul.f32 %v5555_v56, %v7342_v6  ;;  %v7638_v6 = vld [vmem:[#allocation4 + $0x148] sm:$0xff] }
 0x2a3   :  { %v7774_v56 = vld [vmem:[#allocation7 + $0x1e8] sm:$0xff] }
 0x2a4   :  { %v7613_v60 = vadd.f32 %v1159_v55, %v1158_v58  ;;  %v5557_v61 = vpop.eup %5556  ;;  %v7768_v55 = vld [vmem:[#allocation4 + $0x10] sm:$0xff]  ;;  %10954 = vst [vmem:[#allocation28_spill] sm:$0xff] %v7774_v56  ;;  %v7780_v58 = vld [vmem:[#allocation7 + $0x1e0] sm:$0xff] }
 0x2a5   :  { %10953 = vst [vmem:[#allocation27_spill] sm:$0xff] %v7768_v55  ;;  %10956 = vst [vmem:[#allocation30_spill] sm:$0xff] %v7780_v58 }
 0x2a6   :  { %5558 = vtanh.f32 %v7613_v60 }
 0x2b3   :  { %v5559_v62 = vpop.eup %5558 }
 0x2b4   :  { %v7616_v63 = vmul.f32 %v5559_v62, %v5557_v61  ;;  %v7783_v61 = vld [vmem:[#allocation7 + $0x1f0] sm:$0xff]  ;;  %v7786_v62 = vld [vmem:[#allocation7 + $0x1c8] sm:$0xff] }
 0x2b5   :  { %10957 = vst [vmem:[#allocation31_spill] sm:$0xff] %v7783_v61  ;;  %10958 = vst [vmem:[#allocation32_spill] sm:$0xff] %v7786_v62 }
 0x2b6   :  { %1228 = vmatmul.mubr.f32.vlgmr.msra.gmra.mxu0 %v7616_v63  ;;  %1299 = vmatmul.mubr.f32.vlgmr.msra.gmra.mxu1 %v7616_v63 }
 0x2b7   :  { %1330 = vmatpush1.msra.mxu0 %v7349_v5  ;;  %1401 = vmatpush1.msra.mxu1 %v7352_v22  ;;  %v7641_v5 = vld [vmem:[#allocation4 + $0x158] sm:$0xff]  ;;  %v7644_v22 = vld [vmem:[#allocation4 + $0x140] sm:$0xff] }
 0x2b8   :  { %1331 = vmatprep.subr.mxu0 %v7355_v23  ;;  %1402 = vmatprep.subr.mxu1 %v7358_v15  ;;  %v7647_v23 = vld [vmem:[#allocation4 + $0x150] sm:$0xff]  ;;  %v7650_v15 = vld [vmem:[#allocation4 + $0x128] sm:$0xff] }
 0x2b9   :  { %1332 = vmatpush1.msra.mxu0 %v7361_v41  ;;  %1403 = vmatpush1.msra.mxu1 %v7364_v25  ;;  %v7653_v41 = vld [vmem:[#allocation4 + $0x138] sm:$0xff]  ;;  %v7656_v25 = vld [vmem:[#allocation4 + $0x120] sm:$0xff] }
 0x2ba   :  { %1333 = vmatprep.subr.mxu0 %v7367_v50  ;;  %1404 = vmatprep.subr.mxu1 %v7370_v7  ;;  %v7659_v50 = vld [vmem:[#allocation4 + $0x130] sm:$0xff]  ;;  %v7662_v7 = vld [vmem:[#allocation4 + $0x108] sm:$0xff] }
 0x2bb   :  { %1334 = vmatpush1.msra.mxu0 %v7373_v21  ;;  %1405 = vmatpush1.msra.mxu1 %v7376_v32  ;;  %v7665_v21 = vld [vmem:[#allocation4 + $0x118] sm:$0xff]  ;;  %v7668_v32 = vld [vmem:[#allocation4 + $0x100] sm:$0xff] }
 0x2bc   :  { %1335 = vmatprep.subr.mxu0 %v7379_v14  ;;  %1406 = vmatprep.subr.mxu1 %v7382_v0  ;;  %v7671_v14 = vld [vmem:[#allocation4 + $0x110] sm:$0xff]  ;;  %v7674_v0 = vld [vmem:[#allocation4 + $0xe8] sm:$0xff] }
 0x2bd   :  { %1336 = vmatpush1.msra.mxu0 %v7385_v18  ;;  %1407 = vmatpush1.msra.mxu1 %v7388_v27  ;;  %v7677_v18 = vld [vmem:[#allocation4 + $0xf8] sm:$0xff]  ;;  %v7680_v27 = vld [vmem:[#allocation4 + $0xe0] sm:$0xff] }
 0x2be   :  { %1337 = vmatprep.subr.mxu0 %v7391_v17  ;;  %1408 = vmatprep.subr.mxu1 %v7394_v24  ;;  %v7683_v17 = vld [vmem:[#allocation4 + $0xf0] sm:$0xff]  ;;  %v7686_v24 = vld [vmem:[#allocation4 + $0xc8] sm:$0xff] }
 0x2bf   :  { %1338 = vmatpush1.msra.mxu0 %v7397_v20  ;;  %1409 = vmatpush1.msra.mxu1 %v7400_v26  ;;  %v7689_v20 = vld [vmem:[#allocation4 + $0xd8] sm:$0xff]  ;;  %v7692_v26 = vld [vmem:[#allocation4 + $0xc0] sm:$0xff] }
 0x2c0   :  { %1339 = vmatprep.subr.mxu0 %v7638_v6  ;;  %1410 = vmatprep.subr.mxu1 %v7641_v5 }
 0x2c1   :  { %1340 = vmatpush1.msra.mxu0 %v7644_v22  ;;  %1411 = vmatpush1.msra.mxu1 %v7647_v23 }
 0x2c2   :  { %1341 = vmatprep.subr.mxu0 %v7650_v15  ;;  %1412 = vmatprep.subr.mxu1 %v7653_v41 }
 0x2c3   :  { %1342 = vmatpush1.msra.mxu0 %v7656_v25  ;;  %1413 = vmatpush1.msra.mxu1 %v7659_v50 }
 0x2c4   :  { %1343 = vmatprep.subr.mxu0 %v7662_v7  ;;  %1414 = vmatprep.subr.mxu1 %v7665_v21 }
 0x2c5   :  { %1344 = vmatpush1.msra.mxu0 %v7668_v32  ;;  %1415 = vmatpush1.msra.mxu1 %v7671_v14 }
 0x2c6   :  { %1345 = vmatprep.subr.mxu0 %v7674_v0  ;;  %1416 = vmatprep.subr.mxu1 %v7677_v18 }
 0x2c7   :  { %1346 = vmatpush1.msra.mxu0 %v7680_v27  ;;  %1417 = vmatpush1.msra.mxu1 %v7683_v17 }
 0x2c8   :  { %1347 = vmatprep.subr.mxu0 %v7686_v24  ;;  %1418 = vmatprep.subr.mxu1 %v7689_v20 }
 0x2c9   :  { %1348 = vmatpush1.msra.mxu0 %v7692_v26  ;;  %1419 = vmatpush1.msra.mxu1 %v7695_v1 }
 0x2ca   :  { %1349 = vmatprep.subr.mxu0 %v7698_v2  ;;  %1420 = vmatprep.subr.mxu1 %v7701_v3 }
 0x2cb   :  { %1350 = vmatpush1.msra.mxu0 %v7704_v4  ;;  %1421 = vmatpush1.msra.mxu1 %v7707_v8 }
 0x2cc   :  { %1351 = vmatprep.subr.mxu0 %v7710_v9  ;;  %1422 = vmatprep.subr.mxu1 %v7713_v10 }
 0x2cd   :  { %1352 = vmatpush1.msra.mxu0 %v7716_v11  ;;  %1423 = vmatpush1.msra.mxu1 %v7719_v12 }
 0x2ce   :  { %1353 = vmatprep.subr.mxu0 %v7722_v16  ;;  %1424 = vmatprep.subr.mxu1 %v7725_v28 }
 0x2cf   :  { %1354 = vmatpush1.msra.mxu0 %v7728_v35  ;;  %1425 = vmatpush1.msra.mxu1 %v7731_v36 }
 0x2d0   :  { %1355 = vmatprep.subr.mxu0 %v7734_v37  ;;  %1426 = vmatprep.subr.mxu1 %v7737_v38 }
 0x2d1   :  { %1356 = vmatpush1.msra.mxu0 %v7740_v39  ;;  %1427 = vmatpush1.msra.mxu1 %v7743_v40 }
 0x2d2   :  { %1357 = vmatprep.subr.mxu0 %v7746_v42  ;;  %1428 = vmatprep.subr.mxu1 %v7749_v45 }
 0x2d3   :  { %1358 = vmatpush1.msra.mxu0 %v7752_v46  ;;  %1429 = vmatpush1.msra.mxu1 %v7755_v49 }
 0x2d4   :  { %1359 = vmatprep.subr.mxu0 %v7758_v52  ;;  %1430 = vmatprep.subr.mxu1 %v7761_v53 }
 0x2d5   :  { %1360 = vmatpush1.msra.mxu0 %v7764_v54  ;;  %1393 = vmatprep.mubr.f32.mxu0 %v10809_v29 }
 0x2d6   :  { %1431 = vmatpush1.msra.mxu1 %v7768_v55  ;;  %1464 = vmatprep.mubr.f32.mxu1 %v10809_v29 }
 0x2d7   :  { %1394 = vmatmul.mubr.f32.vlgmr.msra.gmra.mxu0 %v7616_v63  ;;  %1465 = vmatmul.mubr.f32.vlgmr.msra.gmra.mxu1 %v7616_v63  ;;  %v7789_v63 = vld [vmem:[#allocation7 + $0x1d8] sm:$0xff] }
 0x2d8   :  { %1499 = vmatprep.subr.mxu0 %v7774_v56  ;;  %1570 = vmatprep.subr.mxu1 %v7777_v57  ;;  %10959 = vst [vmem:[#allocation33_spill] sm:$0xff] %v7789_v63 }
 0x2d9   :  { %1500 = vmatpush1.msra.mxu0 %v7780_v58  ;;  %1571 = vmatpush1.msra.mxu1 %v7783_v61 }
 0x2da   :  { %1501 = vmatprep.subr.mxu0 %v7786_v62  ;;  %1572 = vmatprep.subr.mxu1 %v7789_v63  ;;  %v7807_v63 = vld [vmem:[#allocation7 + $0x1b0] sm:$0xff] }
 0x2db   :  { %1502 = vmatpush1.msra.mxu0 %v7792_v47  ;;  %1573 = vmatpush1.msra.mxu1 %v7795_v43  ;;  %10965 = vst [vmem:[#allocation39_spill] sm:$0xff] %v7807_v63  ;;  %v7810_v47 = vld [vmem:[#allocation7 + $0x188] sm:$0xff]  ;;  %v7813_v43 = vld [vmem:[#allocation7 + $0x198] sm:$0xff] }
 0x2dc   :  { %1503 = vmatprep.subr.mxu0 %v7798_v30  ;;  %1574 = vmatprep.subr.mxu1 %v7801_v33  ;;  %10966 = vst [vmem:[#allocation40_spill] sm:$0xff] %v7810_v47  ;;  %10967 = vst [vmem:[#allocation41_spill] sm:$0xff] %v7813_v43  ;;  %v7816_v30 = vld [vmem:[#allocation7 + $0x180] sm:$0xff]  ;;  %v7819_v33 = vld [vmem:[#allocation7 + $0x190] sm:$0xff] }
 0x2dd   :  { %1504 = vmatpush1.msra.mxu0 %v7804_v51  ;;  %1575 = vmatpush1.msra.mxu1 %v7807_v63  ;;  %10968 = vst [vmem:[#allocation42_spill] sm:$0xff] %v7816_v30  ;;  %10969 = vst [vmem:[#allocation43_spill] sm:$0xff] %v7819_v33  ;;  %v7822_v51 = vld [vmem:[#allocation7 + $0x168] sm:$0xff]  ;;  %v7825_v63 = vld [vmem:[#allocation7 + $0x178] sm:$0xff] }
 0x2de   :  { %1505 = vmatprep.subr.mxu0 %v7810_v47  ;;  %1576 = vmatprep.subr.mxu1 %v7813_v43  ;;  %10970 = vst [vmem:[#allocation44_spill] sm:$0xff] %v7822_v51  ;;  %10971 = vst [vmem:[#allocation45_spill] sm:$0xff] %v7825_v63  ;;  %v7828_v47 = vld [vmem:[#allocation7 + $0x160] sm:$0xff]  ;;  %v7831_v43 = vld [vmem:[#allocation7 + $0x170] sm:$0xff] }
 0x2df   :  { %1506 = vmatpush1.msra.mxu0 %v7816_v30  ;;  %1577 = vmatpush1.msra.mxu1 %v7819_v33  ;;  %10972 = vst [vmem:[#allocation46_spill] sm:$0xff] %v7828_v47  ;;  %10973 = vst [vmem:[#allocation47_spill] sm:$0xff] %v7831_v43  ;;  %v7834_v30 = vld [vmem:[#allocation7 + $0x148] sm:$0xff]  ;;  %v7837_v33 = vld [vmem:[#allocation7 + $0x158] sm:$0xff] }
 0x2e0   :  { %1507 = vmatprep.subr.mxu0 %v7822_v51  ;;  %1578 = vmatprep.subr.mxu1 %v7825_v63  ;;  %10974 = vst [vmem:[#allocation48_spill] sm:$0xff] %v7834_v30  ;;  %10975 = vst [vmem:[#allocation49_spill] sm:$0xff] %v7837_v33  ;;  %v7840_v51 = vld [vmem:[#allocation7 + $0x140] sm:$0xff]  ;;  %v7843_v63 = vld [vmem:[#allocation7 + $0x150] sm:$0xff] }
 0x2e1   :  { %1508 = vmatpush1.msra.mxu0 %v7828_v47  ;;  %1579 = vmatpush1.msra.mxu1 %v7831_v43  ;;  %10976 = vst [vmem:[#allocation50_spill] sm:$0xff] %v7840_v51  ;;  %10977 = vst [vmem:[#allocation51_spill] sm:$0xff] %v7843_v63  ;;  %v7846_v47 = vld [vmem:[#allocation7 + $0x128] sm:$0xff]  ;;  %v7849_v43 = vld [vmem:[#allocation7 + $0x138] sm:$0xff] }
 0x2e2   :  { %1509 = vmatprep.subr.mxu0 %v7834_v30  ;;  %1580 = vmatprep.subr.mxu1 %v7837_v33  ;;  %10978 = vst [vmem:[#allocation52_spill] sm:$0xff] %v7846_v47  ;;  %10979 = vst [vmem:[#allocation53_spill] sm:$0xff] %v7849_v43  ;;  %v7852_v30 = vld [vmem:[#allocation7 + $0x120] sm:$0xff]  ;;  %v7855_v33 = vld [vmem:[#allocation7 + $0x130] sm:$0xff] }
 0x2e3   :  { %1510 = vmatpush1.msra.mxu0 %v7840_v51  ;;  %1581 = vmatpush1.msra.mxu1 %v7843_v63  ;;  %10980 = vst [vmem:[#allocation54_spill] sm:$0xff] %v7852_v30  ;;  %10981 = vst [vmem:[#allocation55_spill] sm:$0xff] %v7855_v33  ;;  %v7858_v51 = vld [vmem:[#allocation7 + $0x108] sm:$0xff]  ;;  %v7861_v63 = vld [vmem:[#allocation7 + $0x118] sm:$0xff] }
 0x2e4   :  { %1511 = vmatprep.subr.mxu0 %v7846_v47  ;;  %1582 = vmatprep.subr.mxu1 %v7849_v43  ;;  %10982 = vst [vmem:[#allocation56_spill] sm:$0xff] %v7858_v51  ;;  %10983 = vst [vmem:[#allocation57_spill] sm:$0xff] %v7861_v63  ;;  %v7864_v47 = vld [vmem:[#allocation7 + $0x100] sm:$0xff]  ;;  %v7867_v43 = vld [vmem:[#allocation7 + $0x110] sm:$0xff] }
 0x2e5   :  { %1512 = vmatpush1.msra.mxu0 %v7852_v30  ;;  %1583 = vmatpush1.msra.mxu1 %v7855_v33  ;;  %10984 = vst [vmem:[#allocation58_spill] sm:$0xff] %v7864_v47  ;;  %10985 = vst [vmem:[#allocation59_spill] sm:$0xff] %v7867_v43  ;;  %v7870_v30 = vld [vmem:[#allocation7 + $0xe8] sm:$0xff]  ;;  %v7873_v33 = vld [vmem:[#allocation7 + $0xf8] sm:$0xff] }
 0x2e6   :  { %1513 = vmatprep.subr.mxu0 %v7858_v51  ;;  %1584 = vmatprep.subr.mxu1 %v7861_v63  ;;  %10986 = vst [vmem:[#allocation60_spill] sm:$0xff] %v7870_v30  ;;  %10987 = vst [vmem:[#allocation61_spill] sm:$0xff] %v7873_v33  ;;  %v7876_v51 = vld [vmem:[#allocation7 + $0xe0] sm:$0xff]  ;;  %v7879_v63 = vld [vmem:[#allocation7 + $0xf0] sm:$0xff] }
 0x2e7   :  { %1514 = vmatpush1.msra.mxu0 %v7864_v47  ;;  %1585 = vmatpush1.msra.mxu1 %v7867_v43  ;;  %10988 = vst [vmem:[#allocation62_spill] sm:$0xff] %v7876_v51  ;;  %10989 = vst [vmem:[#allocation63_spill] sm:$0xff] %v7879_v63  ;;  %v7882_v47 = vld [vmem:[#allocation7 + $0xc8] sm:$0xff]  ;;  %v7885_v43 = vld [vmem:[#allocation7 + $0xd8] sm:$0xff] }
 0x2e8   :  { %1515 = vmatprep.subr.mxu0 %v7870_v30  ;;  %1586 = vmatprep.subr.mxu1 %v7873_v33  ;;  %10990 = vst [vmem:[#allocation64_spill] sm:$0xff] %v7882_v47  ;;  %10991 = vst [vmem:[#allocation65_spill] sm:$0xff] %v7885_v43  ;;  %v7888_v30 = vld [vmem:[#allocation7 + $0xc0] sm:$0xff]  ;;  %v7891_v33 = vld [vmem:[#allocation7 + $0xd0] sm:$0xff] }
 0x2e9   :  { %1516 = vmatpush1.msra.mxu0 %v7876_v51  ;;  %1587 = vmatpush1.msra.mxu1 %v7879_v63  ;;  %10992 = vst [vmem:[#allocation66_spill] sm:$0xff] %v7888_v30  ;;  %10993 = vst [vmem:[#allocation67_spill] sm:$0xff] %v7891_v33  ;;  %v7894_v51 = vld [vmem:[#allocation7 + $0xa8] sm:$0xff]  ;;  %v7897_v63 = vld [vmem:[#allocation7 + $0xb8] sm:$0xff] }
 0x2ea   :  { %1517 = vmatprep.subr.mxu0 %v7882_v47  ;;  %1588 = vmatprep.subr.mxu1 %v7885_v43  ;;  %10994 = vst [vmem:[#allocation68_spill] sm:$0xff] %v7894_v51  ;;  %10995 = vst [vmem:[#allocation69_spill] sm:$0xff] %v7897_v63  ;;  %v7900_v47 = vld [vmem:[#allocation7 + $0xa0] sm:$0xff]  ;;  %v7903_v43 = vld [vmem:[#allocation7 + $0xb0] sm:$0xff] }
 0x2eb   :  { %1518 = vmatpush1.msra.mxu0 %v7888_v30  ;;  %1589 = vmatpush1.msra.mxu1 %v7891_v33  ;;  %10996 = vst [vmem:[#allocation70_spill] sm:$0xff] %v7900_v47  ;;  %10997 = vst [vmem:[#allocation71_spill] sm:$0xff] %v7903_v43  ;;  %v7906_v30 = vld [vmem:[#allocation7 + $0x88] sm:$0xff]  ;;  %v7909_v33 = vld [vmem:[#allocation7 + $0x98] sm:$0xff] }
 0x2ec   :  { %1519 = vmatprep.subr.mxu0 %v7894_v51  ;;  %1590 = vmatprep.subr.mxu1 %v7897_v63  ;;  %10998 = vst [vmem:[#allocation72_spill] sm:$0xff] %v7906_v30  ;;  %10999 = vst [vmem:[#allocation73_spill] sm:$0xff] %v7909_v33  ;;  %v7912_v51 = vld [vmem:[#allocation7 + $0x80] sm:$0xff]  ;;  %v7915_v63 = vld [vmem:[#allocation7 + $0x90] sm:$0xff] }
 0x2ed   :  { %1520 = vmatpush1.msra.mxu0 %v7900_v47  ;;  %1591 = vmatpush1.msra.mxu1 %v7903_v43  ;;  %11000 = vst [vmem:[#allocation74_spill] sm:$0xff] %v7912_v51  ;;  %11001 = vst [vmem:[#allocation75_spill] sm:$0xff] %v7915_v63  ;;  %v7918_v47 = vld [vmem:[#allocation7 + $0x68] sm:$0xff]  ;;  %v7921_v43 = vld [vmem:[#allocation7 + $0x78] sm:$0xff] }
 0x2ee   :  { %1521 = vmatprep.subr.mxu0 %v7906_v30  ;;  %1592 = vmatprep.subr.mxu1 %v7909_v33  ;;  %11002 = vst [vmem:[#allocation76_spill] sm:$0xff] %v7918_v47  ;;  %11003 = vst [vmem:[#allocation77_spill] sm:$0xff] %v7921_v43  ;;  %v7924_v30 = vld [vmem:[#allocation7 + $0x60] sm:$0xff]  ;;  %v7927_v33 = vld [vmem:[#allocation7 + $0x70] sm:$0xff] }
 0x2ef   :  { %1522 = vmatpush1.msra.mxu0 %v7912_v51  ;;  %1593 = vmatpush1.msra.mxu1 %v7915_v63  ;;  %11004 = vst [vmem:[#allocation78_spill] sm:$0xff] %v7924_v30  ;;  %11005 = vst [vmem:[#allocation79_spill] sm:$0xff] %v7927_v33  ;;  %v7930_v51 = vld [vmem:[#allocation7 + $0x48] sm:$0xff]  ;;  %v7933_v63 = vld [vmem:[#allocation7 + $0x58] sm:$0xff] }
 0x2f0   :  { %1523 = vmatprep.subr.mxu0 %v7918_v47  ;;  %1594 = vmatprep.subr.mxu1 %v7921_v43  ;;  %11006 = vst [vmem:[#allocation80_spill] sm:$0xff] %v7930_v51  ;;  %11007 = vst [vmem:[#allocation81_spill] sm:$0xff] %v7933_v63  ;;  %v7936_v47 = vld [vmem:[#allocation7 + $0x40] sm:$0xff]  ;;  %v7939_v43 = vld [vmem:[#allocation7 + $0x50] sm:$0xff] }
 0x2f1   :  { %1524 = vmatpush1.msra.mxu0 %v7924_v30  ;;  %1595 = vmatpush1.msra.mxu1 %v7927_v33  ;;  %11008 = vst [vmem:[#allocation82_spill] sm:$0xff] %v7936_v47  ;;  %11009 = vst [vmem:[#allocation83_spill] sm:$0xff] %v7939_v43  ;;  %v7942_v30 = vld [vmem:[#allocation7 + $0x28] sm:$0xff]  ;;  %v7945_v33 = vld [vmem:[#allocation7 + $0x38] sm:$0xff] }
 0x2f2   :  { %1525 = vmatprep.subr.mxu0 %v7930_v51  ;;  %1596 = vmatprep.subr.mxu1 %v7933_v63  ;;  %11010 = vst [vmem:[#allocation84_spill] sm:$0xff] %v7942_v30  ;;  %11011 = vst [vmem:[#allocation85_spill] sm:$0xff] %v7945_v33  ;;  %v7948_v51 = vld [vmem:[#allocation7 + $0x20] sm:$0xff]  ;;  %v7951_v63 = vld [vmem:[#allocation7 + $0x30] sm:$0xff] }
 0x2f3   :  { %1526 = vmatpush1.msra.mxu0 %v7936_v47  ;;  %1597 = vmatpush1.msra.mxu1 %v7939_v43  ;;  %11012 = vst [vmem:[#allocation86_spill] sm:$0xff] %v7948_v51  ;;  %11013 = vst [vmem:[#allocation87_spill] sm:$0xff] %v7951_v63  ;;  %v7954_v47 = vld [vmem:[#allocation7 + $0x8] sm:$0xff]  ;;  %v7957_v43 = vld [vmem:[#allocation7 + $0x18] sm:$0xff] }
 0x2f4   :  { %1527 = vmatprep.subr.mxu0 %v7942_v30  ;;  %1598 = vmatprep.subr.mxu1 %v7945_v33  ;;  %11014 = vst [vmem:[#allocation88_spill] sm:$0xff] %v7954_v47  ;;  %11015 = vst [vmem:[#allocation89_spill] sm:$0xff] %v7957_v43  ;;  %v7960_v30 = vld [vmem:[#allocation7] sm:$0xff]  ;;  %v7963_v33 = vld [vmem:[#allocation7 + $0x10] sm:$0xff] }
 0x2f5   :  { %1528 = vmatpush1.msra.mxu0 %v7948_v51  ;;  %1599 = vmatpush1.msra.mxu1 %v7951_v63  ;;  %11016 = vst [vmem:[#allocation90_spill] sm:$0xff] %v7960_v30  ;;  %11017 = vst [vmem:[#allocation91_spill] sm:$0xff] %v7963_v33  ;;  %v7966_v51 = vld [vmem:[#allocation7 + $0x3e8] sm:$0xff]  ;;  %v7969_v63 = vld [vmem:[#allocation7 + $0x3f8] sm:$0xff] }
 0x2f6   :  { %1529 = vmatprep.subr.mxu0 %v7954_v47  ;;  %1600 = vmatprep.subr.mxu1 %v7957_v43  ;;  %11018 = vst [vmem:[#allocation92_spill] sm:$0xff] %v7966_v51  ;;  %11019 = vst [vmem:[#allocation93_spill] sm:$0xff] %v7969_v63  ;;  %v7972_v47 = vld [vmem:[#allocation7 + $0x3e0] sm:$0xff]  ;;  %v7975_v43 = vld [vmem:[#allocation7 + $0x3f0] sm:$0xff] }
 0x2f7   :  { %1530 = vmatpush1.msra.mxu0 %v7960_v30  ;;  %1601 = vmatpush1.msra.mxu1 %v7963_v33  ;;  %11020 = vst [vmem:[#allocation94_spill] sm:$0xff] %v7972_v47  ;;  %11021 = vst [vmem:[#allocation95_spill] sm:$0xff] %v7975_v43  ;;  %v7978_v30 = vld [vmem:[#allocation7 + $0x3c8] sm:$0xff]  ;;  %v7981_v33 = vld [vmem:[#allocation7 + $0x3d8] sm:$0xff] }
 0x2f8   :  { %1531 = vmatprep.subr.mxu0 %v7966_v51  ;;  %1602 = vmatprep.subr.mxu1 %v7969_v63  ;;  %11022 = vst [vmem:[#allocation96_spill] sm:$0xff] %v7978_v30  ;;  %11023 = vst [vmem:[#allocation97_spill] sm:$0xff] %v7981_v33  ;;  %v7984_v51 = vld [vmem:[#allocation7 + $0x3c0] sm:$0xff]  ;;  %v7987_v63 = vld [vmem:[#allocation7 + $0x3d0] sm:$0xff] }
 0x2f9   :  { %1532 = vmatpush2.msra.mxu0 %v7972_v47  ;;  %1603 = vmatpush2.msra.mxu1 %v7975_v43  ;;  %11024 = vst [vmem:[#allocation98_spill] sm:$0xff] %v7984_v51  ;;  %11025 = vst [vmem:[#allocation99_spill] sm:$0xff] %v7987_v63  ;;  %v7990_v47 = vld [vmem:[#allocation7 + $0x3a8] sm:$0xff]  ;;  %v7993_v43 = vld [vmem:[#allocation7 + $0x3b8] sm:$0xff] }
 0x2fa   :  { %1533 = vmatprep.subr.mxu0 %v7978_v30  ;;  %1604 = vmatprep.subr.mxu1 %v7981_v33  ;;  %11026 = vst [vmem:[#allocation100_spill] sm:$0xff] %v7990_v47  ;;  %11027 = vst [vmem:[#allocation101_spill] sm:$0xff] %v7993_v43  ;;  %v7996_v30 = vld [vmem:[#allocation7 + $0x3a0] sm:$0xff]  ;;  %v7999_v33 = vld [vmem:[#allocation7 + $0x3b0] sm:$0xff] }
 0x2fb   :  { %1534 = vmatpush2.msra.mxu0 %v7984_v51  ;;  %1605 = vmatpush2.msra.mxu1 %v7987_v63  ;;  %11028 = vst [vmem:[#allocation102_spill] sm:$0xff] %v7996_v30  ;;  %11029 = vst [vmem:[#allocation103_spill] sm:$0xff] %v7999_v33  ;;  %v8002_v51 = vld [vmem:[#allocation7 + $0x388] sm:$0xff]  ;;  %v8005_v63 = vld [vmem:[#allocation7 + $0x398] sm:$0xff] }
 0x2fc   :  { %1535 = vmatprep.subr.mxu0 %v7990_v47  ;;  %1606 = vmatprep.subr.mxu1 %v7993_v43  ;;  %11030 = vst [vmem:[#allocation104_spill] sm:$0xff] %v8002_v51  ;;  %11031 = vst [vmem:[#allocation105_spill] sm:$0xff] %v8005_v63  ;;  %v8008_v47 = vld [vmem:[#allocation7 + $0x380] sm:$0xff]  ;;  %v8011_v43 = vld [vmem:[#allocation7 + $0x390] sm:$0xff] }
 0x2fd   :  { %1536 = vmatpush2.msra.mxu0 %v7996_v30  ;;  %1607 = vmatpush2.msra.mxu1 %v7999_v33  ;;  %11032 = vst [vmem:[#allocation106_spill] sm:$0xff] %v8008_v47  ;;  %11033 = vst [vmem:[#allocation107_spill] sm:$0xff] %v8011_v43  ;;  %v8014_v30 = vld [vmem:[#allocation7 + $0x368] sm:$0xff]  ;;  %v8017_v33 = vld [vmem:[#allocation7 + $0x378] sm:$0xff] }
 0x2fe   :  { %1537 = vmatprep.subr.mxu0 %v8002_v51  ;;  %1608 = vmatprep.subr.mxu1 %v8005_v63  ;;  %11034 = vst [vmem:[#allocation108_spill] sm:$0xff] %v8014_v30  ;;  %11035 = vst [vmem:[#allocation109_spill] sm:$0xff] %v8017_v33  ;;  %v8020_v51 = vld [vmem:[#allocation7 + $0x360] sm:$0xff]  ;;  %v8023_v63 = vld [vmem:[#allocation7 + $0x370] sm:$0xff] }
 0x2ff   :  { %1538 = vmatpush2.msra.mxu0 %v8008_v47  ;;  %1609 = vmatpush2.msra.mxu1 %v8011_v43  ;;  %11036 = vst [vmem:[#allocation110_spill] sm:$0xff] %v8020_v51  ;;  %11037 = vst [vmem:[#allocation111_spill] sm:$0xff] %v8023_v63  ;;  %v8026_v47 = vld [vmem:[#allocation7 + $0x348] sm:$0xff]  ;;  %v8029_v43 = vld [vmem:[#allocation7 + $0x358] sm:$0xff] }
 0x300   :  { %1539 = vmatprep.subr.mxu0 %v8014_v30  ;;  %1610 = vmatprep.subr.mxu1 %v8017_v33  ;;  %11038 = vst [vmem:[#allocation112_spill] sm:$0xff] %v8026_v47  ;;  %11039 = vst [vmem:[#allocation113_spill] sm:$0xff] %v8029_v43  ;;  %v8032_v30 = vld [vmem:[#allocation7 + $0x340] sm:$0xff]  ;;  %v8035_v33 = vld [vmem:[#allocation7 + $0x350] sm:$0xff] }
 0x301   :  { %1540 = vmatpush2.msra.mxu0 %v8020_v51  ;;  %1611 = vmatpush2.msra.mxu1 %v8023_v63  ;;  %11040 = vst [vmem:[#allocation114_spill] sm:$0xff] %v8032_v30  ;;  %11041 = vst [vmem:[#allocation115_spill] sm:$0xff] %v8035_v33  ;;  %v8038_v51 = vld [vmem:[#allocation7 + $0x328] sm:$0xff]  ;;  %v8041_v63 = vld [vmem:[#allocation7 + $0x338] sm:$0xff] }
 0x302   :  { %1541 = vmatprep.subr.mxu0 %v8026_v47  ;;  %1612 = vmatprep.subr.mxu1 %v8029_v43  ;;  %11042 = vst [vmem:[#allocation116_spill] sm:$0xff] %v8038_v51  ;;  %11043 = vst [vmem:[#allocation117_spill] sm:$0xff] %v8041_v63  ;;  %v8044_v47 = vld [vmem:[#allocation7 + $0x320] sm:$0xff]  ;;  %v8047_v43 = vld [vmem:[#allocation7 + $0x330] sm:$0xff] }
 0x303   :  { %1542 = vmatpush2.msra.mxu0 %v8032_v30  ;;  %1613 = vmatpush2.msra.mxu1 %v8035_v33  ;;  %11044 = vst [vmem:[#allocation118_spill] sm:$0xff] %v8044_v47  ;;  %11045 = vst [vmem:[#allocation119_spill] sm:$0xff] %v8047_v43  ;;  %v8050_v30 = vld [vmem:[#allocation7 + $0x308] sm:$0xff]  ;;  %v8053_v33 = vld [vmem:[#allocation7 + $0x318] sm:$0xff] }
 0x304   :  { %1543 = vmatprep.subr.mxu0 %v8038_v51  ;;  %1614 = vmatprep.subr.mxu1 %v8041_v63  ;;  %11046 = vst [vmem:[#allocation120_spill] sm:$0xff] %v8050_v30  ;;  %11047 = vst [vmem:[#allocation121_spill] sm:$0xff] %v8053_v33  ;;  %v8056_v51 = vld [vmem:[#allocation7 + $0x300] sm:$0xff]  ;;  %v8059_v63 = vld [vmem:[#allocation7 + $0x310] sm:$0xff] }
 0x305   :  { %1544 = vmatpush2.msra.mxu0 %v8044_v47  ;;  %1615 = vmatpush2.msra.mxu1 %v8047_v43  ;;  %11048 = vst [vmem:[#allocation122_spill] sm:$0xff] %v8056_v51  ;;  %11049 = vst [vmem:[#allocation123_spill] sm:$0xff] %v8059_v63  ;;  %v8062_v47 = vld [vmem:[#allocation7 + $0x2e8] sm:$0xff]  ;;  %v8065_v43 = vld [vmem:[#allocation7 + $0x2f8] sm:$0xff] }
 0x306   :  { %1545 = vmatprep.subr.mxu0 %v8050_v30  ;;  %1616 = vmatprep.subr.mxu1 %v8053_v33  ;;  %11050 = vst [vmem:[#allocation124_spill] sm:$0xff] %v8062_v47  ;;  %11051 = vst [vmem:[#allocation125_spill] sm:$0xff] %v8065_v43  ;;  %v8068_v30 = vld [vmem:[#allocation7 + $0x2e0] sm:$0xff]  ;;  %v8071_v33 = vld [vmem:[#allocation7 + $0x2f0] sm:$0xff] }
 0x307   :  { %1546 = vmatpush2.msra.mxu0 %v8056_v51  ;;  %1617 = vmatpush2.msra.mxu1 %v8059_v63  ;;  %11052 = vst [vmem:[#allocation126_spill] sm:$0xff] %v8068_v30  ;;  %11053 = vst [vmem:[#allocation127_spill] sm:$0xff] %v8071_v33  ;;  %v8074_v51 = vld [vmem:[#allocation7 + $0x2c8] sm:$0xff]  ;;  %v8077_v63 = vld [vmem:[#allocation7 + $0x2d8] sm:$0xff] }
 0x308   :  { %1547 = vmatprep.subr.mxu0 %v8062_v47  ;;  %1618 = vmatprep.subr.mxu1 %v8065_v43  ;;  %11054 = vst [vmem:[#allocation128_spill] sm:$0xff] %v8074_v51  ;;  %11055 = vst [vmem:[#allocation129_spill] sm:$0xff] %v8077_v63  ;;  %v8080_v47 = vld [vmem:[#allocation7 + $0x2c0] sm:$0xff]  ;;  %v8083_v43 = vld [vmem:[#allocation7 + $0x2d0] sm:$0xff] }
 0x309   :  { %1548 = vmatpush2.msra.mxu0 %v8068_v30  ;;  %1619 = vmatpush2.msra.mxu1 %v8071_v33  ;;  %11056 = vst [vmem:[#allocation130_spill] sm:$0xff] %v8080_v47  ;;  %11057 = vst [vmem:[#allocation131_spill] sm:$0xff] %v8083_v43  ;;  %v8086_v30 = vld [vmem:[#allocation7 + $0x2a8] sm:$0xff]  ;;  %v8089_v33 = vld [vmem:[#allocation7 + $0x2b8] sm:$0xff] }
 0x30a   :  { %1549 = vmatprep.subr.mxu0 %v8074_v51  ;;  %1620 = vmatprep.subr.mxu1 %v8077_v63  ;;  %11058 = vst [vmem:[#allocation132_spill] sm:$0xff] %v8086_v30  ;;  %11059 = vst [vmem:[#allocation133_spill] sm:$0xff] %v8089_v33  ;;  %v8092_v51 = vld [vmem:[#allocation7 + $0x2a0] sm:$0xff]  ;;  %v8095_v63 = vld [vmem:[#allocation7 + $0x2b0] sm:$0xff] }
 0x30b   :  { %1550 = vmatpush2.msra.mxu0 %v8080_v47  ;;  %1621 = vmatpush2.msra.mxu1 %v8083_v43  ;;  %11060 = vst [vmem:[#allocation134_spill] sm:$0xff] %v8092_v51  ;;  %11061 = vst [vmem:[#allocation135_spill] sm:$0xff] %v8095_v63  ;;  %v8098_v47 = vld [vmem:[#allocation7 + $0x288] sm:$0xff]  ;;  %v8101_v43 = vld [vmem:[#allocation7 + $0x298] sm:$0xff] }
 0x30c   :  { %1551 = vmatprep.subr.mxu0 %v8086_v30  ;;  %1622 = vmatprep.subr.mxu1 %v8089_v33  ;;  %11062 = vst [vmem:[#allocation136_spill] sm:$0xff] %v8098_v47  ;;  %11063 = vst [vmem:[#allocation137_spill] sm:$0xff] %v8101_v43  ;;  %v8104_v30 = vld [vmem:[#allocation7 + $0x280] sm:$0xff]  ;;  %v8107_v33 = vld [vmem:[#allocation7 + $0x290] sm:$0xff] }
 0x30d   :  { %1552 = vmatpush2.msra.mxu0 %v8092_v51  ;;  %1623 = vmatpush2.msra.mxu1 %v8095_v63  ;;  %11064 = vst [vmem:[#allocation138_spill] sm:$0xff] %v8104_v30  ;;  %11065 = vst [vmem:[#allocation139_spill] sm:$0xff] %v8107_v33  ;;  %v8110_v51 = vld [vmem:[#allocation7 + $0x268] sm:$0xff]  ;;  %v8113_v63 = vld [vmem:[#allocation7 + $0x278] sm:$0xff] }
 0x30e   :  { %1553 = vmatprep.subr.mxu0 %v8098_v47  ;;  %1624 = vmatprep.subr.mxu1 %v8101_v43  ;;  %11066 = vst [vmem:[#allocation140_spill] sm:$0xff] %v8110_v51  ;;  %11067 = vst [vmem:[#allocation141_spill] sm:$0xff] %v8113_v63  ;;  %v8116_v47 = vld [vmem:[#allocation7 + $0x260] sm:$0xff]  ;;  %v8119_v43 = vld [vmem:[#allocation7 + $0x270] sm:$0xff] }
 0x30f   :  { %1554 = vmatpush2.msra.mxu0 %v8104_v30  ;;  %1625 = vmatpush2.msra.mxu1 %v8107_v33  ;;  %11068 = vst [vmem:[#allocation142_spill] sm:$0xff] %v8116_v47  ;;  %11069 = vst [vmem:[#allocation143_spill] sm:$0xff] %v8119_v43  ;;  %v8122_v30 = vld [vmem:[#allocation7 + $0x248] sm:$0xff]  ;;  %v8125_v33 = vld [vmem:[#allocation7 + $0x258] sm:$0xff] }
 0x310   :  { %1555 = vmatprep.subr.mxu0 %v8110_v51  ;;  %1626 = vmatprep.subr.mxu1 %v8113_v63  ;;  %11070 = vst [vmem:[#allocation144_spill] sm:$0xff] %v8122_v30  ;;  %11071 = vst [vmem:[#allocation145_spill] sm:$0xff] %v8125_v33  ;;  %v8128_v51 = vld [vmem:[#allocation7 + $0x240] sm:$0xff]  ;;  %v8131_v63 = vld [vmem:[#allocation7 + $0x250] sm:$0xff] }
 0x311   :  { %1556 = vmatpush2.msra.mxu0 %v8116_v47  ;;  %1627 = vmatpush2.msra.mxu1 %v8119_v43  ;;  %11072 = vst [vmem:[#allocation146_spill] sm:$0xff] %v8128_v51  ;;  %11073 = vst [vmem:[#allocation147_spill] sm:$0xff] %v8131_v63  ;;  %v8134_v47 = vld [vmem:[#allocation7 + $0x228] sm:$0xff]  ;;  %v8137_v43 = vld [vmem:[#allocation7 + $0x238] sm:$0xff] }
 0x312   :  { %1557 = vmatprep.subr.mxu0 %v8122_v30  ;;  %1628 = vmatprep.subr.mxu1 %v8125_v33  ;;  %11074 = vst [vmem:[#allocation148_spill] sm:$0xff] %v8134_v47  ;;  %11075 = vst [vmem:[#allocation149_spill] sm:$0xff] %v8137_v43  ;;  %v8140_v30 = vld [vmem:[#allocation7 + $0x220] sm:$0xff]  ;;  %v8143_v33 = vld [vmem:[#allocation7 + $0x230] sm:$0xff] }
 0x313   :  { %1558 = vmatpush2.msra.mxu0 %v8128_v51  ;;  %1629 = vmatpush2.msra.mxu1 %v8131_v63  ;;  %11076 = vst [vmem:[#allocation150_spill] sm:$0xff] %v8140_v30  ;;  %11077 = vst [vmem:[#allocation156_spill] sm:$0xff] %v8143_v33  ;;  %v8146_v51 = vld [vmem:[#allocation7 + $0x208] sm:$0xff]  ;;  %v8149_v63 = vld [vmem:[#allocation7 + $0x218] sm:$0xff] }
 0x314   :  { %1559 = vmatprep.subr.mxu0 %v8134_v47  ;;  %1630 = vmatprep.subr.mxu1 %v8137_v43  ;;  %11078 = vst [vmem:[#allocation158_spill] sm:$0xff] %v8146_v51  ;;  %11079 = vst [vmem:[#allocation159_spill] sm:$0xff] %v8149_v63  ;;  %v8152_v47 = vld [vmem:[#allocation7 + $0x200] sm:$0xff]  ;;  %v8155_v43 = vld [vmem:[#allocation7 + $0x210] sm:$0xff] }
 0x315   :  { %1560 = vmatpush2.msra.mxu0 %v8140_v30  ;;  %1631 = vmatpush2.msra.mxu1 %v8143_v33  ;;  %11080 = vst [vmem:[#allocation157_spill] sm:$0xff] %v8152_v47  ;;  %11081 = vst [vmem:[#allocation184_spill] sm:$0xff] %v8155_v43 }
 0x316   :  { %1561 = vmatprep.subr.mxu0 %v8146_v51  ;;  %1632 = vmatprep.subr.mxu1 %v8149_v63 }
 0x317   :  { %1562 = vmatpush2.msra.mxu0 %v8152_v47  ;;  %1633 = vmatpush2.msra.mxu1 %v8155_v43 }
 0x318   :  { %1665 = vmatprep.subr.mxu0 %v7579_v19  ;;  %1736 = vmatprep.subr.mxu1 %v7582_v59 }
 0x376   :  { %v1229_v33 = vpop.f32.mrf.mxu0  ;;  %v1300_v63 = vpop.f32.mrf.mxu1 }
 0x377   :  { %v1230_v30 = vadd.f32 %v1229_v33, %v7586_v31  ;;  %v1301_v19 = vadd.f32 %v1300_v63, %v7598_v48 }
 0x378   :  { %v1231_v51 = vpop.f32.mrf.mxu0  ;;  %v1302_v47 = vpop.f32.mrf.mxu1 }
 0x379   :  { %v5349_v62 = vmul.f32 -1.442695, %v1230_v30  ;;  %v1232_v61 = vadd.f32 %v1231_v51, %v7589_v34  ;;  %v1303_v57 = vadd.f32 %v1302_v47, %v7594_v44  ;;  %v11083_v44 = vld [vmem:[#allocation162_spill] sm:$0xff] }
 0x37b   :  { %5560 = vpow2.f32 %v5349_v62  ;;  %v5350_v58 = vmul.f32 -1.442695, %v1232_v61  ;;  %v5351_v56 = vmul.f32 -1.442695, %v1303_v57  ;;  %v11082_v62 = vld [vmem:[#allocation160_spill] sm:$0xff] }
 0x37d   :  { %5562 = vpow2.f32 %v5350_v58 }
 0x37e   :  { %5564 = vpow2.f32 %v5351_v56 }
 0x388   :  { %v5561_v43 = vpop.eup %5560 }
 0x389   :  { %v1308_v55 = vadd.f32 1.0, %v5561_v43 }
 0x38a   :  { %v5563_v59 = vpop.eup %5562 }
 0x38b   :  { %5566 = vrcp.f32 %v1308_v55  ;;  %v1314_v33 = vadd.f32 1.0, %v5563_v59  ;;  %v5565_v30 = vpop.eup %5564 }
 0x38c   :  { %5568 = vtanh.f32 %v1301_v19  ;;  %v1321_v31 = vadd.f32 1.0, %v5565_v30 }
 0x38d   :  { %5570 = vrcp.f32 %v1314_v33  ;;  %v11084_v33 = vld [vmem:[#allocation163_spill] sm:$0xff] }
 0x397   :  { %v1395_v51 = vpop.f32.mrf.mxu0  ;;  %v1466_v55 = vpop.f32.mrf.mxu1 }
 0x398   :  { %v5567_v34 = vpop.eup %5566  ;;  %v1471_v61 = vadd.f32 %v1395_v51, %v11082_v62  ;;  %v11085_v51 = vld [vmem:[#allocation161_spill] sm:$0xff] }
 0x399   :  { %v5569_v58 = vpop.eup %5568  ;;  %v1397_v29 = vpop.f32.mrf.mxu0  ;;  %v1473_v62 = vadd.f32 %v1466_v55, %v11085_v51  ;;  %v8184_v51 = vld [vmem:[#allocation4 + $0x1e0] sm:$0xff] }
 0x39a   :  { %v5571_v47 = vpop.eup %5570  ;;  %v5352_v57 = vmul.f32 -1.442695, %v1471_v61  ;;  %v1472_v54 = vadd.f32 %v1397_v29, %v11083_v44  ;;  %v1325_v63 = vmul.f32 %v5569_v58, %v5567_v34  ;;  %v1468_v59 = vpop.f32.mrf.mxu1 }
 0x39b   :  { %v1324_v43 = vmul.f32 %v5571_v47, %v7603_v13  ;;  %v1474_v30 = vadd.f32 %v1468_v59, %v11084_v33 }
 0x39c   :  { %5572 = vpow2.f32 %v5352_v57  ;;  %v5353_v56 = vmul.f32 -1.442695, %v1472_v54 }
 0x39d   :  { %v8167_v19 = vadd.f32 %v1325_v63, %v1324_v43  ;;  %5574 = vrcp.f32 %v1321_v31  ;;  %v5354_v61 = vmul.f32 -1.442695, %v1474_v30 }
 0x39e   :  { %5576 = vpow2.f32 %v5353_v56 }
 0x39f   :  { %5578 = vtanh.f32 %v8167_v19 }
 0x3a0   :  { %5580 = vtanh.f32 %v1473_v62  ;;  %v8187_v62 = vld [vmem:[#allocation4 + $0x1f0] sm:$0xff] }
 0x3a1   :  { %5582 = vpow2.f32 %v5354_v61  ;;  %v8193_v61 = vld [vmem:[#allocation4 + $0x1d8] sm:$0xff] }
 0x3a9   :  { %v5573_v48 = vpop.eup %5572 }
 0x3aa   :  { %v5575_v29 = vpop.eup %5574  ;;  %v1478_v34 = vadd.f32 1.0, %v5573_v48 }
 0x3ab   :  { %v5577_v44 = vpop.eup %5576 }
 0x3ac   :  { %v5579_v13 = vpop.eup %5578  ;;  %5584 = vrcp.f32 %v1478_v34  ;;  %v1484_v54 = vadd.f32 1.0, %v5577_v44  ;;  %v8199_v34 = vld [vmem:[#allocation4 + $0x1d0] sm:$0xff]  ;;  %v8202_v44 = vld [vmem:[#allocation4 + $0x1a8] sm:$0xff] }
 0x3ad   :  { %v8172_v58 = vmul.f32 %v5579_v13, %v5575_v29  ;;  %v5581_v31 = vpop.eup %5580  ;;  %v8196_v29 = vld [vmem:[#allocation4 + $0x1c0] sm:$0xff]  ;;  %v8205_v13 = vld [vmem:[#allocation4 + $0x1b8] sm:$0xff] }
 0x3ae   :  { %5586 = vrcp.f32 %v1484_v54  ;;  %v5583_v47 = vpop.eup %5582  ;;  %v8208_v54 = vld [vmem:[#allocation4 + $0x1a0] sm:$0xff] }
 0x3af   :  { %11086 = vst [vmem:[#allocation160_spill] sm:$0xff] %v8172_v58  ;;  %1563 = vmatprep.mubr.f32.mxu0 %v8172_v58  ;;  %1634 = vmatprep.mubr.f32.mxu1 %v8172_v58  ;;  %v1491_v55 = vadd.f32 1.0, %v5583_v47  ;;  %v8214_v47 = vld [vmem:[#allocation4 + $0x188] sm:$0xff] }
 0x3b0   :  { %v8628_v58 = vld [vmem:[#allocation7 + $0x1a0] sm:$0xff] }
 0x3b1   :  { %5588 = vrcp.f32 %v1491_v55  ;;  %v8226_v55 = vld [vmem:[#allocation4 + $0x168] sm:$0xff] }
 0x3b9   :  { %v5585_v57 = vpop.eup %5584 }
 0x3ba   :  { %v1495_v63 = vmul.f32 %v5585_v57, %v5581_v31  ;;  %v8211_v31 = vld [vmem:[#allocation4 + $0x1b0] sm:$0xff]  ;;  %v8217_v57 = vld [vmem:[#allocation4 + $0x198] sm:$0xff] }
 0x3bb   :  { %v5587_v43 = vpop.eup %5586 }
 0x3bc   :  { %v1494_v48 = vmul.f32 %v5587_v43, %v7613_v60  ;;  %v8190_v60 = vld [vmem:[#allocation4 + $0x1c8] sm:$0xff]  ;;  %v8223_v43 = vld [vmem:[#allocation4 + $0x190] sm:$0xff] }
 0x3be   :  { %v8177_v56 = vadd.f32 %v1495_v63, %v1494_v48  ;;  %v5589_v59 = vpop.eup %5588  ;;  %v8220_v63 = vld [vmem:[#allocation4 + $0x180] sm:$0xff]  ;;  %v8229_v48 = vld [vmem:[#allocation4 + $0x178] sm:$0xff] }
 0x3c0   :  { %5590 = vtanh.f32 %v8177_v56 }
 0x3cd   :  { %v5591_v33 = vpop.eup %5590 }
 0x3ce   :  { %v8180_v30 = vmul.f32 %v5591_v33, %v5589_v59  ;;  %v8232_v59 = vld [vmem:[#allocation4 + $0x160] sm:$0xff]  ;;  %v8235_v33 = vld [vmem:[#allocation4 + $0x170] sm:$0xff] }
 0x3d0   :  { %1564 = vmatmul.mubr.f32.vlgmr.msra.gmra.mxu0 %v8180_v30  ;;  %1635 = vmatmul.mubr.f32.vlgmr.msra.gmra.mxu1 %v8180_v30 }
 0x3d1   :  { %1666 = vmatpush1.msra.mxu0 %v8184_v51  ;;  %1737 = vmatpush1.msra.mxu1 %v8187_v62 }
 0x3d2   :  { %1667 = vmatprep.subr.mxu0 %v8190_v60  ;;  %1738 = vmatprep.subr.mxu1 %v8193_v61 }
 0x3d3   :  { %1668 = vmatpush1.msra.mxu0 %v8196_v29  ;;  %1739 = vmatpush1.msra.mxu1 %v8199_v34 }
 0x3d4   :  { %1669 = vmatprep.subr.mxu0 %v8202_v44  ;;  %1740 = vmatprep.subr.mxu1 %v8205_v13 }
 0x3d5   :  { %1670 = vmatpush1.msra.mxu0 %v8208_v54  ;;  %1741 = vmatpush1.msra.mxu1 %v8211_v31 }
 0x3d6   :  { %1671 = vmatprep.subr.mxu0 %v8214_v47  ;;  %1742 = vmatprep.subr.mxu1 %v8217_v57 }
 0x3d7   :  { %1672 = vmatpush1.msra.mxu0 %v8220_v63  ;;  %1743 = vmatpush1.msra.mxu1 %v8223_v43 }
 0x3d8   :  { %1673 = vmatprep.subr.mxu0 %v8226_v55  ;;  %1744 = vmatprep.subr.mxu1 %v8229_v48 }
 0x3d9   :  { %1674 = vmatpush1.msra.mxu0 %v8232_v59  ;;  %1745 = vmatpush1.msra.mxu1 %v8235_v33 }
 0x3da   :  { %1675 = vmatprep.subr.mxu0 %v7638_v6  ;;  %1746 = vmatprep.subr.mxu1 %v7641_v5  ;;  %v11087_v6 = vld [vmem:[#allocation26_spill] sm:$0xff]  ;;  %v11088_v5 = vmov 0.0  }
 0x3db   :  { %1676 = vmatpush1.msra.mxu0 %v7644_v22  ;;  %1747 = vmatpush1.msra.mxu1 %v7647_v23  ;;  %v11089_v22 = vld [vmem:[#allocation27_spill] sm:$0xff]  ;;  %v11090_v23 = vld [vmem:[#allocation28_spill] sm:$0xff] }
 0x3dc   :  { %1677 = vmatprep.subr.mxu0 %v7650_v15  ;;  %1748 = vmatprep.subr.mxu1 %v7653_v41  ;;  %v11091_v15 = vld [vmem:[#allocation29_spill] sm:$0xff]  ;;  %v11092_v41 = vld [vmem:[#allocation30_spill] sm:$0xff] }
 0x3dd   :  { %1678 = vmatpush1.msra.mxu0 %v7656_v25  ;;  %1749 = vmatpush1.msra.mxu1 %v7659_v50  ;;  %v11093_v25 = vld [vmem:[#allocation31_spill] sm:$0xff]  ;;  %v11094_v50 = vld [vmem:[#allocation32_spill] sm:$0xff] }
 0x3de   :  { %1679 = vmatprep.subr.mxu0 %v7662_v7  ;;  %1750 = vmatprep.subr.mxu1 %v7665_v21  ;;  %v11095_v7 = vld [vmem:[#allocation33_spill] sm:$0xff]  ;;  %v11096_v21 = vld [vmem:[#allocation34_spill] sm:$0xff] }
 0x3df   :  { %1680 = vmatpush1.msra.mxu0 %v7668_v32  ;;  %1751 = vmatpush1.msra.mxu1 %v7671_v14  ;;  %v11097_v32 = vld [vmem:[#allocation35_spill] sm:$0xff]  ;;  %v11098_v14 = vld [vmem:[#allocation36_spill] sm:$0xff] }
 0x3e0   :  { %1681 = vmatprep.subr.mxu0 %v7674_v0  ;;  %1752 = vmatprep.subr.mxu1 %v7677_v18  ;;  %v11099_v0 = vld [vmem:[#allocation37_spill] sm:$0xff]  ;;  %v11100_v18 = vld [vmem:[#allocation38_spill] sm:$0xff]  ;;  %11239 = vst [vmem:[#allocation36_spill] sm:$0xff] %v8628_v58 }
 0x3e1   :  { %1682 = vmatpush1.msra.mxu0 %v7680_v27  ;;  %1753 = vmatpush1.msra.mxu1 %v7683_v17  ;;  %v11101_v27 = vld [vmem:[#allocation39_spill] sm:$0xff]  ;;  %v11102_v17 = vld [vmem:[#allocation40_spill] sm:$0xff] }
 0x3e2   :  { %1683 = vmatprep.subr.mxu0 %v7686_v24  ;;  %1754 = vmatprep.subr.mxu1 %v7689_v20  ;;  %v11103_v24 = vld [vmem:[#allocation41_spill] sm:$0xff]  ;;  %v11104_v20 = vld [vmem:[#allocation42_spill] sm:$0xff] }
 0x3e3   :  { %1684 = vmatpush1.msra.mxu0 %v7692_v26  ;;  %1755 = vmatpush1.msra.mxu1 %v7695_v1  ;;  %v11105_v26 = vld [vmem:[#allocation43_spill] sm:$0xff]  ;;  %v11106_v1 = vld [vmem:[#allocation44_spill] sm:$0xff] }
 0x3e4   :  { %1685 = vmatprep.subr.mxu0 %v7698_v2  ;;  %1756 = vmatprep.subr.mxu1 %v7701_v3  ;;  %v11107_v2 = vld [vmem:[#allocation45_spill] sm:$0xff]  ;;  %v11108_v3 = vld [vmem:[#allocation46_spill] sm:$0xff] }
 0x3e5   :  { %1686 = vmatpush1.msra.mxu0 %v7704_v4  ;;  %1757 = vmatpush1.msra.mxu1 %v7707_v8  ;;  %v11109_v4 = vld [vmem:[#allocation47_spill] sm:$0xff]  ;;  %v11110_v8 = vld [vmem:[#allocation48_spill] sm:$0xff] }
 0x3e6   :  { %1687 = vmatprep.subr.mxu0 %v7710_v9  ;;  %1758 = vmatprep.subr.mxu1 %v7713_v10  ;;  %v11111_v9 = vld [vmem:[#allocation49_spill] sm:$0xff]  ;;  %v11112_v10 = vld [vmem:[#allocation50_spill] sm:$0xff] }
 0x3e7   :  { %1688 = vmatpush1.msra.mxu0 %v7716_v11  ;;  %1759 = vmatpush1.msra.mxu1 %v7719_v12  ;;  %v11113_v11 = vld [vmem:[#allocation51_spill] sm:$0xff]  ;;  %v11114_v12 = vld [vmem:[#allocation52_spill] sm:$0xff] }
 0x3e8   :  { %1689 = vmatprep.subr.mxu0 %v7722_v16  ;;  %1760 = vmatprep.subr.mxu1 %v7725_v28  ;;  %v11115_v16 = vld [vmem:[#allocation53_spill] sm:$0xff]  ;;  %v11116_v28 = vld [vmem:[#allocation54_spill] sm:$0xff] }
 0x3e9   :  { %1690 = vmatpush1.msra.mxu0 %v7728_v35  ;;  %1761 = vmatpush1.msra.mxu1 %v7731_v36  ;;  %v11117_v35 = vld [vmem:[#allocation55_spill] sm:$0xff]  ;;  %v11118_v36 = vld [vmem:[#allocation56_spill] sm:$0xff] }
 0x3ea   :  { %1691 = vmatprep.subr.mxu0 %v7734_v37  ;;  %1762 = vmatprep.subr.mxu1 %v7737_v38  ;;  %v11119_v37 = vld [vmem:[#allocation57_spill] sm:$0xff]  ;;  %v11120_v38 = vld [vmem:[#allocation58_spill] sm:$0xff] }
 0x3eb   :  { %1692 = vmatpush1.msra.mxu0 %v7740_v39  ;;  %1763 = vmatpush1.msra.mxu1 %v7743_v40  ;;  %v11121_v39 = vld [vmem:[#allocation59_spill] sm:$0xff]  ;;  %v11122_v40 = vld [vmem:[#allocation60_spill] sm:$0xff] }
 0x3ec   :  { %1693 = vmatprep.subr.mxu0 %v7746_v42  ;;  %1764 = vmatprep.subr.mxu1 %v7749_v45  ;;  %v11123_v42 = vld [vmem:[#allocation61_spill] sm:$0xff]  ;;  %v11124_v45 = vld [vmem:[#allocation62_spill] sm:$0xff] }
 0x3ed   :  { %1694 = vmatpush1.msra.mxu0 %v7752_v46  ;;  %1765 = vmatpush1.msra.mxu1 %v7755_v49  ;;  %v11125_v46 = vld [vmem:[#allocation63_spill] sm:$0xff]  ;;  %v11126_v49 = vld [vmem:[#allocation64_spill] sm:$0xff] }
 0x3ee   :  { %1695 = vmatprep.subr.mxu0 %v7758_v52  ;;  %1766 = vmatprep.subr.mxu1 %v7761_v53  ;;  %v11127_v52 = vld [vmem:[#allocation65_spill] sm:$0xff]  ;;  %v11128_v53 = vld [vmem:[#allocation66_spill] sm:$0xff] }
 0x3ef   :  { %1696 = vmatpush1.msra.mxu0 %v11087_v6  ;;  %1729 = vmatprep.mubr.f32.mxu0 %v11088_v5  ;;  %v11130_v6 = vld [vmem:[#allocation68_spill] sm:$0xff] }
 0x3f0   :  { %1767 = vmatpush1.msra.mxu1 %v11089_v22  ;;  %1800 = vmatprep.mubr.f32.mxu1 %v11088_v5  ;;  %v11131_v22 = vld [vmem:[#allocation69_spill] sm:$0xff] }
 0x3f1   :  { %1730 = vmatmul.mubr.f32.vlgmr.msra.gmra.mxu0 %v8180_v30  ;;  %1801 = vmatmul.mubr.f32.vlgmr.msra.gmra.mxu1 %v8180_v30  ;;  %v11129_v30 = vld [vmem:[#allocation67_spill] sm:$0xff] }
 0x3f2   :  { %1835 = vmatprep.subr.mxu0 %v11090_v23  ;;  %1906 = vmatprep.subr.mxu1 %v11091_v15  ;;  %v11132_v23 = vld [vmem:[#allocation70_spill] sm:$0xff]  ;;  %v11133_v15 = vld [vmem:[#allocation71_spill] sm:$0xff] }
 0x3f3   :  { %1836 = vmatpush1.msra.mxu0 %v11092_v41  ;;  %1907 = vmatpush1.msra.mxu1 %v11093_v25  ;;  %v11134_v41 = vld [vmem:[#allocation72_spill] sm:$0xff]  ;;  %v11135_v25 = vld [vmem:[#allocation73_spill] sm:$0xff] }
 0x3f4   :  { %1837 = vmatprep.subr.mxu0 %v11094_v50  ;;  %1908 = vmatprep.subr.mxu1 %v11095_v7  ;;  %v11136_v50 = vld [vmem:[#allocation74_spill] sm:$0xff]  ;;  %v11137_v7 = vld [vmem:[#allocation75_spill] sm:$0xff] }
 0x3f5   :  { %1838 = vmatpush1.msra.mxu0 %v11096_v21  ;;  %1909 = vmatpush1.msra.mxu1 %v11097_v32  ;;  %v11138_v21 = vld [vmem:[#allocation76_spill] sm:$0xff]  ;;  %v11139_v32 = vld [vmem:[#allocation77_spill] sm:$0xff] }
 0x3f6   :  { %1839 = vmatprep.subr.mxu0 %v11098_v14  ;;  %1910 = vmatprep.subr.mxu1 %v11099_v0  ;;  %v11140_v14 = vld [vmem:[#allocation78_spill] sm:$0xff]  ;;  %v11141_v0 = vld [vmem:[#allocation79_spill] sm:$0xff] }
 0x3f7   :  { %1840 = vmatpush1.msra.mxu0 %v11100_v18  ;;  %1911 = vmatpush1.msra.mxu1 %v11101_v27  ;;  %v11142_v18 = vld [vmem:[#allocation80_spill] sm:$0xff]  ;;  %v11143_v27 = vld [vmem:[#allocation81_spill] sm:$0xff] }
 0x3f8   :  { %1841 = vmatprep.subr.mxu0 %v11102_v17  ;;  %1912 = vmatprep.subr.mxu1 %v11103_v24  ;;  %v11144_v17 = vld [vmem:[#allocation82_spill] sm:$0xff]  ;;  %v11145_v24 = vld [vmem:[#allocation83_spill] sm:$0xff] }
 0x3f9   :  { %1842 = vmatpush1.msra.mxu0 %v11104_v20  ;;  %1913 = vmatpush1.msra.mxu1 %v11105_v26  ;;  %v11146_v20 = vld [vmem:[#allocation84_spill] sm:$0xff]  ;;  %v11147_v26 = vld [vmem:[#allocation85_spill] sm:$0xff] }
 0x3fa   :  { %1843 = vmatprep.subr.mxu0 %v11106_v1  ;;  %1914 = vmatprep.subr.mxu1 %v11107_v2  ;;  %v11148_v1 = vld [vmem:[#allocation86_spill] sm:$0xff]  ;;  %v11149_v2 = vld [vmem:[#allocation87_spill] sm:$0xff] }
 0x3fb   :  { %1844 = vmatpush1.msra.mxu0 %v11108_v3  ;;  %1915 = vmatpush1.msra.mxu1 %v11109_v4  ;;  %v11150_v3 = vld [vmem:[#allocation88_spill] sm:$0xff]  ;;  %v11151_v4 = vld [vmem:[#allocation89_spill] sm:$0xff] }
 0x3fc   :  { %1845 = vmatprep.subr.mxu0 %v11110_v8  ;;  %1916 = vmatprep.subr.mxu1 %v11111_v9  ;;  %v11152_v8 = vld [vmem:[#allocation90_spill] sm:$0xff]  ;;  %v11153_v9 = vld [vmem:[#allocation91_spill] sm:$0xff] }
 0x3fd   :  { %1846 = vmatpush1.msra.mxu0 %v11112_v10  ;;  %1917 = vmatpush1.msra.mxu1 %v11113_v11  ;;  %v11154_v10 = vld [vmem:[#allocation92_spill] sm:$0xff]  ;;  %v11155_v11 = vld [vmem:[#allocation93_spill] sm:$0xff] }
 0x3fe   :  { %1847 = vmatprep.subr.mxu0 %v11114_v12  ;;  %1918 = vmatprep.subr.mxu1 %v11115_v16  ;;  %v11156_v12 = vld [vmem:[#allocation94_spill] sm:$0xff]  ;;  %v11157_v16 = vld [vmem:[#allocation95_spill] sm:$0xff] }
 0x3ff   :  { %1848 = vmatpush1.msra.mxu0 %v11116_v28  ;;  %1919 = vmatpush1.msra.mxu1 %v11117_v35  ;;  %v11158_v28 = vld [vmem:[#allocation96_spill] sm:$0xff]  ;;  %v11159_v35 = vld [vmem:[#allocation97_spill] sm:$0xff] }
 0x400   :  { %1849 = vmatprep.subr.mxu0 %v11118_v36  ;;  %1920 = vmatprep.subr.mxu1 %v11119_v37  ;;  %v11160_v36 = vld [vmem:[#allocation98_spill] sm:$0xff]  ;;  %v11161_v37 = vld [vmem:[#allocation99_spill] sm:$0xff] }
 0x401   :  { %1850 = vmatpush1.msra.mxu0 %v11120_v38  ;;  %1921 = vmatpush1.msra.mxu1 %v11121_v39  ;;  %v11162_v38 = vld [vmem:[#allocation100_spill] sm:$0xff]  ;;  %v11163_v39 = vld [vmem:[#allocation101_spill] sm:$0xff] }
 0x402   :  { %1851 = vmatprep.subr.mxu0 %v11122_v40  ;;  %1922 = vmatprep.subr.mxu1 %v11123_v42  ;;  %v11164_v40 = vld [vmem:[#allocation102_spill] sm:$0xff]  ;;  %v11165_v42 = vld [vmem:[#allocation103_spill] sm:$0xff] }
 0x403   :  { %1852 = vmatpush1.msra.mxu0 %v11124_v45  ;;  %1923 = vmatpush1.msra.mxu1 %v11125_v46  ;;  %v11166_v45 = vld [vmem:[#allocation104_spill] sm:$0xff]  ;;  %v11167_v46 = vld [vmem:[#allocation105_spill] sm:$0xff] }
 0x404   :  { %1853 = vmatprep.subr.mxu0 %v11126_v49  ;;  %1924 = vmatprep.subr.mxu1 %v11127_v52  ;;  %v11168_v49 = vld [vmem:[#allocation106_spill] sm:$0xff]  ;;  %v11169_v52 = vld [vmem:[#allocation107_spill] sm:$0xff] }
 0x405   :  { %1854 = vmatpush1.msra.mxu0 %v11128_v53  ;;  %1925 = vmatpush1.msra.mxu1 %v11129_v30  ;;  %v11170_v53 = vld [vmem:[#allocation108_spill] sm:$0xff]  ;;  %v11171_v30 = vld [vmem:[#allocation109_spill] sm:$0xff] }
 0x406   :  { %1855 = vmatprep.subr.mxu0 %v11130_v6  ;;  %1926 = vmatprep.subr.mxu1 %v11131_v22  ;;  %v11172_v6 = vld [vmem:[#allocation110_spill] sm:$0xff]  ;;  %v11173_v22 = vld [vmem:[#allocation111_spill] sm:$0xff] }
 0x407   :  { %1856 = vmatpush1.msra.mxu0 %v11132_v23  ;;  %1927 = vmatpush1.msra.mxu1 %v11133_v15  ;;  %v11174_v23 = vld [vmem:[#allocation112_spill] sm:$0xff]  ;;  %v11175_v15 = vld [vmem:[#allocation113_spill] sm:$0xff] }
 0x408   :  { %1857 = vmatprep.subr.mxu0 %v11134_v41  ;;  %1928 = vmatprep.subr.mxu1 %v11135_v25  ;;  %v11176_v41 = vld [vmem:[#allocation114_spill] sm:$0xff]  ;;  %v11177_v25 = vld [vmem:[#allocation115_spill] sm:$0xff] }
 0x409   :  { %1858 = vmatpush1.msra.mxu0 %v11136_v50  ;;  %1929 = vmatpush1.msra.mxu1 %v11137_v7  ;;  %v11178_v50 = vld [vmem:[#allocation116_spill] sm:$0xff]  ;;  %v11179_v7 = vld [vmem:[#allocation117_spill] sm:$0xff] }
 0x40a   :  { %1859 = vmatprep.subr.mxu0 %v11138_v21  ;;  %1930 = vmatprep.subr.mxu1 %v11139_v32  ;;  %v11180_v21 = vld [vmem:[#allocation118_spill] sm:$0xff]  ;;  %v11181_v32 = vld [vmem:[#allocation119_spill] sm:$0xff] }
 0x40b   :  { %1860 = vmatpush1.msra.mxu0 %v11140_v14  ;;  %1931 = vmatpush1.msra.mxu1 %v11141_v0  ;;  %v11182_v14 = vld [vmem:[#allocation120_spill] sm:$0xff]  ;;  %v11183_v0 = vld [vmem:[#allocation121_spill] sm:$0xff] }
 0x40c   :  { %1861 = vmatprep.subr.mxu0 %v11142_v18  ;;  %1932 = vmatprep.subr.mxu1 %v11143_v27  ;;  %v11184_v18 = vld [vmem:[#allocation122_spill] sm:$0xff]  ;;  %v11185_v27 = vld [vmem:[#allocation123_spill] sm:$0xff] }
 0x40d   :  { %1862 = vmatpush1.msra.mxu0 %v11144_v17  ;;  %1933 = vmatpush1.msra.mxu1 %v11145_v24  ;;  %v11186_v17 = vld [vmem:[#allocation124_spill] sm:$0xff]  ;;  %v11187_v24 = vld [vmem:[#allocation125_spill] sm:$0xff] }
 0x40e   :  { %1863 = vmatprep.subr.mxu0 %v11146_v20  ;;  %1934 = vmatprep.subr.mxu1 %v11147_v26  ;;  %v11188_v20 = vld [vmem:[#allocation126_spill] sm:$0xff]  ;;  %v11189_v26 = vld [vmem:[#allocation127_spill] sm:$0xff] }
 0x40f   :  { %1864 = vmatpush1.msra.mxu0 %v11148_v1  ;;  %1935 = vmatpush1.msra.mxu1 %v11149_v2  ;;  %v11190_v1 = vld [vmem:[#allocation128_spill] sm:$0xff]  ;;  %v11191_v2 = vld [vmem:[#allocation129_spill] sm:$0xff] }
 0x410   :  { %1865 = vmatprep.subr.mxu0 %v11150_v3  ;;  %1936 = vmatprep.subr.mxu1 %v11151_v4  ;;  %v11192_v3 = vld [vmem:[#allocation130_spill] sm:$0xff]  ;;  %v11193_v4 = vld [vmem:[#allocation131_spill] sm:$0xff] }
 0x411   :  { %1866 = vmatpush1.msra.mxu0 %v11152_v8  ;;  %1937 = vmatpush1.msra.mxu1 %v11153_v9  ;;  %v11194_v8 = vld [vmem:[#allocation132_spill] sm:$0xff]  ;;  %v11195_v9 = vld [vmem:[#allocation133_spill] sm:$0xff] }
 0x412   :  { %1867 = vmatprep.subr.mxu0 %v11154_v10  ;;  %1938 = vmatprep.subr.mxu1 %v11155_v11  ;;  %v11196_v10 = vld [vmem:[#allocation134_spill] sm:$0xff]  ;;  %v11197_v11 = vld [vmem:[#allocation135_spill] sm:$0xff] }
 0x413   :  { %1868 = vmatpush2.msra.mxu0 %v11156_v12  ;;  %1939 = vmatpush2.msra.mxu1 %v11157_v16  ;;  %v11198_v12 = vld [vmem:[#allocation136_spill] sm:$0xff]  ;;  %v11199_v16 = vld [vmem:[#allocation137_spill] sm:$0xff] }
 0x414   :  { %1869 = vmatprep.subr.mxu0 %v11158_v28  ;;  %1940 = vmatprep.subr.mxu1 %v11159_v35  ;;  %v11200_v28 = vld [vmem:[#allocation138_spill] sm:$0xff]  ;;  %v11201_v35 = vld [vmem:[#allocation139_spill] sm:$0xff] }
 0x415   :  { %1870 = vmatpush2.msra.mxu0 %v11160_v36  ;;  %1941 = vmatpush2.msra.mxu1 %v11161_v37  ;;  %v11202_v36 = vld [vmem:[#allocation140_spill] sm:$0xff]  ;;  %v11203_v37 = vld [vmem:[#allocation141_spill] sm:$0xff] }
 0x416   :  { %1871 = vmatprep.subr.mxu0 %v11162_v38  ;;  %1942 = vmatprep.subr.mxu1 %v11163_v39  ;;  %v11204_v38 = vld [vmem:[#allocation142_spill] sm:$0xff]  ;;  %v11205_v39 = vld [vmem:[#allocation143_spill] sm:$0xff] }
 0x417   :  { %1872 = vmatpush2.msra.mxu0 %v11164_v40  ;;  %1943 = vmatpush2.msra.mxu1 %v11165_v42  ;;  %v11206_v40 = vld [vmem:[#allocation144_spill] sm:$0xff]  ;;  %v11207_v42 = vld [vmem:[#allocation145_spill] sm:$0xff] }
 0x418   :  { %1873 = vmatprep.subr.mxu0 %v11166_v45  ;;  %1944 = vmatprep.subr.mxu1 %v11167_v46  ;;  %v11208_v45 = vld [vmem:[#allocation146_spill] sm:$0xff]  ;;  %v11209_v46 = vld [vmem:[#allocation147_spill] sm:$0xff] }
 0x419   :  { %1874 = vmatpush2.msra.mxu0 %v11168_v49  ;;  %1945 = vmatpush2.msra.mxu1 %v11169_v52  ;;  %v11210_v49 = vld [vmem:[#allocation148_spill] sm:$0xff]  ;;  %v11211_v52 = vld [vmem:[#allocation149_spill] sm:$0xff] }
 0x41a   :  { %1875 = vmatprep.subr.mxu0 %v11170_v53  ;;  %1946 = vmatprep.subr.mxu1 %v11171_v30  ;;  %v11212_v53 = vld [vmem:[#allocation150_spill] sm:$0xff]  ;;  %v11213_v30 = vld [vmem:[#allocation156_spill] sm:$0xff] }
 0x41b   :  { %1876 = vmatpush2.msra.mxu0 %v11172_v6  ;;  %1947 = vmatpush2.msra.mxu1 %v11173_v22  ;;  %v11214_v6 = vld [vmem:[#allocation158_spill] sm:$0xff]  ;;  %v11215_v22 = vld [vmem:[#allocation159_spill] sm:$0xff] }
 0x41c   :  { %1877 = vmatprep.subr.mxu0 %v11174_v23  ;;  %1948 = vmatprep.subr.mxu1 %v11175_v15  ;;  %v11216_v23 = vld [vmem:[#allocation157_spill] sm:$0xff]  ;;  %v11217_v15 = vld [vmem:[#allocation184_spill] sm:$0xff] }
 0x41d   :  { %1878 = vmatpush2.msra.mxu0 %v11176_v41  ;;  %1949 = vmatpush2.msra.mxu1 %v11177_v25  ;;  %v8414_v41 = vld [vmem:[#allocation4 + $0x1e8] sm:$0xff]  ;;  %v8417_v25 = vld [vmem:[#allocation4 + $0x1f8] sm:$0xff] }
 0x41e   :  { %1879 = vmatprep.subr.mxu0 %v11178_v50  ;;  %1950 = vmatprep.subr.mxu1 %v11179_v7  ;;  %v11218_v7 = vld [vmem:[#allocation21_spill] sm:$0xff] }
 0x41f   :  { %1880 = vmatpush2.msra.mxu0 %v11180_v21  ;;  %1951 = vmatpush2.msra.mxu1 %v11181_v32 }
 0x420   :  { %1881 = vmatprep.subr.mxu0 %v11182_v14  ;;  %1952 = vmatprep.subr.mxu1 %v11183_v0  ;;  %v11219_v0 = vld [vmem:[#allocation22_spill] sm:$0xff] }
 0x421   :  { %1882 = vmatpush2.msra.mxu0 %v11184_v18  ;;  %1953 = vmatpush2.msra.mxu1 %v11185_v27 }
 0x422   :  { %1883 = vmatprep.subr.mxu0 %v11186_v17  ;;  %1954 = vmatprep.subr.mxu1 %v11187_v24 }
 0x423   :  { %1884 = vmatpush2.msra.mxu0 %v11188_v20  ;;  %1955 = vmatpush2.msra.mxu1 %v11189_v26  ;;  %v11220_v20 = vld [vmem:[#allocation23_spill] sm:$0xff] }
 0x424   :  { %1885 = vmatprep.subr.mxu0 %v11190_v1  ;;  %1956 = vmatprep.subr.mxu1 %v11191_v2 }
 0x425   :  { %1886 = vmatpush2.msra.mxu0 %v11192_v3  ;;  %1957 = vmatpush2.msra.mxu1 %v11193_v4  ;;  %v11221_v3 = vld [vmem:[#allocation24_spill] sm:$0xff] }
 0x426   :  { %1887 = vmatprep.subr.mxu0 %v11194_v8  ;;  %1958 = vmatprep.subr.mxu1 %v11195_v9 }
 0x427   :  { %1888 = vmatpush2.msra.mxu0 %v11196_v10  ;;  %1959 = vmatpush2.msra.mxu1 %v11197_v11 }
 0x428   :  { %1889 = vmatprep.subr.mxu0 %v11198_v12  ;;  %1960 = vmatprep.subr.mxu1 %v11199_v16 }
 0x429   :  { %1890 = vmatpush2.msra.mxu0 %v11200_v28  ;;  %1961 = vmatpush2.msra.mxu1 %v11201_v35  ;;  %v11222_v28 = vld [vmem:[#allocation164_spill] sm:$0xff] }
 0x42a   :  { %1891 = vmatprep.subr.mxu0 %v11202_v36  ;;  %1962 = vmatprep.subr.mxu1 %v11203_v37 }
 0x42b   :  { %1892 = vmatpush2.msra.mxu0 %v11204_v38  ;;  %1963 = vmatpush2.msra.mxu1 %v11205_v39 }
 0x42c   :  { %1893 = vmatprep.subr.mxu0 %v11206_v40  ;;  %1964 = vmatprep.subr.mxu1 %v11207_v42  ;;  %v11223_v42 = vld [vmem:[#allocation166_spill] sm:$0xff] }
 0x42d   :  { %1894 = vmatpush2.msra.mxu0 %v11208_v45  ;;  %1965 = vmatpush2.msra.mxu1 %v11209_v46 }
 0x42e   :  { %1895 = vmatprep.subr.mxu0 %v11210_v49  ;;  %1966 = vmatprep.subr.mxu1 %v11211_v52 }
 0x42f   :  { %1896 = vmatpush2.msra.mxu0 %v11212_v53  ;;  %1967 = vmatpush2.msra.mxu1 %v11213_v30 }
 0x430   :  { %1897 = vmatprep.subr.mxu0 %v11214_v6  ;;  %1968 = vmatprep.subr.mxu1 %v11215_v22  ;;  %v11224_v22 = vld [vmem:[#allocation167_spill] sm:$0xff] }
 0x431   :  { %1898 = vmatpush2.msra.mxu0 %v11216_v23  ;;  %1969 = vmatpush2.msra.mxu1 %v11217_v15  ;;  %v11225_v15 = vld [vmem:[#allocation165_spill] sm:$0xff] }
 0x432   :  { %2001 = vmatprep.subr.mxu0 %v8414_v41  ;;  %2072 = vmatprep.subr.mxu1 %v8417_v25 }
 0x490   :  { %v1565_v50 = vpop.f32.mrf.mxu0  ;;  %v1636_v27 = vpop.f32.mrf.mxu1 }
 0x491   :  { %v1566_v21 = vadd.f32 %v1565_v50, %v11218_v7  ;;  %v1637_v4 = vadd.f32 %v1636_v27, %v11221_v3 }
 0x492   :  { %v1567_v32 = vpop.f32.mrf.mxu0  ;;  %v1638_v24 = vpop.f32.mrf.mxu1 }
 0x493   :  { %v5355_v14 = vmul.f32 -1.442695, %v1566_v21  ;;  %v1568_v18 = vadd.f32 %v1567_v32, %v11219_v0  ;;  %v1639_v26 = vadd.f32 %v1638_v24, %v11220_v20 }
 0x495   :  { %5592 = vpow2.f32 %v5355_v14  ;;  %v5356_v17 = vmul.f32 -1.442695, %v1568_v18  ;;  %v5357_v1 = vmul.f32 -1.442695, %v1639_v26 }
 0x497   :  { %5594 = vpow2.f32 %v5356_v17 }
 0x498   :  { %5596 = vpow2.f32 %v5357_v1 }
 0x4a2   :  { %v5593_v2 = vpop.eup %5592 }
 0x4a3   :  { %v1644_v8 = vadd.f32 1.0, %v5593_v2 }
 0x4a4   :  { %v5595_v9 = vpop.eup %5594 }
 0x4a5   :  { %5598 = vrcp.f32 %v1644_v8  ;;  %v1650_v10 = vadd.f32 1.0, %v5595_v9  ;;  %v5597_v11 = vpop.eup %5596 }
 0x4a6   :  { %5600 = vtanh.f32 %v1637_v4  ;;  %v1657_v37 = vadd.f32 1.0, %v5597_v11 }
 0x4a7   :  { %5602 = vrcp.f32 %v1650_v10 }
 0x4b1   :  { %v1731_v12 = vpop.f32.mrf.mxu0  ;;  %v1802_v52 = vpop.f32.mrf.mxu1 }
 0x4b2   :  { %v5599_v16 = vpop.eup %5598  ;;  %v1807_v35 = vadd.f32 %v1731_v12, %v11222_v28  ;;  %v1809_v50 = vadd.f32 %v1802_v52, %v11225_v15  ;;  %v8549_v52 = vld [vmem:[#allocation4 + $0x78] sm:$0xff]  ;;  %v8564_v15 = vld [vmem:[#allocation4 + $0x40] sm:$0xff] }
 0x4b3   :  { %v5601_v36 = vpop.eup %5600  ;;  %v1733_v38 = vpop.f32.mrf.mxu0 }
 0x4b4   :  { %v5603_v39 = vpop.eup %5602  ;;  %v5358_v40 = vmul.f32 -1.442695, %v1807_v35  ;;  %v1808_v45 = vadd.f32 %v1733_v38, %v11223_v42  ;;  %v1661_v46 = vmul.f32 %v5601_v36, %v5599_v16  ;;  %v1804_v6 = vpop.f32.mrf.mxu1  ;;  %v8519_v35 = vld [vmem:[#allocation4 + $0xd0] sm:$0xff]  ;;  %v8522_v36 = vld [vmem:[#allocation4 + $0xa8] sm:$0xff]  ;;  %v8528_v38 = vld [vmem:[#allocation4 + $0xa0] sm:$0xff] }
 0x4b5   :  { %v1660_v49 = vmul.f32 %v5603_v39, %v8167_v19  ;;  %v1810_v23 = vadd.f32 %v1804_v6, %v11224_v22  ;;  %v8531_v39 = vld [vmem:[#allocation4 + $0xb0] sm:$0xff]  ;;  %v8537_v42 = vld [vmem:[#allocation4 + $0x98] sm:$0xff]  ;;  %v8558_v22 = vld [vmem:[#allocation4 + $0x48] sm:$0xff] }
 0x4b6   :  { %5604 = vpow2.f32 %v5358_v40  ;;  %v5359_v53 = vmul.f32 -1.442695, %v1808_v45  ;;  %v8534_v40 = vld [vmem:[#allocation4 + $0x88] sm:$0xff]  ;;  %v8540_v45 = vld [vmem:[#allocation4 + $0x80] sm:$0xff]  ;;  %v8555_v6 = vld [vmem:[#allocation4 + $0x70] sm:$0xff] }
 0x4b7   :  { %v8427_v30 = vadd.f32 %v1661_v46, %v1660_v49  ;;  %5606 = vrcp.f32 %v1657_v37  ;;  %v5360_v21 = vmul.f32 -1.442695, %v1810_v23  ;;  %v8525_v37 = vld [vmem:[#allocation4 + $0xb8] sm:$0xff]  ;;  %v8543_v46 = vld [vmem:[#allocation4 + $0x90] sm:$0xff]  ;;  %v8546_v49 = vld [vmem:[#allocation4 + $0x68] sm:$0xff] }
 0x4b8   :  { %5608 = vpow2.f32 %v5359_v53  ;;  %v8552_v53 = vld [vmem:[#allocation4 + $0x60] sm:$0xff]  ;;  %v8561_v23 = vld [vmem:[#allocation4 + $0x58] sm:$0xff] }
 0x4b9   :  { %5610 = vtanh.f32 %v8427_v30 }
 0x4ba   :  { %5612 = vtanh.f32 %v1809_v50  ;;  %v8567_v50 = vld [vmem:[#allocation4 + $0x50] sm:$0xff] }
 0x4bb   :  { %5614 = vpow2.f32 %v5360_v21  ;;  %v8570_v21 = vld [vmem:[#allocation4 + $0x28] sm:$0xff] }
 0x4c3   :  { %v5605_v32 = vpop.eup %5604 }
 0x4c4   :  { %v5607_v14 = vpop.eup %5606  ;;  %v1814_v18 = vadd.f32 1.0, %v5605_v32  ;;  %v8573_v32 = vld [vmem:[#allocation4 + $0x38] sm:$0xff] }
 0x4c5   :  { %v5609_v19 = vpop.eup %5608 }
 0x4c6   :  { %v5611_v27 = vpop.eup %5610  ;;  %5616 = vrcp.f32 %v1814_v18  ;;  %v1820_v17 = vadd.f32 1.0, %v5609_v19  ;;  %v8579_v18 = vld [vmem:[#allocation4 + $0x30] sm:$0xff]  ;;  %v8582_v19 = vld [vmem:[#allocation4 + $0x8] sm:$0xff] }
 0x4c7   :  { %v8432_v24 = vmul.f32 %v5611_v27, %v5607_v14  ;;  %v5613_v26 = vpop.eup %5612  ;;  %v8576_v14 = vld [vmem:[#allocation4 + $0x20] sm:$0xff]  ;;  %v8585_v27 = vld [vmem:[#allocation4 + $0x18] sm:$0xff] }
 0x4c8   :  { %5618 = vrcp.f32 %v1820_v17  ;;  %v5615_v1 = vpop.eup %5614  ;;  %v8588_v17 = vld [vmem:[#allocation4] sm:$0xff] }
 0x4c9   :  { %11226 = vst [vmem:[#allocation162_spill] sm:$0xff] %v8432_v24  ;;  %1899 = vmatprep.mubr.f32.mxu0 %v8432_v24  ;;  %1970 = vmatprep.mubr.f32.mxu1 %v8432_v24  ;;  %v1827_v9 = vadd.f32 1.0, %v5615_v1  ;;  %11227 = vst [vmem:[#allocation163_spill] sm:$0xff] %v8588_v17  ;;  %v8598_v1 = vld [vmem:[#allocation7 + $0x1e8] sm:$0xff]  ;;  %v8625_v24 = vld [vmem:[#allocation7 + $0x1b8] sm:$0xff] }
 0x4ca   :  { %11229 = vst [vmem:[#allocation26_spill] sm:$0xff] %v8598_v1  ;;  %11238 = vst [vmem:[#allocation35_spill] sm:$0xff] %v8625_v24 }
 0x4cb   :  { %5620 = vrcp.f32 %v1827_v9  ;;  %v8610_v9 = vld [vmem:[#allocation7 + $0x1c8] sm:$0xff] }
 0x4cc   :  { %11233 = vst [vmem:[#allocation30_spill] sm:$0xff] %v8610_v9 }
 0x4d3   :  { %v5617_v2 = vpop.eup %5616 }
 0x4d4   :  { %v1831_v4 = vmul.f32 %v5617_v2, %v5613_v26  ;;  %v8592_v26 = vld [vmem:[#allocation4 + $0x10] sm:$0xff]  ;;  %v8601_v2 = vld [vmem:[#allocation7 + $0x1f8] sm:$0xff] }
 0x4d5   :  { %v5619_v8 = vpop.eup %5618  ;;  %11228 = vst [vmem:[#allocation161_spill] sm:$0xff] %v8592_v26  ;;  %11230 = vst [vmem:[#allocation27_spill] sm:$0xff] %v8601_v2 }
 0x4d6   :  { %v1830_v10 = vmul.f32 %v5619_v8, %v8177_v56  ;;  %v8462_v56 = vld [vmem:[#allocation4 + $0x148] sm:$0xff]  ;;  %v8607_v8 = vld [vmem:[#allocation7 + $0x1f0] sm:$0xff] }
 0x4d7   :  { %11232 = vst [vmem:[#allocation29_spill] sm:$0xff] %v8607_v8 }
 0x4d8   :  { %v8437_v11 = vadd.f32 %v1831_v4, %v1830_v10  ;;  %v5621_v12 = vpop.eup %5620  ;;  %v8604_v4 = vld [vmem:[#allocation7 + $0x1e0] sm:$0xff]  ;;  %v8613_v10 = vld [vmem:[#allocation7 + $0x1d8] sm:$0xff] }
 0x4d9   :  { %11231 = vst [vmem:[#allocation28_spill] sm:$0xff] %v8604_v4  ;;  %11234 = vst [vmem:[#allocation31_spill] sm:$0xff] %v8613_v10 }
 0x4da   :  { %5622 = vtanh.f32 %v8437_v11 }
 0x4e7   :  { %v5623_v16 = vpop.eup %5622 }
 0x4e8   :  { %v8440_v28 = vmul.f32 %v5623_v16, %v5621_v12  ;;  %v8616_v12 = vld [vmem:[#allocation7 + $0x1c0] sm:$0xff]  ;;  %v8619_v16 = vld [vmem:[#allocation7 + $0x1d0] sm:$0xff] }
 0x4e9   :  { %11235 = vst [vmem:[#allocation32_spill] sm:$0xff] %v8616_v12  ;;  %11236 = vst [vmem:[#allocation33_spill] sm:$0xff] %v8619_v16 }
 0x4ea   :  { %1900 = vmatmul.mubr.f32.vlgmr.msra.gmra.mxu0 %v8440_v28  ;;  %1971 = vmatmul.mubr.f32.vlgmr.msra.gmra.mxu1 %v8440_v28 }
 0x4eb   :  { %2002 = vmatpush1.msra.mxu0 %v8184_v51  ;;  %2073 = vmatpush1.msra.mxu1 %v8187_v62  ;;  %v8465_v51 = vld [vmem:[#allocation4 + $0x158] sm:$0xff]  ;;  %v8468_v62 = vld [vmem:[#allocation4 + $0x140] sm:$0xff] }
 0x4ec   :  { %2003 = vmatprep.subr.mxu0 %v8190_v60  ;;  %2074 = vmatprep.subr.mxu1 %v8193_v61  ;;  %v8471_v60 = vld [vmem:[#allocation4 + $0x150] sm:$0xff]  ;;  %v8474_v61 = vld [vmem:[#allocation4 + $0x128] sm:$0xff] }
 0x4ed   :  { %2004 = vmatpush1.msra.mxu0 %v8196_v29  ;;  %2075 = vmatpush1.msra.mxu1 %v8199_v34  ;;  %v8477_v29 = vld [vmem:[#allocation4 + $0x138] sm:$0xff]  ;;  %v8480_v34 = vld [vmem:[#allocation4 + $0x120] sm:$0xff] }
 0x4ee   :  { %2005 = vmatprep.subr.mxu0 %v8202_v44  ;;  %2076 = vmatprep.subr.mxu1 %v8205_v13  ;;  %v8483_v44 = vld [vmem:[#allocation4 + $0x130] sm:$0xff]  ;;  %v8486_v13 = vld [vmem:[#allocation4 + $0x108] sm:$0xff] }
 0x4ef   :  { %2006 = vmatpush1.msra.mxu0 %v8208_v54  ;;  %2077 = vmatpush1.msra.mxu1 %v8211_v31  ;;  %v8489_v54 = vld [vmem:[#allocation4 + $0x118] sm:$0xff]  ;;  %v8492_v31 = vld [vmem:[#allocation4 + $0x100] sm:$0xff] }
 0x4f0   :  { %2007 = vmatprep.subr.mxu0 %v8214_v47  ;;  %2078 = vmatprep.subr.mxu1 %v8217_v57  ;;  %v8495_v47 = vld [vmem:[#allocation4 + $0x110] sm:$0xff]  ;;  %v8498_v57 = vld [vmem:[#allocation4 + $0xe8] sm:$0xff] }
 0x4f1   :  { %2008 = vmatpush1.msra.mxu0 %v8220_v63  ;;  %2079 = vmatpush1.msra.mxu1 %v8223_v43  ;;  %v8501_v63 = vld [vmem:[#allocation4 + $0xf8] sm:$0xff]  ;;  %v8504_v43 = vld [vmem:[#allocation4 + $0xe0] sm:$0xff] }
 0x4f2   :  { %2009 = vmatprep.subr.mxu0 %v8226_v55  ;;  %2080 = vmatprep.subr.mxu1 %v8229_v48  ;;  %v8507_v55 = vld [vmem:[#allocation4 + $0xf0] sm:$0xff]  ;;  %v8510_v48 = vld [vmem:[#allocation4 + $0xc8] sm:$0xff] }
 0x4f3   :  { %2010 = vmatpush1.msra.mxu0 %v8232_v59  ;;  %2081 = vmatpush1.msra.mxu1 %v8235_v33  ;;  %v8513_v59 = vld [vmem:[#allocation4 + $0xd8] sm:$0xff]  ;;  %v8516_v33 = vld [vmem:[#allocation4 + $0xc0] sm:$0xff] }
 0x4f4   :  { %2011 = vmatprep.subr.mxu0 %v8462_v56  ;;  %2082 = vmatprep.subr.mxu1 %v8465_v51 }
 0x4f5   :  { %2012 = vmatpush1.msra.mxu0 %v8468_v62  ;;  %2083 = vmatpush1.msra.mxu1 %v8471_v60 }
 0x4f6   :  { %2013 = vmatprep.subr.mxu0 %v8474_v61  ;;  %2084 = vmatprep.subr.mxu1 %v8477_v29 }
 0x4f7   :  { %2014 = vmatpush1.msra.mxu0 %v8480_v34  ;;  %2085 = vmatpush1.msra.mxu1 %v8483_v44 }
 0x4f8   :  { %2015 = vmatprep.subr.mxu0 %v8486_v13  ;;  %2086 = vmatprep.subr.mxu1 %v8489_v54 }
 0x4f9   :  { %2016 = vmatpush1.msra.mxu0 %v8492_v31  ;;  %2087 = vmatpush1.msra.mxu1 %v8495_v47 }
 0x4fa   :  { %2017 = vmatprep.subr.mxu0 %v8498_v57  ;;  %2088 = vmatprep.subr.mxu1 %v8501_v63 }
 0x4fb   :  { %2018 = vmatpush1.msra.mxu0 %v8504_v43  ;;  %2089 = vmatpush1.msra.mxu1 %v8507_v55 }
 0x4fc   :  { %2019 = vmatprep.subr.mxu0 %v8510_v48  ;;  %2090 = vmatprep.subr.mxu1 %v8513_v59 }
 0x4fd   :  { %2020 = vmatpush1.msra.mxu0 %v8516_v33  ;;  %2091 = vmatpush1.msra.mxu1 %v8519_v35 }
 0x4fe   :  { %2021 = vmatprep.subr.mxu0 %v8522_v36  ;;  %2092 = vmatprep.subr.mxu1 %v8525_v37 }
 0x4ff   :  { %2022 = vmatpush1.msra.mxu0 %v8528_v38  ;;  %2093 = vmatpush1.msra.mxu1 %v8531_v39 }
 0x500   :  { %2023 = vmatprep.subr.mxu0 %v8534_v40  ;;  %2094 = vmatprep.subr.mxu1 %v8537_v42 }
 0x501   :  { %2024 = vmatpush1.msra.mxu0 %v8540_v45  ;;  %2095 = vmatpush1.msra.mxu1 %v8543_v46 }
 0x502   :  { %2025 = vmatprep.subr.mxu0 %v8546_v49  ;;  %2096 = vmatprep.subr.mxu1 %v8549_v52 }
 0x503   :  { %2026 = vmatpush1.msra.mxu0 %v8552_v53  ;;  %2097 = vmatpush1.msra.mxu1 %v8555_v6 }
 0x504   :  { %2027 = vmatprep.subr.mxu0 %v8558_v22  ;;  %2098 = vmatprep.subr.mxu1 %v8561_v23 }
 0x505   :  { %2028 = vmatpush1.msra.mxu0 %v8564_v15  ;;  %2099 = vmatpush1.msra.mxu1 %v8567_v50 }
 0x506   :  { %2029 = vmatprep.subr.mxu0 %v8570_v21  ;;  %2100 = vmatprep.subr.mxu1 %v8573_v32 }
 0x507   :  { %2030 = vmatpush1.msra.mxu0 %v8576_v14  ;;  %2101 = vmatpush1.msra.mxu1 %v8579_v18 }
 0x508   :  { %2031 = vmatprep.subr.mxu0 %v8582_v19  ;;  %2102 = vmatprep.subr.mxu1 %v8585_v27 }
 0x509   :  { %2032 = vmatpush1.msra.mxu0 %v8588_v17  ;;  %2065 = vmatprep.mubr.f32.mxu0 %v11088_v5 }
 0x50a   :  { %2103 = vmatpush1.msra.mxu1 %v8592_v26  ;;  %2136 = vmatprep.mubr.f32.mxu1 %v11088_v5 }
 0x50b   :  { %2066 = vmatmul.mubr.f32.vlgmr.msra.gmra.mxu0 %v8440_v28  ;;  %2137 = vmatmul.mubr.f32.vlgmr.msra.gmra.mxu1 %v8440_v28  ;;  %v8622_v28 = vld [vmem:[#allocation7 + $0x1a8] sm:$0xff] }
 0x50c   :  { %2171 = vmatprep.subr.mxu0 %v8598_v1  ;;  %2242 = vmatprep.subr.mxu1 %v8601_v2  ;;  %11237 = vst [vmem:[#allocation34_spill] sm:$0xff] %v8622_v28 }
 0x50d   :  { %2172 = vmatpush1.msra.mxu0 %v8604_v4  ;;  %2243 = vmatpush1.msra.mxu1 %v8607_v8 }
 0x50e   :  { %2173 = vmatprep.subr.mxu0 %v8610_v9  ;;  %2244 = vmatprep.subr.mxu1 %v8613_v10  ;;  %v8631_v10 = vld [vmem:[#allocation7 + $0x1b0] sm:$0xff] }
 0x50f   :  { %2174 = vmatpush1.msra.mxu0 %v8616_v12  ;;  %2245 = vmatpush1.msra.mxu1 %v8619_v16  ;;  %11240 = vst [vmem:[#allocation37_spill] sm:$0xff] %v8631_v10  ;;  %v8634_v12 = vld [vmem:[#allocation7 + $0x188] sm:$0xff]  ;;  %v8637_v16 = vld [vmem:[#allocation7 + $0x198] sm:$0xff] }
 0x510   :  { %2175 = vmatprep.subr.mxu0 %v8622_v28  ;;  %2246 = vmatprep.subr.mxu1 %v8625_v24  ;;  %11241 = vst [vmem:[#allocation38_spill] sm:$0xff] %v8634_v12  ;;  %11242 = vst [vmem:[#allocation39_spill] sm:$0xff] %v8637_v16  ;;  %v8640_v28 = vld [vmem:[#allocation7 + $0x180] sm:$0xff]  ;;  %v8643_v24 = vld [vmem:[#allocation7 + $0x190] sm:$0xff] }
 0x511   :  { %2176 = vmatpush1.msra.mxu0 %v8628_v58  ;;  %2247 = vmatpush1.msra.mxu1 %v8631_v10  ;;  %11243 = vst [vmem:[#allocation40_spill] sm:$0xff] %v8640_v28  ;;  %11244 = vst [vmem:[#allocation41_spill] sm:$0xff] %v8643_v24  ;;  %v8646_v58 = vld [vmem:[#allocation7 + $0x168] sm:$0xff]  ;;  %v8649_v10 = vld [vmem:[#allocation7 + $0x178] sm:$0xff] }
 0x512   :  { %2177 = vmatprep.subr.mxu0 %v8634_v12  ;;  %2248 = vmatprep.subr.mxu1 %v8637_v16  ;;  %11245 = vst [vmem:[#allocation42_spill] sm:$0xff] %v8646_v58  ;;  %11246 = vst [vmem:[#allocation43_spill] sm:$0xff] %v8649_v10  ;;  %v8652_v12 = vld [vmem:[#allocation7 + $0x160] sm:$0xff]  ;;  %v8655_v16 = vld [vmem:[#allocation7 + $0x170] sm:$0xff] }
 0x513   :  { %2178 = vmatpush1.msra.mxu0 %v8640_v28  ;;  %2249 = vmatpush1.msra.mxu1 %v8643_v24  ;;  %11247 = vst [vmem:[#allocation44_spill] sm:$0xff] %v8652_v12  ;;  %11248 = vst [vmem:[#allocation45_spill] sm:$0xff] %v8655_v16  ;;  %v8658_v28 = vld [vmem:[#allocation7 + $0x148] sm:$0xff]  ;;  %v8661_v24 = vld [vmem:[#allocation7 + $0x158] sm:$0xff] }
 0x514   :  { %2179 = vmatprep.subr.mxu0 %v8646_v58  ;;  %2250 = vmatprep.subr.mxu1 %v8649_v10  ;;  %11249 = vst [vmem:[#allocation46_spill] sm:$0xff] %v8658_v28  ;;  %11250 = vst [vmem:[#allocation47_spill] sm:$0xff] %v8661_v24  ;;  %v8664_v58 = vld [vmem:[#allocation7 + $0x140] sm:$0xff]  ;;  %v8667_v10 = vld [vmem:[#allocation7 + $0x150] sm:$0xff] }
 0x515   :  { %2180 = vmatpush1.msra.mxu0 %v8652_v12  ;;  %2251 = vmatpush1.msra.mxu1 %v8655_v16  ;;  %11251 = vst [vmem:[#allocation48_spill] sm:$0xff] %v8664_v58  ;;  %11252 = vst [vmem:[#allocation49_spill] sm:$0xff] %v8667_v10  ;;  %v8670_v12 = vld [vmem:[#allocation7 + $0x128] sm:$0xff]  ;;  %v8673_v16 = vld [vmem:[#allocation7 + $0x138] sm:$0xff] }
 0x516   :  { %2181 = vmatprep.subr.mxu0 %v8658_v28  ;;  %2252 = vmatprep.subr.mxu1 %v8661_v24  ;;  %11253 = vst [vmem:[#allocation50_spill] sm:$0xff] %v8670_v12  ;;  %11254 = vst [vmem:[#allocation51_spill] sm:$0xff] %v8673_v16  ;;  %v8676_v28 = vld [vmem:[#allocation7 + $0x120] sm:$0xff]  ;;  %v8679_v24 = vld [vmem:[#allocation7 + $0x130] sm:$0xff] }
 0x517   :  { %2182 = vmatpush1.msra.mxu0 %v8664_v58  ;;  %2253 = vmatpush1.msra.mxu1 %v8667_v10  ;;  %11255 = vst [vmem:[#allocation52_spill] sm:$0xff] %v8676_v28  ;;  %11256 = vst [vmem:[#allocation53_spill] sm:$0xff] %v8679_v24  ;;  %v8682_v58 = vld [vmem:[#allocation7 + $0x108] sm:$0xff]  ;;  %v8685_v10 = vld [vmem:[#allocation7 + $0x118] sm:$0xff] }
 0x518   :  { %2183 = vmatprep.subr.mxu0 %v8670_v12  ;;  %2254 = vmatprep.subr.mxu1 %v8673_v16  ;;  %11257 = vst [vmem:[#allocation54_spill] sm:$0xff] %v8682_v58  ;;  %11258 = vst [vmem:[#allocation55_spill] sm:$0xff] %v8685_v10  ;;  %v8688_v12 = vld [vmem:[#allocation7 + $0x100] sm:$0xff]  ;;  %v8691_v16 = vld [vmem:[#allocation7 + $0x110] sm:$0xff] }
 0x519   :  { %2184 = vmatpush1.msra.mxu0 %v8676_v28  ;;  %2255 = vmatpush1.msra.mxu1 %v8679_v24  ;;  %11259 = vst [vmem:[#allocation56_spill] sm:$0xff] %v8688_v12  ;;  %11260 = vst [vmem:[#allocation57_spill] sm:$0xff] %v8691_v16  ;;  %v8694_v28 = vld [vmem:[#allocation7 + $0xe8] sm:$0xff]  ;;  %v8697_v24 = vld [vmem:[#allocation7 + $0xf8] sm:$0xff] }
 0x51a   :  { %2185 = vmatprep.subr.mxu0 %v8682_v58  ;;  %2256 = vmatprep.subr.mxu1 %v8685_v10  ;;  %11261 = vst [vmem:[#allocation58_spill] sm:$0xff] %v8694_v28  ;;  %11262 = vst [vmem:[#allocation59_spill] sm:$0xff] %v8697_v24  ;;  %v8700_v58 = vld [vmem:[#allocation7 + $0xe0] sm:$0xff]  ;;  %v8703_v10 = vld [vmem:[#allocation7 + $0xf0] sm:$0xff] }
 0x51b   :  { %2186 = vmatpush1.msra.mxu0 %v8688_v12  ;;  %2257 = vmatpush1.msra.mxu1 %v8691_v16  ;;  %11263 = vst [vmem:[#allocation60_spill] sm:$0xff] %v8700_v58  ;;  %11264 = vst [vmem:[#allocation61_spill] sm:$0xff] %v8703_v10  ;;  %v8706_v12 = vld [vmem:[#allocation7 + $0xc8] sm:$0xff]  ;;  %v8709_v16 = vld [vmem:[#allocation7 + $0xd8] sm:$0xff] }
 0x51c   :  { %2187 = vmatprep.subr.mxu0 %v8694_v28  ;;  %2258 = vmatprep.subr.mxu1 %v8697_v24  ;;  %11265 = vst [vmem:[#allocation62_spill] sm:$0xff] %v8706_v12  ;;  %11266 = vst [vmem:[#allocation63_spill] sm:$0xff] %v8709_v16  ;;  %v8712_v28 = vld [vmem:[#allocation7 + $0xc0] sm:$0xff]  ;;  %v8715_v24 = vld [vmem:[#allocation7 + $0xd0] sm:$0xff] }
 0x51d   :  { %2188 = vmatpush1.msra.mxu0 %v8700_v58  ;;  %2259 = vmatpush1.msra.mxu1 %v8703_v10  ;;  %11267 = vst [vmem:[#allocation64_spill] sm:$0xff] %v8712_v28  ;;  %11268 = vst [vmem:[#allocation65_spill] sm:$0xff] %v8715_v24  ;;  %v8718_v58 = vld [vmem:[#allocation7 + $0xa8] sm:$0xff]  ;;  %v8721_v10 = vld [vmem:[#allocation7 + $0xb8] sm:$0xff] }
 0x51e   :  { %2189 = vmatprep.subr.mxu0 %v8706_v12  ;;  %2260 = vmatprep.subr.mxu1 %v8709_v16  ;;  %11269 = vst [vmem:[#allocation66_spill] sm:$0xff] %v8718_v58  ;;  %11270 = vst [vmem:[#allocation67_spill] sm:$0xff] %v8721_v10  ;;  %v8724_v12 = vld [vmem:[#allocation7 + $0xa0] sm:$0xff]  ;;  %v8727_v16 = vld [vmem:[#allocation7 + $0xb0] sm:$0xff] }
 0x51f   :  { %2190 = vmatpush1.msra.mxu0 %v8712_v28  ;;  %2261 = vmatpush1.msra.mxu1 %v8715_v24  ;;  %11271 = vst [vmem:[#allocation68_spill] sm:$0xff] %v8724_v12  ;;  %11272 = vst [vmem:[#allocation69_spill] sm:$0xff] %v8727_v16  ;;  %v8730_v28 = vld [vmem:[#allocation7 + $0x88] sm:$0xff]  ;;  %v8733_v24 = vld [vmem:[#allocation7 + $0x98] sm:$0xff] }
 0x520   :  { %2191 = vmatprep.subr.mxu0 %v8718_v58  ;;  %2262 = vmatprep.subr.mxu1 %v8721_v10  ;;  %11273 = vst [vmem:[#allocation70_spill] sm:$0xff] %v8730_v28  ;;  %11274 = vst [vmem:[#allocation71_spill] sm:$0xff] %v8733_v24  ;;  %v8736_v58 = vld [vmem:[#allocation7 + $0x80] sm:$0xff]  ;;  %v8739_v10 = vld [vmem:[#allocation7 + $0x90] sm:$0xff] }
 0x521   :  { %2192 = vmatpush1.msra.mxu0 %v8724_v12  ;;  %2263 = vmatpush1.msra.mxu1 %v8727_v16  ;;  %11275 = vst [vmem:[#allocation72_spill] sm:$0xff] %v8736_v58  ;;  %11276 = vst [vmem:[#allocation73_spill] sm:$0xff] %v8739_v10  ;;  %v8742_v12 = vld [vmem:[#allocation7 + $0x68] sm:$0xff]  ;;  %v8745_v16 = vld [vmem:[#allocation7 + $0x78] sm:$0xff] }
 0x522   :  { %2193 = vmatprep.subr.mxu0 %v8730_v28  ;;  %2264 = vmatprep.subr.mxu1 %v8733_v24  ;;  %11277 = vst [vmem:[#allocation74_spill] sm:$0xff] %v8742_v12  ;;  %11278 = vst [vmem:[#allocation75_spill] sm:$0xff] %v8745_v16  ;;  %v8748_v28 = vld [vmem:[#allocation7 + $0x60] sm:$0xff]  ;;  %v8751_v24 = vld [vmem:[#allocation7 + $0x70] sm:$0xff] }
 0x523   :  { %2194 = vmatpush1.msra.mxu0 %v8736_v58  ;;  %2265 = vmatpush1.msra.mxu1 %v8739_v10  ;;  %11279 = vst [vmem:[#allocation76_spill] sm:$0xff] %v8748_v28  ;;  %11280 = vst [vmem:[#allocation77_spill] sm:$0xff] %v8751_v24  ;;  %v8754_v58 = vld [vmem:[#allocation7 + $0x48] sm:$0xff]  ;;  %v8757_v10 = vld [vmem:[#allocation7 + $0x58] sm:$0xff] }
 0x524   :  { %2195 = vmatprep.subr.mxu0 %v8742_v12  ;;  %2266 = vmatprep.subr.mxu1 %v8745_v16  ;;  %11281 = vst [vmem:[#allocation78_spill] sm:$0xff] %v8754_v58  ;;  %11282 = vst [vmem:[#allocation79_spill] sm:$0xff] %v8757_v10  ;;  %v8760_v12 = vld [vmem:[#allocation7 + $0x40] sm:$0xff]  ;;  %v8763_v16 = vld [vmem:[#allocation7 + $0x50] sm:$0xff] }
 0x525   :  { %2196 = vmatpush1.msra.mxu0 %v8748_v28  ;;  %2267 = vmatpush1.msra.mxu1 %v8751_v24  ;;  %11283 = vst [vmem:[#allocation80_spill] sm:$0xff] %v8760_v12  ;;  %11284 = vst [vmem:[#allocation81_spill] sm:$0xff] %v8763_v16  ;;  %v8766_v28 = vld [vmem:[#allocation7 + $0x28] sm:$0xff]  ;;  %v8769_v24 = vld [vmem:[#allocation7 + $0x38] sm:$0xff] }
 0x526   :  { %2197 = vmatprep.subr.mxu0 %v8754_v58  ;;  %2268 = vmatprep.subr.mxu1 %v8757_v10  ;;  %11285 = vst [vmem:[#allocation82_spill] sm:$0xff] %v8766_v28  ;;  %11286 = vst [vmem:[#allocation83_spill] sm:$0xff] %v8769_v24  ;;  %v8772_v58 = vld [vmem:[#allocation7 + $0x20] sm:$0xff]  ;;  %v8775_v10 = vld [vmem:[#allocation7 + $0x30] sm:$0xff] }
 0x527   :  { %2198 = vmatpush1.msra.mxu0 %v8760_v12  ;;  %2269 = vmatpush1.msra.mxu1 %v8763_v16  ;;  %11287 = vst [vmem:[#allocation84_spill] sm:$0xff] %v8772_v58  ;;  %11288 = vst [vmem:[#allocation85_spill] sm:$0xff] %v8775_v10  ;;  %v8778_v12 = vld [vmem:[#allocation7 + $0x8] sm:$0xff]  ;;  %v8781_v16 = vld [vmem:[#allocation7 + $0x18] sm:$0xff] }
 0x528   :  { %2199 = vmatprep.subr.mxu0 %v8766_v28  ;;  %2270 = vmatprep.subr.mxu1 %v8769_v24  ;;  %11289 = vst [vmem:[#allocation86_spill] sm:$0xff] %v8778_v12  ;;  %11290 = vst [vmem:[#allocation87_spill] sm:$0xff] %v8781_v16  ;;  %v8784_v28 = vld [vmem:[#allocation7] sm:$0xff]  ;;  %v8787_v24 = vld [vmem:[#allocation7 + $0x10] sm:$0xff] }
 0x529   :  { %2200 = vmatpush1.msra.mxu0 %v8772_v58  ;;  %2271 = vmatpush1.msra.mxu1 %v8775_v10  ;;  %11291 = vst [vmem:[#allocation88_spill] sm:$0xff] %v8784_v28  ;;  %11292 = vst [vmem:[#allocation89_spill] sm:$0xff] %v8787_v24  ;;  %v8790_v58 = vld [vmem:[#allocation7 + $0x3e8] sm:$0xff]  ;;  %v8793_v10 = vld [vmem:[#allocation7 + $0x3f8] sm:$0xff] }
 0x52a   :  { %2201 = vmatprep.subr.mxu0 %v8778_v12  ;;  %2272 = vmatprep.subr.mxu1 %v8781_v16  ;;  %11293 = vst [vmem:[#allocation90_spill] sm:$0xff] %v8790_v58  ;;  %11294 = vst [vmem:[#allocation91_spill] sm:$0xff] %v8793_v10  ;;  %v8796_v12 = vld [vmem:[#allocation7 + $0x3e0] sm:$0xff]  ;;  %v8799_v16 = vld [vmem:[#allocation7 + $0x3f0] sm:$0xff] }
 0x52b   :  { %2202 = vmatpush1.msra.mxu0 %v8784_v28  ;;  %2273 = vmatpush1.msra.mxu1 %v8787_v24  ;;  %11295 = vst [vmem:[#allocation92_spill] sm:$0xff] %v8796_v12  ;;  %11296 = vst [vmem:[#allocation93_spill] sm:$0xff] %v8799_v16  ;;  %v8802_v28 = vld [vmem:[#allocation7 + $0x3c8] sm:$0xff]  ;;  %v8805_v24 = vld [vmem:[#allocation7 + $0x3d8] sm:$0xff] }
 0x52c   :  { %2203 = vmatprep.subr.mxu0 %v8790_v58  ;;  %2274 = vmatprep.subr.mxu1 %v8793_v10  ;;  %11297 = vst [vmem:[#allocation94_spill] sm:$0xff] %v8802_v28  ;;  %11298 = vst [vmem:[#allocation95_spill] sm:$0xff] %v8805_v24  ;;  %v8808_v58 = vld [vmem:[#allocation7 + $0x3c0] sm:$0xff]  ;;  %v8811_v10 = vld [vmem:[#allocation7 + $0x3d0] sm:$0xff] }
 0x52d   :  { %2204 = vmatpush2.msra.mxu0 %v8796_v12  ;;  %2275 = vmatpush2.msra.mxu1 %v8799_v16  ;;  %11299 = vst [vmem:[#allocation96_spill] sm:$0xff] %v8808_v58  ;;  %11300 = vst [vmem:[#allocation97_spill] sm:$0xff] %v8811_v10  ;;  %v8814_v12 = vld [vmem:[#allocation7 + $0x3a8] sm:$0xff]  ;;  %v8817_v16 = vld [vmem:[#allocation7 + $0x3b8] sm:$0xff] }
 0x52e   :  { %2205 = vmatprep.subr.mxu0 %v8802_v28  ;;  %2276 = vmatprep.subr.mxu1 %v8805_v24  ;;  %11301 = vst [vmem:[#allocation98_spill] sm:$0xff] %v8814_v12  ;;  %11302 = vst [vmem:[#allocation99_spill] sm:$0xff] %v8817_v16  ;;  %v8820_v28 = vld [vmem:[#allocation7 + $0x3a0] sm:$0xff]  ;;  %v8823_v24 = vld [vmem:[#allocation7 + $0x3b0] sm:$0xff] }
 0x52f   :  { %2206 = vmatpush2.msra.mxu0 %v8808_v58  ;;  %2277 = vmatpush2.msra.mxu1 %v8811_v10  ;;  %11303 = vst [vmem:[#allocation100_spill] sm:$0xff] %v8820_v28  ;;  %11304 = vst [vmem:[#allocation101_spill] sm:$0xff] %v8823_v24  ;;  %v8826_v58 = vld [vmem:[#allocation7 + $0x388] sm:$0xff]  ;;  %v8829_v10 = vld [vmem:[#allocation7 + $0x398] sm:$0xff] }
 0x530   :  { %2207 = vmatprep.subr.mxu0 %v8814_v12  ;;  %2278 = vmatprep.subr.mxu1 %v8817_v16  ;;  %11305 = vst [vmem:[#allocation102_spill] sm:$0xff] %v8826_v58  ;;  %11306 = vst [vmem:[#allocation103_spill] sm:$0xff] %v8829_v10  ;;  %v8832_v12 = vld [vmem:[#allocation7 + $0x380] sm:$0xff]  ;;  %v8835_v16 = vld [vmem:[#allocation7 + $0x390] sm:$0xff] }
 0x531   :  { %2208 = vmatpush2.msra.mxu0 %v8820_v28  ;;  %2279 = vmatpush2.msra.mxu1 %v8823_v24  ;;  %11307 = vst [vmem:[#allocation104_spill] sm:$0xff] %v8832_v12  ;;  %11308 = vst [vmem:[#allocation105_spill] sm:$0xff] %v8835_v16  ;;  %v8838_v28 = vld [vmem:[#allocation7 + $0x368] sm:$0xff]  ;;  %v8841_v24 = vld [vmem:[#allocation7 + $0x378] sm:$0xff] }
 0x532   :  { %2209 = vmatprep.subr.mxu0 %v8826_v58  ;;  %2280 = vmatprep.subr.mxu1 %v8829_v10  ;;  %11309 = vst [vmem:[#allocation106_spill] sm:$0xff] %v8838_v28  ;;  %11310 = vst [vmem:[#allocation107_spill] sm:$0xff] %v8841_v24  ;;  %v8844_v58 = vld [vmem:[#allocation7 + $0x360] sm:$0xff]  ;;  %v8847_v10 = vld [vmem:[#allocation7 + $0x370] sm:$0xff] }
 0x533   :  { %2210 = vmatpush2.msra.mxu0 %v8832_v12  ;;  %2281 = vmatpush2.msra.mxu1 %v8835_v16  ;;  %11311 = vst [vmem:[#allocation108_spill] sm:$0xff] %v8844_v58  ;;  %11312 = vst [vmem:[#allocation109_spill] sm:$0xff] %v8847_v10  ;;  %v8850_v12 = vld [vmem:[#allocation7 + $0x348] sm:$0xff]  ;;  %v8853_v16 = vld [vmem:[#allocation7 + $0x358] sm:$0xff] }
 0x534   :  { %2211 = vmatprep.subr.mxu0 %v8838_v28  ;;  %2282 = vmatprep.subr.mxu1 %v8841_v24  ;;  %11313 = vst [vmem:[#allocation110_spill] sm:$0xff] %v8850_v12  ;;  %11314 = vst [vmem:[#allocation111_spill] sm:$0xff] %v8853_v16  ;;  %v8856_v28 = vld [vmem:[#allocation7 + $0x340] sm:$0xff]  ;;  %v8859_v24 = vld [vmem:[#allocation7 + $0x350] sm:$0xff] }
 0x535   :  { %2212 = vmatpush2.msra.mxu0 %v8844_v58  ;;  %2283 = vmatpush2.msra.mxu1 %v8847_v10  ;;  %11315 = vst [vmem:[#allocation112_spill] sm:$0xff] %v8856_v28  ;;  %11316 = vst [vmem:[#allocation113_spill] sm:$0xff] %v8859_v24  ;;  %v8862_v58 = vld [vmem:[#allocation7 + $0x328] sm:$0xff]  ;;  %v8865_v10 = vld [vmem:[#allocation7 + $0x338] sm:$0xff] }
 0x536   :  { %2213 = vmatprep.subr.mxu0 %v8850_v12  ;;  %2284 = vmatprep.subr.mxu1 %v8853_v16  ;;  %11317 = vst [vmem:[#allocation114_spill] sm:$0xff] %v8862_v58  ;;  %11318 = vst [vmem:[#allocation115_spill] sm:$0xff] %v8865_v10  ;;  %v8868_v12 = vld [vmem:[#allocation7 + $0x320] sm:$0xff]  ;;  %v8871_v16 = vld [vmem:[#allocation7 + $0x330] sm:$0xff] }
 0x537   :  { %2214 = vmatpush2.msra.mxu0 %v8856_v28  ;;  %2285 = vmatpush2.msra.mxu1 %v8859_v24  ;;  %11319 = vst [vmem:[#allocation116_spill] sm:$0xff] %v8868_v12  ;;  %11320 = vst [vmem:[#allocation117_spill] sm:$0xff] %v8871_v16  ;;  %v8874_v28 = vld [vmem:[#allocation7 + $0x308] sm:$0xff]  ;;  %v8877_v24 = vld [vmem:[#allocation7 + $0x318] sm:$0xff] }
 0x538   :  { %2215 = vmatprep.subr.mxu0 %v8862_v58  ;;  %2286 = vmatprep.subr.mxu1 %v8865_v10  ;;  %11321 = vst [vmem:[#allocation118_spill] sm:$0xff] %v8874_v28  ;;  %11322 = vst [vmem:[#allocation119_spill] sm:$0xff] %v8877_v24  ;;  %v8880_v58 = vld [vmem:[#allocation7 + $0x300] sm:$0xff]  ;;  %v8883_v10 = vld [vmem:[#allocation7 + $0x310] sm:$0xff] }
 0x539   :  { %2216 = vmatpush2.msra.mxu0 %v8868_v12  ;;  %2287 = vmatpush2.msra.mxu1 %v8871_v16  ;;  %11323 = vst [vmem:[#allocation120_spill] sm:$0xff] %v8880_v58  ;;  %11324 = vst [vmem:[#allocation121_spill] sm:$0xff] %v8883_v10  ;;  %v8886_v12 = vld [vmem:[#allocation7 + $0x2e8] sm:$0xff]  ;;  %v8889_v16 = vld [vmem:[#allocation7 + $0x2f8] sm:$0xff] }
 0x53a   :  { %2217 = vmatprep.subr.mxu0 %v8874_v28  ;;  %2288 = vmatprep.subr.mxu1 %v8877_v24  ;;  %11325 = vst [vmem:[#allocation122_spill] sm:$0xff] %v8886_v12  ;;  %11326 = vst [vmem:[#allocation123_spill] sm:$0xff] %v8889_v16  ;;  %v8892_v28 = vld [vmem:[#allocation7 + $0x2e0] sm:$0xff]  ;;  %v8895_v24 = vld [vmem:[#allocation7 + $0x2f0] sm:$0xff] }
 0x53b   :  { %2218 = vmatpush2.msra.mxu0 %v8880_v58  ;;  %2289 = vmatpush2.msra.mxu1 %v8883_v10  ;;  %11327 = vst [vmem:[#allocation124_spill] sm:$0xff] %v8892_v28  ;;  %11328 = vst [vmem:[#allocation125_spill] sm:$0xff] %v8895_v24  ;;  %v8898_v58 = vld [vmem:[#allocation7 + $0x2c8] sm:$0xff]  ;;  %v8901_v10 = vld [vmem:[#allocation7 + $0x2d8] sm:$0xff] }
 0x53c   :  { %2219 = vmatprep.subr.mxu0 %v8886_v12  ;;  %2290 = vmatprep.subr.mxu1 %v8889_v16  ;;  %11329 = vst [vmem:[#allocation126_spill] sm:$0xff] %v8898_v58  ;;  %11330 = vst [vmem:[#allocation127_spill] sm:$0xff] %v8901_v10  ;;  %v8904_v12 = vld [vmem:[#allocation7 + $0x2c0] sm:$0xff]  ;;  %v8907_v16 = vld [vmem:[#allocation7 + $0x2d0] sm:$0xff] }
 0x53d   :  { %2220 = vmatpush2.msra.mxu0 %v8892_v28  ;;  %2291 = vmatpush2.msra.mxu1 %v8895_v24  ;;  %11331 = vst [vmem:[#allocation128_spill] sm:$0xff] %v8904_v12  ;;  %11332 = vst [vmem:[#allocation129_spill] sm:$0xff] %v8907_v16  ;;  %v8910_v28 = vld [vmem:[#allocation7 + $0x2a8] sm:$0xff]  ;;  %v8913_v24 = vld [vmem:[#allocation7 + $0x2b8] sm:$0xff] }
 0x53e   :  { %2221 = vmatprep.subr.mxu0 %v8898_v58  ;;  %2292 = vmatprep.subr.mxu1 %v8901_v10  ;;  %11333 = vst [vmem:[#allocation130_spill] sm:$0xff] %v8910_v28  ;;  %11334 = vst [vmem:[#allocation131_spill] sm:$0xff] %v8913_v24  ;;  %v8916_v58 = vld [vmem:[#allocation7 + $0x2a0] sm:$0xff]  ;;  %v8919_v10 = vld [vmem:[#allocation7 + $0x2b0] sm:$0xff] }
 0x53f   :  { %2222 = vmatpush2.msra.mxu0 %v8904_v12  ;;  %2293 = vmatpush2.msra.mxu1 %v8907_v16  ;;  %11335 = vst [vmem:[#allocation132_spill] sm:$0xff] %v8916_v58  ;;  %11336 = vst [vmem:[#allocation133_spill] sm:$0xff] %v8919_v10  ;;  %v8922_v12 = vld [vmem:[#allocation7 + $0x288] sm:$0xff]  ;;  %v8925_v16 = vld [vmem:[#allocation7 + $0x298] sm:$0xff] }
 0x540   :  { %2223 = vmatprep.subr.mxu0 %v8910_v28  ;;  %2294 = vmatprep.subr.mxu1 %v8913_v24  ;;  %11337 = vst [vmem:[#allocation134_spill] sm:$0xff] %v8922_v12  ;;  %11338 = vst [vmem:[#allocation135_spill] sm:$0xff] %v8925_v16  ;;  %v8928_v28 = vld [vmem:[#allocation7 + $0x280] sm:$0xff]  ;;  %v8931_v24 = vld [vmem:[#allocation7 + $0x290] sm:$0xff] }
 0x541   :  { %2224 = vmatpush2.msra.mxu0 %v8916_v58  ;;  %2295 = vmatpush2.msra.mxu1 %v8919_v10  ;;  %11339 = vst [vmem:[#allocation136_spill] sm:$0xff] %v8928_v28  ;;  %11340 = vst [vmem:[#allocation137_spill] sm:$0xff] %v8931_v24  ;;  %v8934_v58 = vld [vmem:[#allocation7 + $0x268] sm:$0xff]  ;;  %v8937_v10 = vld [vmem:[#allocation7 + $0x278] sm:$0xff] }
 0x542   :  { %2225 = vmatprep.subr.mxu0 %v8922_v12  ;;  %2296 = vmatprep.subr.mxu1 %v8925_v16  ;;  %11341 = vst [vmem:[#allocation138_spill] sm:$0xff] %v8934_v58  ;;  %11342 = vst [vmem:[#allocation139_spill] sm:$0xff] %v8937_v10  ;;  %v8940_v12 = vld [vmem:[#allocation7 + $0x260] sm:$0xff]  ;;  %v8943_v16 = vld [vmem:[#allocation7 + $0x270] sm:$0xff] }
 0x543   :  { %2226 = vmatpush2.msra.mxu0 %v8928_v28  ;;  %2297 = vmatpush2.msra.mxu1 %v8931_v24  ;;  %11343 = vst [vmem:[#allocation140_spill] sm:$0xff] %v8940_v12  ;;  %11344 = vst [vmem:[#allocation141_spill] sm:$0xff] %v8943_v16  ;;  %v8946_v28 = vld [vmem:[#allocation7 + $0x248] sm:$0xff]  ;;  %v8949_v24 = vld [vmem:[#allocation7 + $0x258] sm:$0xff] }
 0x544   :  { %2227 = vmatprep.subr.mxu0 %v8934_v58  ;;  %2298 = vmatprep.subr.mxu1 %v8937_v10  ;;  %11345 = vst [vmem:[#allocation142_spill] sm:$0xff] %v8946_v28  ;;  %11346 = vst [vmem:[#allocation143_spill] sm:$0xff] %v8949_v24  ;;  %v8952_v58 = vld [vmem:[#allocation7 + $0x240] sm:$0xff]  ;;  %v8955_v10 = vld [vmem:[#allocation7 + $0x250] sm:$0xff] }
 0x545   :  { %2228 = vmatpush2.msra.mxu0 %v8940_v12  ;;  %2299 = vmatpush2.msra.mxu1 %v8943_v16  ;;  %11347 = vst [vmem:[#allocation144_spill] sm:$0xff] %v8952_v58  ;;  %11348 = vst [vmem:[#allocation145_spill] sm:$0xff] %v8955_v10  ;;  %v8958_v12 = vld [vmem:[#allocation7 + $0x228] sm:$0xff]  ;;  %v8961_v16 = vld [vmem:[#allocation7 + $0x238] sm:$0xff] }
 0x546   :  { %2229 = vmatprep.subr.mxu0 %v8946_v28  ;;  %2300 = vmatprep.subr.mxu1 %v8949_v24  ;;  %11349 = vst [vmem:[#allocation146_spill] sm:$0xff] %v8958_v12  ;;  %11350 = vst [vmem:[#allocation147_spill] sm:$0xff] %v8961_v16  ;;  %v8964_v28 = vld [vmem:[#allocation7 + $0x220] sm:$0xff]  ;;  %v8967_v24 = vld [vmem:[#allocation7 + $0x230] sm:$0xff] }
 0x547   :  { %2230 = vmatpush2.msra.mxu0 %v8952_v58  ;;  %2301 = vmatpush2.msra.mxu1 %v8955_v10  ;;  %11351 = vst [vmem:[#allocation148_spill] sm:$0xff] %v8964_v28  ;;  %11352 = vst [vmem:[#allocation149_spill] sm:$0xff] %v8967_v24  ;;  %v8970_v58 = vld [vmem:[#allocation7 + $0x208] sm:$0xff]  ;;  %v8973_v10 = vld [vmem:[#allocation7 + $0x218] sm:$0xff] }
 0x548   :  { %2231 = vmatprep.subr.mxu0 %v8958_v12  ;;  %2302 = vmatprep.subr.mxu1 %v8961_v16  ;;  %11353 = vst [vmem:[#allocation150_spill] sm:$0xff] %v8970_v58  ;;  %11354 = vst [vmem:[#allocation156_spill] sm:$0xff] %v8973_v10  ;;  %v8976_v12 = vld [vmem:[#allocation7 + $0x200] sm:$0xff]  ;;  %v8979_v16 = vld [vmem:[#allocation7 + $0x210] sm:$0xff] }
 0x549   :  { %2232 = vmatpush2.msra.mxu0 %v8964_v28  ;;  %2303 = vmatpush2.msra.mxu1 %v8967_v24  ;;  %11355 = vst [vmem:[#allocation158_spill] sm:$0xff] %v8976_v12  ;;  %11356 = vst [vmem:[#allocation159_spill] sm:$0xff] %v8979_v16 }
 0x54a   :  { %2233 = vmatprep.subr.mxu0 %v8970_v58  ;;  %2304 = vmatprep.subr.mxu1 %v8973_v10 }
 0x54b   :  { %2234 = vmatpush2.msra.mxu0 %v8976_v12  ;;  %2305 = vmatpush2.msra.mxu1 %v8979_v16 }
 0x54c   :  { %2337 = vmatprep.subr.mxu0 %v8414_v41  ;;  %2408 = vmatprep.subr.mxu1 %v8417_v25 }
 0x5aa   :  { %v1901_v24 = vpop.f32.mrf.mxu0  ;;  %v1972_v10 = vpop.f32.mrf.mxu1 }
 0x5ab   :  { %v1902_v28 = vadd.f32 %v1901_v24, %v11218_v7  ;;  %v1973_v41 = vadd.f32 %v1972_v10, %v11221_v3 }
 0x5ac   :  { %v1903_v58 = vpop.f32.mrf.mxu0  ;;  %v1974_v12 = vpop.f32.mrf.mxu1 }
 0x5ad   :  { %v5361_v9 = vmul.f32 -1.442695, %v1902_v28  ;;  %v1904_v8 = vadd.f32 %v1903_v58, %v11219_v0  ;;  %v1975_v2 = vadd.f32 %v1974_v12, %v11220_v20  ;;  %v11358_v20 = vld [vmem:[#allocation170_spill] sm:$0xff] }
 0x5af   :  { %5624 = vpow2.f32 %v5361_v9  ;;  %v5362_v4 = vmul.f32 -1.442695, %v1904_v8  ;;  %v5363_v1 = vmul.f32 -1.442695, %v1975_v2  ;;  %v11357_v9 = vld [vmem:[#allocation168_spill] sm:$0xff] }
 0x5b1   :  { %5626 = vpow2.f32 %v5362_v4 }
 0x5b2   :  { %5628 = vpow2.f32 %v5363_v1 }
 0x5bc   :  { %v5625_v16 = vpop.eup %5624 }
 0x5bd   :  { %v1980_v26 = vadd.f32 1.0, %v5625_v16 }
 0x5be   :  { %v5627_v25 = vpop.eup %5626 }
 0x5bf   :  { %5630 = vrcp.f32 %v1980_v26  ;;  %v1986_v24 = vadd.f32 1.0, %v5627_v25  ;;  %v5629_v28 = vpop.eup %5628 }
 0x5c0   :  { %5632 = vtanh.f32 %v1973_v41  ;;  %v1993_v7 = vadd.f32 1.0, %v5629_v28 }
 0x5c1   :  { %5634 = vrcp.f32 %v1986_v24  ;;  %v11359_v24 = vld [vmem:[#allocation171_spill] sm:$0xff] }
 0x5cb   :  { %v2067_v58 = vpop.f32.mrf.mxu0  ;;  %v2138_v26 = vpop.f32.mrf.mxu1 }
 0x5cc   :  { %v5631_v0 = vpop.eup %5630  ;;  %v2143_v8 = vadd.f32 %v2067_v58, %v11357_v9  ;;  %v11360_v58 = vld [vmem:[#allocation169_spill] sm:$0xff] }
 0x5cd   :  { %v5633_v4 = vpop.eup %5632  ;;  %v2069_v5 = vpop.f32.mrf.mxu0  ;;  %v2145_v9 = vadd.f32 %v2138_v26, %v11360_v58  ;;  %v9008_v58 = vld [vmem:[#allocation4 + $0x1e0] sm:$0xff] }
 0x5ce   :  { %v5635_v12 = vpop.eup %5634  ;;  %v5364_v2 = vmul.f32 -1.442695, %v2143_v8  ;;  %v2144_v17 = vadd.f32 %v2069_v5, %v11358_v20  ;;  %v1997_v10 = vmul.f32 %v5633_v4, %v5631_v0  ;;  %v2140_v25 = vpop.f32.mrf.mxu1 }
 0x5cf   :  { %v1996_v1 = vmul.f32 %v5635_v12, %v8427_v30  ;;  %v2146_v28 = vadd.f32 %v2140_v25, %v11359_v24 }
 0x5d0   :  { %5636 = vpow2.f32 %v5364_v2  ;;  %v5365_v16 = vmul.f32 -1.442695, %v2144_v17 }
 0x5d1   :  { %v8991_v41 = vadd.f32 %v1997_v10, %v1996_v1  ;;  %5638 = vrcp.f32 %v1993_v7  ;;  %v5366_v8 = vmul.f32 -1.442695, %v2146_v28 }
 0x5d2   :  { %5640 = vpow2.f32 %v5365_v16 }
 0x5d3   :  { %5642 = vtanh.f32 %v8991_v41 }
 0x5d4   :  { %5644 = vtanh.f32 %v2145_v9  ;;  %v9011_v9 = vld [vmem:[#allocation4 + $0x1f0] sm:$0xff] }
 0x5d5   :  { %5646 = vpow2.f32 %v5366_v8  ;;  %v9017_v8 = vld [vmem:[#allocation4 + $0x1d8] sm:$0xff] }
 0x5dd   :  { %v5637_v3 = vpop.eup %5636 }
 0x5de   :  { %v5639_v5 = vpop.eup %5638  ;;  %v2150_v0 = vadd.f32 1.0, %v5637_v3 }
 0x5df   :  { %v5641_v20 = vpop.eup %5640 }
 0x5e0   :  { %v5643_v30 = vpop.eup %5642  ;;  %5648 = vrcp.f32 %v2150_v0  ;;  %v2156_v17 = vadd.f32 1.0, %v5641_v20  ;;  %v9023_v0 = vld [vmem:[#allocation4 + $0x1d0] sm:$0xff]  ;;  %v9026_v20 = vld [vmem:[#allocation4 + $0x1a8] sm:$0xff] }
 0x5e1   :  { %v8996_v4 = vmul.f32 %v5643_v30, %v5639_v5  ;;  %v5645_v7 = vpop.eup %5644  ;;  %v9020_v5 = vld [vmem:[#allocation4 + $0x1c0] sm:$0xff]  ;;  %v9029_v30 = vld [vmem:[#allocation4 + $0x1b8] sm:$0xff] }
 0x5e2   :  { %5650 = vrcp.f32 %v2156_v17  ;;  %v5647_v12 = vpop.eup %5646  ;;  %v9032_v17 = vld [vmem:[#allocation4 + $0x1a0] sm:$0xff] }
 0x5e3   :  { %11361 = vst [vmem:[#allocation157_spill] sm:$0xff] %v8996_v4  ;;  %2235 = vmatprep.mubr.f32.mxu0 %v8996_v4  ;;  %2306 = vmatprep.mubr.f32.mxu1 %v8996_v4  ;;  %v2163_v26 = vadd.f32 1.0, %v5647_v12  ;;  %v9038_v12 = vld [vmem:[#allocation4 + $0x188] sm:$0xff] }
 0x5e4   :  { %v9452_v4 = vld [vmem:[#allocation7 + $0x1a0] sm:$0xff] }
 0x5e5   :  { %5652 = vrcp.f32 %v2163_v26  ;;  %v9050_v26 = vld [vmem:[#allocation4 + $0x168] sm:$0xff] }
 0x5ed   :  { %v5649_v2 = vpop.eup %5648 }
 0x5ee   :  { %v2167_v10 = vmul.f32 %v5649_v2, %v5645_v7  ;;  %v9035_v7 = vld [vmem:[#allocation4 + $0x1b0] sm:$0xff]  ;;  %v9041_v2 = vld [vmem:[#allocation4 + $0x198] sm:$0xff] }
 0x5ef   :  { %v5651_v1 = vpop.eup %5650 }
 0x5f0   :  { %v2166_v3 = vmul.f32 %v5651_v1, %v8437_v11  ;;  %v9014_v11 = vld [vmem:[#allocation4 + $0x1c8] sm:$0xff]  ;;  %v9047_v1 = vld [vmem:[#allocation4 + $0x190] sm:$0xff] }
 0x5f2   :  { %v9001_v16 = vadd.f32 %v2167_v10, %v2166_v3  ;;  %v5653_v25 = vpop.eup %5652  ;;  %v9044_v10 = vld [vmem:[#allocation4 + $0x180] sm:$0xff]  ;;  %v9053_v3 = vld [vmem:[#allocation4 + $0x178] sm:$0xff] }
 0x5f4   :  { %5654 = vtanh.f32 %v9001_v16 }
 0x601   :  { %v5655_v24 = vpop.eup %5654 }
 0x602   :  { %v9004_v28 = vmul.f32 %v5655_v24, %v5653_v25  ;;  %v9056_v25 = vld [vmem:[#allocation4 + $0x160] sm:$0xff]  ;;  %v9059_v24 = vld [vmem:[#allocation4 + $0x170] sm:$0xff] }
 0x604   :  { %2236 = vmatmul.mubr.f32.vlgmr.msra.gmra.mxu0 %v9004_v28  ;;  %2307 = vmatmul.mubr.f32.vlgmr.msra.gmra.mxu1 %v9004_v28 }
 0x605   :  { %2338 = vmatpush1.msra.mxu0 %v9008_v58  ;;  %2409 = vmatpush1.msra.mxu1 %v9011_v9 }
 0x606   :  { %2339 = vmatprep.subr.mxu0 %v9014_v11  ;;  %2410 = vmatprep.subr.mxu1 %v9017_v8 }
 0x607   :  { %2340 = vmatpush1.msra.mxu0 %v9020_v5  ;;  %2411 = vmatpush1.msra.mxu1 %v9023_v0 }
 0x608   :  { %2341 = vmatprep.subr.mxu0 %v9026_v20  ;;  %2412 = vmatprep.subr.mxu1 %v9029_v30 }
 0x609   :  { %2342 = vmatpush1.msra.mxu0 %v9032_v17  ;;  %2413 = vmatpush1.msra.mxu1 %v9035_v7 }
 0x60a   :  { %2343 = vmatprep.subr.mxu0 %v9038_v12  ;;  %2414 = vmatprep.subr.mxu1 %v9041_v2 }
 0x60b   :  { %2344 = vmatpush1.msra.mxu0 %v9044_v10  ;;  %2415 = vmatpush1.msra.mxu1 %v9047_v1 }
 0x60c   :  { %2345 = vmatprep.subr.mxu0 %v9050_v26  ;;  %2416 = vmatprep.subr.mxu1 %v9053_v3 }
 0x60d   :  { %2346 = vmatpush1.msra.mxu0 %v9056_v25  ;;  %2417 = vmatpush1.msra.mxu1 %v9059_v24 }
 0x60e   :  { %2347 = vmatprep.subr.mxu0 %v8462_v56  ;;  %2418 = vmatprep.subr.mxu1 %v8465_v51  ;;  %v11362_v56 = vld [vmem:[#allocation163_spill] sm:$0xff]  ;;  %v11363_v51 = vmov 0.0  }
 0x60f   :  { %2348 = vmatpush1.msra.mxu0 %v8468_v62  ;;  %2419 = vmatpush1.msra.mxu1 %v8471_v60  ;;  %v11364_v62 = vld [vmem:[#allocation161_spill] sm:$0xff]  ;;  %v11365_v60 = vld [vmem:[#allocation26_spill] sm:$0xff] }
 0x610   :  { %2349 = vmatprep.subr.mxu0 %v8474_v61  ;;  %2420 = vmatprep.subr.mxu1 %v8477_v29  ;;  %v11366_v61 = vld [vmem:[#allocation27_spill] sm:$0xff]  ;;  %v11367_v29 = vld [vmem:[#allocation28_spill] sm:$0xff] }
 0x611   :  { %2350 = vmatpush1.msra.mxu0 %v8480_v34  ;;  %2421 = vmatpush1.msra.mxu1 %v8483_v44  ;;  %v11368_v34 = vld [vmem:[#allocation29_spill] sm:$0xff]  ;;  %v11369_v44 = vld [vmem:[#allocation30_spill] sm:$0xff]  ;;  %11514 = vst [vmem:[#allocation28_spill] sm:$0xff] %v9452_v4 }
 0x612   :  { %2351 = vmatprep.subr.mxu0 %v8486_v13  ;;  %2422 = vmatprep.subr.mxu1 %v8489_v54  ;;  %v11370_v13 = vld [vmem:[#allocation31_spill] sm:$0xff]  ;;  %v11371_v54 = vld [vmem:[#allocation32_spill] sm:$0xff] }
 0x613   :  { %2352 = vmatpush1.msra.mxu0 %v8492_v31  ;;  %2423 = vmatpush1.msra.mxu1 %v8495_v47  ;;  %v11372_v31 = vld [vmem:[#allocation33_spill] sm:$0xff]  ;;  %v11373_v47 = vld [vmem:[#allocation34_spill] sm:$0xff] }
 0x614   :  { %2353 = vmatprep.subr.mxu0 %v8498_v57  ;;  %2424 = vmatprep.subr.mxu1 %v8501_v63  ;;  %v11374_v57 = vld [vmem:[#allocation35_spill] sm:$0xff]  ;;  %v11375_v63 = vld [vmem:[#allocation36_spill] sm:$0xff] }
 0x615   :  { %2354 = vmatpush1.msra.mxu0 %v8504_v43  ;;  %2425 = vmatpush1.msra.mxu1 %v8507_v55  ;;  %v11376_v43 = vld [vmem:[#allocation37_spill] sm:$0xff]  ;;  %v11377_v55 = vld [vmem:[#allocation38_spill] sm:$0xff] }
 0x616   :  { %2355 = vmatprep.subr.mxu0 %v8510_v48  ;;  %2426 = vmatprep.subr.mxu1 %v8513_v59  ;;  %v11378_v48 = vld [vmem:[#allocation39_spill] sm:$0xff]  ;;  %v11379_v59 = vld [vmem:[#allocation40_spill] sm:$0xff] }
 0x617   :  { %2356 = vmatpush1.msra.mxu0 %v8516_v33  ;;  %2427 = vmatpush1.msra.mxu1 %v8519_v35  ;;  %v11380_v33 = vld [vmem:[#allocation41_spill] sm:$0xff]  ;;  %v11381_v35 = vld [vmem:[#allocation42_spill] sm:$0xff] }
 0x618   :  { %2357 = vmatprep.subr.mxu0 %v8522_v36  ;;  %2428 = vmatprep.subr.mxu1 %v8525_v37  ;;  %v11382_v36 = vld [vmem:[#allocation43_spill] sm:$0xff]  ;;  %v11383_v37 = vld [vmem:[#allocation44_spill] sm:$0xff] }
 0x619   :  { %2358 = vmatpush1.msra.mxu0 %v8528_v38  ;;  %2429 = vmatpush1.msra.mxu1 %v8531_v39  ;;  %v11384_v38 = vld [vmem:[#allocation45_spill] sm:$0xff]  ;;  %v11385_v39 = vld [vmem:[#allocation46_spill] sm:$0xff] }
 0x61a   :  { %2359 = vmatprep.subr.mxu0 %v8534_v40  ;;  %2430 = vmatprep.subr.mxu1 %v8537_v42  ;;  %v11386_v40 = vld [vmem:[#allocation47_spill] sm:$0xff]  ;;  %v11387_v42 = vld [vmem:[#allocation48_spill] sm:$0xff] }
 0x61b   :  { %2360 = vmatpush1.msra.mxu0 %v8540_v45  ;;  %2431 = vmatpush1.msra.mxu1 %v8543_v46  ;;  %v11388_v45 = vld [vmem:[#allocation49_spill] sm:$0xff]  ;;  %v11389_v46 = vld [vmem:[#allocation50_spill] sm:$0xff] }
 0x61c   :  { %2361 = vmatprep.subr.mxu0 %v8546_v49  ;;  %2432 = vmatprep.subr.mxu1 %v8549_v52  ;;  %v11390_v49 = vld [vmem:[#allocation51_spill] sm:$0xff]  ;;  %v11391_v52 = vld [vmem:[#allocation52_spill] sm:$0xff] }
 0x61d   :  { %2362 = vmatpush1.msra.mxu0 %v8552_v53  ;;  %2433 = vmatpush1.msra.mxu1 %v8555_v6  ;;  %v11392_v53 = vld [vmem:[#allocation53_spill] sm:$0xff]  ;;  %v11393_v6 = vld [vmem:[#allocation54_spill] sm:$0xff] }
 0x61e   :  { %2363 = vmatprep.subr.mxu0 %v8558_v22  ;;  %2434 = vmatprep.subr.mxu1 %v8561_v23  ;;  %v11394_v22 = vld [vmem:[#allocation55_spill] sm:$0xff]  ;;  %v11395_v23 = vld [vmem:[#allocation56_spill] sm:$0xff] }
 0x61f   :  { %2364 = vmatpush1.msra.mxu0 %v8564_v15  ;;  %2435 = vmatpush1.msra.mxu1 %v8567_v50  ;;  %v11396_v15 = vld [vmem:[#allocation57_spill] sm:$0xff]  ;;  %v11397_v50 = vld [vmem:[#allocation58_spill] sm:$0xff] }
 0x620   :  { %2365 = vmatprep.subr.mxu0 %v8570_v21  ;;  %2436 = vmatprep.subr.mxu1 %v8573_v32  ;;  %v11398_v21 = vld [vmem:[#allocation59_spill] sm:$0xff]  ;;  %v11399_v32 = vld [vmem:[#allocation60_spill] sm:$0xff] }
 0x621   :  { %2366 = vmatpush1.msra.mxu0 %v8576_v14  ;;  %2437 = vmatpush1.msra.mxu1 %v8579_v18  ;;  %v11400_v14 = vld [vmem:[#allocation61_spill] sm:$0xff]  ;;  %v11401_v18 = vld [vmem:[#allocation62_spill] sm:$0xff] }
 0x622   :  { %2367 = vmatprep.subr.mxu0 %v8582_v19  ;;  %2438 = vmatprep.subr.mxu1 %v8585_v27  ;;  %v11402_v19 = vld [vmem:[#allocation63_spill] sm:$0xff]  ;;  %v11403_v27 = vld [vmem:[#allocation64_spill] sm:$0xff] }
 0x623   :  { %2368 = vmatpush1.msra.mxu0 %v11362_v56  ;;  %2401 = vmatprep.mubr.f32.mxu0 %v11363_v51  ;;  %v11405_v56 = vld [vmem:[#allocation66_spill] sm:$0xff] }
 0x624   :  { %2439 = vmatpush1.msra.mxu1 %v11364_v62  ;;  %2472 = vmatprep.mubr.f32.mxu1 %v11363_v51  ;;  %v11406_v62 = vld [vmem:[#allocation67_spill] sm:$0xff] }
 0x625   :  { %2402 = vmatmul.mubr.f32.vlgmr.msra.gmra.mxu0 %v9004_v28  ;;  %2473 = vmatmul.mubr.f32.vlgmr.msra.gmra.mxu1 %v9004_v28  ;;  %v11404_v28 = vld [vmem:[#allocation65_spill] sm:$0xff] }
 0x626   :  { %2507 = vmatprep.subr.mxu0 %v11365_v60  ;;  %2578 = vmatprep.subr.mxu1 %v11366_v61  ;;  %v11407_v60 = vld [vmem:[#allocation68_spill] sm:$0xff]  ;;  %v11408_v61 = vld [vmem:[#allocation69_spill] sm:$0xff] }
 0x627   :  { %2508 = vmatpush1.msra.mxu0 %v11367_v29  ;;  %2579 = vmatpush1.msra.mxu1 %v11368_v34  ;;  %v11409_v29 = vld [vmem:[#allocation70_spill] sm:$0xff]  ;;  %v11410_v34 = vld [vmem:[#allocation71_spill] sm:$0xff] }
 0x628   :  { %2509 = vmatprep.subr.mxu0 %v11369_v44  ;;  %2580 = vmatprep.subr.mxu1 %v11370_v13  ;;  %v11411_v44 = vld [vmem:[#allocation72_spill] sm:$0xff]  ;;  %v11412_v13 = vld [vmem:[#allocation73_spill] sm:$0xff] }
 0x629   :  { %2510 = vmatpush1.msra.mxu0 %v11371_v54  ;;  %2581 = vmatpush1.msra.mxu1 %v11372_v31  ;;  %v11413_v54 = vld [vmem:[#allocation74_spill] sm:$0xff]  ;;  %v11414_v31 = vld [vmem:[#allocation75_spill] sm:$0xff] }
 0x62a   :  { %2511 = vmatprep.subr.mxu0 %v11373_v47  ;;  %2582 = vmatprep.subr.mxu1 %v11374_v57  ;;  %v11415_v47 = vld [vmem:[#allocation76_spill] sm:$0xff]  ;;  %v11416_v57 = vld [vmem:[#allocation77_spill] sm:$0xff] }
 0x62b   :  { %2512 = vmatpush1.msra.mxu0 %v11375_v63  ;;  %2583 = vmatpush1.msra.mxu1 %v11376_v43  ;;  %v11417_v63 = vld [vmem:[#allocation78_spill] sm:$0xff]  ;;  %v11418_v43 = vld [vmem:[#allocation79_spill] sm:$0xff] }
 0x62c   :  { %2513 = vmatprep.subr.mxu0 %v11377_v55  ;;  %2584 = vmatprep.subr.mxu1 %v11378_v48  ;;  %v11419_v55 = vld [vmem:[#allocation80_spill] sm:$0xff]  ;;  %v11420_v48 = vld [vmem:[#allocation81_spill] sm:$0xff] }
 0x62d   :  { %2514 = vmatpush1.msra.mxu0 %v11379_v59  ;;  %2585 = vmatpush1.msra.mxu1 %v11380_v33  ;;  %v11421_v59 = vld [vmem:[#allocation82_spill] sm:$0xff]  ;;  %v11422_v33 = vld [vmem:[#allocation83_spill] sm:$0xff] }
 0x62e   :  { %2515 = vmatprep.subr.mxu0 %v11381_v35  ;;  %2586 = vmatprep.subr.mxu1 %v11382_v36  ;;  %v11423_v35 = vld [vmem:[#allocation84_spill] sm:$0xff]  ;;  %v11424_v36 = vld [vmem:[#allocation85_spill] sm:$0xff] }
 0x62f   :  { %2516 = vmatpush1.msra.mxu0 %v11383_v37  ;;  %2587 = vmatpush1.msra.mxu1 %v11384_v38  ;;  %v11425_v37 = vld [vmem:[#allocation86_spill] sm:$0xff]  ;;  %v11426_v38 = vld [vmem:[#allocation87_spill] sm:$0xff] }
 0x630   :  { %2517 = vmatprep.subr.mxu0 %v11385_v39  ;;  %2588 = vmatprep.subr.mxu1 %v11386_v40  ;;  %v11427_v39 = vld [vmem:[#allocation88_spill] sm:$0xff]  ;;  %v11428_v40 = vld [vmem:[#allocation89_spill] sm:$0xff] }
 0x631   :  { %2518 = vmatpush1.msra.mxu0 %v11387_v42  ;;  %2589 = vmatpush1.msra.mxu1 %v11388_v45  ;;  %v11429_v42 = vld [vmem:[#allocation90_spill] sm:$0xff]  ;;  %v11430_v45 = vld [vmem:[#allocation91_spill] sm:$0xff] }
 0x632   :  { %2519 = vmatprep.subr.mxu0 %v11389_v46  ;;  %2590 = vmatprep.subr.mxu1 %v11390_v49  ;;  %v11431_v46 = vld [vmem:[#allocation92_spill] sm:$0xff]  ;;  %v11432_v49 = vld [vmem:[#allocation93_spill] sm:$0xff] }
 0x633   :  { %2520 = vmatpush1.msra.mxu0 %v11391_v52  ;;  %2591 = vmatpush1.msra.mxu1 %v11392_v53  ;;  %v11433_v52 = vld [vmem:[#allocation94_spill] sm:$0xff]  ;;  %v11434_v53 = vld [vmem:[#allocation95_spill] sm:$0xff] }
 0x634   :  { %2521 = vmatprep.subr.mxu0 %v11393_v6  ;;  %2592 = vmatprep.subr.mxu1 %v11394_v22  ;;  %v11435_v6 = vld [vmem:[#allocation96_spill] sm:$0xff]  ;;  %v11436_v22 = vld [vmem:[#allocation97_spill] sm:$0xff] }
 0x635   :  { %2522 = vmatpush1.msra.mxu0 %v11395_v23  ;;  %2593 = vmatpush1.msra.mxu1 %v11396_v15  ;;  %v11437_v23 = vld [vmem:[#allocation98_spill] sm:$0xff]  ;;  %v11438_v15 = vld [vmem:[#allocation99_spill] sm:$0xff] }
 0x636   :  { %2523 = vmatprep.subr.mxu0 %v11397_v50  ;;  %2594 = vmatprep.subr.mxu1 %v11398_v21  ;;  %v11439_v50 = vld [vmem:[#allocation100_spill] sm:$0xff]  ;;  %v11440_v21 = vld [vmem:[#allocation101_spill] sm:$0xff] }
 0x637   :  { %2524 = vmatpush1.msra.mxu0 %v11399_v32  ;;  %2595 = vmatpush1.msra.mxu1 %v11400_v14  ;;  %v11441_v32 = vld [vmem:[#allocation102_spill] sm:$0xff]  ;;  %v11442_v14 = vld [vmem:[#allocation103_spill] sm:$0xff] }
 0x638   :  { %2525 = vmatprep.subr.mxu0 %v11401_v18  ;;  %2596 = vmatprep.subr.mxu1 %v11402_v19  ;;  %v11443_v18 = vld [vmem:[#allocation104_spill] sm:$0xff]  ;;  %v11444_v19 = vld [vmem:[#allocation105_spill] sm:$0xff] }
 0x639   :  { %2526 = vmatpush1.msra.mxu0 %v11403_v27  ;;  %2597 = vmatpush1.msra.mxu1 %v11404_v28  ;;  %v11445_v27 = vld [vmem:[#allocation106_spill] sm:$0xff]  ;;  %v11446_v28 = vld [vmem:[#allocation107_spill] sm:$0xff] }
 0x63a   :  { %2527 = vmatprep.subr.mxu0 %v11405_v56  ;;  %2598 = vmatprep.subr.mxu1 %v11406_v62  ;;  %v11447_v56 = vld [vmem:[#allocation108_spill] sm:$0xff]  ;;  %v11448_v62 = vld [vmem:[#allocation109_spill] sm:$0xff] }
 0x63b   :  { %2528 = vmatpush1.msra.mxu0 %v11407_v60  ;;  %2599 = vmatpush1.msra.mxu1 %v11408_v61  ;;  %v11449_v60 = vld [vmem:[#allocation110_spill] sm:$0xff]  ;;  %v11450_v61 = vld [vmem:[#allocation111_spill] sm:$0xff] }
 0x63c   :  { %2529 = vmatprep.subr.mxu0 %v11409_v29  ;;  %2600 = vmatprep.subr.mxu1 %v11410_v34  ;;  %v11451_v29 = vld [vmem:[#allocation112_spill] sm:$0xff]  ;;  %v11452_v34 = vld [vmem:[#allocation113_spill] sm:$0xff] }
 0x63d   :  { %2530 = vmatpush1.msra.mxu0 %v11411_v44  ;;  %2601 = vmatpush1.msra.mxu1 %v11412_v13  ;;  %v11453_v44 = vld [vmem:[#allocation114_spill] sm:$0xff]  ;;  %v11454_v13 = vld [vmem:[#allocation115_spill] sm:$0xff] }
 0x63e   :  { %2531 = vmatprep.subr.mxu0 %v11413_v54  ;;  %2602 = vmatprep.subr.mxu1 %v11414_v31  ;;  %v11455_v54 = vld [vmem:[#allocation116_spill] sm:$0xff]  ;;  %v11456_v31 = vld [vmem:[#allocation117_spill] sm:$0xff] }
 0x63f   :  { %2532 = vmatpush1.msra.mxu0 %v11415_v47  ;;  %2603 = vmatpush1.msra.mxu1 %v11416_v57  ;;  %v11457_v47 = vld [vmem:[#allocation118_spill] sm:$0xff]  ;;  %v11458_v57 = vld [vmem:[#allocation119_spill] sm:$0xff] }
 0x640   :  { %2533 = vmatprep.subr.mxu0 %v11417_v63  ;;  %2604 = vmatprep.subr.mxu1 %v11418_v43  ;;  %v11459_v63 = vld [vmem:[#allocation120_spill] sm:$0xff]  ;;  %v11460_v43 = vld [vmem:[#allocation121_spill] sm:$0xff] }
 0x641   :  { %2534 = vmatpush1.msra.mxu0 %v11419_v55  ;;  %2605 = vmatpush1.msra.mxu1 %v11420_v48  ;;  %v11461_v55 = vld [vmem:[#allocation122_spill] sm:$0xff]  ;;  %v11462_v48 = vld [vmem:[#allocation123_spill] sm:$0xff] }
 0x642   :  { %2535 = vmatprep.subr.mxu0 %v11421_v59  ;;  %2606 = vmatprep.subr.mxu1 %v11422_v33  ;;  %v11463_v59 = vld [vmem:[#allocation124_spill] sm:$0xff]  ;;  %v11464_v33 = vld [vmem:[#allocation125_spill] sm:$0xff] }
 0x643   :  { %2536 = vmatpush1.msra.mxu0 %v11423_v35  ;;  %2607 = vmatpush1.msra.mxu1 %v11424_v36  ;;  %v11465_v35 = vld [vmem:[#allocation126_spill] sm:$0xff]  ;;  %v11466_v36 = vld [vmem:[#allocation127_spill] sm:$0xff] }
 0x644   :  { %2537 = vmatprep.subr.mxu0 %v11425_v37  ;;  %2608 = vmatprep.subr.mxu1 %v11426_v38  ;;  %v11467_v37 = vld [vmem:[#allocation128_spill] sm:$0xff]  ;;  %v11468_v38 = vld [vmem:[#allocation129_spill] sm:$0xff] }
 0x645   :  { %2538 = vmatpush1.msra.mxu0 %v11427_v39  ;;  %2609 = vmatpush1.msra.mxu1 %v11428_v40  ;;  %v11469_v39 = vld [vmem:[#allocation130_spill] sm:$0xff]  ;;  %v11470_v40 = vld [vmem:[#allocation131_spill] sm:$0xff] }
 0x646   :  { %2539 = vmatprep.subr.mxu0 %v11429_v42  ;;  %2610 = vmatprep.subr.mxu1 %v11430_v45  ;;  %v11471_v42 = vld [vmem:[#allocation132_spill] sm:$0xff]  ;;  %v11472_v45 = vld [vmem:[#allocation133_spill] sm:$0xff] }
 0x647   :  { %2540 = vmatpush2.msra.mxu0 %v11431_v46  ;;  %2611 = vmatpush2.msra.mxu1 %v11432_v49  ;;  %v11473_v46 = vld [vmem:[#allocation134_spill] sm:$0xff]  ;;  %v11474_v49 = vld [vmem:[#allocation135_spill] sm:$0xff] }
 0x648   :  { %2541 = vmatprep.subr.mxu0 %v11433_v52  ;;  %2612 = vmatprep.subr.mxu1 %v11434_v53  ;;  %v11475_v52 = vld [vmem:[#allocation136_spill] sm:$0xff]  ;;  %v11476_v53 = vld [vmem:[#allocation137_spill] sm:$0xff] }
 0x649   :  { %2542 = vmatpush2.msra.mxu0 %v11435_v6  ;;  %2613 = vmatpush2.msra.mxu1 %v11436_v22  ;;  %v11477_v6 = vld [vmem:[#allocation138_spill] sm:$0xff]  ;;  %v11478_v22 = vld [vmem:[#allocation139_spill] sm:$0xff] }
 0x64a   :  { %2543 = vmatprep.subr.mxu0 %v11437_v23  ;;  %2614 = vmatprep.subr.mxu1 %v11438_v15  ;;  %v11479_v23 = vld [vmem:[#allocation140_spill] sm:$0xff]  ;;  %v11480_v15 = vld [vmem:[#allocation141_spill] sm:$0xff] }
 0x64b   :  { %2544 = vmatpush2.msra.mxu0 %v11439_v50  ;;  %2615 = vmatpush2.msra.mxu1 %v11440_v21  ;;  %v11481_v50 = vld [vmem:[#allocation142_spill] sm:$0xff]  ;;  %v11482_v21 = vld [vmem:[#allocation143_spill] sm:$0xff] }
 0x64c   :  { %2545 = vmatprep.subr.mxu0 %v11441_v32  ;;  %2616 = vmatprep.subr.mxu1 %v11442_v14  ;;  %v11483_v32 = vld [vmem:[#allocation144_spill] sm:$0xff]  ;;  %v11484_v14 = vld [vmem:[#allocation145_spill] sm:$0xff] }
 0x64d   :  { %2546 = vmatpush2.msra.mxu0 %v11443_v18  ;;  %2617 = vmatpush2.msra.mxu1 %v11444_v19  ;;  %v11485_v18 = vld [vmem:[#allocation146_spill] sm:$0xff]  ;;  %v11486_v19 = vld [vmem:[#allocation147_spill] sm:$0xff] }
 0x64e   :  { %2547 = vmatprep.subr.mxu0 %v11445_v27  ;;  %2618 = vmatprep.subr.mxu1 %v11446_v28  ;;  %v11487_v27 = vld [vmem:[#allocation148_spill] sm:$0xff]  ;;  %v11488_v28 = vld [vmem:[#allocation149_spill] sm:$0xff] }
 0x64f   :  { %2548 = vmatpush2.msra.mxu0 %v11447_v56  ;;  %2619 = vmatpush2.msra.mxu1 %v11448_v62  ;;  %v11489_v56 = vld [vmem:[#allocation150_spill] sm:$0xff]  ;;  %v11490_v62 = vld [vmem:[#allocation156_spill] sm:$0xff] }
 0x650   :  { %2549 = vmatprep.subr.mxu0 %v11449_v60  ;;  %2620 = vmatprep.subr.mxu1 %v11450_v61  ;;  %v11491_v60 = vld [vmem:[#allocation158_spill] sm:$0xff]  ;;  %v11492_v61 = vld [vmem:[#allocation159_spill] sm:$0xff] }
 0x651   :  { %2550 = vmatpush2.msra.mxu0 %v11451_v29  ;;  %2621 = vmatpush2.msra.mxu1 %v11452_v34  ;;  %v9238_v29 = vld [vmem:[#allocation4 + $0x1e8] sm:$0xff]  ;;  %v9241_v34 = vld [vmem:[#allocation4 + $0x1f8] sm:$0xff] }
 0x652   :  { %2551 = vmatprep.subr.mxu0 %v11453_v44  ;;  %2622 = vmatprep.subr.mxu1 %v11454_v13  ;;  %v11493_v13 = vld [vmem:[#allocation21_spill] sm:$0xff] }
 0x653   :  { %2552 = vmatpush2.msra.mxu0 %v11455_v54  ;;  %2623 = vmatpush2.msra.mxu1 %v11456_v31 }
 0x654   :  { %2553 = vmatprep.subr.mxu0 %v11457_v47  ;;  %2624 = vmatprep.subr.mxu1 %v11458_v57  ;;  %v11494_v57 = vld [vmem:[#allocation22_spill] sm:$0xff] }
 0x655   :  { %2554 = vmatpush2.msra.mxu0 %v11459_v63  ;;  %2625 = vmatpush2.msra.mxu1 %v11460_v43 }
 0x656   :  { %2555 = vmatprep.subr.mxu0 %v11461_v55  ;;  %2626 = vmatprep.subr.mxu1 %v11462_v48 }
 0x657   :  { %2556 = vmatpush2.msra.mxu0 %v11463_v59  ;;  %2627 = vmatpush2.msra.mxu1 %v11464_v33  ;;  %v11495_v59 = vld [vmem:[#allocation23_spill] sm:$0xff] }
 0x658   :  { %2557 = vmatprep.subr.mxu0 %v11465_v35  ;;  %2628 = vmatprep.subr.mxu1 %v11466_v36 }
 0x659   :  { %2558 = vmatpush2.msra.mxu0 %v11467_v37  ;;  %2629 = vmatpush2.msra.mxu1 %v11468_v38  ;;  %v11496_v37 = vld [vmem:[#allocation24_spill] sm:$0xff] }
 0x65a   :  { %2559 = vmatprep.subr.mxu0 %v11469_v39  ;;  %2630 = vmatprep.subr.mxu1 %v11470_v40 }
 0x65b   :  { %2560 = vmatpush2.msra.mxu0 %v11471_v42  ;;  %2631 = vmatpush2.msra.mxu1 %v11472_v45 }
 0x65c   :  { %2561 = vmatprep.subr.mxu0 %v11473_v46  ;;  %2632 = vmatprep.subr.mxu1 %v11474_v49 }
 0x65d   :  { %2562 = vmatpush2.msra.mxu0 %v11475_v52  ;;  %2633 = vmatpush2.msra.mxu1 %v11476_v53  ;;  %v11497_v52 = vld [vmem:[#allocation172_spill] sm:$0xff] }
 0x65e   :  { %2563 = vmatprep.subr.mxu0 %v11477_v6  ;;  %2634 = vmatprep.subr.mxu1 %v11478_v22 }
 0x65f   :  { %2564 = vmatpush2.msra.mxu0 %v11479_v23  ;;  %2635 = vmatpush2.msra.mxu1 %v11480_v15 }
 0x660   :  { %2565 = vmatprep.subr.mxu0 %v11481_v50  ;;  %2636 = vmatprep.subr.mxu1 %v11482_v21  ;;  %v11498_v21 = vld [vmem:[#allocation174_spill] sm:$0xff] }
 0x661   :  { %2566 = vmatpush2.msra.mxu0 %v11483_v32  ;;  %2637 = vmatpush2.msra.mxu1 %v11484_v14 }
 0x662   :  { %2567 = vmatprep.subr.mxu0 %v11485_v18  ;;  %2638 = vmatprep.subr.mxu1 %v11486_v19 }
 0x663   :  { %2568 = vmatpush2.msra.mxu0 %v11487_v27  ;;  %2639 = vmatpush2.msra.mxu1 %v11488_v28 }
 0x664   :  { %2569 = vmatprep.subr.mxu0 %v11489_v56  ;;  %2640 = vmatprep.subr.mxu1 %v11490_v62  ;;  %v11499_v62 = vld [vmem:[#allocation175_spill] sm:$0xff] }
 0x665   :  { %2570 = vmatpush2.msra.mxu0 %v11491_v60  ;;  %2641 = vmatpush2.msra.mxu1 %v11492_v61  ;;  %v11500_v61 = vld [vmem:[#allocation173_spill] sm:$0xff] }
 0x666   :  { %2673 = vmatprep.subr.mxu0 %v9238_v29  ;;  %2744 = vmatprep.subr.mxu1 %v9241_v34 }
 0x6c4   :  { %v2237_v44 = vpop.f32.mrf.mxu0  ;;  %v2308_v43 = vpop.f32.mrf.mxu1 }
 0x6c5   :  { %v2238_v54 = vadd.f32 %v2237_v44, %v11493_v13  ;;  %v2309_v38 = vadd.f32 %v2308_v43, %v11496_v37 }
 0x6c6   :  { %v2239_v31 = vpop.f32.mrf.mxu0  ;;  %v2310_v48 = vpop.f32.mrf.mxu1 }
 0x6c7   :  { %v5367_v47 = vmul.f32 -1.442695, %v2238_v54  ;;  %v2240_v63 = vadd.f32 %v2239_v31, %v11494_v57  ;;  %v2311_v33 = vadd.f32 %v2310_v48, %v11495_v59 }
 0x6c9   :  { %5656 = vpow2.f32 %v5367_v47  ;;  %v5368_v55 = vmul.f32 -1.442695, %v2240_v63  ;;  %v5369_v35 = vmul.f32 -1.442695, %v2311_v33 }
 0x6cb   :  { %5658 = vpow2.f32 %v5368_v55 }
 0x6cc   :  { %5660 = vpow2.f32 %v5369_v35 }
 0x6d6   :  { %v5657_v36 = vpop.eup %5656 }
 0x6d7   :  { %v2316_v39 = vadd.f32 1.0, %v5657_v36 }
 0x6d8   :  { %v5659_v40 = vpop.eup %5658 }
 0x6d9   :  { %5662 = vrcp.f32 %v2316_v39  ;;  %v2322_v42 = vadd.f32 1.0, %v5659_v40  ;;  %v5661_v45 = vpop.eup %5660 }
 0x6da   :  { %5664 = vtanh.f32 %v2309_v38  ;;  %v2329_v22 = vadd.f32 1.0, %v5661_v45 }
 0x6db   :  { %5666 = vrcp.f32 %v2322_v42 }
 0x6e5   :  { %v2403_v46 = vpop.f32.mrf.mxu0  ;;  %v2474_v19 = vpop.f32.mrf.mxu1 }
 0x6e6   :  { %v5663_v49 = vpop.eup %5662  ;;  %v2479_v53 = vadd.f32 %v2403_v46, %v11497_v52  ;;  %v2481_v44 = vadd.f32 %v2474_v19, %v11500_v61  ;;  %v9373_v19 = vld [vmem:[#allocation4 + $0x78] sm:$0xff]  ;;  %v9388_v61 = vld [vmem:[#allocation4 + $0x40] sm:$0xff] }
 0x6e7   :  { %v5665_v6 = vpop.eup %5664  ;;  %v2405_v23 = vpop.f32.mrf.mxu0 }
 0x6e8   :  { %v5667_v15 = vpop.eup %5666  ;;  %v5370_v50 = vmul.f32 -1.442695, %v2479_v53  ;;  %v2480_v32 = vadd.f32 %v2405_v23, %v11498_v21  ;;  %v2333_v14 = vmul.f32 %v5665_v6, %v5663_v49  ;;  %v2476_v56 = vpop.f32.mrf.mxu1  ;;  %v9343_v53 = vld [vmem:[#allocation4 + $0xd0] sm:$0xff]  ;;  %v9346_v6 = vld [vmem:[#allocation4 + $0xa8] sm:$0xff]  ;;  %v9352_v23 = vld [vmem:[#allocation4 + $0xa0] sm:$0xff] }
 0x6e9   :  { %v2332_v18 = vmul.f32 %v5667_v15, %v8991_v41  ;;  %v2482_v60 = vadd.f32 %v2476_v56, %v11499_v62  ;;  %v9355_v15 = vld [vmem:[#allocation4 + $0xb0] sm:$0xff]  ;;  %v9361_v21 = vld [vmem:[#allocation4 + $0x98] sm:$0xff]  ;;  %v9382_v62 = vld [vmem:[#allocation4 + $0x48] sm:$0xff] }
 0x6ea   :  { %5668 = vpow2.f32 %v5370_v50  ;;  %v5371_v27 = vmul.f32 -1.442695, %v2480_v32  ;;  %v9358_v50 = vld [vmem:[#allocation4 + $0x88] sm:$0xff]  ;;  %v9364_v32 = vld [vmem:[#allocation4 + $0x80] sm:$0xff]  ;;  %v9379_v56 = vld [vmem:[#allocation4 + $0x70] sm:$0xff] }
 0x6eb   :  { %v9251_v28 = vadd.f32 %v2333_v14, %v2332_v18  ;;  %5670 = vrcp.f32 %v2329_v22  ;;  %v5372_v54 = vmul.f32 -1.442695, %v2482_v60  ;;  %v9349_v22 = vld [vmem:[#allocation4 + $0xb8] sm:$0xff]  ;;  %v9367_v14 = vld [vmem:[#allocation4 + $0x90] sm:$0xff]  ;;  %v9370_v18 = vld [vmem:[#allocation4 + $0x68] sm:$0xff] }
 0x6ec   :  { %5672 = vpow2.f32 %v5371_v27  ;;  %v9376_v27 = vld [vmem:[#allocation4 + $0x60] sm:$0xff]  ;;  %v9385_v60 = vld [vmem:[#allocation4 + $0x58] sm:$0xff] }
 0x6ed   :  { %5674 = vtanh.f32 %v9251_v28 }
 0x6ee   :  { %5676 = vtanh.f32 %v2481_v44  ;;  %v9391_v44 = vld [vmem:[#allocation4 + $0x50] sm:$0xff] }
 0x6ef   :  { %5678 = vpow2.f32 %v5372_v54  ;;  %v9394_v54 = vld [vmem:[#allocation4 + $0x28] sm:$0xff] }
 0x6f7   :  { %v5669_v31 = vpop.eup %5668 }
 0x6f8   :  { %v5671_v47 = vpop.eup %5670  ;;  %v2486_v63 = vadd.f32 1.0, %v5669_v31  ;;  %v9397_v31 = vld [vmem:[#allocation4 + $0x38] sm:$0xff] }
 0x6f9   :  { %v5673_v41 = vpop.eup %5672 }
 0x6fa   :  { %v5675_v43 = vpop.eup %5674  ;;  %5680 = vrcp.f32 %v2486_v63  ;;  %v2492_v55 = vadd.f32 1.0, %v5673_v41  ;;  %v9403_v63 = vld [vmem:[#allocation4 + $0x30] sm:$0xff]  ;;  %v9406_v41 = vld [vmem:[#allocation4 + $0x8] sm:$0xff] }
 0x6fb   :  { %v9256_v48 = vmul.f32 %v5675_v43, %v5671_v47  ;;  %v5677_v33 = vpop.eup %5676  ;;  %v9400_v47 = vld [vmem:[#allocation4 + $0x20] sm:$0xff]  ;;  %v9409_v43 = vld [vmem:[#allocation4 + $0x18] sm:$0xff] }
 0x6fc   :  { %5682 = vrcp.f32 %v2492_v55  ;;  %v5679_v35 = vpop.eup %5678  ;;  %v9412_v55 = vld [vmem:[#allocation4] sm:$0xff] }
 0x6fd   :  { %11501 = vst [vmem:[#allocation184_spill] sm:$0xff] %v9256_v48  ;;  %2571 = vmatprep.mubr.f32.mxu0 %v9256_v48  ;;  %2642 = vmatprep.mubr.f32.mxu1 %v9256_v48  ;;  %v2499_v40 = vadd.f32 1.0, %v5679_v35  ;;  %11502 = vst [vmem:[#allocation164_spill] sm:$0xff] %v9412_v55  ;;  %v9422_v35 = vld [vmem:[#allocation7 + $0x1e8] sm:$0xff]  ;;  %v9449_v48 = vld [vmem:[#allocation7 + $0x1b8] sm:$0xff] }
 0x6fe   :  { %11504 = vst [vmem:[#allocation167_spill] sm:$0xff] %v9422_v35  ;;  %11513 = vst [vmem:[#allocation27_spill] sm:$0xff] %v9449_v48 }
 0x6ff   :  { %5684 = vrcp.f32 %v2499_v40  ;;  %v9434_v40 = vld [vmem:[#allocation7 + $0x1c8] sm:$0xff] }
 0x700   :  { %11508 = vst [vmem:[#allocation171_spill] sm:$0xff] %v9434_v40 }
 0x707   :  { %v5681_v36 = vpop.eup %5680 }
 0x708   :  { %v2503_v38 = vmul.f32 %v5681_v36, %v5677_v33  ;;  %v9416_v33 = vld [vmem:[#allocation4 + $0x10] sm:$0xff]  ;;  %v9425_v36 = vld [vmem:[#allocation7 + $0x1f8] sm:$0xff] }
 0x709   :  { %v5683_v39 = vpop.eup %5682  ;;  %11503 = vst [vmem:[#allocation166_spill] sm:$0xff] %v9416_v33  ;;  %11505 = vst [vmem:[#allocation165_spill] sm:$0xff] %v9425_v36 }
 0x70a   :  { %v2502_v42 = vmul.f32 %v5683_v39, %v9001_v16  ;;  %v9286_v16 = vld [vmem:[#allocation4 + $0x148] sm:$0xff]  ;;  %v9431_v39 = vld [vmem:[#allocation7 + $0x1f0] sm:$0xff] }
 0x70b   :  { %11507 = vst [vmem:[#allocation170_spill] sm:$0xff] %v9431_v39 }
 0x70c   :  { %v9261_v45 = vadd.f32 %v2503_v38, %v2502_v42  ;;  %v5685_v46 = vpop.eup %5684  ;;  %v9428_v38 = vld [vmem:[#allocation7 + $0x1e0] sm:$0xff]  ;;  %v9437_v42 = vld [vmem:[#allocation7 + $0x1d8] sm:$0xff] }
 0x70d   :  { %11506 = vst [vmem:[#allocation168_spill] sm:$0xff] %v9428_v38  ;;  %11509 = vst [vmem:[#allocation169_spill] sm:$0xff] %v9437_v42 }
 0x70e   :  { %5686 = vtanh.f32 %v9261_v45 }
 0x71b   :  { %v5687_v49 = vpop.eup %5686 }
 0x71c   :  { %v9264_v52 = vmul.f32 %v5687_v49, %v5685_v46  ;;  %v9440_v46 = vld [vmem:[#allocation7 + $0x1c0] sm:$0xff]  ;;  %v9443_v49 = vld [vmem:[#allocation7 + $0x1d0] sm:$0xff] }
 0x71d   :  { %11510 = vst [vmem:[#allocation163_spill] sm:$0xff] %v9440_v46  ;;  %11511 = vst [vmem:[#allocation161_spill] sm:$0xff] %v9443_v49 }
 0x71e   :  { %2572 = vmatmul.mubr.f32.vlgmr.msra.gmra.mxu0 %v9264_v52  ;;  %2643 = vmatmul.mubr.f32.vlgmr.msra.gmra.mxu1 %v9264_v52 }
 0x71f   :  { %2674 = vmatpush1.msra.mxu0 %v9008_v58  ;;  %2745 = vmatpush1.msra.mxu1 %v9011_v9  ;;  %v9289_v58 = vld [vmem:[#allocation4 + $0x158] sm:$0xff]  ;;  %v9292_v9 = vld [vmem:[#allocation4 + $0x140] sm:$0xff] }
 0x720   :  { %2675 = vmatprep.subr.mxu0 %v9014_v11  ;;  %2746 = vmatprep.subr.mxu1 %v9017_v8  ;;  %v9295_v11 = vld [vmem:[#allocation4 + $0x150] sm:$0xff]  ;;  %v9298_v8 = vld [vmem:[#allocation4 + $0x128] sm:$0xff] }
 0x721   :  { %2676 = vmatpush1.msra.mxu0 %v9020_v5  ;;  %2747 = vmatpush1.msra.mxu1 %v9023_v0  ;;  %v9301_v5 = vld [vmem:[#allocation4 + $0x138] sm:$0xff]  ;;  %v9304_v0 = vld [vmem:[#allocation4 + $0x120] sm:$0xff] }
 0x722   :  { %2677 = vmatprep.subr.mxu0 %v9026_v20  ;;  %2748 = vmatprep.subr.mxu1 %v9029_v30  ;;  %v9307_v20 = vld [vmem:[#allocation4 + $0x130] sm:$0xff]  ;;  %v9310_v30 = vld [vmem:[#allocation4 + $0x108] sm:$0xff] }
 0x723   :  { %2678 = vmatpush1.msra.mxu0 %v9032_v17  ;;  %2749 = vmatpush1.msra.mxu1 %v9035_v7  ;;  %v9313_v17 = vld [vmem:[#allocation4 + $0x118] sm:$0xff]  ;;  %v9316_v7 = vld [vmem:[#allocation4 + $0x100] sm:$0xff] }
 0x724   :  { %2679 = vmatprep.subr.mxu0 %v9038_v12  ;;  %2750 = vmatprep.subr.mxu1 %v9041_v2  ;;  %v9319_v12 = vld [vmem:[#allocation4 + $0x110] sm:$0xff]  ;;  %v9322_v2 = vld [vmem:[#allocation4 + $0xe8] sm:$0xff] }
 0x725   :  { %2680 = vmatpush1.msra.mxu0 %v9044_v10  ;;  %2751 = vmatpush1.msra.mxu1 %v9047_v1  ;;  %v9325_v10 = vld [vmem:[#allocation4 + $0xf8] sm:$0xff]  ;;  %v9328_v1 = vld [vmem:[#allocation4 + $0xe0] sm:$0xff] }
 0x726   :  { %2681 = vmatprep.subr.mxu0 %v9050_v26  ;;  %2752 = vmatprep.subr.mxu1 %v9053_v3  ;;  %v9331_v26 = vld [vmem:[#allocation4 + $0xf0] sm:$0xff]  ;;  %v9334_v3 = vld [vmem:[#allocation4 + $0xc8] sm:$0xff] }
 0x727   :  { %2682 = vmatpush1.msra.mxu0 %v9056_v25  ;;  %2753 = vmatpush1.msra.mxu1 %v9059_v24  ;;  %v9337_v25 = vld [vmem:[#allocation4 + $0xd8] sm:$0xff]  ;;  %v9340_v24 = vld [vmem:[#allocation4 + $0xc0] sm:$0xff] }
 0x728   :  { %2683 = vmatprep.subr.mxu0 %v9286_v16  ;;  %2754 = vmatprep.subr.mxu1 %v9289_v58 }
 0x729   :  { %2684 = vmatpush1.msra.mxu0 %v9292_v9  ;;  %2755 = vmatpush1.msra.mxu1 %v9295_v11 }
 0x72a   :  { %2685 = vmatprep.subr.mxu0 %v9298_v8  ;;  %2756 = vmatprep.subr.mxu1 %v9301_v5 }
 0x72b   :  { %2686 = vmatpush1.msra.mxu0 %v9304_v0  ;;  %2757 = vmatpush1.msra.mxu1 %v9307_v20 }
 0x72c   :  { %2687 = vmatprep.subr.mxu0 %v9310_v30  ;;  %2758 = vmatprep.subr.mxu1 %v9313_v17 }
 0x72d   :  { %2688 = vmatpush1.msra.mxu0 %v9316_v7  ;;  %2759 = vmatpush1.msra.mxu1 %v9319_v12 }
 0x72e   :  { %2689 = vmatprep.subr.mxu0 %v9322_v2  ;;  %2760 = vmatprep.subr.mxu1 %v9325_v10 }
 0x72f   :  { %2690 = vmatpush1.msra.mxu0 %v9328_v1  ;;  %2761 = vmatpush1.msra.mxu1 %v9331_v26 }
 0x730   :  { %2691 = vmatprep.subr.mxu0 %v9334_v3  ;;  %2762 = vmatprep.subr.mxu1 %v9337_v25 }
 0x731   :  { %2692 = vmatpush1.msra.mxu0 %v9340_v24  ;;  %2763 = vmatpush1.msra.mxu1 %v9343_v53 }
 0x732   :  { %2693 = vmatprep.subr.mxu0 %v9346_v6  ;;  %2764 = vmatprep.subr.mxu1 %v9349_v22 }
 0x733   :  { %2694 = vmatpush1.msra.mxu0 %v9352_v23  ;;  %2765 = vmatpush1.msra.mxu1 %v9355_v15 }
 0x734   :  { %2695 = vmatprep.subr.mxu0 %v9358_v50  ;;  %2766 = vmatprep.subr.mxu1 %v9361_v21 }
 0x735   :  { %2696 = vmatpush1.msra.mxu0 %v9364_v32  ;;  %2767 = vmatpush1.msra.mxu1 %v9367_v14 }
 0x736   :  { %2697 = vmatprep.subr.mxu0 %v9370_v18  ;;  %2768 = vmatprep.subr.mxu1 %v9373_v19 }
 0x737   :  { %2698 = vmatpush1.msra.mxu0 %v9376_v27  ;;  %2769 = vmatpush1.msra.mxu1 %v9379_v56 }
 0x738   :  { %2699 = vmatprep.subr.mxu0 %v9382_v62  ;;  %2770 = vmatprep.subr.mxu1 %v9385_v60 }
 0x739   :  { %2700 = vmatpush1.msra.mxu0 %v9388_v61  ;;  %2771 = vmatpush1.msra.mxu1 %v9391_v44 }
 0x73a   :  { %2701 = vmatprep.subr.mxu0 %v9394_v54  ;;  %2772 = vmatprep.subr.mxu1 %v9397_v31 }
 0x73b   :  { %2702 = vmatpush1.msra.mxu0 %v9400_v47  ;;  %2773 = vmatpush1.msra.mxu1 %v9403_v63 }
 0x73c   :  { %2703 = vmatprep.subr.mxu0 %v9406_v41  ;;  %2774 = vmatprep.subr.mxu1 %v9409_v43 }
 0x73d   :  { %2704 = vmatpush1.msra.mxu0 %v9412_v55  ;;  %2737 = vmatprep.mubr.f32.mxu0 %v11363_v51 }
 0x73e   :  { %2775 = vmatpush1.msra.mxu1 %v9416_v33  ;;  %2808 = vmatprep.mubr.f32.mxu1 %v11363_v51 }
 0x73f   :  { %2738 = vmatmul.mubr.f32.vlgmr.msra.gmra.mxu0 %v9264_v52  ;;  %2809 = vmatmul.mubr.f32.vlgmr.msra.gmra.mxu1 %v9264_v52  ;;  %v9446_v52 = vld [vmem:[#allocation7 + $0x1a8] sm:$0xff] }
 0x740   :  { %2843 = vmatprep.subr.mxu0 %v9422_v35  ;;  %2914 = vmatprep.subr.mxu1 %v9425_v36  ;;  %11512 = vst [vmem:[#allocation26_spill] sm:$0xff] %v9446_v52 }
 0x741   :  { %2844 = vmatpush1.msra.mxu0 %v9428_v38  ;;  %2915 = vmatpush1.msra.mxu1 %v9431_v39 }
 0x742   :  { %2845 = vmatprep.subr.mxu0 %v9434_v40  ;;  %2916 = vmatprep.subr.mxu1 %v9437_v42  ;;  %v9455_v42 = vld [vmem:[#allocation7 + $0x1b0] sm:$0xff] }
 0x743   :  { %2846 = vmatpush1.msra.mxu0 %v9440_v46  ;;  %2917 = vmatpush1.msra.mxu1 %v9443_v49  ;;  %11515 = vst [vmem:[#allocation29_spill] sm:$0xff] %v9455_v42  ;;  %v9458_v46 = vld [vmem:[#allocation7 + $0x188] sm:$0xff]  ;;  %v9461_v49 = vld [vmem:[#allocation7 + $0x198] sm:$0xff] }
 0x744   :  { %2847 = vmatprep.subr.mxu0 %v9446_v52  ;;  %2918 = vmatprep.subr.mxu1 %v9449_v48  ;;  %11516 = vst [vmem:[#allocation30_spill] sm:$0xff] %v9458_v46  ;;  %11517 = vst [vmem:[#allocation31_spill] sm:$0xff] %v9461_v49  ;;  %v9464_v52 = vld [vmem:[#allocation7 + $0x180] sm:$0xff]  ;;  %v9467_v48 = vld [vmem:[#allocation7 + $0x190] sm:$0xff] }
 0x745   :  { %2848 = vmatpush1.msra.mxu0 %v9452_v4  ;;  %2919 = vmatpush1.msra.mxu1 %v9455_v42  ;;  %11518 = vst [vmem:[#allocation32_spill] sm:$0xff] %v9464_v52  ;;  %11519 = vst [vmem:[#allocation33_spill] sm:$0xff] %v9467_v48  ;;  %v9470_v4 = vld [vmem:[#allocation7 + $0x168] sm:$0xff]  ;;  %v9473_v42 = vld [vmem:[#allocation7 + $0x178] sm:$0xff] }
 0x746   :  { %2849 = vmatprep.subr.mxu0 %v9458_v46  ;;  %2920 = vmatprep.subr.mxu1 %v9461_v49  ;;  %11520 = vst [vmem:[#allocation34_spill] sm:$0xff] %v9470_v4  ;;  %11521 = vst [vmem:[#allocation35_spill] sm:$0xff] %v9473_v42  ;;  %v9476_v46 = vld [vmem:[#allocation7 + $0x160] sm:$0xff]  ;;  %v9479_v49 = vld [vmem:[#allocation7 + $0x170] sm:$0xff] }
 0x747   :  { %2850 = vmatpush1.msra.mxu0 %v9464_v52  ;;  %2921 = vmatpush1.msra.mxu1 %v9467_v48  ;;  %11522 = vst [vmem:[#allocation36_spill] sm:$0xff] %v9476_v46  ;;  %11523 = vst [vmem:[#allocation37_spill] sm:$0xff] %v9479_v49  ;;  %v9482_v52 = vld [vmem:[#allocation7 + $0x148] sm:$0xff]  ;;  %v9485_v48 = vld [vmem:[#allocation7 + $0x158] sm:$0xff] }
 0x748   :  { %2851 = vmatprep.subr.mxu0 %v9470_v4  ;;  %2922 = vmatprep.subr.mxu1 %v9473_v42  ;;  %11524 = vst [vmem:[#allocation38_spill] sm:$0xff] %v9482_v52  ;;  %11525 = vst [vmem:[#allocation39_spill] sm:$0xff] %v9485_v48  ;;  %v9488_v4 = vld [vmem:[#allocation7 + $0x140] sm:$0xff]  ;;  %v9491_v42 = vld [vmem:[#allocation7 + $0x150] sm:$0xff] }
 0x749   :  { %2852 = vmatpush1.msra.mxu0 %v9476_v46  ;;  %2923 = vmatpush1.msra.mxu1 %v9479_v49  ;;  %11526 = vst [vmem:[#allocation40_spill] sm:$0xff] %v9488_v4  ;;  %11527 = vst [vmem:[#allocation41_spill] sm:$0xff] %v9491_v42  ;;  %v9494_v46 = vld [vmem:[#allocation7 + $0x128] sm:$0xff]  ;;  %v9497_v49 = vld [vmem:[#allocation7 + $0x138] sm:$0xff] }
 0x74a   :  { %2853 = vmatprep.subr.mxu0 %v9482_v52  ;;  %2924 = vmatprep.subr.mxu1 %v9485_v48  ;;  %11528 = vst [vmem:[#allocation42_spill] sm:$0xff] %v9494_v46  ;;  %11529 = vst [vmem:[#allocation43_spill] sm:$0xff] %v9497_v49  ;;  %v9500_v52 = vld [vmem:[#allocation7 + $0x120] sm:$0xff]  ;;  %v9503_v48 = vld [vmem:[#allocation7 + $0x130] sm:$0xff] }
 0x74b   :  { %2854 = vmatpush1.msra.mxu0 %v9488_v4  ;;  %2925 = vmatpush1.msra.mxu1 %v9491_v42  ;;  %11530 = vst [vmem:[#allocation44_spill] sm:$0xff] %v9500_v52  ;;  %11531 = vst [vmem:[#allocation45_spill] sm:$0xff] %v9503_v48  ;;  %v9506_v4 = vld [vmem:[#allocation7 + $0x108] sm:$0xff]  ;;  %v9509_v42 = vld [vmem:[#allocation7 + $0x118] sm:$0xff] }
 0x74c   :  { %2855 = vmatprep.subr.mxu0 %v9494_v46  ;;  %2926 = vmatprep.subr.mxu1 %v9497_v49  ;;  %11532 = vst [vmem:[#allocation46_spill] sm:$0xff] %v9506_v4  ;;  %11533 = vst [vmem:[#allocation47_spill] sm:$0xff] %v9509_v42  ;;  %v9512_v46 = vld [vmem:[#allocation7 + $0x100] sm:$0xff]  ;;  %v9515_v49 = vld [vmem:[#allocation7 + $0x110] sm:$0xff] }
 0x74d   :  { %2856 = vmatpush1.msra.mxu0 %v9500_v52  ;;  %2927 = vmatpush1.msra.mxu1 %v9503_v48  ;;  %11534 = vst [vmem:[#allocation48_spill] sm:$0xff] %v9512_v46  ;;  %11535 = vst [vmem:[#allocation49_spill] sm:$0xff] %v9515_v49  ;;  %v9518_v52 = vld [vmem:[#allocation7 + $0xe8] sm:$0xff]  ;;  %v9521_v48 = vld [vmem:[#allocation7 + $0xf8] sm:$0xff] }
 0x74e   :  { %2857 = vmatprep.subr.mxu0 %v9506_v4  ;;  %2928 = vmatprep.subr.mxu1 %v9509_v42  ;;  %11536 = vst [vmem:[#allocation50_spill] sm:$0xff] %v9518_v52  ;;  %11537 = vst [vmem:[#allocation51_spill] sm:$0xff] %v9521_v48  ;;  %v9524_v4 = vld [vmem:[#allocation7 + $0xe0] sm:$0xff]  ;;  %v9527_v42 = vld [vmem:[#allocation7 + $0xf0] sm:$0xff] }
 0x74f   :  { %2858 = vmatpush1.msra.mxu0 %v9512_v46  ;;  %2929 = vmatpush1.msra.mxu1 %v9515_v49  ;;  %11538 = vst [vmem:[#allocation52_spill] sm:$0xff] %v9524_v4  ;;  %11539 = vst [vmem:[#allocation53_spill] sm:$0xff] %v9527_v42  ;;  %v9530_v46 = vld [vmem:[#allocation7 + $0xc8] sm:$0xff]  ;;  %v9533_v49 = vld [vmem:[#allocation7 + $0xd8] sm:$0xff] }
 0x750   :  { %2859 = vmatprep.subr.mxu0 %v9518_v52  ;;  %2930 = vmatprep.subr.mxu1 %v9521_v48  ;;  %11540 = vst [vmem:[#allocation54_spill] sm:$0xff] %v9530_v46  ;;  %11541 = vst [vmem:[#allocation55_spill] sm:$0xff] %v9533_v49  ;;  %v9536_v52 = vld [vmem:[#allocation7 + $0xc0] sm:$0xff]  ;;  %v9539_v48 = vld [vmem:[#allocation7 + $0xd0] sm:$0xff] }
 0x751   :  { %2860 = vmatpush1.msra.mxu0 %v9524_v4  ;;  %2931 = vmatpush1.msra.mxu1 %v9527_v42  ;;  %11542 = vst [vmem:[#allocation56_spill] sm:$0xff] %v9536_v52  ;;  %11543 = vst [vmem:[#allocation57_spill] sm:$0xff] %v9539_v48  ;;  %v9542_v4 = vld [vmem:[#allocation7 + $0xa8] sm:$0xff]  ;;  %v9545_v42 = vld [vmem:[#allocation7 + $0xb8] sm:$0xff] }
 0x752   :  { %2861 = vmatprep.subr.mxu0 %v9530_v46  ;;  %2932 = vmatprep.subr.mxu1 %v9533_v49  ;;  %11544 = vst [vmem:[#allocation58_spill] sm:$0xff] %v9542_v4  ;;  %11545 = vst [vmem:[#allocation59_spill] sm:$0xff] %v9545_v42  ;;  %v9548_v46 = vld [vmem:[#allocation7 + $0xa0] sm:$0xff]  ;;  %v9551_v49 = vld [vmem:[#allocation7 + $0xb0] sm:$0xff] }
 0x753   :  { %2862 = vmatpush1.msra.mxu0 %v9536_v52  ;;  %2933 = vmatpush1.msra.mxu1 %v9539_v48  ;;  %11546 = vst [vmem:[#allocation60_spill] sm:$0xff] %v9548_v46  ;;  %11547 = vst [vmem:[#allocation61_spill] sm:$0xff] %v9551_v49  ;;  %v9554_v52 = vld [vmem:[#allocation7 + $0x88] sm:$0xff]  ;;  %v9557_v48 = vld [vmem:[#allocation7 + $0x98] sm:$0xff] }
 0x754   :  { %2863 = vmatprep.subr.mxu0 %v9542_v4  ;;  %2934 = vmatprep.subr.mxu1 %v9545_v42  ;;  %11548 = vst [vmem:[#allocation62_spill] sm:$0xff] %v9554_v52  ;;  %11549 = vst [vmem:[#allocation63_spill] sm:$0xff] %v9557_v48  ;;  %v9560_v4 = vld [vmem:[#allocation7 + $0x80] sm:$0xff]  ;;  %v9563_v42 = vld [vmem:[#allocation7 + $0x90] sm:$0xff] }
 0x755   :  { %2864 = vmatpush1.msra.mxu0 %v9548_v46  ;;  %2935 = vmatpush1.msra.mxu1 %v9551_v49  ;;  %11550 = vst [vmem:[#allocation64_spill] sm:$0xff] %v9560_v4  ;;  %11551 = vst [vmem:[#allocation65_spill] sm:$0xff] %v9563_v42  ;;  %v9566_v46 = vld [vmem:[#allocation7 + $0x68] sm:$0xff]  ;;  %v9569_v49 = vld [vmem:[#allocation7 + $0x78] sm:$0xff] }
 0x756   :  { %2865 = vmatprep.subr.mxu0 %v9554_v52  ;;  %2936 = vmatprep.subr.mxu1 %v9557_v48  ;;  %11552 = vst [vmem:[#allocation66_spill] sm:$0xff] %v9566_v46  ;;  %11553 = vst [vmem:[#allocation67_spill] sm:$0xff] %v9569_v49  ;;  %v9572_v52 = vld [vmem:[#allocation7 + $0x60] sm:$0xff]  ;;  %v9575_v48 = vld [vmem:[#allocation7 + $0x70] sm:$0xff] }
 0x757   :  { %2866 = vmatpush1.msra.mxu0 %v9560_v4  ;;  %2937 = vmatpush1.msra.mxu1 %v9563_v42  ;;  %11554 = vst [vmem:[#allocation68_spill] sm:$0xff] %v9572_v52  ;;  %11555 = vst [vmem:[#allocation69_spill] sm:$0xff] %v9575_v48  ;;  %v9578_v4 = vld [vmem:[#allocation7 + $0x48] sm:$0xff]  ;;  %v9581_v42 = vld [vmem:[#allocation7 + $0x58] sm:$0xff] }
 0x758   :  { %2867 = vmatprep.subr.mxu0 %v9566_v46  ;;  %2938 = vmatprep.subr.mxu1 %v9569_v49  ;;  %11556 = vst [vmem:[#allocation70_spill] sm:$0xff] %v9578_v4  ;;  %11557 = vst [vmem:[#allocation71_spill] sm:$0xff] %v9581_v42  ;;  %v9584_v46 = vld [vmem:[#allocation7 + $0x40] sm:$0xff]  ;;  %v9587_v49 = vld [vmem:[#allocation7 + $0x50] sm:$0xff] }
 0x759   :  { %2868 = vmatpush1.msra.mxu0 %v9572_v52  ;;  %2939 = vmatpush1.msra.mxu1 %v9575_v48  ;;  %11558 = vst [vmem:[#allocation72_spill] sm:$0xff] %v9584_v46  ;;  %11559 = vst [vmem:[#allocation73_spill] sm:$0xff] %v9587_v49  ;;  %v9590_v52 = vld [vmem:[#allocation7 + $0x28] sm:$0xff]  ;;  %v9593_v48 = vld [vmem:[#allocation7 + $0x38] sm:$0xff] }
 0x75a   :  { %2869 = vmatprep.subr.mxu0 %v9578_v4  ;;  %2940 = vmatprep.subr.mxu1 %v9581_v42  ;;  %11560 = vst [vmem:[#allocation74_spill] sm:$0xff] %v9590_v52  ;;  %11561 = vst [vmem:[#allocation75_spill] sm:$0xff] %v9593_v48  ;;  %v9596_v4 = vld [vmem:[#allocation7 + $0x20] sm:$0xff]  ;;  %v9599_v42 = vld [vmem:[#allocation7 + $0x30] sm:$0xff] }
 0x75b   :  { %2870 = vmatpush1.msra.mxu0 %v9584_v46  ;;  %2941 = vmatpush1.msra.mxu1 %v9587_v49  ;;  %11562 = vst [vmem:[#allocation76_spill] sm:$0xff] %v9596_v4  ;;  %11563 = vst [vmem:[#allocation77_spill] sm:$0xff] %v9599_v42  ;;  %v9602_v46 = vld [vmem:[#allocation7 + $0x8] sm:$0xff]  ;;  %v9605_v49 = vld [vmem:[#allocation7 + $0x18] sm:$0xff] }
 0x75c   :  { %2871 = vmatprep.subr.mxu0 %v9590_v52  ;;  %2942 = vmatprep.subr.mxu1 %v9593_v48  ;;  %11564 = vst [vmem:[#allocation78_spill] sm:$0xff] %v9602_v46  ;;  %11565 = vst [vmem:[#allocation79_spill] sm:$0xff] %v9605_v49  ;;  %v9608_v52 = vld [vmem:[#allocation7] sm:$0xff]  ;;  %v9611_v48 = vld [vmem:[#allocation7 + $0x10] sm:$0xff] }
 0x75d   :  { %2872 = vmatpush1.msra.mxu0 %v9596_v4  ;;  %2943 = vmatpush1.msra.mxu1 %v9599_v42  ;;  %11566 = vst [vmem:[#allocation80_spill] sm:$0xff] %v9608_v52  ;;  %11567 = vst [vmem:[#allocation81_spill] sm:$0xff] %v9611_v48  ;;  %v9614_v4 = vld [vmem:[#allocation7 + $0x3e8] sm:$0xff]  ;;  %v9617_v42 = vld [vmem:[#allocation7 + $0x3f8] sm:$0xff] }
 0x75e   :  { %2873 = vmatprep.subr.mxu0 %v9602_v46  ;;  %2944 = vmatprep.subr.mxu1 %v9605_v49  ;;  %11568 = vst [vmem:[#allocation82_spill] sm:$0xff] %v9614_v4  ;;  %11569 = vst [vmem:[#allocation83_spill] sm:$0xff] %v9617_v42  ;;  %v9620_v46 = vld [vmem:[#allocation7 + $0x3e0] sm:$0xff]  ;;  %v9623_v49 = vld [vmem:[#allocation7 + $0x3f0] sm:$0xff] }
 0x75f   :  { %2874 = vmatpush1.msra.mxu0 %v9608_v52  ;;  %2945 = vmatpush1.msra.mxu1 %v9611_v48  ;;  %11570 = vst [vmem:[#allocation84_spill] sm:$0xff] %v9620_v46  ;;  %11571 = vst [vmem:[#allocation85_spill] sm:$0xff] %v9623_v49  ;;  %v9626_v52 = vld [vmem:[#allocation7 + $0x3c8] sm:$0xff]  ;;  %v9629_v48 = vld [vmem:[#allocation7 + $0x3d8] sm:$0xff] }
 0x760   :  { %2875 = vmatprep.subr.mxu0 %v9614_v4  ;;  %2946 = vmatprep.subr.mxu1 %v9617_v42  ;;  %11572 = vst [vmem:[#allocation86_spill] sm:$0xff] %v9626_v52  ;;  %11573 = vst [vmem:[#allocation87_spill] sm:$0xff] %v9629_v48  ;;  %v9632_v4 = vld [vmem:[#allocation7 + $0x3c0] sm:$0xff]  ;;  %v9635_v42 = vld [vmem:[#allocation7 + $0x3d0] sm:$0xff] }
 0x761   :  { %2876 = vmatpush2.msra.mxu0 %v9620_v46  ;;  %2947 = vmatpush2.msra.mxu1 %v9623_v49  ;;  %11574 = vst [vmem:[#allocation88_spill] sm:$0xff] %v9632_v4  ;;  %11575 = vst [vmem:[#allocation89_spill] sm:$0xff] %v9635_v42  ;;  %v9638_v46 = vld [vmem:[#allocation7 + $0x3a8] sm:$0xff]  ;;  %v9641_v49 = vld [vmem:[#allocation7 + $0x3b8] sm:$0xff] }
 0x762   :  { %2877 = vmatprep.subr.mxu0 %v9626_v52  ;;  %2948 = vmatprep.subr.mxu1 %v9629_v48  ;;  %11576 = vst [vmem:[#allocation90_spill] sm:$0xff] %v9638_v46  ;;  %11577 = vst [vmem:[#allocation91_spill] sm:$0xff] %v9641_v49  ;;  %v9644_v52 = vld [vmem:[#allocation7 + $0x3a0] sm:$0xff]  ;;  %v9647_v48 = vld [vmem:[#allocation7 + $0x3b0] sm:$0xff] }
 0x763   :  { %2878 = vmatpush2.msra.mxu0 %v9632_v4  ;;  %2949 = vmatpush2.msra.mxu1 %v9635_v42  ;;  %11578 = vst [vmem:[#allocation92_spill] sm:$0xff] %v9644_v52  ;;  %11579 = vst [vmem:[#allocation93_spill] sm:$0xff] %v9647_v48  ;;  %v9650_v4 = vld [vmem:[#allocation7 + $0x388] sm:$0xff]  ;;  %v9653_v42 = vld [vmem:[#allocation7 + $0x398] sm:$0xff] }
 0x764   :  { %2879 = vmatprep.subr.mxu0 %v9638_v46  ;;  %2950 = vmatprep.subr.mxu1 %v9641_v49  ;;  %11580 = vst [vmem:[#allocation94_spill] sm:$0xff] %v9650_v4  ;;  %11581 = vst [vmem:[#allocation95_spill] sm:$0xff] %v9653_v42  ;;  %v9656_v46 = vld [vmem:[#allocation7 + $0x380] sm:$0xff]  ;;  %v9659_v49 = vld [vmem:[#allocation7 + $0x390] sm:$0xff] }
 0x765   :  { %2880 = vmatpush2.msra.mxu0 %v9644_v52  ;;  %2951 = vmatpush2.msra.mxu1 %v9647_v48  ;;  %11582 = vst [vmem:[#allocation96_spill] sm:$0xff] %v9656_v46  ;;  %11583 = vst [vmem:[#allocation97_spill] sm:$0xff] %v9659_v49  ;;  %v9662_v52 = vld [vmem:[#allocation7 + $0x368] sm:$0xff]  ;;  %v9665_v48 = vld [vmem:[#allocation7 + $0x378] sm:$0xff] }
 0x766   :  { %2881 = vmatprep.subr.mxu0 %v9650_v4  ;;  %2952 = vmatprep.subr.mxu1 %v9653_v42  ;;  %11584 = vst [vmem:[#allocation98_spill] sm:$0xff] %v9662_v52  ;;  %11585 = vst [vmem:[#allocation99_spill] sm:$0xff] %v9665_v48  ;;  %v9668_v4 = vld [vmem:[#allocation7 + $0x360] sm:$0xff]  ;;  %v9671_v42 = vld [vmem:[#allocation7 + $0x370] sm:$0xff] }
 0x767   :  { %2882 = vmatpush2.msra.mxu0 %v9656_v46  ;;  %2953 = vmatpush2.msra.mxu1 %v9659_v49  ;;  %11586 = vst [vmem:[#allocation100_spill] sm:$0xff] %v9668_v4  ;;  %11587 = vst [vmem:[#allocation101_spill] sm:$0xff] %v9671_v42  ;;  %v9674_v46 = vld [vmem:[#allocation7 + $0x348] sm:$0xff]  ;;  %v9677_v49 = vld [vmem:[#allocation7 + $0x358] sm:$0xff] }
 0x768   :  { %2883 = vmatprep.subr.mxu0 %v9662_v52  ;;  %2954 = vmatprep.subr.mxu1 %v9665_v48  ;;  %11588 = vst [vmem:[#allocation102_spill] sm:$0xff] %v9674_v46  ;;  %11589 = vst [vmem:[#allocation103_spill] sm:$0xff] %v9677_v49  ;;  %v9680_v52 = vld [vmem:[#allocation7 + $0x340] sm:$0xff]  ;;  %v9683_v48 = vld [vmem:[#allocation7 + $0x350] sm:$0xff] }
 0x769   :  { %2884 = vmatpush2.msra.mxu0 %v9668_v4  ;;  %2955 = vmatpush2.msra.mxu1 %v9671_v42  ;;  %11590 = vst [vmem:[#allocation104_spill] sm:$0xff] %v9680_v52  ;;  %11591 = vst [vmem:[#allocation105_spill] sm:$0xff] %v9683_v48  ;;  %v9686_v4 = vld [vmem:[#allocation7 + $0x328] sm:$0xff]  ;;  %v9689_v42 = vld [vmem:[#allocation7 + $0x338] sm:$0xff] }
 0x76a   :  { %2885 = vmatprep.subr.mxu0 %v9674_v46  ;;  %2956 = vmatprep.subr.mxu1 %v9677_v49  ;;  %11592 = vst [vmem:[#allocation106_spill] sm:$0xff] %v9686_v4  ;;  %11593 = vst [vmem:[#allocation107_spill] sm:$0xff] %v9689_v42  ;;  %v9692_v46 = vld [vmem:[#allocation7 + $0x320] sm:$0xff]  ;;  %v9695_v49 = vld [vmem:[#allocation7 + $0x330] sm:$0xff] }
 0x76b   :  { %2886 = vmatpush2.msra.mxu0 %v9680_v52  ;;  %2957 = vmatpush2.msra.mxu1 %v9683_v48  ;;  %11594 = vst [vmem:[#allocation108_spill] sm:$0xff] %v9692_v46  ;;  %11595 = vst [vmem:[#allocation109_spill] sm:$0xff] %v9695_v49  ;;  %v9698_v52 = vld [vmem:[#allocation7 + $0x308] sm:$0xff]  ;;  %v9701_v48 = vld [vmem:[#allocation7 + $0x318] sm:$0xff] }
 0x76c   :  { %2887 = vmatprep.subr.mxu0 %v9686_v4  ;;  %2958 = vmatprep.subr.mxu1 %v9689_v42  ;;  %11596 = vst [vmem:[#allocation110_spill] sm:$0xff] %v9698_v52  ;;  %11597 = vst [vmem:[#allocation111_spill] sm:$0xff] %v9701_v48  ;;  %v9704_v4 = vld [vmem:[#allocation7 + $0x300] sm:$0xff]  ;;  %v9707_v42 = vld [vmem:[#allocation7 + $0x310] sm:$0xff] }
 0x76d   :  { %2888 = vmatpush2.msra.mxu0 %v9692_v46  ;;  %2959 = vmatpush2.msra.mxu1 %v9695_v49  ;;  %11598 = vst [vmem:[#allocation112_spill] sm:$0xff] %v9704_v4  ;;  %11599 = vst [vmem:[#allocation113_spill] sm:$0xff] %v9707_v42  ;;  %v9710_v46 = vld [vmem:[#allocation7 + $0x2e8] sm:$0xff]  ;;  %v9713_v49 = vld [vmem:[#allocation7 + $0x2f8] sm:$0xff] }
 0x76e   :  { %2889 = vmatprep.subr.mxu0 %v9698_v52  ;;  %2960 = vmatprep.subr.mxu1 %v9701_v48  ;;  %11600 = vst [vmem:[#allocation114_spill] sm:$0xff] %v9710_v46  ;;  %11601 = vst [vmem:[#allocation115_spill] sm:$0xff] %v9713_v49  ;;  %v9716_v52 = vld [vmem:[#allocation7 + $0x2e0] sm:$0xff]  ;;  %v9719_v48 = vld [vmem:[#allocation7 + $0x2f0] sm:$0xff] }
 0x76f   :  { %2890 = vmatpush2.msra.mxu0 %v9704_v4  ;;  %2961 = vmatpush2.msra.mxu1 %v9707_v42  ;;  %11602 = vst [vmem:[#allocation116_spill] sm:$0xff] %v9716_v52  ;;  %11603 = vst [vmem:[#allocation117_spill] sm:$0xff] %v9719_v48  ;;  %v9722_v4 = vld [vmem:[#allocation7 + $0x2c8] sm:$0xff]  ;;  %v9725_v42 = vld [vmem:[#allocation7 + $0x2d8] sm:$0xff] }
 0x770   :  { %2891 = vmatprep.subr.mxu0 %v9710_v46  ;;  %2962 = vmatprep.subr.mxu1 %v9713_v49  ;;  %11604 = vst [vmem:[#allocation118_spill] sm:$0xff] %v9722_v4  ;;  %11605 = vst [vmem:[#allocation119_spill] sm:$0xff] %v9725_v42  ;;  %v9728_v46 = vld [vmem:[#allocation7 + $0x2c0] sm:$0xff]  ;;  %v9731_v49 = vld [vmem:[#allocation7 + $0x2d0] sm:$0xff] }
 0x771   :  { %2892 = vmatpush2.msra.mxu0 %v9716_v52  ;;  %2963 = vmatpush2.msra.mxu1 %v9719_v48  ;;  %11606 = vst [vmem:[#allocation120_spill] sm:$0xff] %v9728_v46  ;;  %11607 = vst [vmem:[#allocation121_spill] sm:$0xff] %v9731_v49  ;;  %v9734_v52 = vld [vmem:[#allocation7 + $0x2a8] sm:$0xff]  ;;  %v9737_v48 = vld [vmem:[#allocation7 + $0x2b8] sm:$0xff] }
 0x772   :  { %2893 = vmatprep.subr.mxu0 %v9722_v4  ;;  %2964 = vmatprep.subr.mxu1 %v9725_v42  ;;  %11608 = vst [vmem:[#allocation122_spill] sm:$0xff] %v9734_v52  ;;  %11609 = vst [vmem:[#allocation123_spill] sm:$0xff] %v9737_v48  ;;  %v9740_v4 = vld [vmem:[#allocation7 + $0x2a0] sm:$0xff]  ;;  %v9743_v42 = vld [vmem:[#allocation7 + $0x2b0] sm:$0xff] }
 0x773   :  { %2894 = vmatpush2.msra.mxu0 %v9728_v46  ;;  %2965 = vmatpush2.msra.mxu1 %v9731_v49  ;;  %11610 = vst [vmem:[#allocation124_spill] sm:$0xff] %v9740_v4  ;;  %11611 = vst [vmem:[#allocation125_spill] sm:$0xff] %v9743_v42  ;;  %v9746_v46 = vld [vmem:[#allocation7 + $0x288] sm:$0xff]  ;;  %v9749_v49 = vld [vmem:[#allocation7 + $0x298] sm:$0xff] }
 0x774   :  { %2895 = vmatprep.subr.mxu0 %v9734_v52  ;;  %2966 = vmatprep.subr.mxu1 %v9737_v48  ;;  %11612 = vst [vmem:[#allocation126_spill] sm:$0xff] %v9746_v46  ;;  %11613 = vst [vmem:[#allocation127_spill] sm:$0xff] %v9749_v49  ;;  %v9752_v52 = vld [vmem:[#allocation7 + $0x280] sm:$0xff]  ;;  %v9755_v48 = vld [vmem:[#allocation7 + $0x290] sm:$0xff] }
 0x775   :  { %2896 = vmatpush2.msra.mxu0 %v9740_v4  ;;  %2967 = vmatpush2.msra.mxu1 %v9743_v42  ;;  %11614 = vst [vmem:[#allocation128_spill] sm:$0xff] %v9752_v52  ;;  %11615 = vst [vmem:[#allocation129_spill] sm:$0xff] %v9755_v48  ;;  %v9758_v4 = vld [vmem:[#allocation7 + $0x268] sm:$0xff]  ;;  %v9761_v42 = vld [vmem:[#allocation7 + $0x278] sm:$0xff] }
 0x776   :  { %2897 = vmatprep.subr.mxu0 %v9746_v46  ;;  %2968 = vmatprep.subr.mxu1 %v9749_v49  ;;  %11616 = vst [vmem:[#allocation130_spill] sm:$0xff] %v9758_v4  ;;  %11617 = vst [vmem:[#allocation131_spill] sm:$0xff] %v9761_v42  ;;  %v9764_v46 = vld [vmem:[#allocation7 + $0x260] sm:$0xff]  ;;  %v9767_v49 = vld [vmem:[#allocation7 + $0x270] sm:$0xff] }
 0x777   :  { %2898 = vmatpush2.msra.mxu0 %v9752_v52  ;;  %2969 = vmatpush2.msra.mxu1 %v9755_v48  ;;  %11618 = vst [vmem:[#allocation132_spill] sm:$0xff] %v9764_v46  ;;  %11619 = vst [vmem:[#allocation133_spill] sm:$0xff] %v9767_v49  ;;  %v9770_v52 = vld [vmem:[#allocation7 + $0x248] sm:$0xff]  ;;  %v9773_v48 = vld [vmem:[#allocation7 + $0x258] sm:$0xff] }
 0x778   :  { %2899 = vmatprep.subr.mxu0 %v9758_v4  ;;  %2970 = vmatprep.subr.mxu1 %v9761_v42  ;;  %11620 = vst [vmem:[#allocation134_spill] sm:$0xff] %v9770_v52  ;;  %11621 = vst [vmem:[#allocation135_spill] sm:$0xff] %v9773_v48  ;;  %v9776_v4 = vld [vmem:[#allocation7 + $0x240] sm:$0xff]  ;;  %v9779_v42 = vld [vmem:[#allocation7 + $0x250] sm:$0xff] }
 0x779   :  { %2900 = vmatpush2.msra.mxu0 %v9764_v46  ;;  %2971 = vmatpush2.msra.mxu1 %v9767_v49  ;;  %11622 = vst [vmem:[#allocation136_spill] sm:$0xff] %v9776_v4  ;;  %11623 = vst [vmem:[#allocation137_spill] sm:$0xff] %v9779_v42  ;;  %v9782_v46 = vld [vmem:[#allocation7 + $0x228] sm:$0xff]  ;;  %v9785_v49 = vld [vmem:[#allocation7 + $0x238] sm:$0xff] }
 0x77a   :  { %2901 = vmatprep.subr.mxu0 %v9770_v52  ;;  %2972 = vmatprep.subr.mxu1 %v9773_v48  ;;  %11624 = vst [vmem:[#allocation138_spill] sm:$0xff] %v9782_v46  ;;  %11625 = vst [vmem:[#allocation139_spill] sm:$0xff] %v9785_v49  ;;  %v9788_v52 = vld [vmem:[#allocation7 + $0x220] sm:$0xff]  ;;  %v9791_v48 = vld [vmem:[#allocation7 + $0x230] sm:$0xff] }
 0x77b   :  { %2902 = vmatpush2.msra.mxu0 %v9776_v4  ;;  %2973 = vmatpush2.msra.mxu1 %v9779_v42  ;;  %11626 = vst [vmem:[#allocation140_spill] sm:$0xff] %v9788_v52  ;;  %11627 = vst [vmem:[#allocation141_spill] sm:$0xff] %v9791_v48  ;;  %v9794_v4 = vld [vmem:[#allocation7 + $0x208] sm:$0xff]  ;;  %v9797_v42 = vld [vmem:[#allocation7 + $0x218] sm:$0xff] }
 0x77c   :  { %2903 = vmatprep.subr.mxu0 %v9782_v46  ;;  %2974 = vmatprep.subr.mxu1 %v9785_v49  ;;  %11628 = vst [vmem:[#allocation142_spill] sm:$0xff] %v9794_v4  ;;  %11629 = vst [vmem:[#allocation143_spill] sm:$0xff] %v9797_v42  ;;  %v9800_v46 = vld [vmem:[#allocation7 + $0x200] sm:$0xff]  ;;  %v9803_v49 = vld [vmem:[#allocation7 + $0x210] sm:$0xff] }
 0x77d   :  { %2904 = vmatpush2.msra.mxu0 %v9788_v52  ;;  %2975 = vmatpush2.msra.mxu1 %v9791_v48  ;;  %11630 = vst [vmem:[#allocation144_spill] sm:$0xff] %v9800_v46  ;;  %11631 = vst [vmem:[#allocation145_spill] sm:$0xff] %v9803_v49 }
 0x77e   :  { %2905 = vmatprep.subr.mxu0 %v9794_v4  ;;  %2976 = vmatprep.subr.mxu1 %v9797_v42 }
 0x77f   :  { %2906 = vmatpush2.msra.mxu0 %v9800_v46  ;;  %2977 = vmatpush2.msra.mxu1 %v9803_v49 }
 0x780   :  { %3009 = vmatprep.subr.mxu0 %v9238_v29  ;;  %3080 = vmatprep.subr.mxu1 %v9241_v34 }
 0x7de   :  { %v2573_v48 = vpop.f32.mrf.mxu0  ;;  %v2644_v42 = vpop.f32.mrf.mxu1 }
 0x7df   :  { %v2574_v52 = vadd.f32 %v2573_v48, %v11493_v13  ;;  %v2645_v29 = vadd.f32 %v2644_v42, %v11496_v37 }
 0x7e0   :  { %v2575_v4 = vpop.f32.mrf.mxu0  ;;  %v2646_v46 = vpop.f32.mrf.mxu1 }
 0x7e1   :  { %v5373_v40 = vmul.f32 -1.442695, %v2574_v52  ;;  %v2576_v39 = vadd.f32 %v2575_v4, %v11494_v57  ;;  %v2647_v36 = vadd.f32 %v2646_v46, %v11495_v59  ;;  %v11633_v59 = vld [vmem:[#allocation178_spill] sm:$0xff] }
 0x7e3   :  { %5688 = vpow2.f32 %v5373_v40  ;;  %v5374_v38 = vmul.f32 -1.442695, %v2576_v39  ;;  %v5375_v35 = vmul.f32 -1.442695, %v2647_v36  ;;  %v11632_v40 = vld [vmem:[#allocation176_spill] sm:$0xff] }
 0x7e5   :  { %5690 = vpow2.f32 %v5374_v38 }
 0x7e6   :  { %5692 = vpow2.f32 %v5375_v35 }
 0x7f0   :  { %v5689_v49 = vpop.eup %5688 }
 0x7f1   :  { %v2652_v33 = vadd.f32 1.0, %v5689_v49 }
 0x7f2   :  { %v5691_v34 = vpop.eup %5690 }
 0x7f3   :  { %5694 = vrcp.f32 %v2652_v33  ;;  %v2658_v48 = vadd.f32 1.0, %v5691_v34  ;;  %v5693_v52 = vpop.eup %5692 }
 0x7f4   :  { %5696 = vtanh.f32 %v2645_v29  ;;  %v2665_v13 = vadd.f32 1.0, %v5693_v52 }
 0x7f5   :  { %5698 = vrcp.f32 %v2658_v48  ;;  %v11634_v48 = vld [vmem:[#allocation179_spill] sm:$0xff] }
 0x7ff   :  { %v2739_v4 = vpop.f32.mrf.mxu0  ;;  %v2810_v33 = vpop.f32.mrf.mxu1 }
 0x800   :  { %v5695_v57 = vpop.eup %5694  ;;  %v2815_v39 = vadd.f32 %v2739_v4, %v11632_v40  ;;  %v11635_v4 = vld [vmem:[#allocation177_spill] sm:$0xff] }
 0x801   :  { %v5697_v38 = vpop.eup %5696  ;;  %v2741_v51 = vpop.f32.mrf.mxu0  ;;  %v2817_v40 = vadd.f32 %v2810_v33, %v11635_v4  ;;  %v6344_v4 = vld [vmem:[#allocation4 + $0x1e0] sm:$0xff] }
 0x802   :  { %v5699_v46 = vpop.eup %5698  ;;  %v5376_v36 = vmul.f32 -1.442695, %v2815_v39  ;;  %v2816_v55 = vadd.f32 %v2741_v51, %v11633_v59  ;;  %v2669_v42 = vmul.f32 %v5697_v38, %v5695_v57  ;;  %v2812_v34 = vpop.f32.mrf.mxu1 }
 0x803   :  { %v2668_v35 = vmul.f32 %v5699_v46, %v9251_v28  ;;  %v2818_v52 = vadd.f32 %v2812_v34, %v11634_v48 }
 0x804   :  { %5700 = vpow2.f32 %v5376_v36  ;;  %v5377_v49 = vmul.f32 -1.442695, %v2816_v55 }
 0x805   :  { %v9815_v29 = vadd.f32 %v2669_v42, %v2668_v35  ;;  %5702 = vrcp.f32 %v2665_v13  ;;  %v5378_v39 = vmul.f32 -1.442695, %v2818_v52 }
 0x806   :  { %5704 = vpow2.f32 %v5377_v49 }
 0x807   :  { %5706 = vtanh.f32 %v9815_v29 }
 0x808   :  { %5708 = vtanh.f32 %v2817_v40  ;;  %v6345_v40 = vld [vmem:[#allocation4 + $0x1f0] sm:$0xff] }
 0x809   :  { %5710 = vpow2.f32 %v5378_v39  ;;  %v6346_v39 = vld [vmem:[#allocation4 + $0x1c8] sm:$0xff] }
 0x811   :  { %v5701_v37 = vpop.eup %5700 }
 0x812   :  { %v5703_v51 = vpop.eup %5702  ;;  %v2822_v57 = vadd.f32 1.0, %v5701_v37 }
 0x813   :  { %v5705_v59 = vpop.eup %5704 }
 0x814   :  { %v5707_v28 = vpop.eup %5706  ;;  %5712 = vrcp.f32 %v2822_v57  ;;  %v2828_v55 = vadd.f32 1.0, %v5705_v59  ;;  %v6349_v57 = vld [vmem:[#allocation4 + $0x1d0] sm:$0xff]  ;;  %v6350_v59 = vld [vmem:[#allocation4 + $0x1a8] sm:$0xff] }
 0x815   :  { %v9820_v38 = vmul.f32 %v5707_v28, %v5703_v51  ;;  %v5709_v13 = vpop.eup %5708  ;;  %v6348_v51 = vld [vmem:[#allocation4 + $0x1c0] sm:$0xff]  ;;  %v6351_v28 = vld [vmem:[#allocation4 + $0x1b8] sm:$0xff] }
 0x816   :  { %5714 = vrcp.f32 %v2828_v55  ;;  %v5711_v46 = vpop.eup %5710  ;;  %v6352_v55 = vld [vmem:[#allocation4 + $0x1a0] sm:$0xff] }
 0x817   :  { %2907 = vmatprep.mubr.f32.mxu0 %v9820_v38  ;;  %2978 = vmatprep.mubr.f32.mxu1 %v9820_v38  ;;  %v2835_v33 = vadd.f32 1.0, %v5711_v46  ;;  %v6354_v46 = vld [vmem:[#allocation4 + $0x188] sm:$0xff] }
 0x819   :  { %5716 = vrcp.f32 %v2835_v33  ;;  %v6358_v33 = vld [vmem:[#allocation4 + $0x168] sm:$0xff] }
 0x821   :  { %v5713_v36 = vpop.eup %5712 }
 0x822   :  { %v2839_v42 = vmul.f32 %v5713_v36, %v5709_v13  ;;  %v6353_v13 = vld [vmem:[#allocation4 + $0x1b0] sm:$0xff]  ;;  %v6355_v36 = vld [vmem:[#allocation4 + $0x198] sm:$0xff] }
 0x823   :  { %v5715_v35 = vpop.eup %5714 }
 0x824   :  { %v2838_v37 = vmul.f32 %v5715_v35, %v9261_v45  ;;  %v6347_v45 = vld [vmem:[#allocation4 + $0x1d8] sm:$0xff]  ;;  %v6357_v35 = vld [vmem:[#allocation4 + $0x190] sm:$0xff] }
 0x826   :  { %v9825_v49 = vadd.f32 %v2839_v42, %v2838_v37  ;;  %v5717_v34 = vpop.eup %5716  ;;  %v6356_v42 = vld [vmem:[#allocation4 + $0x180] sm:$0xff]  ;;  %v6359_v37 = vld [vmem:[#allocation4 + $0x178] sm:$0xff] }
 0x828   :  { %5718 = vtanh.f32 %v9825_v49 }
 0x835   :  { %v5719_v48 = vpop.eup %5718 }
 0x836   :  { %v9828_v52 = vmul.f32 %v5719_v48, %v5717_v34  ;;  %v6360_v34 = vld [vmem:[#allocation4 + $0x160] sm:$0xff]  ;;  %v6361_v48 = vld [vmem:[#allocation4 + $0x170] sm:$0xff] }
 0x838   :  { %2908 = vmatmul.mubr.f32.vlgmr.msra.gmra.mxu0 %v9828_v52  ;;  %2979 = vmatmul.mubr.f32.vlgmr.msra.gmra.mxu1 %v9828_v52 }
 0x839   :  { %3010 = vmatpush1.msra.mxu0 %v6344_v4  ;;  %3081 = vmatpush1.msra.mxu1 %v6345_v40  ;;  %v11679_v4 = vld [vmem:[#allocation58_spill] sm:$0xff]  ;;  %v11680_v40 = vld [vmem:[#allocation59_spill] sm:$0xff] }
 0x83a   :  { %3011 = vmatprep.subr.mxu0 %v6346_v39  ;;  %3082 = vmatprep.subr.mxu1 %v6347_v45  ;;  %v11681_v39 = vld [vmem:[#allocation60_spill] sm:$0xff]  ;;  %v11682_v45 = vld [vmem:[#allocation61_spill] sm:$0xff] }
 0x83b   :  { %3012 = vmatpush1.msra.mxu0 %v6348_v51  ;;  %3083 = vmatpush1.msra.mxu1 %v6349_v57  ;;  %v11683_v51 = vld [vmem:[#allocation62_spill] sm:$0xff]  ;;  %v11684_v57 = vld [vmem:[#allocation63_spill] sm:$0xff] }
 0x83c   :  { %3013 = vmatprep.subr.mxu0 %v6350_v59  ;;  %3084 = vmatprep.subr.mxu1 %v6351_v28  ;;  %v11685_v59 = vld [vmem:[#allocation64_spill] sm:$0xff]  ;;  %v11686_v28 = vld [vmem:[#allocation65_spill] sm:$0xff] }
 0x83d   :  { %3014 = vmatpush1.msra.mxu0 %v6352_v55  ;;  %3085 = vmatpush1.msra.mxu1 %v6353_v13  ;;  %v11687_v55 = vld [vmem:[#allocation66_spill] sm:$0xff]  ;;  %v11688_v13 = vld [vmem:[#allocation67_spill] sm:$0xff] }
 0x83e   :  { %3015 = vmatprep.subr.mxu0 %v6354_v46  ;;  %3086 = vmatprep.subr.mxu1 %v6355_v36  ;;  %v11689_v46 = vld [vmem:[#allocation68_spill] sm:$0xff]  ;;  %v11690_v36 = vld [vmem:[#allocation69_spill] sm:$0xff] }
 0x83f   :  { %3016 = vmatpush1.msra.mxu0 %v6356_v42  ;;  %3087 = vmatpush1.msra.mxu1 %v6357_v35  ;;  %v11691_v42 = vld [vmem:[#allocation70_spill] sm:$0xff]  ;;  %v11692_v35 = vld [vmem:[#allocation71_spill] sm:$0xff] }
 0x840   :  { %3017 = vmatprep.subr.mxu0 %v6358_v33  ;;  %3088 = vmatprep.subr.mxu1 %v6359_v37  ;;  %v11693_v33 = vld [vmem:[#allocation72_spill] sm:$0xff]  ;;  %v11694_v37 = vld [vmem:[#allocation73_spill] sm:$0xff] }
 0x841   :  { %3018 = vmatpush1.msra.mxu0 %v6360_v34  ;;  %3089 = vmatpush1.msra.mxu1 %v6361_v48  ;;  %v11695_v34 = vld [vmem:[#allocation74_spill] sm:$0xff]  ;;  %v11696_v48 = vld [vmem:[#allocation75_spill] sm:$0xff] }
 0x842   :  { %3019 = vmatprep.subr.mxu0 %v9286_v16  ;;  %3090 = vmatprep.subr.mxu1 %v9289_v58  ;;  %v11636_v16 = vld [vmem:[#allocation164_spill] sm:$0xff]  ;;  %v11637_v58 = vmov 0.0  }
 0x843   :  { %3020 = vmatpush1.msra.mxu0 %v9292_v9  ;;  %3091 = vmatpush1.msra.mxu1 %v9295_v11  ;;  %v11638_v9 = vld [vmem:[#allocation166_spill] sm:$0xff]  ;;  %v11639_v11 = vld [vmem:[#allocation167_spill] sm:$0xff] }
 0x844   :  { %3021 = vmatprep.subr.mxu0 %v9298_v8  ;;  %3092 = vmatprep.subr.mxu1 %v9301_v5  ;;  %v11640_v8 = vld [vmem:[#allocation165_spill] sm:$0xff]  ;;  %v11641_v5 = vld [vmem:[#allocation168_spill] sm:$0xff] }
 0x845   :  { %3022 = vmatpush1.msra.mxu0 %v9304_v0  ;;  %3093 = vmatpush1.msra.mxu1 %v9307_v20  ;;  %v11642_v0 = vld [vmem:[#allocation170_spill] sm:$0xff]  ;;  %v11643_v20 = vld [vmem:[#allocation171_spill] sm:$0xff] }
 0x846   :  { %3023 = vmatprep.subr.mxu0 %v9310_v30  ;;  %3094 = vmatprep.subr.mxu1 %v9313_v17  ;;  %v11644_v30 = vld [vmem:[#allocation169_spill] sm:$0xff]  ;;  %v11645_v17 = vld [vmem:[#allocation163_spill] sm:$0xff] }
 0x847   :  { %3024 = vmatpush1.msra.mxu0 %v9316_v7  ;;  %3095 = vmatpush1.msra.mxu1 %v9319_v12  ;;  %v11646_v7 = vld [vmem:[#allocation161_spill] sm:$0xff]  ;;  %v11647_v12 = vld [vmem:[#allocation26_spill] sm:$0xff] }
 0x848   :  { %3025 = vmatprep.subr.mxu0 %v9322_v2  ;;  %3096 = vmatprep.subr.mxu1 %v9325_v10  ;;  %v11648_v2 = vld [vmem:[#allocation27_spill] sm:$0xff]  ;;  %v11649_v10 = vld [vmem:[#allocation28_spill] sm:$0xff] }
 0x849   :  { %3026 = vmatpush1.msra.mxu0 %v9328_v1  ;;  %3097 = vmatpush1.msra.mxu1 %v9331_v26  ;;  %v11650_v1 = vld [vmem:[#allocation29_spill] sm:$0xff]  ;;  %v11651_v26 = vld [vmem:[#allocation30_spill] sm:$0xff] }
 0x84a   :  { %3027 = vmatprep.subr.mxu0 %v9334_v3  ;;  %3098 = vmatprep.subr.mxu1 %v9337_v25  ;;  %v11652_v3 = vld [vmem:[#allocation31_spill] sm:$0xff]  ;;  %v11653_v25 = vld [vmem:[#allocation32_spill] sm:$0xff] }
 0x84b   :  { %3028 = vmatpush1.msra.mxu0 %v9340_v24  ;;  %3099 = vmatpush1.msra.mxu1 %v9343_v53  ;;  %v11654_v24 = vld [vmem:[#allocation33_spill] sm:$0xff]  ;;  %v11655_v53 = vld [vmem:[#allocation34_spill] sm:$0xff] }
 0x84c   :  { %3029 = vmatprep.subr.mxu0 %v9346_v6  ;;  %3100 = vmatprep.subr.mxu1 %v9349_v22  ;;  %v11656_v6 = vld [vmem:[#allocation35_spill] sm:$0xff]  ;;  %v11657_v22 = vld [vmem:[#allocation36_spill] sm:$0xff] }
 0x84d   :  { %3030 = vmatpush1.msra.mxu0 %v9352_v23  ;;  %3101 = vmatpush1.msra.mxu1 %v9355_v15  ;;  %v11658_v23 = vld [vmem:[#allocation37_spill] sm:$0xff]  ;;  %v11659_v15 = vld [vmem:[#allocation38_spill] sm:$0xff] }
 0x84e   :  { %3031 = vmatprep.subr.mxu0 %v9358_v50  ;;  %3102 = vmatprep.subr.mxu1 %v9361_v21  ;;  %v11660_v50 = vld [vmem:[#allocation39_spill] sm:$0xff]  ;;  %v11661_v21 = vld [vmem:[#allocation40_spill] sm:$0xff] }
 0x84f   :  { %3032 = vmatpush1.msra.mxu0 %v9364_v32  ;;  %3103 = vmatpush1.msra.mxu1 %v9367_v14  ;;  %v11662_v32 = vld [vmem:[#allocation41_spill] sm:$0xff]  ;;  %v11663_v14 = vld [vmem:[#allocation42_spill] sm:$0xff] }
 0x850   :  { %3033 = vmatprep.subr.mxu0 %v9370_v18  ;;  %3104 = vmatprep.subr.mxu1 %v9373_v19  ;;  %v11664_v18 = vld [vmem:[#allocation43_spill] sm:$0xff]  ;;  %v11665_v19 = vld [vmem:[#allocation44_spill] sm:$0xff] }
 0x851   :  { %3034 = vmatpush1.msra.mxu0 %v9376_v27  ;;  %3105 = vmatpush1.msra.mxu1 %v9379_v56  ;;  %v11666_v27 = vld [vmem:[#allocation45_spill] sm:$0xff]  ;;  %v11667_v56 = vld [vmem:[#allocation46_spill] sm:$0xff] }
 0x852   :  { %3035 = vmatprep.subr.mxu0 %v9382_v62  ;;  %3106 = vmatprep.subr.mxu1 %v9385_v60  ;;  %v11668_v62 = vld [vmem:[#allocation47_spill] sm:$0xff]  ;;  %v11669_v60 = vld [vmem:[#allocation48_spill] sm:$0xff] }
 0x853   :  { %3036 = vmatpush1.msra.mxu0 %v9388_v61  ;;  %3107 = vmatpush1.msra.mxu1 %v9391_v44  ;;  %v11670_v61 = vld [vmem:[#allocation49_spill] sm:$0xff]  ;;  %v11671_v44 = vld [vmem:[#allocation50_spill] sm:$0xff] }
 0x854   :  { %3037 = vmatprep.subr.mxu0 %v9394_v54  ;;  %3108 = vmatprep.subr.mxu1 %v9397_v31  ;;  %v11672_v54 = vld [vmem:[#allocation51_spill] sm:$0xff]  ;;  %v11673_v31 = vld [vmem:[#allocation52_spill] sm:$0xff] }
 0x855   :  { %3038 = vmatpush1.msra.mxu0 %v9400_v47  ;;  %3109 = vmatpush1.msra.mxu1 %v9403_v63  ;;  %v11674_v47 = vld [vmem:[#allocation53_spill] sm:$0xff]  ;;  %v11675_v63 = vld [vmem:[#allocation54_spill] sm:$0xff] }
 0x856   :  { %3039 = vmatprep.subr.mxu0 %v9406_v41  ;;  %3110 = vmatprep.subr.mxu1 %v9409_v43  ;;  %v11676_v41 = vld [vmem:[#allocation55_spill] sm:$0xff]  ;;  %v11677_v43 = vld [vmem:[#allocation56_spill] sm:$0xff] }
 0x857   :  { %3040 = vmatpush1.msra.mxu0 %v11636_v16  ;;  %3073 = vmatprep.mubr.f32.mxu0 %v11637_v58  ;;  %v11697_v16 = vld [vmem:[#allocation76_spill] sm:$0xff] }
 0x858   :  { %3111 = vmatpush1.msra.mxu1 %v11638_v9  ;;  %3144 = vmatprep.mubr.f32.mxu1 %v11637_v58  ;;  %v11698_v58 = vld [vmem:[#allocation77_spill] sm:$0xff]  ;;  %v11699_v9 = vld [vmem:[#allocation78_spill] sm:$0xff] }
 0x859   :  { %3074 = vmatmul.mubr.f32.vlgmr.msra.gmra.mxu0 %v9828_v52  ;;  %3145 = vmatmul.mubr.f32.vlgmr.msra.gmra.mxu1 %v9828_v52  ;;  %v11678_v52 = vld [vmem:[#allocation57_spill] sm:$0xff] }
 0x85a   :  { %3179 = vmatprep.subr.mxu0 %v11639_v11  ;;  %3250 = vmatprep.subr.mxu1 %v11640_v8  ;;  %v11700_v11 = vld [vmem:[#allocation79_spill] sm:$0xff]  ;;  %v11701_v8 = vld [vmem:[#allocation80_spill] sm:$0xff] }
 0x85b   :  { %3180 = vmatpush1.msra.mxu0 %v11641_v5  ;;  %3251 = vmatpush1.msra.mxu1 %v11642_v0  ;;  %v11702_v5 = vld [vmem:[#allocation81_spill] sm:$0xff]  ;;  %v11703_v0 = vld [vmem:[#allocation82_spill] sm:$0xff] }
 0x85c   :  { %3181 = vmatprep.subr.mxu0 %v11643_v20  ;;  %3252 = vmatprep.subr.mxu1 %v11644_v30  ;;  %v11704_v20 = vld [vmem:[#allocation83_spill] sm:$0xff]  ;;  %v11705_v30 = vld [vmem:[#allocation84_spill] sm:$0xff] }
 0x85d   :  { %3182 = vmatpush1.msra.mxu0 %v11645_v17  ;;  %3253 = vmatpush1.msra.mxu1 %v11646_v7  ;;  %v11706_v17 = vld [vmem:[#allocation85_spill] sm:$0xff]  ;;  %v11707_v7 = vld [vmem:[#allocation86_spill] sm:$0xff] }
 0x85e   :  { %3183 = vmatprep.subr.mxu0 %v11647_v12  ;;  %3254 = vmatprep.subr.mxu1 %v11648_v2  ;;  %v11708_v12 = vld [vmem:[#allocation87_spill] sm:$0xff]  ;;  %v11709_v2 = vld [vmem:[#allocation88_spill] sm:$0xff] }
 0x85f   :  { %3184 = vmatpush1.msra.mxu0 %v11649_v10  ;;  %3255 = vmatpush1.msra.mxu1 %v11650_v1  ;;  %v11710_v10 = vld [vmem:[#allocation89_spill] sm:$0xff]  ;;  %v11711_v1 = vld [vmem:[#allocation90_spill] sm:$0xff] }
 0x860   :  { %3185 = vmatprep.subr.mxu0 %v11651_v26  ;;  %3256 = vmatprep.subr.mxu1 %v11652_v3  ;;  %v11712_v26 = vld [vmem:[#allocation91_spill] sm:$0xff]  ;;  %v11713_v3 = vld [vmem:[#allocation92_spill] sm:$0xff] }
 0x861   :  { %3186 = vmatpush1.msra.mxu0 %v11653_v25  ;;  %3257 = vmatpush1.msra.mxu1 %v11654_v24  ;;  %v11714_v25 = vld [vmem:[#allocation93_spill] sm:$0xff]  ;;  %v11715_v24 = vld [vmem:[#allocation94_spill] sm:$0xff] }
 0x862   :  { %3187 = vmatprep.subr.mxu0 %v11655_v53  ;;  %3258 = vmatprep.subr.mxu1 %v11656_v6  ;;  %v11716_v53 = vld [vmem:[#allocation95_spill] sm:$0xff]  ;;  %v11717_v6 = vld [vmem:[#allocation96_spill] sm:$0xff] }
 0x863   :  { %3188 = vmatpush1.msra.mxu0 %v11657_v22  ;;  %3259 = vmatpush1.msra.mxu1 %v11658_v23  ;;  %v11718_v22 = vld [vmem:[#allocation97_spill] sm:$0xff]  ;;  %v11719_v23 = vld [vmem:[#allocation98_spill] sm:$0xff] }
 0x864   :  { %3189 = vmatprep.subr.mxu0 %v11659_v15  ;;  %3260 = vmatprep.subr.mxu1 %v11660_v50  ;;  %v11720_v15 = vld [vmem:[#allocation99_spill] sm:$0xff]  ;;  %v11721_v50 = vld [vmem:[#allocation100_spill] sm:$0xff] }
 0x865   :  { %3190 = vmatpush1.msra.mxu0 %v11661_v21  ;;  %3261 = vmatpush1.msra.mxu1 %v11662_v32  ;;  %v11722_v21 = vld [vmem:[#allocation101_spill] sm:$0xff]  ;;  %v11723_v32 = vld [vmem:[#allocation102_spill] sm:$0xff] }
 0x866   :  { %3191 = vmatprep.subr.mxu0 %v11663_v14  ;;  %3262 = vmatprep.subr.mxu1 %v11664_v18  ;;  %v11724_v14 = vld [vmem:[#allocation103_spill] sm:$0xff]  ;;  %v11725_v18 = vld [vmem:[#allocation104_spill] sm:$0xff] }
 0x867   :  { %3192 = vmatpush1.msra.mxu0 %v11665_v19  ;;  %3263 = vmatpush1.msra.mxu1 %v11666_v27  ;;  %v11726_v19 = vld [vmem:[#allocation105_spill] sm:$0xff]  ;;  %v11727_v27 = vld [vmem:[#allocation106_spill] sm:$0xff] }
 0x868   :  { %3193 = vmatprep.subr.mxu0 %v11667_v56  ;;  %3264 = vmatprep.subr.mxu1 %v11668_v62  ;;  %v11728_v56 = vld [vmem:[#allocation107_spill] sm:$0xff]  ;;  %v11729_v62 = vld [vmem:[#allocation108_spill] sm:$0xff] }
 0x869   :  { %3194 = vmatpush1.msra.mxu0 %v11669_v60  ;;  %3265 = vmatpush1.msra.mxu1 %v11670_v61  ;;  %v11730_v60 = vld [vmem:[#allocation109_spill] sm:$0xff]  ;;  %v11731_v61 = vld [vmem:[#allocation110_spill] sm:$0xff] }
 0x86a   :  { %3195 = vmatprep.subr.mxu0 %v11671_v44  ;;  %3266 = vmatprep.subr.mxu1 %v11672_v54  ;;  %v11732_v44 = vld [vmem:[#allocation111_spill] sm:$0xff]  ;;  %v11733_v54 = vld [vmem:[#allocation112_spill] sm:$0xff] }
 0x86b   :  { %3196 = vmatpush1.msra.mxu0 %v11673_v31  ;;  %3267 = vmatpush1.msra.mxu1 %v11674_v47  ;;  %v11734_v31 = vld [vmem:[#allocation113_spill] sm:$0xff]  ;;  %v11735_v47 = vld [vmem:[#allocation114_spill] sm:$0xff] }
 0x86c   :  { %3197 = vmatprep.subr.mxu0 %v11675_v63  ;;  %3268 = vmatprep.subr.mxu1 %v11676_v41  ;;  %v11736_v63 = vld [vmem:[#allocation115_spill] sm:$0xff]  ;;  %v11737_v41 = vld [vmem:[#allocation116_spill] sm:$0xff] }
 0x86d   :  { %3198 = vmatpush1.msra.mxu0 %v11677_v43  ;;  %3269 = vmatpush1.msra.mxu1 %v11678_v52  ;;  %v11738_v43 = vld [vmem:[#allocation117_spill] sm:$0xff]  ;;  %v11739_v52 = vld [vmem:[#allocation118_spill] sm:$0xff] }
 0x86e   :  { %3199 = vmatprep.subr.mxu0 %v11679_v4  ;;  %3270 = vmatprep.subr.mxu1 %v11680_v40  ;;  %v11740_v4 = vld [vmem:[#allocation119_spill] sm:$0xff]  ;;  %v11741_v40 = vld [vmem:[#allocation120_spill] sm:$0xff] }
 0x86f   :  { %3200 = vmatpush1.msra.mxu0 %v11681_v39  ;;  %3271 = vmatpush1.msra.mxu1 %v11682_v45  ;;  %v11742_v39 = vld [vmem:[#allocation121_spill] sm:$0xff]  ;;  %v11743_v45 = vld [vmem:[#allocation122_spill] sm:$0xff] }
 0x870   :  { %3201 = vmatprep.subr.mxu0 %v11683_v51  ;;  %3272 = vmatprep.subr.mxu1 %v11684_v57  ;;  %v11744_v51 = vld [vmem:[#allocation123_spill] sm:$0xff]  ;;  %v11745_v57 = vld [vmem:[#allocation124_spill] sm:$0xff] }
 0x871   :  { %3202 = vmatpush1.msra.mxu0 %v11685_v59  ;;  %3273 = vmatpush1.msra.mxu1 %v11686_v28  ;;  %v11746_v59 = vld [vmem:[#allocation125_spill] sm:$0xff]  ;;  %v11747_v28 = vld [vmem:[#allocation126_spill] sm:$0xff] }
 0x872   :  { %3203 = vmatprep.subr.mxu0 %v11687_v55  ;;  %3274 = vmatprep.subr.mxu1 %v11688_v13  ;;  %v11748_v55 = vld [vmem:[#allocation127_spill] sm:$0xff]  ;;  %v11749_v13 = vld [vmem:[#allocation128_spill] sm:$0xff] }
 0x873   :  { %3204 = vmatpush1.msra.mxu0 %v11689_v46  ;;  %3275 = vmatpush1.msra.mxu1 %v11690_v36  ;;  %v11750_v46 = vld [vmem:[#allocation129_spill] sm:$0xff]  ;;  %v11751_v36 = vld [vmem:[#allocation130_spill] sm:$0xff] }
 0x874   :  { %3205 = vmatprep.subr.mxu0 %v11691_v42  ;;  %3276 = vmatprep.subr.mxu1 %v11692_v35  ;;  %v11752_v42 = vld [vmem:[#allocation131_spill] sm:$0xff]  ;;  %v11753_v35 = vld [vmem:[#allocation132_spill] sm:$0xff] }
 0x875   :  { %3206 = vmatpush1.msra.mxu0 %v11693_v33  ;;  %3277 = vmatpush1.msra.mxu1 %v11694_v37  ;;  %v11754_v33 = vld [vmem:[#allocation133_spill] sm:$0xff]  ;;  %v11755_v37 = vld [vmem:[#allocation134_spill] sm:$0xff] }
 0x876   :  { %3207 = vmatprep.subr.mxu0 %v11695_v34  ;;  %3278 = vmatprep.subr.mxu1 %v11696_v48  ;;  %v11756_v34 = vld [vmem:[#allocation135_spill] sm:$0xff]  ;;  %v11757_v48 = vld [vmem:[#allocation136_spill] sm:$0xff] }
 0x877   :  { %3208 = vmatpush1.msra.mxu0 %v11697_v16  ;;  %3279 = vmatpush1.msra.mxu1 %v11698_v58  ;;  %v11758_v16 = vld [vmem:[#allocation137_spill] sm:$0xff]  ;;  %v11759_v58 = vld [vmem:[#allocation138_spill] sm:$0xff] }
 0x878   :  { %3209 = vmatprep.subr.mxu0 %v11699_v9  ;;  %3280 = vmatprep.subr.mxu1 %v11700_v11  ;;  %v11760_v9 = vld [vmem:[#allocation139_spill] sm:$0xff]  ;;  %v11761_v11 = vld [vmem:[#allocation140_spill] sm:$0xff] }
 0x879   :  { %3210 = vmatpush1.msra.mxu0 %v11701_v8  ;;  %3281 = vmatpush1.msra.mxu1 %v11702_v5  ;;  %v11762_v8 = vld [vmem:[#allocation141_spill] sm:$0xff]  ;;  %v11763_v5 = vld [vmem:[#allocation142_spill] sm:$0xff] }
 0x87a   :  { %3211 = vmatprep.subr.mxu0 %v11703_v0  ;;  %3282 = vmatprep.subr.mxu1 %v11704_v20  ;;  %v11764_v0 = vld [vmem:[#allocation143_spill] sm:$0xff]  ;;  %v11765_v20 = vld [vmem:[#allocation144_spill] sm:$0xff] }
 0x87b   :  { %3212 = vmatpush2.msra.mxu0 %v11705_v30  ;;  %3283 = vmatpush2.msra.mxu1 %v11706_v17  ;;  %v11766_v30 = vld [vmem:[#allocation145_spill] sm:$0xff]  ;;  %v3436_v17 = vld [vmem:[#allocation10 + $0x2d8] sm:$0xff] }
 0x87c   :  { %3213 = vmatprep.subr.mxu0 %v11707_v7  ;;  %3284 = vmatprep.subr.mxu1 %v11708_v12  ;;  %v3628_v7 = vld [vmem:[#allocation10 + $0x8d8] sm:$0xff] }
 0x87d   :  { %3214 = vmatpush2.msra.mxu0 %v11709_v2  ;;  %3285 = vmatpush2.msra.mxu1 %v11710_v10  ;;  %v11767_v2 = vld [vmem:[#allocation21_spill] sm:$0xff] }
 0x87e   :  { %3215 = vmatprep.subr.mxu0 %v11711_v1  ;;  %3286 = vmatprep.subr.mxu1 %v11712_v26 }
 0x87f   :  { %3216 = vmatpush2.msra.mxu0 %v11713_v3  ;;  %3287 = vmatpush2.msra.mxu1 %v11714_v25  ;;  %v11768_v3 = vld [vmem:[#allocation22_spill] sm:$0xff] }
 0x880   :  { %3217 = vmatprep.subr.mxu0 %v11715_v24  ;;  %3288 = vmatprep.subr.mxu1 %v11716_v53 }
 0x881   :  { %3218 = vmatpush2.msra.mxu0 %v11717_v6  ;;  %3289 = vmatpush2.msra.mxu1 %v11718_v22  ;;  %v11769_v22 = vld [vmem:[#allocation23_spill] sm:$0xff] }
 0x882   :  { %3219 = vmatprep.subr.mxu0 %v11719_v23  ;;  %3290 = vmatprep.subr.mxu1 %v11720_v15 }
 0x883   :  { %3220 = vmatpush2.msra.mxu0 %v11721_v50  ;;  %3291 = vmatpush2.msra.mxu1 %v11722_v21  ;;  %v11770_v21 = vld [vmem:[#allocation24_spill] sm:$0xff] }
 0x884   :  { %3221 = vmatprep.subr.mxu0 %v11723_v32  ;;  %3292 = vmatprep.subr.mxu1 %v11724_v14 }
 0x885   :  { %3222 = vmatpush2.msra.mxu0 %v11725_v18  ;;  %3293 = vmatpush2.msra.mxu1 %v11726_v19 }
 0x886   :  { %3223 = vmatprep.subr.mxu0 %v11727_v27  ;;  %3294 = vmatprep.subr.mxu1 %v11728_v56 }
 0x887   :  { %3224 = vmatpush2.msra.mxu0 %v11729_v62  ;;  %3295 = vmatpush2.msra.mxu1 %v11730_v60  ;;  %v11771_v60 = vld [vmem:[#allocation180_spill] sm:$0xff] }
 0x888   :  { %3225 = vmatprep.subr.mxu0 %v11731_v61  ;;  %3296 = vmatprep.subr.mxu1 %v11732_v44 }
 0x889   :  { %3226 = vmatpush2.msra.mxu0 %v11733_v54  ;;  %3297 = vmatpush2.msra.mxu1 %v11734_v31 }
 0x88a   :  { %3227 = vmatprep.subr.mxu0 %v11735_v47  ;;  %3298 = vmatprep.subr.mxu1 %v11736_v63 }
 0x88b   :  { %3228 = vmatpush2.msra.mxu0 %v11737_v41  ;;  %3299 = vmatpush2.msra.mxu1 %v11738_v43  ;;  %v11772_v41 = vld [vmem:[#allocation182_spill] sm:$0xff] }
 0x88c   :  { %3229 = vmatprep.subr.mxu0 %v11739_v52  ;;  %3300 = vmatprep.subr.mxu1 %v11740_v4 }
 0x88d   :  { %3230 = vmatpush2.msra.mxu0 %v11741_v40  ;;  %3301 = vmatpush2.msra.mxu1 %v11742_v39 }
 0x88e   :  { %3231 = vmatprep.subr.mxu0 %v11743_v45  ;;  %3302 = vmatprep.subr.mxu1 %v11744_v51 }
 0x88f   :  { %3232 = vmatpush2.msra.mxu0 %v11745_v57  ;;  %3303 = vmatpush2.msra.mxu1 %v11746_v59  ;;  %v11773_v57 = vld [vmem:[#allocation183_spill] sm:$0xff] }
 0x890   :  { %3233 = vmatprep.subr.mxu0 %v11747_v28  ;;  %3304 = vmatprep.subr.mxu1 %v11748_v55  ;;  %v11774_v28 = vld [vmem:[#allocation181_spill] sm:$0xff] }
 0x891   :  { %3234 = vmatpush2.msra.mxu0 %v11749_v13  ;;  %3305 = vmatpush2.msra.mxu1 %v11750_v46 }
 0x892   :  { %3235 = vmatprep.subr.mxu0 %v11751_v36  ;;  %3306 = vmatprep.subr.mxu1 %v11752_v42 }
 0x893   :  { %3236 = vmatpush2.msra.mxu0 %v11753_v35  ;;  %3307 = vmatpush2.msra.mxu1 %v11754_v33 }
 0x894   :  { %3237 = vmatprep.subr.mxu0 %v11755_v37  ;;  %3308 = vmatprep.subr.mxu1 %v11756_v34 }
 0x895   :  { %3238 = vmatpush2.msra.mxu0 %v11757_v48  ;;  %3309 = vmatpush2.msra.mxu1 %v11758_v16 }
 0x896   :  { %3239 = vmatprep.subr.mxu0 %v11759_v58  ;;  %3310 = vmatprep.subr.mxu1 %v11760_v9 }
 0x897   :  { %3240 = vmatpush2.msra.mxu0 %v11761_v11  ;;  %3311 = vmatpush2.msra.mxu1 %v11762_v8 }
 0x898   :  { %3241 = vmatprep.subr.mxu0 %v11763_v5  ;;  %3312 = vmatprep.subr.mxu1 %v11764_v0 }
 0x899   :  { %3242 = vmatpush2.msra.mxu0 %v11765_v20  ;;  %3313 = vmatpush2.msra.mxu1 %v11766_v30 }
 0x89a   :  { %4145 = vmatprep.subr.mxu0 %v3436_v17  ;;  %4216 = vmatprep.subr.mxu1 %v3628_v7  ;;  %v3435_v17 = vld [vmem:[#allocation10 + $0x2d0] sm:$0xff] }
 0x89b   :  { %v3627_v7 = vld [vmem:[#allocation10 + $0x8d0] sm:$0xff] }
 0x8f8   :  { %v2909_v12 = vpop.f32.mrf.mxu0  ;;  %v2980_v24 = vpop.f32.mrf.mxu1 }
 0x8f9   :  { %v2910_v10 = vadd.f32 %v2909_v12, %v11767_v2  ;;  %v2981_v32 = vadd.f32 %v2980_v24, %v11770_v21  ;;  %v3430_v12 = vld [vmem:[#allocation10 + $0x2a8] sm:$0xff]  ;;  %v3616_v24 = vld [vmem:[#allocation10 + $0x878] sm:$0xff] }
 0x8fa   :  { %v2911_v1 = vpop.f32.mrf.mxu0  ;;  %v2982_v6 = vpop.f32.mrf.mxu1 }
 0x8fb   :  { %v5379_v26 = vmul.f32 -1.442695, %v2910_v10  ;;  %v2912_v25 = vadd.f32 %v2911_v1, %v11768_v3  ;;  %v2983_v23 = vadd.f32 %v2982_v6, %v11769_v22  ;;  %v3622_v10 = vld [vmem:[#allocation10 + $0x8a8] sm:$0xff]  ;;  %v3429_v1 = vld [vmem:[#allocation10 + $0x2a0] sm:$0xff]  ;;  %v3423_v6 = vld [vmem:[#allocation10 + $0x270] sm:$0xff] }
 0x8fd   :  { %5720 = vpow2.f32 %v5379_v26  ;;  %v5380_v53 = vmul.f32 -1.442695, %v2912_v25  ;;  %v5381_v15 = vmul.f32 -1.442695, %v2983_v23  ;;  %v3621_v26 = vld [vmem:[#allocation10 + $0x8a0] sm:$0xff]  ;;  %v3615_v23 = vld [vmem:[#allocation10 + $0x870] sm:$0xff] }
 0x8fe   :  { %v11775_v25 = vld [vmem:[#allocation160_spill] sm:$0xff] }
 0x8ff   :  { %5722 = vpow2.f32 %v5380_v53  ;;  %v11776_v53 = vld [vmem:[#allocation157_spill] sm:$0xff] }
 0x900   :  { %5724 = vpow2.f32 %v5381_v15  ;;  %v3418_v15 = vld [vmem:[#allocation10 + $0x248] sm:$0xff] }
 0x90a   :  { %v5721_v50 = vpop.eup %5720 }
 0x90b   :  { %v2988_v14 = vadd.f32 1.0, %v5721_v50  ;;  %v3610_v50 = vld [vmem:[#allocation10 + $0x848] sm:$0xff] }
 0x90c   :  { %v5723_v18 = vpop.eup %5722 }
 0x90d   :  { %5726 = vrcp.f32 %v2988_v14  ;;  %v2994_v19 = vadd.f32 1.0, %v5723_v18  ;;  %v5725_v27 = vpop.eup %5724  ;;  %v3609_v14 = vld [vmem:[#allocation10 + $0x840] sm:$0xff]  ;;  %v3412_v18 = vld [vmem:[#allocation10 + $0x218] sm:$0xff] }
 0x90e   :  { %5728 = vtanh.f32 %v2981_v32  ;;  %v3001_v54 = vadd.f32 1.0, %v5725_v27  ;;  %v3417_v32 = vld [vmem:[#allocation10 + $0x240] sm:$0xff]  ;;  %v3411_v27 = vld [vmem:[#allocation10 + $0x210] sm:$0xff] }
 0x90f   :  { %5730 = vrcp.f32 %v2994_v19  ;;  %v3604_v19 = vld [vmem:[#allocation10 + $0x818] sm:$0xff] }
 0x919   :  { %v3075_v56 = vpop.f32.mrf.mxu0  ;;  %v3146_v40 = vpop.f32.mrf.mxu1 }
 0x91a   :  { %v5727_v62 = vpop.eup %5726  ;;  %v3151_v61 = vadd.f32 %v3075_v56, %v11771_v60  ;;  %v3153_v55 = vadd.f32 %v3146_v40, %v11774_v28  ;;  %v3603_v56 = vld [vmem:[#allocation10 + $0x810] sm:$0xff]  ;;  %v3598_v60 = vld [vmem:[#allocation10 + $0x7e8] sm:$0xff]  ;;  %v3388_v40 = vld [vmem:[#allocation10 + $0x158] sm:$0xff] }
 0x91b   :  { %v5729_v44 = vpop.eup %5728  ;;  %v3077_v31 = vpop.f32.mrf.mxu0  ;;  %v3574_v28 = vld [vmem:[#allocation10 + $0x728] sm:$0xff] }
 0x91c   :  { %v5731_v47 = vpop.eup %5730  ;;  %v5382_v63 = vmul.f32 -1.442695, %v3151_v61  ;;  %v3152_v43 = vadd.f32 %v3077_v31, %v11772_v41  ;;  %v3005_v52 = vmul.f32 %v5729_v44, %v5727_v62  ;;  %v3148_v51 = vpop.f32.mrf.mxu1  ;;  %v3406_v62 = vld [vmem:[#allocation10 + $0x1e8] sm:$0xff]  ;;  %v3405_v61 = vld [vmem:[#allocation10 + $0x1e0] sm:$0xff]  ;;  %v3592_v31 = vld [vmem:[#allocation10 + $0x7b8] sm:$0xff] }
 0x91d   :  { %v3004_v4 = vmul.f32 %v5731_v47, %v9815_v29  ;;  %v3154_v59 = vadd.f32 %v3148_v51, %v11773_v57  ;;  %v3597_v44 = vld [vmem:[#allocation10 + $0x7e0] sm:$0xff]  ;;  %v3399_v47 = vld [vmem:[#allocation10 + $0x1b0] sm:$0xff]  ;;  %v3394_v41 = vld [vmem:[#allocation10 + $0x188] sm:$0xff] }
 0x91e   :  { %5732 = vpow2.f32 %v5382_v63  ;;  %v5383_v39 = vmul.f32 -1.442695, %v3152_v43  ;;  %v3591_v63 = vld [vmem:[#allocation10 + $0x7b0] sm:$0xff]  ;;  %v3586_v43 = vld [vmem:[#allocation10 + $0x788] sm:$0xff] }
 0x91f   :  { %v10015_v45 = vadd.f32 %v3005_v52, %v3004_v4  ;;  %5734 = vrcp.f32 %v3001_v54  ;;  %v5384_v13 = vmul.f32 -1.442695, %v3154_v59  ;;  %v3400_v54 = vld [vmem:[#allocation10 + $0x1b8] sm:$0xff]  ;;  %v3393_v52 = vld [vmem:[#allocation10 + $0x180] sm:$0xff]  ;;  %v3387_v51 = vld [vmem:[#allocation10 + $0x150] sm:$0xff] }
 0x920   :  { %5736 = vpow2.f32 %v5383_v39  ;;  %v3585_v4 = vld [vmem:[#allocation10 + $0x780] sm:$0xff]  ;;  %v3580_v39 = vld [vmem:[#allocation10 + $0x758] sm:$0xff]  ;;  %v3579_v57 = vld [vmem:[#allocation10 + $0x750] sm:$0xff] }
 0x921   :  { %5738 = vtanh.f32 %v10015_v45  ;;  %v3382_v59 = vld [vmem:[#allocation10 + $0x128] sm:$0xff] }
 0x922   :  { %5740 = vtanh.f32 %v3153_v55  ;;  %v3381_v55 = vld [vmem:[#allocation10 + $0x120] sm:$0xff] }
 0x923   :  { %5742 = vpow2.f32 %v5384_v13  ;;  %v3573_v13 = vld [vmem:[#allocation10 + $0x720] sm:$0xff] }
 0x92b   :  { %v5733_v46 = vpop.eup %5732 }
 0x92c   :  { %v5735_v36 = vpop.eup %5734  ;;  %v3158_v42 = vadd.f32 1.0, %v5733_v46  ;;  %v3376_v46 = vld [vmem:[#allocation10 + $0xf8] sm:$0xff] }
 0x92d   :  { %v5737_v29 = vpop.eup %5736 }
 0x92e   :  { %v5739_v35 = vpop.eup %5738  ;;  %5744 = vrcp.f32 %v3158_v42  ;;  %v3164_v33 = vadd.f32 1.0, %v5737_v29  ;;  %v3375_v42 = vld [vmem:[#allocation10 + $0xf0] sm:$0xff] }
 0x92f   :  { %v10020_v37 = vmul.f32 %v5739_v35, %v5735_v36  ;;  %v5741_v34 = vpop.eup %5740  ;;  %v3568_v36 = vld [vmem:[#allocation10 + $0x6f8] sm:$0xff]  ;;  %v3567_v29 = vld [vmem:[#allocation10 + $0x6f0] sm:$0xff]  ;;  %v3370_v35 = vld [vmem:[#allocation10 + $0xc8] sm:$0xff] }
 0x930   :  { %5746 = vrcp.f32 %v3164_v33  ;;  %v5743_v48 = vpop.eup %5742  ;;  %v3562_v33 = vld [vmem:[#allocation10 + $0x6c8] sm:$0xff] }
 0x931   :  { %3243 = vmatprep.mubr.f32.mxu0 %v10020_v37  ;;  %3314 = vmatprep.mubr.f32.mxu1 %v10020_v37  ;;  %v3171_v11 = vadd.f32 1.0, %v5743_v48  ;;  %v3561_v48 = vld [vmem:[#allocation10 + $0x6c0] sm:$0xff] }
 0x933   :  { %5748 = vrcp.f32 %v3171_v11  ;;  %v3555_v11 = vld [vmem:[#allocation10 + $0x690] sm:$0xff] }
 0x93b   :  { %v5745_v16 = vpop.eup %5744 }
 0x93c   :  { %v3175_v58 = vmul.f32 %v5745_v16, %v5741_v34  ;;  %v3369_v34 = vld [vmem:[#allocation10 + $0xc0] sm:$0xff]  ;;  %v3364_v16 = vld [vmem:[#allocation10 + $0x98] sm:$0xff] }
 0x93d   :  { %v5747_v9 = vpop.eup %5746 }
 0x93e   :  { %v3174_v8 = vmul.f32 %v5747_v9, %v9825_v49  ;;  %v3424_v49 = vld [vmem:[#allocation10 + $0x278] sm:$0xff]  ;;  %v3363_v9 = vld [vmem:[#allocation10 + $0x90] sm:$0xff] }
 0x940   :  { %v3176_v5 = vadd.f32 %v3175_v58, %v3174_v8  ;;  %v5749_v0 = vpop.eup %5748  ;;  %v3556_v58 = vld [vmem:[#allocation10 + $0x698] sm:$0xff]  ;;  %v3358_v8 = vld [vmem:[#allocation10 + $0x68] sm:$0xff] }
 0x942   :  { %5750 = vtanh.f32 %v3176_v5  ;;  %v3550_v5 = vld [vmem:[#allocation10 + $0x668] sm:$0xff] }
 0x94f   :  { %v5751_v20 = vpop.eup %5750 }
 0x950   :  { %v3178_v30 = vmul.f32 %v5751_v20, %v5749_v0  ;;  %v3357_v0 = vld [vmem:[#allocation10 + $0x60] sm:$0xff] }
 0x951   :  { %v3549_v20 = vld [vmem:[#allocation10 + $0x660] sm:$0xff] }
 0x952   :  { %3244 = vmatmul.mubr.f32.vlgmr.msra.gmra.mxu0 %v3178_v30  ;;  %3315 = vmatmul.mubr.f32.vlgmr.msra.gmra.mxu1 %v3178_v30  ;;  %v3352_v30 = vld [vmem:[#allocation10 + $0x38] sm:$0xff] }
 0x953   :  { %4146 = vmatpush1.msra.mxu0 %v3435_v17  ;;  %4217 = vmatpush1.msra.mxu1 %v3627_v7  ;;  %v3544_v17 = vld [vmem:[#allocation10 + $0x638] sm:$0xff]  ;;  %v3351_v7 = vld [vmem:[#allocation10 + $0x30] sm:$0xff] }
 0x954   :  { %4147 = vmatprep.subr.mxu0 %v3430_v12  ;;  %4209 = vmatprep.mubr.f32.mxu0 %v11775_v25  ;;  %v3543_v12 = vld [vmem:[#allocation10 + $0x630] sm:$0xff] }
 0x955   :  { %4218 = vmatprep.subr.mxu1 %v3622_v10  ;;  %4280 = vmatprep.mubr.f32.mxu1 %v11776_v53  ;;  %v3346_v10 = vld [vmem:[#allocation10 + $0x8] sm:$0xff] }
 0x956   :  { %4148 = vmatpush1.msra.mxu0 %v3429_v1  ;;  %4219 = vmatpush1.msra.mxu1 %v3621_v26  ;;  %v3538_v1 = vld [vmem:[#allocation10 + $0x608] sm:$0xff]  ;;  %v3345_v26 = vld [vmem:[#allocation10] sm:$0xff] }
 0x957   :  { %4149 = vmatprep.subr.mxu0 %v3424_v49  ;;  %4220 = vmatprep.subr.mxu1 %v3616_v24  ;;  %v3537_v49 = vld [vmem:[#allocation10 + $0x600] sm:$0xff]  ;;  %v3532_v24 = vld [vmem:[#allocation10 + $0x5d8] sm:$0xff] }
 0x958   :  { %4150 = vmatpush1.msra.mxu0 %v3423_v6  ;;  %4221 = vmatpush1.msra.mxu1 %v3615_v23  ;;  %v3724_v6 = vld [vmem:[#allocation10 + $0xbd8] sm:$0xff]  ;;  %v3531_v23 = vld [vmem:[#allocation10 + $0x5d0] sm:$0xff] }
 0x959   :  { %4151 = vmatprep.subr.mxu0 %v3418_v15  ;;  %4222 = vmatprep.subr.mxu1 %v3610_v50  ;;  %v3723_v15 = vld [vmem:[#allocation10 + $0xbd0] sm:$0xff]  ;;  %v3526_v50 = vld [vmem:[#allocation10 + $0x5a8] sm:$0xff] }
 0x95a   :  { %4152 = vmatpush1.msra.mxu0 %v3417_v32  ;;  %4223 = vmatpush1.msra.mxu1 %v3609_v14  ;;  %v3718_v32 = vld [vmem:[#allocation10 + $0xba8] sm:$0xff]  ;;  %v3525_v14 = vld [vmem:[#allocation10 + $0x5a0] sm:$0xff] }
 0x95b   :  { %4153 = vmatprep.subr.mxu0 %v3412_v18  ;;  %4224 = vmatprep.subr.mxu1 %v3604_v19  ;;  %v3717_v18 = vld [vmem:[#allocation10 + $0xba0] sm:$0xff]  ;;  %v3520_v19 = vld [vmem:[#allocation10 + $0x578] sm:$0xff] }
 0x95c   :  { %4154 = vmatpush1.msra.mxu0 %v3411_v27  ;;  %4225 = vmatpush1.msra.mxu1 %v3603_v56  ;;  %v3712_v27 = vld [vmem:[#allocation10 + $0xb78] sm:$0xff]  ;;  %v3519_v56 = vld [vmem:[#allocation10 + $0x570] sm:$0xff] }
 0x95d   :  { %4155 = vmatprep.subr.mxu0 %v3406_v62  ;;  %4226 = vmatprep.subr.mxu1 %v3598_v60  ;;  %v3711_v62 = vld [vmem:[#allocation10 + $0xb70] sm:$0xff]  ;;  %v3514_v60 = vld [vmem:[#allocation10 + $0x548] sm:$0xff] }
 0x95e   :  { %4156 = vmatpush1.msra.mxu0 %v3405_v61  ;;  %4227 = vmatpush1.msra.mxu1 %v3597_v44  ;;  %v3706_v61 = vld [vmem:[#allocation10 + $0xb48] sm:$0xff]  ;;  %v3513_v44 = vld [vmem:[#allocation10 + $0x540] sm:$0xff] }
 0x95f   :  { %4157 = vmatprep.subr.mxu0 %v3400_v54  ;;  %4228 = vmatprep.subr.mxu1 %v3592_v31  ;;  %v3705_v54 = vld [vmem:[#allocation10 + $0xb40] sm:$0xff]  ;;  %v3508_v31 = vld [vmem:[#allocation10 + $0x518] sm:$0xff] }
 0x960   :  { %4158 = vmatpush1.msra.mxu0 %v3399_v47  ;;  %4229 = vmatpush1.msra.mxu1 %v3591_v63  ;;  %v3700_v47 = vld [vmem:[#allocation10 + $0xb18] sm:$0xff]  ;;  %v3507_v63 = vld [vmem:[#allocation10 + $0x510] sm:$0xff] }
 0x961   :  { %4159 = vmatprep.subr.mxu0 %v3394_v41  ;;  %4230 = vmatprep.subr.mxu1 %v3586_v43  ;;  %v3699_v41 = vld [vmem:[#allocation10 + $0xb10] sm:$0xff]  ;;  %v3502_v43 = vld [vmem:[#allocation10 + $0x4e8] sm:$0xff] }
 0x962   :  { %4160 = vmatpush1.msra.mxu0 %v3393_v52  ;;  %4231 = vmatpush1.msra.mxu1 %v3585_v4  ;;  %v3694_v52 = vld [vmem:[#allocation10 + $0xae8] sm:$0xff]  ;;  %v3501_v4 = vld [vmem:[#allocation10 + $0x4e0] sm:$0xff] }
 0x963   :  { %4161 = vmatprep.subr.mxu0 %v3388_v40  ;;  %4232 = vmatprep.subr.mxu1 %v3580_v39  ;;  %v3693_v40 = vld [vmem:[#allocation10 + $0xae0] sm:$0xff]  ;;  %v3496_v39 = vld [vmem:[#allocation10 + $0x4b8] sm:$0xff] }
 0x964   :  { %4162 = vmatpush1.msra.mxu0 %v3387_v51  ;;  %4233 = vmatpush1.msra.mxu1 %v3579_v57  ;;  %v3688_v51 = vld [vmem:[#allocation10 + $0xab8] sm:$0xff]  ;;  %v3495_v57 = vld [vmem:[#allocation10 + $0x4b0] sm:$0xff] }
 0x965   :  { %4163 = vmatprep.subr.mxu0 %v3382_v59  ;;  %4234 = vmatprep.subr.mxu1 %v3574_v28  ;;  %v3687_v59 = vld [vmem:[#allocation10 + $0xab0] sm:$0xff]  ;;  %v3490_v28 = vld [vmem:[#allocation10 + $0x488] sm:$0xff] }
 0x966   :  { %4164 = vmatpush1.msra.mxu0 %v3381_v55  ;;  %4235 = vmatpush1.msra.mxu1 %v3573_v13  ;;  %v3682_v55 = vld [vmem:[#allocation10 + $0xa88] sm:$0xff]  ;;  %v3489_v13 = vld [vmem:[#allocation10 + $0x480] sm:$0xff] }
 0x967   :  { %4165 = vmatprep.subr.mxu0 %v3376_v46  ;;  %4236 = vmatprep.subr.mxu1 %v3568_v36  ;;  %v3681_v46 = vld [vmem:[#allocation10 + $0xa80] sm:$0xff]  ;;  %v3484_v36 = vld [vmem:[#allocation10 + $0x458] sm:$0xff] }
 0x968   :  { %4166 = vmatpush1.msra.mxu0 %v3375_v42  ;;  %4237 = vmatpush1.msra.mxu1 %v3567_v29  ;;  %v3676_v42 = vld [vmem:[#allocation10 + $0xa58] sm:$0xff]  ;;  %v3483_v29 = vld [vmem:[#allocation10 + $0x450] sm:$0xff] }
 0x969   :  { %4167 = vmatprep.subr.mxu0 %v3370_v35  ;;  %4238 = vmatprep.subr.mxu1 %v3562_v33  ;;  %v3675_v35 = vld [vmem:[#allocation10 + $0xa50] sm:$0xff]  ;;  %v3478_v33 = vld [vmem:[#allocation10 + $0x428] sm:$0xff] }
 0x96a   :  { %4168 = vmatpush1.msra.mxu0 %v3369_v34  ;;  %4239 = vmatpush1.msra.mxu1 %v3561_v48  ;;  %v3670_v34 = vld [vmem:[#allocation10 + $0xa28] sm:$0xff]  ;;  %v3477_v48 = vld [vmem:[#allocation10 + $0x420] sm:$0xff] }
 0x96b   :  { %4169 = vmatprep.subr.mxu0 %v3364_v16  ;;  %4240 = vmatprep.subr.mxu1 %v3556_v58  ;;  %v3669_v16 = vld [vmem:[#allocation10 + $0xa20] sm:$0xff]  ;;  %v3472_v58 = vld [vmem:[#allocation10 + $0x3f8] sm:$0xff] }
 0x96c   :  { %4170 = vmatpush1.msra.mxu0 %v3363_v9  ;;  %4241 = vmatpush1.msra.mxu1 %v3555_v11  ;;  %v3664_v9 = vld [vmem:[#allocation10 + $0x9f8] sm:$0xff]  ;;  %v3471_v11 = vld [vmem:[#allocation10 + $0x3f0] sm:$0xff] }
 0x96d   :  { %4171 = vmatprep.subr.mxu0 %v3358_v8  ;;  %4242 = vmatprep.subr.mxu1 %v3550_v5  ;;  %v3663_v8 = vld [vmem:[#allocation10 + $0x9f0] sm:$0xff]  ;;  %v3466_v5 = vld [vmem:[#allocation10 + $0x3c8] sm:$0xff] }
 0x96e   :  { %4172 = vmatpush1.msra.mxu0 %v3357_v0  ;;  %4243 = vmatpush1.msra.mxu1 %v3549_v20  ;;  %v3658_v0 = vld [vmem:[#allocation10 + $0x9c8] sm:$0xff]  ;;  %v3465_v20 = vld [vmem:[#allocation10 + $0x3c0] sm:$0xff] }
 0x96f   :  { %4173 = vmatprep.subr.mxu0 %v3352_v30  ;;  %4244 = vmatprep.subr.mxu1 %v3544_v17  ;;  %v3657_v30 = vld [vmem:[#allocation10 + $0x9c0] sm:$0xff]  ;;  %v3460_v17 = vld [vmem:[#allocation10 + $0x398] sm:$0xff] }
 0x970   :  { %4174 = vmatpush1.msra.mxu0 %v3351_v7  ;;  %4245 = vmatpush1.msra.mxu1 %v3543_v12  ;;  %v3652_v7 = vld [vmem:[#allocation10 + $0x998] sm:$0xff]  ;;  %v3459_v12 = vld [vmem:[#allocation10 + $0x390] sm:$0xff] }
 0x971   :  { %4175 = vmatprep.subr.mxu0 %v3346_v10  ;;  %4246 = vmatprep.subr.mxu1 %v3538_v1  ;;  %v3651_v10 = vld [vmem:[#allocation10 + $0x990] sm:$0xff]  ;;  %v3454_v1 = vld [vmem:[#allocation10 + $0x368] sm:$0xff] }
 0x972   :  { %4176 = vmatpush1.msra.mxu0 %v3345_v26  ;;  %4247 = vmatpush1.msra.mxu1 %v3537_v49  ;;  %v3646_v26 = vld [vmem:[#allocation10 + $0x968] sm:$0xff]  ;;  %v3453_v49 = vld [vmem:[#allocation10 + $0x360] sm:$0xff] }
 0x973   :  { %4177 = vmatprep.subr.mxu0 %v3532_v24  ;;  %4248 = vmatprep.subr.mxu1 %v3724_v6  ;;  %v3645_v24 = vld [vmem:[#allocation10 + $0x960] sm:$0xff]  ;;  %v3448_v6 = vld [vmem:[#allocation10 + $0x338] sm:$0xff] }
 0x974   :  { %4178 = vmatpush2.msra.mxu0 %v3531_v23  ;;  %4249 = vmatpush2.msra.mxu1 %v3723_v15  ;;  %v3640_v23 = vld [vmem:[#allocation10 + $0x938] sm:$0xff]  ;;  %v3447_v15 = vld [vmem:[#allocation10 + $0x330] sm:$0xff] }
 0x975   :  { %4179 = vmatprep.subr.mxu0 %v3526_v50  ;;  %4250 = vmatprep.subr.mxu1 %v3718_v32  ;;  %v3639_v50 = vld [vmem:[#allocation10 + $0x930] sm:$0xff]  ;;  %v3442_v32 = vld [vmem:[#allocation10 + $0x308] sm:$0xff] }
 0x976   :  { %4180 = vmatpush2.msra.mxu0 %v3525_v14  ;;  %4251 = vmatpush2.msra.mxu1 %v3717_v18  ;;  %v3634_v14 = vld [vmem:[#allocation10 + $0x908] sm:$0xff]  ;;  %v3441_v18 = vld [vmem:[#allocation10 + $0x300] sm:$0xff] }
 0x977   :  { %4181 = vmatprep.subr.mxu0 %v3520_v19  ;;  %4252 = vmatprep.subr.mxu1 %v3712_v27  ;;  %v3633_v19 = vld [vmem:[#allocation10 + $0x900] sm:$0xff]  ;;  %v3820_v27 = vld [vmem:[#allocation10 + $0xed8] sm:$0xff] }
 0x978   :  { %4182 = vmatpush2.msra.mxu0 %v3519_v56  ;;  %4253 = vmatpush2.msra.mxu1 %v3711_v62  ;;  %v3819_v56 = vld [vmem:[#allocation10 + $0xed0] sm:$0xff]  ;;  %v4012_v62 = vld [vmem:[#allocation10 + $0x14d8] sm:$0xff] }
 0x979   :  { %4183 = vmatprep.subr.mxu0 %v3514_v60  ;;  %4254 = vmatprep.subr.mxu1 %v3706_v61  ;;  %v11777_v60 = vld [vmem:[#allocation25_spill] sm:$0xff]  ;;  %v11778_v61 = vld [vmem:[#allocation162_spill] sm:$0xff] }
 0x97a   :  { %4184 = vmatpush2.msra.mxu0 %v3513_v44  ;;  %4255 = vmatpush2.msra.mxu1 %v3705_v54  ;;  %v3814_v44 = vld [vmem:[#allocation10 + $0xea8] sm:$0xff]  ;;  %v4011_v54 = vld [vmem:[#allocation10 + $0x14d0] sm:$0xff] }
 0x97b   :  { %4185 = vmatprep.subr.mxu0 %v3508_v31  ;;  %4256 = vmatprep.subr.mxu1 %v3700_v47  ;;  %v3813_v31 = vld [vmem:[#allocation10 + $0xea0] sm:$0xff]  ;;  %v4006_v47 = vld [vmem:[#allocation10 + $0x14a8] sm:$0xff] }
 0x97c   :  { %4186 = vmatpush2.msra.mxu0 %v3507_v63  ;;  %4257 = vmatpush2.msra.mxu1 %v3699_v41  ;;  %v3808_v63 = vld [vmem:[#allocation10 + $0xe78] sm:$0xff]  ;;  %v4005_v41 = vld [vmem:[#allocation10 + $0x14a0] sm:$0xff] }
 0x97d   :  { %4187 = vmatprep.subr.mxu0 %v3502_v43  ;;  %4258 = vmatprep.subr.mxu1 %v3694_v52  ;;  %v3807_v43 = vld [vmem:[#allocation10 + $0xe70] sm:$0xff]  ;;  %v4000_v52 = vld [vmem:[#allocation10 + $0x1478] sm:$0xff] }
 0x97e   :  { %4188 = vmatpush2.msra.mxu0 %v3501_v4  ;;  %4259 = vmatpush2.msra.mxu1 %v3693_v40  ;;  %v3802_v4 = vld [vmem:[#allocation10 + $0xe48] sm:$0xff]  ;;  %v3999_v40 = vld [vmem:[#allocation10 + $0x1470] sm:$0xff] }
 0x97f   :  { %4189 = vmatprep.subr.mxu0 %v3496_v39  ;;  %4260 = vmatprep.subr.mxu1 %v3688_v51  ;;  %v3801_v39 = vld [vmem:[#allocation10 + $0xe40] sm:$0xff]  ;;  %v3994_v51 = vld [vmem:[#allocation10 + $0x1448] sm:$0xff] }
 0x980   :  { %4190 = vmatpush2.msra.mxu0 %v3495_v57  ;;  %4261 = vmatpush2.msra.mxu1 %v3687_v59  ;;  %v3796_v57 = vld [vmem:[#allocation10 + $0xe18] sm:$0xff]  ;;  %v3993_v59 = vld [vmem:[#allocation10 + $0x1440] sm:$0xff] }
 0x981   :  { %4191 = vmatprep.subr.mxu0 %v3490_v28  ;;  %4262 = vmatprep.subr.mxu1 %v3682_v55  ;;  %v3795_v28 = vld [vmem:[#allocation10 + $0xe10] sm:$0xff]  ;;  %v3988_v55 = vld [vmem:[#allocation10 + $0x1418] sm:$0xff] }
 0x982   :  { %4192 = vmatpush2.msra.mxu0 %v3489_v13  ;;  %4263 = vmatpush2.msra.mxu1 %v3681_v46  ;;  %v3790_v13 = vld [vmem:[#allocation10 + $0xde8] sm:$0xff]  ;;  %v3987_v46 = vld [vmem:[#allocation10 + $0x1410] sm:$0xff] }
 0x983   :  { %4193 = vmatprep.subr.mxu0 %v3484_v36  ;;  %4264 = vmatprep.subr.mxu1 %v3676_v42  ;;  %v3789_v36 = vld [vmem:[#allocation10 + $0xde0] sm:$0xff]  ;;  %v3982_v42 = vld [vmem:[#allocation10 + $0x13e8] sm:$0xff] }
 0x984   :  { %4194 = vmatpush2.msra.mxu0 %v3483_v29  ;;  %4265 = vmatpush2.msra.mxu1 %v3675_v35  ;;  %v3784_v29 = vld [vmem:[#allocation10 + $0xdb8] sm:$0xff]  ;;  %v3981_v35 = vld [vmem:[#allocation10 + $0x13e0] sm:$0xff] }
 0x985   :  { %4195 = vmatprep.subr.mxu0 %v3478_v33  ;;  %4266 = vmatprep.subr.mxu1 %v3670_v34  ;;  %v3783_v33 = vld [vmem:[#allocation10 + $0xdb0] sm:$0xff]  ;;  %v3976_v34 = vld [vmem:[#allocation10 + $0x13b8] sm:$0xff] }
 0x986   :  { %4196 = vmatpush2.msra.mxu0 %v3477_v48  ;;  %4267 = vmatpush2.msra.mxu1 %v3669_v16  ;;  %v3778_v48 = vld [vmem:[#allocation10 + $0xd88] sm:$0xff]  ;;  %v3975_v16 = vld [vmem:[#allocation10 + $0x13b0] sm:$0xff] }
 0x987   :  { %4197 = vmatprep.subr.mxu0 %v3472_v58  ;;  %4268 = vmatprep.subr.mxu1 %v3664_v9  ;;  %v3777_v58 = vld [vmem:[#allocation10 + $0xd80] sm:$0xff]  ;;  %v3970_v9 = vld [vmem:[#allocation10 + $0x1388] sm:$0xff] }
 0x988   :  { %4198 = vmatpush2.msra.mxu0 %v3471_v11  ;;  %4269 = vmatpush2.msra.mxu1 %v3663_v8  ;;  %v3772_v11 = vld [vmem:[#allocation10 + $0xd58] sm:$0xff]  ;;  %v3969_v8 = vld [vmem:[#allocation10 + $0x1380] sm:$0xff] }
 0x989   :  { %4199 = vmatprep.subr.mxu0 %v3466_v5  ;;  %4270 = vmatprep.subr.mxu1 %v3658_v0  ;;  %v3771_v5 = vld [vmem:[#allocation10 + $0xd50] sm:$0xff]  ;;  %v3964_v0 = vld [vmem:[#allocation10 + $0x1358] sm:$0xff] }
 0x98a   :  { %4200 = vmatpush2.msra.mxu0 %v3465_v20  ;;  %4271 = vmatpush2.msra.mxu1 %v3657_v30  ;;  %v3766_v20 = vld [vmem:[#allocation10 + $0xd28] sm:$0xff]  ;;  %v3963_v30 = vld [vmem:[#allocation10 + $0x1350] sm:$0xff] }
 0x98b   :  { %4201 = vmatprep.subr.mxu0 %v3460_v17  ;;  %4272 = vmatprep.subr.mxu1 %v3652_v7  ;;  %v3765_v17 = vld [vmem:[#allocation10 + $0xd20] sm:$0xff]  ;;  %v3958_v7 = vld [vmem:[#allocation10 + $0x1328] sm:$0xff] }
 0x98c   :  { %4202 = vmatpush2.msra.mxu0 %v3459_v12  ;;  %4273 = vmatpush2.msra.mxu1 %v3651_v10  ;;  %v3760_v12 = vld [vmem:[#allocation10 + $0xcf8] sm:$0xff]  ;;  %v3957_v10 = vld [vmem:[#allocation10 + $0x1320] sm:$0xff] }
 0x98d   :  { %4203 = vmatprep.subr.mxu0 %v3454_v1  ;;  %4274 = vmatprep.subr.mxu1 %v3646_v26  ;;  %v3759_v1 = vld [vmem:[#allocation10 + $0xcf0] sm:$0xff]  ;;  %v3952_v26 = vld [vmem:[#allocation10 + $0x12f8] sm:$0xff] }
 0x98e   :  { %4204 = vmatpush2.msra.mxu0 %v3453_v49  ;;  %4275 = vmatpush2.msra.mxu1 %v3645_v24  ;;  %v3754_v49 = vld [vmem:[#allocation10 + $0xcc8] sm:$0xff]  ;;  %v3951_v24 = vld [vmem:[#allocation10 + $0x12f0] sm:$0xff] }
 0x98f   :  { %4205 = vmatprep.subr.mxu0 %v3448_v6  ;;  %4276 = vmatprep.subr.mxu1 %v3640_v23  ;;  %v3753_v6 = vld [vmem:[#allocation10 + $0xcc0] sm:$0xff]  ;;  %v3946_v23 = vld [vmem:[#allocation10 + $0x12c8] sm:$0xff] }
 0x990   :  { %4206 = vmatpush2.msra.mxu0 %v3447_v15  ;;  %4277 = vmatpush2.msra.mxu1 %v3639_v50  ;;  %v3748_v15 = vld [vmem:[#allocation10 + $0xc98] sm:$0xff]  ;;  %v3945_v50 = vld [vmem:[#allocation10 + $0x12c0] sm:$0xff] }
 0x991   :  { %4207 = vmatprep.subr.mxu0 %v3442_v32  ;;  %4278 = vmatprep.subr.mxu1 %v3634_v14  ;;  %v3747_v32 = vld [vmem:[#allocation10 + $0xc90] sm:$0xff]  ;;  %v3940_v14 = vld [vmem:[#allocation10 + $0x1298] sm:$0xff] }
 0x992   :  { %4208 = vmatpush2.msra.mxu0 %v3441_v18  ;;  %4279 = vmatpush2.msra.mxu1 %v3633_v19  ;;  %v3742_v18 = vld [vmem:[#allocation10 + $0xc68] sm:$0xff]  ;;  %v3939_v19 = vld [vmem:[#allocation10 + $0x1290] sm:$0xff] }
 0x993   :  { %4210 = vmatmul.mubr.f32.vlgmr.msra.gmra.mxu0 %v11777_v60  ;;  %4281 = vmatmul.mubr.f32.vlgmr.msra.gmra.mxu1 %v11778_v61 }
 0x994   :  { %4287 = vmatprep.subr.mxu0 %v3820_v27  ;;  %4351 = vmatprep.mubr.f32.mxu0 %v9820_v38  ;;  %v3741_v27 = vld [vmem:[#allocation10 + $0xc60] sm:$0xff] }
 0x995   :  { %4288 = vmatpush1.msra.mxu0 %v3819_v56  ;;  %4358 = vmatprep.subr.mxu1 %v4012_v62  ;;  %v3934_v56 = vld [vmem:[#allocation10 + $0x1268] sm:$0xff]  ;;  %v3736_v62 = vld [vmem:[#allocation10 + $0xc38] sm:$0xff] }
 0x996   :  { %4289 = vmatprep.subr.mxu0 %v3814_v44  ;;  %4359 = vmatpush1.msra.mxu1 %v4011_v54  ;;  %v3933_v44 = vld [vmem:[#allocation10 + $0x1260] sm:$0xff]  ;;  %v3735_v54 = vld [vmem:[#allocation10 + $0xc30] sm:$0xff] }
 0x997   :  { %4290 = vmatpush1.msra.mxu0 %v3813_v31  ;;  %4360 = vmatprep.subr.mxu1 %v4006_v47  ;;  %v3928_v31 = vld [vmem:[#allocation10 + $0x1238] sm:$0xff]  ;;  %v3730_v47 = vld [vmem:[#allocation10 + $0xc08] sm:$0xff] }
 0x998   :  { %4291 = vmatprep.subr.mxu0 %v3808_v63  ;;  %4361 = vmatpush1.msra.mxu1 %v4005_v41  ;;  %v3927_v63 = vld [vmem:[#allocation10 + $0x1230] sm:$0xff]  ;;  %v3729_v41 = vld [vmem:[#allocation10 + $0xc00] sm:$0xff] }
 0x999   :  { %4292 = vmatpush1.msra.mxu0 %v3807_v43  ;;  %4362 = vmatprep.subr.mxu1 %v4000_v52  ;;  %v3922_v43 = vld [vmem:[#allocation10 + $0x1208] sm:$0xff]  ;;  %v3916_v52 = vld [vmem:[#allocation10 + $0x11d8] sm:$0xff] }
 0x99a   :  { %4293 = vmatprep.subr.mxu0 %v3802_v4  ;;  %4363 = vmatpush1.msra.mxu1 %v3999_v40  ;;  %v3921_v4 = vld [vmem:[#allocation10 + $0x1200] sm:$0xff]  ;;  %v3915_v40 = vld [vmem:[#allocation10 + $0x11d0] sm:$0xff] }
 0x99b   :  { %4294 = vmatpush1.msra.mxu0 %v3801_v39  ;;  %4364 = vmatprep.subr.mxu1 %v3994_v51  ;;  %v4108_v39 = vld [vmem:[#allocation10 + $0x17d8] sm:$0xff]  ;;  %v3910_v51 = vld [vmem:[#allocation10 + $0x11a8] sm:$0xff] }
 0x99c   :  { %4295 = vmatprep.subr.mxu0 %v3796_v57  ;;  %4365 = vmatpush1.msra.mxu1 %v3993_v59  ;;  %v4107_v57 = vld [vmem:[#allocation10 + $0x17d0] sm:$0xff]  ;;  %v3909_v59 = vld [vmem:[#allocation10 + $0x11a0] sm:$0xff] }
 0x99d   :  { %4296 = vmatpush1.msra.mxu0 %v3795_v28  ;;  %4366 = vmatprep.subr.mxu1 %v3988_v55  ;;  %v4102_v28 = vld [vmem:[#allocation10 + $0x17a8] sm:$0xff]  ;;  %v3904_v55 = vld [vmem:[#allocation10 + $0x1178] sm:$0xff] }
 0x99e   :  { %4297 = vmatprep.subr.mxu0 %v3790_v13  ;;  %4367 = vmatpush1.msra.mxu1 %v3987_v46  ;;  %v4101_v13 = vld [vmem:[#allocation10 + $0x17a0] sm:$0xff]  ;;  %v3903_v46 = vld [vmem:[#allocation10 + $0x1170] sm:$0xff] }
 0x99f   :  { %4298 = vmatpush1.msra.mxu0 %v3789_v36  ;;  %4368 = vmatprep.subr.mxu1 %v3982_v42  ;;  %v4096_v36 = vld [vmem:[#allocation10 + $0x1778] sm:$0xff]  ;;  %v3898_v42 = vld [vmem:[#allocation10 + $0x1148] sm:$0xff] }
 0x9a0   :  { %4299 = vmatprep.subr.mxu0 %v3784_v29  ;;  %4369 = vmatpush1.msra.mxu1 %v3981_v35  ;;  %v4095_v29 = vld [vmem:[#allocation10 + $0x1770] sm:$0xff]  ;;  %v3897_v35 = vld [vmem:[#allocation10 + $0x1140] sm:$0xff] }
 0x9a1   :  { %4300 = vmatpush1.msra.mxu0 %v3783_v33  ;;  %4370 = vmatprep.subr.mxu1 %v3976_v34  ;;  %v4090_v33 = vld [vmem:[#allocation10 + $0x1748] sm:$0xff]  ;;  %v3892_v34 = vld [vmem:[#allocation10 + $0x1118] sm:$0xff] }
 0x9a2   :  { %4301 = vmatprep.subr.mxu0 %v3778_v48  ;;  %4371 = vmatpush1.msra.mxu1 %v3975_v16  ;;  %v4089_v48 = vld [vmem:[#allocation10 + $0x1740] sm:$0xff]  ;;  %v3891_v16 = vld [vmem:[#allocation10 + $0x1110] sm:$0xff] }
 0x9a3   :  { %4302 = vmatpush1.msra.mxu0 %v3777_v58  ;;  %4372 = vmatprep.subr.mxu1 %v3970_v9  ;;  %v4084_v58 = vld [vmem:[#allocation10 + $0x1718] sm:$0xff]  ;;  %v3886_v9 = vld [vmem:[#allocation10 + $0x10e8] sm:$0xff] }
 0x9a4   :  { %4303 = vmatprep.subr.mxu0 %v3772_v11  ;;  %4373 = vmatpush1.msra.mxu1 %v3969_v8  ;;  %v4083_v11 = vld [vmem:[#allocation10 + $0x1710] sm:$0xff]  ;;  %v3885_v8 = vld [vmem:[#allocation10 + $0x10e0] sm:$0xff] }
 0x9a5   :  { %4304 = vmatpush1.msra.mxu0 %v3771_v5  ;;  %4374 = vmatprep.subr.mxu1 %v3964_v0  ;;  %v4078_v5 = vld [vmem:[#allocation10 + $0x16e8] sm:$0xff]  ;;  %v3880_v0 = vld [vmem:[#allocation10 + $0x10b8] sm:$0xff] }
 0x9a6   :  { %4305 = vmatprep.subr.mxu0 %v3766_v20  ;;  %4375 = vmatpush1.msra.mxu1 %v3963_v30  ;;  %v4077_v20 = vld [vmem:[#allocation10 + $0x16e0] sm:$0xff]  ;;  %v3879_v30 = vld [vmem:[#allocation10 + $0x10b0] sm:$0xff] }
 0x9a7   :  { %4306 = vmatpush1.msra.mxu0 %v3765_v17  ;;  %4376 = vmatprep.subr.mxu1 %v3958_v7  ;;  %v4072_v17 = vld [vmem:[#allocation10 + $0x16b8] sm:$0xff]  ;;  %v3874_v7 = vld [vmem:[#allocation10 + $0x1088] sm:$0xff] }
 0x9a8   :  { %4307 = vmatprep.subr.mxu0 %v3760_v12  ;;  %4377 = vmatpush1.msra.mxu1 %v3957_v10  ;;  %v4071_v12 = vld [vmem:[#allocation10 + $0x16b0] sm:$0xff]  ;;  %v3873_v10 = vld [vmem:[#allocation10 + $0x1080] sm:$0xff] }
 0x9a9   :  { %4308 = vmatpush1.msra.mxu0 %v3759_v1  ;;  %4378 = vmatprep.subr.mxu1 %v3952_v26  ;;  %v4066_v1 = vld [vmem:[#allocation10 + $0x1688] sm:$0xff]  ;;  %v3868_v26 = vld [vmem:[#allocation10 + $0x1058] sm:$0xff] }
 0x9aa   :  { %4309 = vmatprep.subr.mxu0 %v3754_v49  ;;  %4379 = vmatpush1.msra.mxu1 %v3951_v24  ;;  %v4065_v49 = vld [vmem:[#allocation10 + $0x1680] sm:$0xff]  ;;  %v3867_v24 = vld [vmem:[#allocation10 + $0x1050] sm:$0xff] }
 0x9ab   :  { %4310 = vmatpush1.msra.mxu0 %v3753_v6  ;;  %4380 = vmatprep.subr.mxu1 %v3946_v23  ;;  %v4060_v6 = vld [vmem:[#allocation10 + $0x1658] sm:$0xff]  ;;  %v3862_v23 = vld [vmem:[#allocation10 + $0x1028] sm:$0xff] }
 0x9ac   :  { %4311 = vmatprep.subr.mxu0 %v3748_v15  ;;  %4381 = vmatpush1.msra.mxu1 %v3945_v50  ;;  %v4059_v15 = vld [vmem:[#allocation10 + $0x1650] sm:$0xff]  ;;  %v3861_v50 = vld [vmem:[#allocation10 + $0x1020] sm:$0xff] }
 0x9ad   :  { %4312 = vmatpush1.msra.mxu0 %v3747_v32  ;;  %4382 = vmatprep.subr.mxu1 %v3940_v14  ;;  %v4054_v32 = vld [vmem:[#allocation10 + $0x1628] sm:$0xff]  ;;  %v3856_v14 = vld [vmem:[#allocation10 + $0xff8] sm:$0xff] }
 0x9ae   :  { %4313 = vmatprep.subr.mxu0 %v3742_v18  ;;  %4383 = vmatpush1.msra.mxu1 %v3939_v19  ;;  %v4053_v18 = vld [vmem:[#allocation10 + $0x1620] sm:$0xff]  ;;  %v3855_v19 = vld [vmem:[#allocation10 + $0xff0] sm:$0xff] }
 0x9af   :  { %4314 = vmatpush1.msra.mxu0 %v3741_v27  ;;  %4384 = vmatprep.subr.mxu1 %v3934_v56  ;;  %v4048_v27 = vld [vmem:[#allocation10 + $0x15f8] sm:$0xff]  ;;  %v3850_v56 = vld [vmem:[#allocation10 + $0xfc8] sm:$0xff] }
 0x9b0   :  { %4315 = vmatprep.subr.mxu0 %v3736_v62  ;;  %4385 = vmatpush1.msra.mxu1 %v3933_v44  ;;  %v4047_v62 = vld [vmem:[#allocation10 + $0x15f0] sm:$0xff]  ;;  %v3849_v44 = vld [vmem:[#allocation10 + $0xfc0] sm:$0xff] }
 0x9b1   :  { %4316 = vmatpush1.msra.mxu0 %v3735_v54  ;;  %4386 = vmatprep.subr.mxu1 %v3928_v31  ;;  %v4042_v54 = vld [vmem:[#allocation10 + $0x15c8] sm:$0xff]  ;;  %v3844_v31 = vld [vmem:[#allocation10 + $0xf98] sm:$0xff] }
 0x9b2   :  { %4317 = vmatprep.subr.mxu0 %v3730_v47  ;;  %4387 = vmatpush1.msra.mxu1 %v3927_v63  ;;  %v4041_v47 = vld [vmem:[#allocation10 + $0x15c0] sm:$0xff]  ;;  %v3843_v63 = vld [vmem:[#allocation10 + $0xf90] sm:$0xff] }
 0x9b3   :  { %4318 = vmatpush1.msra.mxu0 %v3729_v41  ;;  %4388 = vmatprep.subr.mxu1 %v3922_v43  ;;  %v4036_v41 = vld [vmem:[#allocation10 + $0x1598] sm:$0xff]  ;;  %v3838_v43 = vld [vmem:[#allocation10 + $0xf68] sm:$0xff] }
 0x9b4   :  { %4319 = vmatprep.subr.mxu0 %v3916_v52  ;;  %4389 = vmatpush1.msra.mxu1 %v3921_v4  ;;  %v4035_v52 = vld [vmem:[#allocation10 + $0x1590] sm:$0xff]  ;;  %v3837_v4 = vld [vmem:[#allocation10 + $0xf60] sm:$0xff] }
 0x9b5   :  { %4320 = vmatpush2.msra.mxu0 %v3915_v40  ;;  %4390 = vmatprep.subr.mxu1 %v4108_v39  ;;  %v4030_v40 = vld [vmem:[#allocation10 + $0x1568] sm:$0xff]  ;;  %v3832_v39 = vld [vmem:[#allocation10 + $0xf38] sm:$0xff] }
 0x9b6   :  { %4321 = vmatprep.subr.mxu0 %v3910_v51  ;;  %4391 = vmatpush2.msra.mxu1 %v4107_v57  ;;  %v4029_v51 = vld [vmem:[#allocation10 + $0x1560] sm:$0xff]  ;;  %v3831_v57 = vld [vmem:[#allocation10 + $0xf30] sm:$0xff] }
 0x9b7   :  { %4322 = vmatpush2.msra.mxu0 %v3909_v59  ;;  %4392 = vmatprep.subr.mxu1 %v4102_v28  ;;  %v4024_v59 = vld [vmem:[#allocation10 + $0x1538] sm:$0xff]  ;;  %v3826_v28 = vld [vmem:[#allocation10 + $0xf08] sm:$0xff] }
 0x9b8   :  { %4323 = vmatprep.subr.mxu0 %v3904_v55  ;;  %4393 = vmatpush2.msra.mxu1 %v4101_v13  ;;  %v4023_v55 = vld [vmem:[#allocation10 + $0x1530] sm:$0xff]  ;;  %v3825_v13 = vld [vmem:[#allocation10 + $0xf00] sm:$0xff] }
 0x9b9   :  { %4324 = vmatpush2.msra.mxu0 %v3903_v46  ;;  %4394 = vmatprep.subr.mxu1 %v4096_v36  ;;  %v4018_v46 = vld [vmem:[#allocation10 + $0x1508] sm:$0xff] }
 0x9ba   :  { %4325 = vmatprep.subr.mxu0 %v3898_v42  ;;  %4395 = vmatpush2.msra.mxu1 %v4095_v29  ;;  %v3438_v36 = vld [vmem:[#allocation10 + $0x2e8] sm:$0xff]  ;;  %v3437_v42 = vld [vmem:[#allocation10 + $0x2e0] sm:$0xff]  ;;  %v3432_v29 = vld [vmem:[#allocation10 + $0x2b8] sm:$0xff] }
 0x9bb   :  { %4326 = vmatpush2.msra.mxu0 %v3897_v35  ;;  %4396 = vmatprep.subr.mxu1 %v4090_v33  ;;  %v4017_v35 = vld [vmem:[#allocation10 + $0x1500] sm:$0xff] }
 0x9bc   :  { %4327 = vmatprep.subr.mxu0 %v3892_v34  ;;  %4397 = vmatpush2.msra.mxu1 %v4089_v48  ;;  %v11779_v33 = vld [vmem:[#allocation184_spill] sm:$0xff]  ;;  %v3431_v34 = vld [vmem:[#allocation10 + $0x2b0] sm:$0xff]  ;;  %v3630_v48 = vld [vmem:[#allocation10 + $0x8e8] sm:$0xff] }
 0x9bd   :  { %4328 = vmatpush2.msra.mxu0 %v3891_v16  ;;  %4398 = vmatprep.subr.mxu1 %v4084_v58  ;;  %v3426_v16 = vld [vmem:[#allocation10 + $0x288] sm:$0xff]  ;;  %v3425_v58 = vld [vmem:[#allocation10 + $0x280] sm:$0xff] }
 0x9be   :  { %4329 = vmatprep.subr.mxu0 %v3886_v9  ;;  %4399 = vmatpush2.msra.mxu1 %v4083_v11  ;;  %v3420_v9 = vld [vmem:[#allocation10 + $0x258] sm:$0xff]  ;;  %v3419_v11 = vld [vmem:[#allocation10 + $0x250] sm:$0xff] }
 0x9bf   :  { %4330 = vmatpush2.msra.mxu0 %v3885_v8  ;;  %4400 = vmatprep.subr.mxu1 %v4078_v5  ;;  %v3414_v8 = vld [vmem:[#allocation10 + $0x228] sm:$0xff]  ;;  %v3413_v5 = vld [vmem:[#allocation10 + $0x220] sm:$0xff] }
 0x9c0   :  { %4331 = vmatprep.subr.mxu0 %v3880_v0  ;;  %4401 = vmatpush2.msra.mxu1 %v4077_v20  ;;  %v3408_v0 = vld [vmem:[#allocation10 + $0x1f8] sm:$0xff]  ;;  %v3407_v20 = vld [vmem:[#allocation10 + $0x1f0] sm:$0xff] }
 0x9c1   :  { %4332 = vmatpush2.msra.mxu0 %v3879_v30  ;;  %4402 = vmatprep.subr.mxu1 %v4072_v17  ;;  %v3402_v30 = vld [vmem:[#allocation10 + $0x1c8] sm:$0xff]  ;;  %v3401_v17 = vld [vmem:[#allocation10 + $0x1c0] sm:$0xff] }
 0x9c2   :  { %4333 = vmatprep.subr.mxu0 %v3874_v7  ;;  %4403 = vmatpush2.msra.mxu1 %v4071_v12  ;;  %v3396_v7 = vld [vmem:[#allocation10 + $0x198] sm:$0xff]  ;;  %v3395_v12 = vld [vmem:[#allocation10 + $0x190] sm:$0xff] }
 0x9c3   :  { %4334 = vmatpush2.msra.mxu0 %v3873_v10  ;;  %4404 = vmatprep.subr.mxu1 %v4066_v1  ;;  %v3390_v10 = vld [vmem:[#allocation10 + $0x168] sm:$0xff]  ;;  %v3389_v1 = vld [vmem:[#allocation10 + $0x160] sm:$0xff] }
 0x9c4   :  { %4335 = vmatprep.subr.mxu0 %v3868_v26  ;;  %4405 = vmatpush2.msra.mxu1 %v4065_v49  ;;  %v3384_v26 = vld [vmem:[#allocation10 + $0x138] sm:$0xff]  ;;  %v3383_v49 = vld [vmem:[#allocation10 + $0x130] sm:$0xff] }
 0x9c5   :  { %4336 = vmatpush2.msra.mxu0 %v3867_v24  ;;  %4406 = vmatprep.subr.mxu1 %v4060_v6  ;;  %v3378_v24 = vld [vmem:[#allocation10 + $0x108] sm:$0xff]  ;;  %v3377_v6 = vld [vmem:[#allocation10 + $0x100] sm:$0xff] }
 0x9c6   :  { %4337 = vmatprep.subr.mxu0 %v3862_v23  ;;  %4407 = vmatpush2.msra.mxu1 %v4059_v15  ;;  %v3372_v23 = vld [vmem:[#allocation10 + $0xd8] sm:$0xff]  ;;  %v3371_v15 = vld [vmem:[#allocation10 + $0xd0] sm:$0xff] }
 0x9c7   :  { %4338 = vmatpush2.msra.mxu0 %v3861_v50  ;;  %4408 = vmatprep.subr.mxu1 %v4054_v32  ;;  %v3366_v50 = vld [vmem:[#allocation10 + $0xa8] sm:$0xff]  ;;  %v3365_v32 = vld [vmem:[#allocation10 + $0xa0] sm:$0xff] }
 0x9c8   :  { %4339 = vmatprep.subr.mxu0 %v3856_v14  ;;  %4409 = vmatpush2.msra.mxu1 %v4053_v18  ;;  %v3360_v14 = vld [vmem:[#allocation10 + $0x78] sm:$0xff]  ;;  %v3359_v18 = vld [vmem:[#allocation10 + $0x70] sm:$0xff] }
 0x9c9   :  { %4340 = vmatpush2.msra.mxu0 %v3855_v19  ;;  %4410 = vmatprep.subr.mxu1 %v4048_v27  ;;  %v3354_v19 = vld [vmem:[#allocation10 + $0x48] sm:$0xff]  ;;  %v3353_v27 = vld [vmem:[#allocation10 + $0x40] sm:$0xff] }
 0x9ca   :  { %4341 = vmatprep.subr.mxu0 %v3850_v56  ;;  %4411 = vmatpush2.msra.mxu1 %v4047_v62  ;;  %v3348_v56 = vld [vmem:[#allocation10 + $0x18] sm:$0xff]  ;;  %v3347_v62 = vld [vmem:[#allocation10 + $0x10] sm:$0xff] }
 0x9cb   :  { %4342 = vmatpush2.msra.mxu0 %v3849_v44  ;;  %4412 = vmatprep.subr.mxu1 %v4042_v54  ;;  %v3534_v44 = vld [vmem:[#allocation10 + $0x5e8] sm:$0xff]  ;;  %v3533_v54 = vld [vmem:[#allocation10 + $0x5e0] sm:$0xff] }
 0x9cc   :  { %4343 = vmatprep.subr.mxu0 %v3844_v31  ;;  %4413 = vmatpush2.msra.mxu1 %v4041_v47  ;;  %v3528_v31 = vld [vmem:[#allocation10 + $0x5b8] sm:$0xff]  ;;  %v3527_v47 = vld [vmem:[#allocation10 + $0x5b0] sm:$0xff] }
 0x9cd   :  { %4344 = vmatpush2.msra.mxu0 %v3843_v63  ;;  %4414 = vmatprep.subr.mxu1 %v4036_v41  ;;  %v3522_v63 = vld [vmem:[#allocation10 + $0x588] sm:$0xff]  ;;  %v3521_v41 = vld [vmem:[#allocation10 + $0x580] sm:$0xff] }
 0x9ce   :  { %4345 = vmatprep.subr.mxu0 %v3838_v43  ;;  %4415 = vmatpush2.msra.mxu1 %v4035_v52  ;;  %v3516_v43 = vld [vmem:[#allocation10 + $0x558] sm:$0xff]  ;;  %v3515_v52 = vld [vmem:[#allocation10 + $0x550] sm:$0xff] }
 0x9cf   :  { %4346 = vmatpush2.msra.mxu0 %v3837_v4  ;;  %4416 = vmatprep.subr.mxu1 %v4030_v40  ;;  %v3510_v4 = vld [vmem:[#allocation10 + $0x528] sm:$0xff]  ;;  %v3509_v40 = vld [vmem:[#allocation10 + $0x520] sm:$0xff] }
 0x9d0   :  { %4347 = vmatprep.subr.mxu0 %v3832_v39  ;;  %4417 = vmatpush2.msra.mxu1 %v4029_v51  ;;  %v3504_v39 = vld [vmem:[#allocation10 + $0x4f8] sm:$0xff]  ;;  %v3503_v51 = vld [vmem:[#allocation10 + $0x4f0] sm:$0xff] }
 0x9d1   :  { %4348 = vmatpush2.msra.mxu0 %v3831_v57  ;;  %4418 = vmatprep.subr.mxu1 %v4024_v59  ;;  %v3498_v57 = vld [vmem:[#allocation10 + $0x4c8] sm:$0xff]  ;;  %v3497_v59 = vld [vmem:[#allocation10 + $0x4c0] sm:$0xff] }
 0x9d2   :  { %4349 = vmatprep.subr.mxu0 %v3826_v28  ;;  %4419 = vmatpush2.msra.mxu1 %v4023_v55  ;;  %v3492_v28 = vld [vmem:[#allocation10 + $0x498] sm:$0xff]  ;;  %v3491_v55 = vld [vmem:[#allocation10 + $0x490] sm:$0xff] }
 0x9d3   :  { %4350 = vmatpush2.msra.mxu0 %v3825_v13  ;;  %4420 = vmatprep.subr.mxu1 %v4018_v46  ;;  %v3486_v13 = vld [vmem:[#allocation10 + $0x468] sm:$0xff]  ;;  %v3485_v46 = vld [vmem:[#allocation10 + $0x460] sm:$0xff] }
 0x9d4   :  { %4352 = vmatmul.mubr.f32.vlgmr.msra.gmra.mxu0 %v11779_v33  ;;  %4429 = vmatprep.subr.mxu0 %v3438_v36  ;;  %v3480_v36 = vld [vmem:[#allocation10 + $0x438] sm:$0xff] }
 0x9d5   :  { %4430 = vmatpush1.msra.mxu0 %v3437_v42  ;;  %4493 = vmatprep.mubr.f32.mxu0 %v11775_v25  ;;  %v3479_v42 = vld [vmem:[#allocation10 + $0x430] sm:$0xff] }
 0x9d6   :  { %4431 = vmatprep.subr.mxu0 %v3432_v29  ;;  %4421 = vmatpush2.msra.mxu1 %v4017_v35  ;;  %v3474_v29 = vld [vmem:[#allocation10 + $0x408] sm:$0xff]  ;;  %v3473_v35 = vld [vmem:[#allocation10 + $0x400] sm:$0xff] }
 0x9d7   :  { %4432 = vmatpush1.msra.mxu0 %v3431_v34  ;;  %4500 = vmatprep.subr.mxu1 %v3630_v48  ;;  %v3468_v34 = vld [vmem:[#allocation10 + $0x3d8] sm:$0xff]  ;;  %v3467_v48 = vld [vmem:[#allocation10 + $0x3d0] sm:$0xff] }
 0x9d8   :  { %4433 = vmatprep.subr.mxu0 %v3426_v16  ;;  %v3462_v16 = vld [vmem:[#allocation10 + $0x3a8] sm:$0xff] }
 0x9d9   :  { %4434 = vmatpush1.msra.mxu0 %v3425_v58  ;;  %v3461_v58 = vld [vmem:[#allocation10 + $0x3a0] sm:$0xff] }
 0x9da   :  { %4435 = vmatprep.subr.mxu0 %v3420_v9  ;;  %v3456_v9 = vld [vmem:[#allocation10 + $0x378] sm:$0xff] }
 0x9db   :  { %4436 = vmatpush1.msra.mxu0 %v3419_v11  ;;  %v3455_v11 = vld [vmem:[#allocation10 + $0x370] sm:$0xff] }
 0x9dc   :  { %4437 = vmatprep.subr.mxu0 %v3414_v8  ;;  %v3450_v8 = vld [vmem:[#allocation10 + $0x348] sm:$0xff] }
 0x9dd   :  { %4438 = vmatpush1.msra.mxu0 %v3413_v5  ;;  %v3449_v5 = vld [vmem:[#allocation10 + $0x340] sm:$0xff] }
 0x9de   :  { %4439 = vmatprep.subr.mxu0 %v3408_v0  ;;  %v3444_v0 = vld [vmem:[#allocation10 + $0x318] sm:$0xff] }
 0x9df   :  { %4440 = vmatpush1.msra.mxu0 %v3407_v20  ;;  %v3443_v20 = vld [vmem:[#allocation10 + $0x310] sm:$0xff] }
 0x9e0   :  { %4441 = vmatprep.subr.mxu0 %v3402_v30  ;;  %v3822_v30 = vld [vmem:[#allocation10 + $0xee8] sm:$0xff] }
 0x9e1   :  { %4442 = vmatpush1.msra.mxu0 %v3401_v17 }
 0x9e2   :  { %4443 = vmatprep.subr.mxu0 %v3396_v7  ;;  %v3821_v7 = vld [vmem:[#allocation10 + $0xee0] sm:$0xff] }
 0x9e3   :  { %4444 = vmatpush1.msra.mxu0 %v3395_v12 }
 0x9e4   :  { %4445 = vmatprep.subr.mxu0 %v3390_v10  ;;  %v3816_v10 = vld [vmem:[#allocation10 + $0xeb8] sm:$0xff] }
 0x9e5   :  { %4446 = vmatpush1.msra.mxu0 %v3389_v1 }
 0x9e6   :  { %4447 = vmatprep.subr.mxu0 %v3384_v26  ;;  %v3815_v26 = vld [vmem:[#allocation10 + $0xeb0] sm:$0xff] }
 0x9e7   :  { %4448 = vmatpush1.msra.mxu0 %v3383_v49 }
 0x9e8   :  { %4449 = vmatprep.subr.mxu0 %v3378_v24 }
 0x9e9   :  { %4450 = vmatpush1.msra.mxu0 %v3377_v6  ;;  %v3810_v6 = vld [vmem:[#allocation10 + $0xe88] sm:$0xff] }
 0x9ea   :  { %4451 = vmatprep.subr.mxu0 %v3372_v23  ;;  %v3809_v23 = vld [vmem:[#allocation10 + $0xe80] sm:$0xff] }
 0x9eb   :  { %4452 = vmatpush1.msra.mxu0 %v3371_v15 }
 0x9ec   :  { %4453 = vmatprep.subr.mxu0 %v3366_v50 }
 0x9ed   :  { %4454 = vmatpush1.msra.mxu0 %v3365_v32  ;;  %v3803_v32 = vld [vmem:[#allocation10 + $0xe50] sm:$0xff] }
 0x9ee   :  { %4455 = vmatprep.subr.mxu0 %v3360_v14  ;;  %v3798_v14 = vld [vmem:[#allocation10 + $0xe28] sm:$0xff] }
 0x9ef   :  { %4456 = vmatpush1.msra.mxu0 %v3359_v18  ;;  %v3797_v18 = vld [vmem:[#allocation10 + $0xe20] sm:$0xff] }
 0x9f0   :  { %4457 = vmatprep.subr.mxu0 %v3354_v19 }
 0x9f1   :  { %4458 = vmatpush1.msra.mxu0 %v3353_v27  ;;  %v3792_v27 = vld [vmem:[#allocation10 + $0xdf8] sm:$0xff] }
 0x9f2   :  { %4459 = vmatprep.subr.mxu0 %v3348_v56  ;;  %v3786_v56 = vld [vmem:[#allocation10 + $0xdc8] sm:$0xff] }
 0x9f3   :  { %4460 = vmatpush1.msra.mxu0 %v3347_v62 }
 0x9f4   :  { %4461 = vmatprep.subr.mxu0 %v3534_v44  ;;  %v3785_v44 = vld [vmem:[#allocation10 + $0xdc0] sm:$0xff] }
 0x9f5   :  { %4462 = vmatpush2.msra.mxu0 %v3533_v54  ;;  %v3780_v54 = vld [vmem:[#allocation10 + $0xd98] sm:$0xff] }
 0x9f6   :  { %4463 = vmatprep.subr.mxu0 %v3528_v31  ;;  %v3779_v31 = vld [vmem:[#allocation10 + $0xd90] sm:$0xff] }
 0x9f7   :  { %4464 = vmatpush2.msra.mxu0 %v3527_v47  ;;  %v3774_v47 = vld [vmem:[#allocation10 + $0xd68] sm:$0xff] }
 0x9f8   :  { %4465 = vmatprep.subr.mxu0 %v3522_v63 }
 0x9f9   :  { %4466 = vmatpush2.msra.mxu0 %v3521_v41  ;;  %v3773_v41 = vld [vmem:[#allocation10 + $0xd60] sm:$0xff] }
 0x9fa   :  { %4467 = vmatprep.subr.mxu0 %v3516_v43  ;;  %v3768_v43 = vld [vmem:[#allocation10 + $0xd38] sm:$0xff] }
 0x9fb   :  { %4468 = vmatpush2.msra.mxu0 %v3515_v52 }
 0x9fc   :  { %4469 = vmatprep.subr.mxu0 %v3510_v4 }
 0x9fd   :  { %4470 = vmatpush2.msra.mxu0 %v3509_v40  ;;  %v3767_v40 = vld [vmem:[#allocation10 + $0xd30] sm:$0xff] }
 0x9fe   :  { %4471 = vmatprep.subr.mxu0 %v3504_v39 }
 0x9ff   :  { %4472 = vmatpush2.msra.mxu0 %v3503_v51 }
 0xa00   :  { %4473 = vmatprep.subr.mxu0 %v3498_v57  ;;  %v3761_v57 = vld [vmem:[#allocation10 + $0xd00] sm:$0xff] }
 0xa01   :  { %4474 = vmatpush2.msra.mxu0 %v3497_v59 }
 0xa02   :  { %4475 = vmatprep.subr.mxu0 %v3492_v28  ;;  %v3756_v28 = vld [vmem:[#allocation10 + $0xcd8] sm:$0xff] }
 0xa03   :  { %4476 = vmatpush2.msra.mxu0 %v3491_v55  ;;  %v3755_v55 = vld [vmem:[#allocation10 + $0xcd0] sm:$0xff] }
 0xa04   :  { %4477 = vmatprep.subr.mxu0 %v3486_v13  ;;  %v3750_v13 = vld [vmem:[#allocation10 + $0xca8] sm:$0xff] }
 0xa05   :  { %4478 = vmatpush2.msra.mxu0 %v3485_v46  ;;  %v3744_v46 = vld [vmem:[#allocation10 + $0xc78] sm:$0xff] }
 0xa06   :  { %4479 = vmatprep.subr.mxu0 %v3480_v36  ;;  %v3743_v36 = vld [vmem:[#allocation10 + $0xc70] sm:$0xff] }
 0xa07   :  { %4480 = vmatpush2.msra.mxu0 %v3479_v42  ;;  %v3738_v42 = vld [vmem:[#allocation10 + $0xc48] sm:$0xff] }
 0xa08   :  { %4481 = vmatprep.subr.mxu0 %v3474_v29  ;;  %v3737_v29 = vld [vmem:[#allocation10 + $0xc40] sm:$0xff] }
 0xa09   :  { %4482 = vmatpush2.msra.mxu0 %v3473_v35  ;;  %v3732_v35 = vld [vmem:[#allocation10 + $0xc18] sm:$0xff] }
 0xa0a   :  { %4483 = vmatprep.subr.mxu0 %v3468_v34  ;;  %v3731_v34 = vld [vmem:[#allocation10 + $0xc10] sm:$0xff] }
 0xa0b   :  { %4484 = vmatpush2.msra.mxu0 %v3467_v48  ;;  %v3918_v48 = vld [vmem:[#allocation10 + $0x11e8] sm:$0xff] }
 0xa0c   :  { %4485 = vmatprep.subr.mxu0 %v3462_v16  ;;  %v3917_v16 = vld [vmem:[#allocation10 + $0x11e0] sm:$0xff] }
 0xa0d   :  { %4486 = vmatpush2.msra.mxu0 %v3461_v58 }
 0xa0e   :  { %4487 = vmatprep.subr.mxu0 %v3456_v9  ;;  %v3912_v9 = vld [vmem:[#allocation10 + $0x11b8] sm:$0xff] }
 0xa0f   :  { %4488 = vmatpush2.msra.mxu0 %v3455_v11 }
 0xa10   :  { %4489 = vmatprep.subr.mxu0 %v3450_v8  ;;  %v3911_v8 = vld [vmem:[#allocation10 + $0x11b0] sm:$0xff] }
 0xa11   :  { %4490 = vmatpush2.msra.mxu0 %v3449_v5 }
 0xa12   :  { %4491 = vmatprep.subr.mxu0 %v3444_v0  ;;  %v3245_v17 = vpop.f32.mrf.mxu0  ;;  %v3316_v15 = vpop.f32.mrf.mxu1  ;;  %v3906_v0 = vld [vmem:[#allocation10 + $0x1188] sm:$0xff] }
 0xa13   :  { %4492 = vmatpush2.msra.mxu0 %v3443_v20  ;;  %v3246_v12 = vadd.f32 %v3245_v17, %v11767_v2  ;;  %v3804_v2 = vld [vmem:[#allocation10 + $0xe58] sm:$0xff]  ;;  %v3317_v4 = vadd.f32 %v3316_v15, %v11770_v21  ;;  %v3749_v21 = vld [vmem:[#allocation10 + $0xca0] sm:$0xff]  ;;  %v3882_v15 = vld [vmem:[#allocation10 + $0x10c8] sm:$0xff] }
 0xa14   :  { %4494 = vmatmul.mubr.f32.vlgmr.msra.gmra.mxu0 %v11777_v60  ;;  %4571 = vmatprep.subr.mxu0 %v3822_v30  ;;  %v3247_v1 = vpop.f32.mrf.mxu0  ;;  %v3318_v19 = vpop.f32.mrf.mxu1  ;;  %v3905_v17 = vld [vmem:[#allocation10 + $0x1180] sm:$0xff] }
 0xa15   :  { %v5385_v49 = vmul.f32 -1.442695, %v3246_v12  ;;  %4572 = vmatpush1.msra.mxu0 %v3821_v7  ;;  %4635 = vmatprep.mubr.f32.mxu0 %v9820_v38  ;;  %v3248_v24 = vadd.f32 %v3247_v1, %v11768_v3  ;;  %v3791_v3 = vld [vmem:[#allocation10 + $0xdf0] sm:$0xff]  ;;  %v3319_v62 = vadd.f32 %v3318_v19, %v11769_v22  ;;  %v3762_v22 = vld [vmem:[#allocation10 + $0xd08] sm:$0xff] }
 0xa16   :  { %4573 = vmatprep.subr.mxu0 %v3816_v10  ;;  %v3900_v10 = vld [vmem:[#allocation10 + $0x1158] sm:$0xff]  ;;  %v3899_v1 = vld [vmem:[#allocation10 + $0x1150] sm:$0xff] }
 0xa17   :  { %5752 = vpow2.f32 %v5385_v49  ;;  %v5386_v50 = vmul.f32 -1.442695, %v3248_v24  ;;  %4574 = vmatpush1.msra.mxu0 %v3815_v26  ;;  %v5387_v63 = vmul.f32 -1.442695, %v3319_v62  ;;  %v3894_v26 = vld [vmem:[#allocation10 + $0x1128] sm:$0xff]  ;;  %v3893_v24 = vld [vmem:[#allocation10 + $0x1120] sm:$0xff] }
 0xa18   :  { %4575 = vmatprep.subr.mxu0 %v3810_v6  ;;  %v3888_v6 = vld [vmem:[#allocation10 + $0x10f8] sm:$0xff]  ;;  %v3863_v19 = vld [vmem:[#allocation10 + $0x1030] sm:$0xff] }
 0xa19   :  { %5754 = vpow2.f32 %v5386_v50  ;;  %4576 = vmatpush1.msra.mxu0 %v3809_v23  ;;  %v3887_v23 = vld [vmem:[#allocation10 + $0x10f0] sm:$0xff]  ;;  %v3881_v50 = vld [vmem:[#allocation10 + $0x10c0] sm:$0xff]  ;;  %v3852_v62 = vld [vmem:[#allocation10 + $0xfd8] sm:$0xff] }
 0xa1a   :  { %4577 = vmatprep.subr.mxu0 %v3804_v2  ;;  %5756 = vpow2.f32 %v5387_v63  ;;  %v3875_v2 = vld [vmem:[#allocation10 + $0x1090] sm:$0xff]  ;;  %v3845_v63 = vld [vmem:[#allocation10 + $0xfa0] sm:$0xff] }
 0xa1b   :  { %4578 = vmatpush1.msra.mxu0 %v3803_v32  ;;  %v3870_v32 = vld [vmem:[#allocation10 + $0x1068] sm:$0xff] }
 0xa1c   :  { %4579 = vmatprep.subr.mxu0 %v3798_v14  ;;  %v3869_v14 = vld [vmem:[#allocation10 + $0x1060] sm:$0xff] }
 0xa1d   :  { %4580 = vmatpush1.msra.mxu0 %v3797_v18  ;;  %v3864_v18 = vld [vmem:[#allocation10 + $0x1038] sm:$0xff] }
 0xa1e   :  { %4581 = vmatprep.subr.mxu0 %v3792_v27  ;;  %v3858_v27 = vld [vmem:[#allocation10 + $0x1008] sm:$0xff] }
 0xa1f   :  { %4582 = vmatpush1.msra.mxu0 %v3791_v3  ;;  %v3857_v3 = vld [vmem:[#allocation10 + $0x1000] sm:$0xff] }
 0xa20   :  { %4583 = vmatprep.subr.mxu0 %v3786_v56 }
 0xa21   :  { %4584 = vmatpush1.msra.mxu0 %v3785_v44 }
 0xa22   :  { %4585 = vmatprep.subr.mxu0 %v3780_v54  ;;  %v3851_v54 = vld [vmem:[#allocation10 + $0xfd0] sm:$0xff] }
 0xa23   :  { %4586 = vmatpush1.msra.mxu0 %v3779_v31  ;;  %v3846_v31 = vld [vmem:[#allocation10 + $0xfa8] sm:$0xff] }
 0xa24   :  { %v5753_v52 = vpop.eup %5752  ;;  %4587 = vmatprep.subr.mxu0 %v3774_v47 }
 0xa25   :  { %v3324_v39 = vadd.f32 1.0, %v5753_v52  ;;  %4588 = vmatpush1.msra.mxu0 %v3773_v41  ;;  %v3629_v41 = vld [vmem:[#allocation10 + $0x8e0] sm:$0xff]  ;;  %v3624_v52 = vld [vmem:[#allocation10 + $0x8b8] sm:$0xff] }
 0xa26   :  { %v5755_v51 = vpop.eup %5754  ;;  %4589 = vmatprep.subr.mxu0 %v3768_v43  ;;  %v3840_v43 = vld [vmem:[#allocation10 + $0xf78] sm:$0xff] }
 0xa27   :  { %5758 = vrcp.f32 %v3324_v39  ;;  %v3330_v59 = vadd.f32 1.0, %v5755_v51  ;;  %4590 = vmatpush1.msra.mxu0 %v3767_v40  ;;  %v5757_v58 = vpop.eup %5756  ;;  %v3834_v40 = vld [vmem:[#allocation10 + $0xf48] sm:$0xff]  ;;  %v3623_v39 = vld [vmem:[#allocation10 + $0x8b0] sm:$0xff] }
 0xa28   :  { %5760 = vtanh.f32 %v3317_v4  ;;  %4591 = vmatprep.subr.mxu0 %v3762_v22  ;;  %v3337_v30 = vadd.f32 1.0, %v5757_v58  ;;  %v3839_v4 = vld [vmem:[#allocation10 + $0xf70] sm:$0xff]  ;;  %v3833_v22 = vld [vmem:[#allocation10 + $0xf40] sm:$0xff]  ;;  %v3618_v51 = vld [vmem:[#allocation10 + $0x888] sm:$0xff] }
 0xa29   :  { %5762 = vrcp.f32 %v3330_v59  ;;  %4592 = vmatpush1.msra.mxu0 %v3761_v57  ;;  %v3828_v57 = vld [vmem:[#allocation10 + $0xf18] sm:$0xff]  ;;  %v3617_v59 = vld [vmem:[#allocation10 + $0x880] sm:$0xff]  ;;  %v3427_v58 = vld [vmem:[#allocation10 + $0x290] sm:$0xff] }
 0xa2a   :  { %4593 = vmatprep.subr.mxu0 %v3756_v28  ;;  %5764 = vrcp.f32 %v3337_v30  ;;  %v3827_v28 = vld [vmem:[#allocation10 + $0xf10] sm:$0xff] }
 0xa2b   :  { %4594 = vmatpush1.msra.mxu0 %v3755_v55  ;;  %v3612_v55 = vld [vmem:[#allocation10 + $0x858] sm:$0xff]  ;;  %v3587_v30 = vld [vmem:[#allocation10 + $0x790] sm:$0xff] }
 0xa2c   :  { %4595 = vmatprep.subr.mxu0 %v3750_v13  ;;  %v3440_v13 = vld [vmem:[#allocation10 + $0x2f8] sm:$0xff] }
 0xa2d   :  { %4596 = vmatpush1.msra.mxu0 %v3749_v21  ;;  %v3611_v21 = vld [vmem:[#allocation10 + $0x850] sm:$0xff] }
 0xa2e   :  { %4597 = vmatprep.subr.mxu0 %v3744_v46  ;;  %v3439_v46 = vld [vmem:[#allocation10 + $0x2f0] sm:$0xff] }
 0xa2f   :  { %4598 = vmatpush1.msra.mxu0 %v3743_v36  ;;  %v3606_v36 = vld [vmem:[#allocation10 + $0x828] sm:$0xff] }
 0xa30   :  { %4599 = vmatprep.subr.mxu0 %v3738_v42  ;;  %v3434_v42 = vld [vmem:[#allocation10 + $0x2c8] sm:$0xff] }
 0xa31   :  { %4600 = vmatpush1.msra.mxu0 %v3737_v29  ;;  %v3605_v29 = vld [vmem:[#allocation10 + $0x820] sm:$0xff] }
 0xa32   :  { %4601 = vmatprep.subr.mxu0 %v3732_v35  ;;  %v3433_v35 = vld [vmem:[#allocation10 + $0x2c0] sm:$0xff] }
 0xa33   :  { %4602 = vmatpush1.msra.mxu0 %v3731_v34  ;;  %v3600_v34 = vld [vmem:[#allocation10 + $0x7f8] sm:$0xff] }
 0xa34   :  { %v5759_v11 = vpop.eup %5758  ;;  %4603 = vmatprep.subr.mxu0 %v3918_v48  ;;  %v3428_v48 = vld [vmem:[#allocation10 + $0x298] sm:$0xff] }
 0xa35   :  { %v5761_v5 = vpop.eup %5760  ;;  %4604 = vmatpush2.msra.mxu0 %v3917_v16  ;;  %v3599_v16 = vld [vmem:[#allocation10 + $0x7f0] sm:$0xff] }
 0xa36   :  { %v5763_v20 = vpop.eup %5762  ;;  %4605 = vmatprep.subr.mxu0 %v3912_v9  ;;  %v3341_v7 = vmul.f32 %v5761_v5, %v5759_v11  ;;  %v3594_v9 = vld [vmem:[#allocation10 + $0x7c8] sm:$0xff]  ;;  %v3421_v5 = vld [vmem:[#allocation10 + $0x260] sm:$0xff] }
 0xa37   :  { %v3340_v12 = vmul.f32 %v5763_v20, %v10015_v45  ;;  %4606 = vmatpush2.msra.mxu0 %v3911_v8  ;;  %v3876_v45 = vld [vmem:[#allocation10 + $0x1098] sm:$0xff]  ;;  %v5765_v56 = vpop.eup %5764  ;;  %v3422_v11 = vld [vmem:[#allocation10 + $0x268] sm:$0xff]  ;;  %v3593_v8 = vld [vmem:[#allocation10 + $0x7c0] sm:$0xff] }
 0xa38   :  { %4607 = vmatprep.subr.mxu0 %v3906_v0  ;;  %v3588_v0 = vld [vmem:[#allocation10 + $0x798] sm:$0xff] }
 0xa39   :  { %4608 = vmatpush2.msra.mxu0 %v3905_v17  ;;  %v3342_v49 = vadd.f32 %v3341_v7, %v3340_v12  ;;  %v3416_v20 = vld [vmem:[#allocation10 + $0x238] sm:$0xff]  ;;  %v3582_v17 = vld [vmem:[#allocation10 + $0x768] sm:$0xff]  ;;  %v3581_v12 = vld [vmem:[#allocation10 + $0x760] sm:$0xff] }
 0xa3a   :  { %4609 = vmatprep.subr.mxu0 %v3900_v10  ;;  %v3410_v7 = vld [vmem:[#allocation10 + $0x208] sm:$0xff]  ;;  %v3409_v10 = vld [vmem:[#allocation10 + $0x200] sm:$0xff] }
 0xa3b   :  { %4610 = vmatpush2.msra.mxu0 %v3899_v1  ;;  %5766 = vtanh.f32 %v3342_v49  ;;  %v3576_v1 = vld [vmem:[#allocation10 + $0x738] sm:$0xff]  ;;  %v3575_v49 = vld [vmem:[#allocation10 + $0x730] sm:$0xff] }
 0xa3c   :  { %4611 = vmatprep.subr.mxu0 %v3894_v26  ;;  %v3404_v26 = vld [vmem:[#allocation10 + $0x1d8] sm:$0xff] }
 0xa3d   :  { %4612 = vmatpush2.msra.mxu0 %v3893_v24  ;;  %v3403_v24 = vld [vmem:[#allocation10 + $0x1d0] sm:$0xff] }
 0xa3e   :  { %4613 = vmatprep.subr.mxu0 %v3888_v6  ;;  %v3570_v6 = vld [vmem:[#allocation10 + $0x708] sm:$0xff] }
 0xa3f   :  { %4614 = vmatpush2.msra.mxu0 %v3887_v23  ;;  %v3398_v23 = vld [vmem:[#allocation10 + $0x1a8] sm:$0xff] }
 0xa40   :  { %4615 = vmatprep.subr.mxu0 %v3882_v15  ;;  %v3569_v15 = vld [vmem:[#allocation10 + $0x700] sm:$0xff] }
 0xa41   :  { %4616 = vmatpush2.msra.mxu0 %v3881_v50  ;;  %v3397_v50 = vld [vmem:[#allocation10 + $0x1a0] sm:$0xff] }
 0xa42   :  { %4617 = vmatprep.subr.mxu0 %v3876_v45  ;;  %v3564_v45 = vld [vmem:[#allocation10 + $0x6d8] sm:$0xff] }
 0xa43   :  { %4618 = vmatpush2.msra.mxu0 %v3875_v2  ;;  %v3392_v2 = vld [vmem:[#allocation10 + $0x178] sm:$0xff] }
 0xa44   :  { %4619 = vmatprep.subr.mxu0 %v3870_v32  ;;  %v3563_v32 = vld [vmem:[#allocation10 + $0x6d0] sm:$0xff] }
 0xa45   :  { %4620 = vmatpush2.msra.mxu0 %v3869_v14  ;;  %v3391_v14 = vld [vmem:[#allocation10 + $0x170] sm:$0xff] }
 0xa46   :  { %4621 = vmatprep.subr.mxu0 %v3864_v18  ;;  %v3558_v18 = vld [vmem:[#allocation10 + $0x6a8] sm:$0xff] }
 0xa47   :  { %4622 = vmatpush2.msra.mxu0 %v3863_v19  ;;  %v3386_v19 = vld [vmem:[#allocation10 + $0x148] sm:$0xff] }
 0xa48   :  { %v5767_v44 = vpop.eup %5766  ;;  %4623 = vmatprep.subr.mxu0 %v3858_v27  ;;  %v3557_v27 = vld [vmem:[#allocation10 + $0x6a0] sm:$0xff] }
 0xa49   :  { %4624 = vmatpush2.msra.mxu0 %v3857_v3  ;;  %v10039_v47 = vmul.f32 %v5767_v44, %v5765_v56  ;;  %v3385_v3 = vld [vmem:[#allocation10 + $0x140] sm:$0xff]  ;;  %v3552_v56 = vld [vmem:[#allocation10 + $0x678] sm:$0xff]  ;;  %v3551_v44 = vld [vmem:[#allocation10 + $0x670] sm:$0xff] }
 0xa4a   :  { %4625 = vmatprep.subr.mxu0 %v3852_v62  ;;  %v3380_v62 = vld [vmem:[#allocation10 + $0x118] sm:$0xff] }
 0xa4b   :  { %4626 = vmatpush2.msra.mxu0 %v3851_v54  ;;  %4422 = vmatprep.mubr.f32.mxu1 %v10039_v47  ;;  %v3379_v54 = vld [vmem:[#allocation10 + $0x110] sm:$0xff] }
 0xa4c   :  { %4627 = vmatprep.subr.mxu0 %v3846_v31  ;;  %4423 = vmatmul.mubr.f32.vlgmr.msra.gmra.mxu1 %v10020_v37  ;;  %v3546_v31 = vld [vmem:[#allocation10 + $0x648] sm:$0xff] }
 0xa4d   :  { %4628 = vmatpush2.msra.mxu0 %v3845_v63  ;;  %4501 = vmatpush1.msra.mxu1 %v3629_v41  ;;  %v3374_v63 = vld [vmem:[#allocation10 + $0xe8] sm:$0xff]  ;;  %v3545_v41 = vld [vmem:[#allocation10 + $0x640] sm:$0xff] }
 0xa4e   :  { %4629 = vmatprep.subr.mxu0 %v3840_v43  ;;  %4502 = vmatprep.subr.mxu1 %v3624_v52  ;;  %v3373_v43 = vld [vmem:[#allocation10 + $0xe0] sm:$0xff]  ;;  %v3540_v52 = vld [vmem:[#allocation10 + $0x618] sm:$0xff] }
 0xa4f   :  { %4630 = vmatpush2.msra.mxu0 %v3839_v4  ;;  %4564 = vmatprep.mubr.f32.mxu1 %v11776_v53  ;;  %v3368_v4 = vld [vmem:[#allocation10 + $0xb8] sm:$0xff] }
 0xa50   :  { %4631 = vmatprep.subr.mxu0 %v3834_v40  ;;  %4503 = vmatpush1.msra.mxu1 %v3623_v39  ;;  %v3539_v40 = vld [vmem:[#allocation10 + $0x610] sm:$0xff] }
 0xa51   :  { %4632 = vmatpush2.msra.mxu0 %v3833_v22  ;;  %4504 = vmatprep.subr.mxu1 %v3618_v51  ;;  %v3367_v39 = vld [vmem:[#allocation10 + $0xb0] sm:$0xff]  ;;  %v3726_v22 = vld [vmem:[#allocation10 + $0xbe8] sm:$0xff] }
 0xa52   :  { %4633 = vmatprep.subr.mxu0 %v3828_v57  ;;  %4505 = vmatpush1.msra.mxu1 %v3617_v59  ;;  %v3362_v51 = vld [vmem:[#allocation10 + $0x88] sm:$0xff]  ;;  %v3725_v57 = vld [vmem:[#allocation10 + $0xbe0] sm:$0xff] }
 0xa53   :  { %4634 = vmatpush2.msra.mxu0 %v3827_v28  ;;  %4506 = vmatprep.subr.mxu1 %v3612_v55  ;;  %v3361_v59 = vld [vmem:[#allocation10 + $0x80] sm:$0xff]  ;;  %v3720_v28 = vld [vmem:[#allocation10 + $0xbb8] sm:$0xff] }
 0xa54   :  { %4636 = vmatmul.mubr.f32.vlgmr.msra.gmra.mxu0 %v11779_v33  ;;  %4713 = vmatprep.subr.mxu0 %v3440_v13  ;;  %v3356_v55 = vld [vmem:[#allocation10 + $0x58] sm:$0xff]  ;;  %v3719_v13 = vld [vmem:[#allocation10 + $0xbb0] sm:$0xff] }
 0xa55   :  { %4507 = vmatpush1.msra.mxu1 %v3611_v21  ;;  %4714 = vmatpush1.msra.mxu0 %v3439_v46  ;;  %v3355_v21 = vld [vmem:[#allocation10 + $0x50] sm:$0xff]  ;;  %v3714_v46 = vld [vmem:[#allocation10 + $0xb88] sm:$0xff] }
 0xa56   :  { %4777 = vmatprep.mubr.f32.mxu0 %v11775_v25  ;;  %4508 = vmatprep.subr.mxu1 %v3606_v36  ;;  %v3415_v25 = vld [vmem:[#allocation10 + $0x230] sm:$0xff]  ;;  %v3350_v36 = vld [vmem:[#allocation10 + $0x28] sm:$0xff] }
 0xa57   :  { %4715 = vmatprep.subr.mxu0 %v3434_v42  ;;  %4509 = vmatpush1.msra.mxu1 %v3605_v29  ;;  %v3713_v42 = vld [vmem:[#allocation10 + $0xb80] sm:$0xff] }
 0xa58   :  { %4716 = vmatpush1.msra.mxu0 %v3433_v35  ;;  %4510 = vmatprep.subr.mxu1 %v3600_v34  ;;  %v3349_v29 = vld [vmem:[#allocation10 + $0x20] sm:$0xff]  ;;  %v3708_v35 = vld [vmem:[#allocation10 + $0xb58] sm:$0xff] }
 0xa59   :  { %4717 = vmatprep.subr.mxu0 %v3428_v48  ;;  %4511 = vmatpush1.msra.mxu1 %v3599_v16  ;;  %v3536_v34 = vld [vmem:[#allocation10 + $0x5f8] sm:$0xff]  ;;  %v3707_v48 = vld [vmem:[#allocation10 + $0xb50] sm:$0xff] }
 0xa5a   :  { %4718 = vmatpush1.msra.mxu0 %v3427_v58  ;;  %4512 = vmatprep.subr.mxu1 %v3594_v9  ;;  %v3535_v16 = vld [vmem:[#allocation10 + $0x5f0] sm:$0xff]  ;;  %v3702_v58 = vld [vmem:[#allocation10 + $0xb28] sm:$0xff] }
 0xa5b   :  { %4719 = vmatprep.subr.mxu0 %v3422_v11  ;;  %4513 = vmatpush1.msra.mxu1 %v3593_v8  ;;  %v3530_v9 = vld [vmem:[#allocation10 + $0x5c8] sm:$0xff]  ;;  %v3701_v11 = vld [vmem:[#allocation10 + $0xb20] sm:$0xff] }
 0xa5c   :  { %4720 = vmatpush1.msra.mxu0 %v3421_v5  ;;  %4514 = vmatprep.subr.mxu1 %v3588_v0  ;;  %v3529_v8 = vld [vmem:[#allocation10 + $0x5c0] sm:$0xff]  ;;  %v3696_v5 = vld [vmem:[#allocation10 + $0xaf8] sm:$0xff] }
 0xa5d   :  { %4721 = vmatprep.subr.mxu0 %v3416_v20  ;;  %4515 = vmatpush1.msra.mxu1 %v3587_v30  ;;  %v3524_v0 = vld [vmem:[#allocation10 + $0x598] sm:$0xff]  ;;  %v3695_v20 = vld [vmem:[#allocation10 + $0xaf0] sm:$0xff] }
 0xa5e   :  { %4722 = vmatpush1.msra.mxu0 %v3415_v25  ;;  %4516 = vmatprep.subr.mxu1 %v3582_v17  ;;  %v3523_v30 = vld [vmem:[#allocation10 + $0x590] sm:$0xff]  ;;  %v3690_v25 = vld [vmem:[#allocation10 + $0xac8] sm:$0xff] }
 0xa5f   :  { %4723 = vmatprep.subr.mxu0 %v3410_v7  ;;  %4517 = vmatpush1.msra.mxu1 %v3581_v12  ;;  %v3518_v17 = vld [vmem:[#allocation10 + $0x568] sm:$0xff]  ;;  %v3689_v7 = vld [vmem:[#allocation10 + $0xac0] sm:$0xff] }
 0xa60   :  { %4724 = vmatpush1.msra.mxu0 %v3409_v10  ;;  %4518 = vmatprep.subr.mxu1 %v3576_v1  ;;  %v3517_v12 = vld [vmem:[#allocation10 + $0x560] sm:$0xff]  ;;  %v3684_v10 = vld [vmem:[#allocation10 + $0xa98] sm:$0xff] }
 0xa61   :  { %4725 = vmatprep.subr.mxu0 %v3404_v26  ;;  %4519 = vmatpush1.msra.mxu1 %v3575_v49  ;;  %v3512_v1 = vld [vmem:[#allocation10 + $0x538] sm:$0xff]  ;;  %v3683_v26 = vld [vmem:[#allocation10 + $0xa90] sm:$0xff] }
 0xa62   :  { %4726 = vmatpush1.msra.mxu0 %v3403_v24  ;;  %4520 = vmatprep.subr.mxu1 %v3570_v6  ;;  %v3511_v49 = vld [vmem:[#allocation10 + $0x530] sm:$0xff]  ;;  %v3678_v24 = vld [vmem:[#allocation10 + $0xa68] sm:$0xff] }
 0xa63   :  { %4727 = vmatprep.subr.mxu0 %v3398_v23  ;;  %4521 = vmatpush1.msra.mxu1 %v3569_v15  ;;  %v3506_v6 = vld [vmem:[#allocation10 + $0x508] sm:$0xff]  ;;  %v3677_v23 = vld [vmem:[#allocation10 + $0xa60] sm:$0xff] }
 0xa64   :  { %4728 = vmatpush1.msra.mxu0 %v3397_v50  ;;  %4522 = vmatprep.subr.mxu1 %v3564_v45  ;;  %v3505_v15 = vld [vmem:[#allocation10 + $0x500] sm:$0xff]  ;;  %v3672_v50 = vld [vmem:[#allocation10 + $0xa38] sm:$0xff] }
 0xa65   :  { %4729 = vmatprep.subr.mxu0 %v3392_v2  ;;  %4523 = vmatpush1.msra.mxu1 %v3563_v32  ;;  %v3500_v45 = vld [vmem:[#allocation10 + $0x4d8] sm:$0xff]  ;;  %v3671_v2 = vld [vmem:[#allocation10 + $0xa30] sm:$0xff] }
 0xa66   :  { %4730 = vmatpush1.msra.mxu0 %v3391_v14  ;;  %4524 = vmatprep.subr.mxu1 %v3558_v18  ;;  %v3499_v32 = vld [vmem:[#allocation10 + $0x4d0] sm:$0xff]  ;;  %v3666_v14 = vld [vmem:[#allocation10 + $0xa08] sm:$0xff] }
 0xa67   :  { %4731 = vmatprep.subr.mxu0 %v3386_v19  ;;  %4525 = vmatpush1.msra.mxu1 %v3557_v27  ;;  %v3494_v18 = vld [vmem:[#allocation10 + $0x4a8] sm:$0xff]  ;;  %v3665_v19 = vld [vmem:[#allocation10 + $0xa00] sm:$0xff] }
 0xa68   :  { %4732 = vmatpush1.msra.mxu0 %v3385_v3  ;;  %4526 = vmatprep.subr.mxu1 %v3552_v56  ;;  %v3493_v27 = vld [vmem:[#allocation10 + $0x4a0] sm:$0xff]  ;;  %v3660_v3 = vld [vmem:[#allocation10 + $0x9d8] sm:$0xff] }
 0xa69   :  { %4733 = vmatprep.subr.mxu0 %v3380_v62  ;;  %4527 = vmatpush1.msra.mxu1 %v3551_v44  ;;  %v3488_v56 = vld [vmem:[#allocation10 + $0x478] sm:$0xff]  ;;  %v3659_v62 = vld [vmem:[#allocation10 + $0x9d0] sm:$0xff] }
 0xa6a   :  { %4734 = vmatpush1.msra.mxu0 %v3379_v54  ;;  %4528 = vmatprep.subr.mxu1 %v3546_v31  ;;  %v3487_v44 = vld [vmem:[#allocation10 + $0x470] sm:$0xff]  ;;  %v3654_v54 = vld [vmem:[#allocation10 + $0x9a8] sm:$0xff] }
 0xa6b   :  { %4735 = vmatprep.subr.mxu0 %v3374_v63  ;;  %4529 = vmatpush1.msra.mxu1 %v3545_v41  ;;  %v3482_v31 = vld [vmem:[#allocation10 + $0x448] sm:$0xff]  ;;  %v3653_v63 = vld [vmem:[#allocation10 + $0x9a0] sm:$0xff] }
 0xa6c   :  { %4736 = vmatpush1.msra.mxu0 %v3373_v43  ;;  %4530 = vmatprep.subr.mxu1 %v3540_v52  ;;  %v3481_v41 = vld [vmem:[#allocation10 + $0x440] sm:$0xff]  ;;  %v3648_v43 = vld [vmem:[#allocation10 + $0x978] sm:$0xff] }
 0xa6d   :  { %4737 = vmatprep.subr.mxu0 %v3368_v4  ;;  %4531 = vmatpush1.msra.mxu1 %v3539_v40  ;;  %v3476_v52 = vld [vmem:[#allocation10 + $0x418] sm:$0xff]  ;;  %v3647_v4 = vld [vmem:[#allocation10 + $0x970] sm:$0xff] }
 0xa6e   :  { %4738 = vmatpush1.msra.mxu0 %v3367_v39  ;;  %4532 = vmatprep.subr.mxu1 %v3726_v22  ;;  %v3475_v40 = vld [vmem:[#allocation10 + $0x410] sm:$0xff]  ;;  %v3642_v39 = vld [vmem:[#allocation10 + $0x948] sm:$0xff] }
 0xa6f   :  { %4739 = vmatprep.subr.mxu0 %v3362_v51  ;;  %4533 = vmatpush2.msra.mxu1 %v3725_v57  ;;  %v3470_v22 = vld [vmem:[#allocation10 + $0x3e8] sm:$0xff]  ;;  %v3641_v51 = vld [vmem:[#allocation10 + $0x940] sm:$0xff] }
 0xa70   :  { %4740 = vmatpush1.msra.mxu0 %v3361_v59  ;;  %4534 = vmatprep.subr.mxu1 %v3720_v28  ;;  %v3469_v57 = vld [vmem:[#allocation10 + $0x3e0] sm:$0xff]  ;;  %v3636_v59 = vld [vmem:[#allocation10 + $0x918] sm:$0xff] }
 0xa71   :  { %4741 = vmatprep.subr.mxu0 %v3356_v55  ;;  %4535 = vmatpush2.msra.mxu1 %v3719_v13  ;;  %v3464_v28 = vld [vmem:[#allocation10 + $0x3b8] sm:$0xff]  ;;  %v3635_v55 = vld [vmem:[#allocation10 + $0x910] sm:$0xff] }
 0xa72   :  { %4742 = vmatpush1.msra.mxu0 %v3355_v21  ;;  %4536 = vmatprep.subr.mxu1 %v3714_v46  ;;  %v3463_v13 = vld [vmem:[#allocation10 + $0x3b0] sm:$0xff]  ;;  %v4014_v21 = vld [vmem:[#allocation10 + $0x14e8] sm:$0xff] }
 0xa73   :  { %4743 = vmatprep.subr.mxu0 %v3350_v36  ;;  %4537 = vmatpush2.msra.mxu1 %v3713_v42  ;;  %v3458_v46 = vld [vmem:[#allocation10 + $0x388] sm:$0xff]  ;;  %v4013_v36 = vld [vmem:[#allocation10 + $0x14e0] sm:$0xff] }
 0xa74   :  { %4744 = vmatpush1.msra.mxu0 %v3349_v29  ;;  %4538 = vmatprep.subr.mxu1 %v3708_v35  ;;  %v3457_v42 = vld [vmem:[#allocation10 + $0x380] sm:$0xff]  ;;  %v4008_v29 = vld [vmem:[#allocation10 + $0x14b8] sm:$0xff] }
 0xa75   :  { %4745 = vmatprep.subr.mxu0 %v3536_v34  ;;  %4539 = vmatpush2.msra.mxu1 %v3707_v48  ;;  %v3452_v35 = vld [vmem:[#allocation10 + $0x358] sm:$0xff]  ;;  %v4007_v34 = vld [vmem:[#allocation10 + $0x14b0] sm:$0xff] }
 0xa76   :  { %4746 = vmatpush2.msra.mxu0 %v3535_v16  ;;  %4540 = vmatprep.subr.mxu1 %v3702_v58  ;;  %v3451_v48 = vld [vmem:[#allocation10 + $0x350] sm:$0xff]  ;;  %v4002_v16 = vld [vmem:[#allocation10 + $0x1488] sm:$0xff] }
 0xa77   :  { %4747 = vmatprep.subr.mxu0 %v3530_v9  ;;  %4541 = vmatpush2.msra.mxu1 %v3701_v11  ;;  %v3446_v58 = vld [vmem:[#allocation10 + $0x328] sm:$0xff]  ;;  %v4001_v9 = vld [vmem:[#allocation10 + $0x1480] sm:$0xff] }
 0xa78   :  { %4748 = vmatpush2.msra.mxu0 %v3529_v8  ;;  %4542 = vmatprep.subr.mxu1 %v3696_v5  ;;  %v3445_v11 = vld [vmem:[#allocation10 + $0x320] sm:$0xff]  ;;  %v3996_v8 = vld [vmem:[#allocation10 + $0x1458] sm:$0xff] }
 0xa79   :  { %4749 = vmatprep.subr.mxu0 %v3524_v0  ;;  %4543 = vmatpush2.msra.mxu1 %v3695_v20  ;;  %v3824_v5 = vld [vmem:[#allocation10 + $0xef8] sm:$0xff]  ;;  %v3995_v0 = vld [vmem:[#allocation10 + $0x1450] sm:$0xff] }
 0xa7a   :  { %4750 = vmatpush2.msra.mxu0 %v3523_v30  ;;  %4544 = vmatprep.subr.mxu1 %v3690_v25  ;;  %v3823_v20 = vld [vmem:[#allocation10 + $0xef0] sm:$0xff]  ;;  %v3990_v30 = vld [vmem:[#allocation10 + $0x1428] sm:$0xff] }
 0xa7b   :  { %4751 = vmatprep.subr.mxu0 %v3518_v17  ;;  %4545 = vmatpush2.msra.mxu1 %v3689_v7  ;;  %v3818_v25 = vld [vmem:[#allocation10 + $0xec8] sm:$0xff]  ;;  %v3989_v17 = vld [vmem:[#allocation10 + $0x1420] sm:$0xff] }
 0xa7c   :  { %4752 = vmatpush2.msra.mxu0 %v3517_v12  ;;  %4546 = vmatprep.subr.mxu1 %v3684_v10  ;;  %v3817_v7 = vld [vmem:[#allocation10 + $0xec0] sm:$0xff]  ;;  %v3984_v12 = vld [vmem:[#allocation10 + $0x13f8] sm:$0xff] }
 0xa7d   :  { %4753 = vmatprep.subr.mxu0 %v3512_v1  ;;  %4547 = vmatpush2.msra.mxu1 %v3683_v26  ;;  %v3812_v10 = vld [vmem:[#allocation10 + $0xe98] sm:$0xff]  ;;  %v3983_v1 = vld [vmem:[#allocation10 + $0x13f0] sm:$0xff] }
 0xa7e   :  { %4754 = vmatpush2.msra.mxu0 %v3511_v49  ;;  %4548 = vmatprep.subr.mxu1 %v3678_v24  ;;  %v3811_v26 = vld [vmem:[#allocation10 + $0xe90] sm:$0xff]  ;;  %v3978_v49 = vld [vmem:[#allocation10 + $0x13c8] sm:$0xff] }
 0xa7f   :  { %4755 = vmatprep.subr.mxu0 %v3506_v6  ;;  %4549 = vmatpush2.msra.mxu1 %v3677_v23  ;;  %v3806_v24 = vld [vmem:[#allocation10 + $0xe68] sm:$0xff]  ;;  %v3805_v6 = vld [vmem:[#allocation10 + $0xe60] sm:$0xff]  ;;  %v3972_v23 = vld [vmem:[#allocation10 + $0x1398] sm:$0xff] }
 0xa80   :  { %4756 = vmatpush2.msra.mxu0 %v3505_v15  ;;  %4550 = vmatprep.subr.mxu1 %v3672_v50  ;;  %v3800_v15 = vld [vmem:[#allocation10 + $0xe38] sm:$0xff]  ;;  %v3971_v50 = vld [vmem:[#allocation10 + $0x1390] sm:$0xff] }
 0xa81   :  { %4757 = vmatprep.subr.mxu0 %v3500_v45  ;;  %4551 = vmatpush2.msra.mxu1 %v3671_v2  ;;  %v3966_v45 = vld [vmem:[#allocation10 + $0x1368] sm:$0xff] }
 0xa82   :  { %4758 = vmatpush2.msra.mxu0 %v3499_v32  ;;  %4552 = vmatprep.subr.mxu1 %v3666_v14  ;;  %v3794_v2 = vld [vmem:[#allocation10 + $0xe08] sm:$0xff]  ;;  %v3965_v32 = vld [vmem:[#allocation10 + $0x1360] sm:$0xff] }
 0xa83   :  { %4759 = vmatprep.subr.mxu0 %v3494_v18  ;;  %4553 = vmatpush2.msra.mxu1 %v3665_v19  ;;  %v3793_v14 = vld [vmem:[#allocation10 + $0xe00] sm:$0xff]  ;;  %v3960_v18 = vld [vmem:[#allocation10 + $0x1338] sm:$0xff] }
 0xa84   :  { %4760 = vmatpush2.msra.mxu0 %v3493_v27  ;;  %4554 = vmatprep.subr.mxu1 %v3660_v3  ;;  %v3788_v19 = vld [vmem:[#allocation10 + $0xdd8] sm:$0xff]  ;;  %v3959_v27 = vld [vmem:[#allocation10 + $0x1330] sm:$0xff] }
 0xa85   :  { %4761 = vmatprep.subr.mxu0 %v3488_v56  ;;  %4555 = vmatpush2.msra.mxu1 %v3659_v62  ;;  %v3787_v3 = vld [vmem:[#allocation10 + $0xdd0] sm:$0xff]  ;;  %v3954_v56 = vld [vmem:[#allocation10 + $0x1308] sm:$0xff] }
 0xa86   :  { %4762 = vmatpush2.msra.mxu0 %v3487_v44  ;;  %4556 = vmatprep.subr.mxu1 %v3654_v54  ;;  %v3782_v62 = vld [vmem:[#allocation10 + $0xda8] sm:$0xff]  ;;  %v3953_v44 = vld [vmem:[#allocation10 + $0x1300] sm:$0xff] }
 0xa87   :  { %4763 = vmatprep.subr.mxu0 %v3482_v31  ;;  %4557 = vmatpush2.msra.mxu1 %v3653_v63  ;;  %v3781_v54 = vld [vmem:[#allocation10 + $0xda0] sm:$0xff]  ;;  %v3948_v31 = vld [vmem:[#allocation10 + $0x12d8] sm:$0xff] }
 0xa88   :  { %4764 = vmatpush2.msra.mxu0 %v3481_v41  ;;  %4558 = vmatprep.subr.mxu1 %v3648_v43  ;;  %v3776_v63 = vld [vmem:[#allocation10 + $0xd78] sm:$0xff]  ;;  %v3947_v41 = vld [vmem:[#allocation10 + $0x12d0] sm:$0xff] }
 0xa89   :  { %4765 = vmatprep.subr.mxu0 %v3476_v52  ;;  %4559 = vmatpush2.msra.mxu1 %v3647_v4  ;;  %v3775_v43 = vld [vmem:[#allocation10 + $0xd70] sm:$0xff]  ;;  %v3942_v52 = vld [vmem:[#allocation10 + $0x12a8] sm:$0xff] }
 0xa8a   :  { %4766 = vmatpush2.msra.mxu0 %v3475_v40  ;;  %4560 = vmatprep.subr.mxu1 %v3642_v39  ;;  %v3770_v4 = vld [vmem:[#allocation10 + $0xd48] sm:$0xff]  ;;  %v3941_v40 = vld [vmem:[#allocation10 + $0x12a0] sm:$0xff] }
 0xa8b   :  { %4767 = vmatprep.subr.mxu0 %v3470_v22  ;;  %4561 = vmatpush2.msra.mxu1 %v3641_v51  ;;  %v3769_v39 = vld [vmem:[#allocation10 + $0xd40] sm:$0xff]  ;;  %v3936_v22 = vld [vmem:[#allocation10 + $0x1278] sm:$0xff] }
 0xa8c   :  { %4768 = vmatpush2.msra.mxu0 %v3469_v57  ;;  %4562 = vmatprep.subr.mxu1 %v3636_v59  ;;  %v3764_v51 = vld [vmem:[#allocation10 + $0xd18] sm:$0xff]  ;;  %v3935_v57 = vld [vmem:[#allocation10 + $0x1270] sm:$0xff] }
 0xa8d   :  { %4769 = vmatprep.subr.mxu0 %v3464_v28  ;;  %4563 = vmatpush2.msra.mxu1 %v3635_v55  ;;  %v3763_v59 = vld [vmem:[#allocation10 + $0xd10] sm:$0xff]  ;;  %v3930_v28 = vld [vmem:[#allocation10 + $0x1248] sm:$0xff] }
 0xa8e   :  { %4770 = vmatpush2.msra.mxu0 %v3463_v13  ;;  %4565 = vmatmul.mubr.f32.vlgmr.msra.gmra.mxu1 %v11778_v61  ;;  %v3758_v55 = vld [vmem:[#allocation10 + $0xce8] sm:$0xff]  ;;  %v3929_v13 = vld [vmem:[#allocation10 + $0x1240] sm:$0xff] }
 0xa8f   :  { %4642 = vmatprep.subr.mxu1 %v4014_v21  ;;  %4771 = vmatprep.subr.mxu0 %v3458_v46  ;;  %v3757_v21 = vld [vmem:[#allocation10 + $0xce0] sm:$0xff]  ;;  %v3924_v46 = vld [vmem:[#allocation10 + $0x1218] sm:$0xff] }
 0xa90   :  { %4643 = vmatpush1.msra.mxu1 %v4013_v36  ;;  %4706 = vmatprep.mubr.f32.mxu1 %v10039_v47  ;;  %v3752_v36 = vld [vmem:[#allocation10 + $0xcb8] sm:$0xff] }
 0xa91   :  { %4772 = vmatpush2.msra.mxu0 %v3457_v42  ;;  %4644 = vmatprep.subr.mxu1 %v4008_v29  ;;  %v3923_v42 = vld [vmem:[#allocation10 + $0x1210] sm:$0xff] }
 0xa92   :  { %4773 = vmatprep.subr.mxu0 %v3452_v35  ;;  %4645 = vmatpush1.msra.mxu1 %v4007_v34  ;;  %v3751_v29 = vld [vmem:[#allocation10 + $0xcb0] sm:$0xff]  ;;  %v4110_v35 = vld [vmem:[#allocation10 + $0x17e8] sm:$0xff] }
 0xa93   :  { %4774 = vmatpush2.msra.mxu0 %v3451_v48  ;;  %4646 = vmatprep.subr.mxu1 %v4002_v16  ;;  %v3746_v34 = vld [vmem:[#allocation10 + $0xc88] sm:$0xff]  ;;  %v4109_v48 = vld [vmem:[#allocation10 + $0x17e0] sm:$0xff] }
 0xa94   :  { %4775 = vmatprep.subr.mxu0 %v3446_v58  ;;  %4647 = vmatpush1.msra.mxu1 %v4001_v9  ;;  %v3745_v16 = vld [vmem:[#allocation10 + $0xc80] sm:$0xff]  ;;  %v4104_v58 = vld [vmem:[#allocation10 + $0x17b8] sm:$0xff] }
 0xa95   :  { %4776 = vmatpush2.msra.mxu0 %v3445_v11  ;;  %4648 = vmatprep.subr.mxu1 %v3996_v8  ;;  %v3740_v9 = vld [vmem:[#allocation10 + $0xc58] sm:$0xff]  ;;  %v4103_v11 = vld [vmem:[#allocation10 + $0x17b0] sm:$0xff] }
 0xa96   :  { %4778 = vmatmul.mubr.f32.vlgmr.msra.gmra.mxu0 %v11777_v60  ;;  %4855 = vmatprep.subr.mxu0 %v3824_v5  ;;  %v3977_v60 = vld [vmem:[#allocation10 + $0x13c0] sm:$0xff]  ;;  %v3739_v8 = vld [vmem:[#allocation10 + $0xc50] sm:$0xff]  ;;  %v4098_v5 = vld [vmem:[#allocation10 + $0x1788] sm:$0xff] }
 0xa97   :  { %4649 = vmatpush1.msra.mxu1 %v3995_v0  ;;  %4856 = vmatpush1.msra.mxu0 %v3823_v20  ;;  %v3734_v0 = vld [vmem:[#allocation10 + $0xc28] sm:$0xff]  ;;  %v4097_v20 = vld [vmem:[#allocation10 + $0x1780] sm:$0xff] }
 0xa98   :  { %4919 = vmatprep.mubr.f32.mxu0 %v9820_v38  ;;  %4650 = vmatprep.subr.mxu1 %v3990_v30  ;;  %v3799_v38 = vld [vmem:[#allocation10 + $0xe30] sm:$0xff]  ;;  %v3733_v30 = vld [vmem:[#allocation10 + $0xc20] sm:$0xff] }
 0xa99   :  { %4857 = vmatprep.subr.mxu0 %v3818_v25  ;;  %4651 = vmatpush1.msra.mxu1 %v3989_v17  ;;  %v4092_v25 = vld [vmem:[#allocation10 + $0x1758] sm:$0xff] }
 0xa9a   :  { %4858 = vmatpush1.msra.mxu0 %v3817_v7  ;;  %4652 = vmatprep.subr.mxu1 %v3984_v12  ;;  %v3920_v17 = vld [vmem:[#allocation10 + $0x11f8] sm:$0xff]  ;;  %v4091_v7 = vld [vmem:[#allocation10 + $0x1750] sm:$0xff] }
 0xa9b   :  { %4859 = vmatprep.subr.mxu0 %v3812_v10  ;;  %4653 = vmatpush1.msra.mxu1 %v3983_v1  ;;  %v3919_v12 = vld [vmem:[#allocation10 + $0x11f0] sm:$0xff]  ;;  %v4086_v10 = vld [vmem:[#allocation10 + $0x1728] sm:$0xff] }
 0xa9c   :  { %4860 = vmatpush1.msra.mxu0 %v3811_v26  ;;  %4654 = vmatprep.subr.mxu1 %v3978_v49  ;;  %v3914_v1 = vld [vmem:[#allocation10 + $0x11c8] sm:$0xff]  ;;  %v4085_v26 = vld [vmem:[#allocation10 + $0x1720] sm:$0xff] }
 0xa9d   :  { %4861 = vmatprep.subr.mxu0 %v3806_v24  ;;  %4655 = vmatpush1.msra.mxu1 %v3977_v60  ;;  %v3913_v49 = vld [vmem:[#allocation10 + $0x11c0] sm:$0xff]  ;;  %v4080_v24 = vld [vmem:[#allocation10 + $0x16f8] sm:$0xff] }
 0xa9e   :  { %4862 = vmatpush1.msra.mxu0 %v3805_v6  ;;  %4656 = vmatprep.subr.mxu1 %v3972_v23  ;;  %v3908_v60 = vld [vmem:[#allocation10 + $0x1198] sm:$0xff]  ;;  %v4079_v6 = vld [vmem:[#allocation10 + $0x16f0] sm:$0xff] }
 0xa9f   :  { %4863 = vmatprep.subr.mxu0 %v3800_v15  ;;  %4657 = vmatpush1.msra.mxu1 %v3971_v50  ;;  %v3907_v23 = vld [vmem:[#allocation10 + $0x1190] sm:$0xff]  ;;  %v4074_v15 = vld [vmem:[#allocation10 + $0x16c8] sm:$0xff] }
 0xaa0   :  { %4864 = vmatpush1.msra.mxu0 %v3799_v38  ;;  %4658 = vmatprep.subr.mxu1 %v3966_v45  ;;  %v3902_v50 = vld [vmem:[#allocation10 + $0x1168] sm:$0xff]  ;;  %v4073_v38 = vld [vmem:[#allocation10 + $0x16c0] sm:$0xff] }
 0xaa1   :  { %4865 = vmatprep.subr.mxu0 %v3794_v2  ;;  %4659 = vmatpush1.msra.mxu1 %v3965_v32  ;;  %v3901_v45 = vld [vmem:[#allocation10 + $0x1160] sm:$0xff]  ;;  %v4068_v2 = vld [vmem:[#allocation10 + $0x1698] sm:$0xff] }
 0xaa2   :  { %4866 = vmatpush1.msra.mxu0 %v3793_v14  ;;  %4660 = vmatprep.subr.mxu1 %v3960_v18  ;;  %v3896_v32 = vld [vmem:[#allocation10 + $0x1138] sm:$0xff]  ;;  %v4067_v14 = vld [vmem:[#allocation10 + $0x1690] sm:$0xff] }
 0xaa3   :  { %4867 = vmatprep.subr.mxu0 %v3788_v19  ;;  %4661 = vmatpush1.msra.mxu1 %v3959_v27  ;;  %v3895_v18 = vld [vmem:[#allocation10 + $0x1130] sm:$0xff]  ;;  %v4062_v19 = vld [vmem:[#allocation10 + $0x1668] sm:$0xff] }
 0xaa4   :  { %4868 = vmatpush1.msra.mxu0 %v3787_v3  ;;  %4662 = vmatprep.subr.mxu1 %v3954_v56  ;;  %v3890_v27 = vld [vmem:[#allocation10 + $0x1108] sm:$0xff]  ;;  %v4061_v3 = vld [vmem:[#allocation10 + $0x1660] sm:$0xff] }
 0xaa5   :  { %4869 = vmatprep.subr.mxu0 %v3782_v62  ;;  %4663 = vmatpush1.msra.mxu1 %v3953_v44  ;;  %v3889_v56 = vld [vmem:[#allocation10 + $0x1100] sm:$0xff]  ;;  %v4056_v62 = vld [vmem:[#allocation10 + $0x1638] sm:$0xff] }
 0xaa6   :  { %4870 = vmatpush1.msra.mxu0 %v3781_v54  ;;  %4664 = vmatprep.subr.mxu1 %v3948_v31  ;;  %v3884_v44 = vld [vmem:[#allocation10 + $0x10d8] sm:$0xff]  ;;  %v4055_v54 = vld [vmem:[#allocation10 + $0x1630] sm:$0xff] }
 0xaa7   :  { %4871 = vmatprep.subr.mxu0 %v3776_v63  ;;  %4665 = vmatpush1.msra.mxu1 %v3947_v41  ;;  %v3883_v31 = vld [vmem:[#allocation10 + $0x10d0] sm:$0xff]  ;;  %v4050_v63 = vld [vmem:[#allocation10 + $0x1608] sm:$0xff] }
 0xaa8   :  { %4872 = vmatpush1.msra.mxu0 %v3775_v43  ;;  %4666 = vmatprep.subr.mxu1 %v3942_v52  ;;  %v3878_v41 = vld [vmem:[#allocation10 + $0x10a8] sm:$0xff]  ;;  %v4049_v43 = vld [vmem:[#allocation10 + $0x1600] sm:$0xff] }
 0xaa9   :  { %4873 = vmatprep.subr.mxu0 %v3770_v4  ;;  %4667 = vmatpush1.msra.mxu1 %v3941_v40  ;;  %v3877_v52 = vld [vmem:[#allocation10 + $0x10a0] sm:$0xff]  ;;  %v4044_v4 = vld [vmem:[#allocation10 + $0x15d8] sm:$0xff] }
 0xaaa   :  { %4874 = vmatpush1.msra.mxu0 %v3769_v39  ;;  %4668 = vmatprep.subr.mxu1 %v3936_v22  ;;  %v3872_v40 = vld [vmem:[#allocation10 + $0x1078] sm:$0xff]  ;;  %v4043_v39 = vld [vmem:[#allocation10 + $0x15d0] sm:$0xff] }
 0xaab   :  { %4875 = vmatprep.subr.mxu0 %v3764_v51  ;;  %4669 = vmatpush1.msra.mxu1 %v3935_v57  ;;  %v3871_v22 = vld [vmem:[#allocation10 + $0x1070] sm:$0xff]  ;;  %v4038_v51 = vld [vmem:[#allocation10 + $0x15a8] sm:$0xff] }
 0xaac   :  { %4876 = vmatpush1.msra.mxu0 %v3763_v59  ;;  %4670 = vmatprep.subr.mxu1 %v3930_v28  ;;  %v3866_v57 = vld [vmem:[#allocation10 + $0x1048] sm:$0xff]  ;;  %v4037_v59 = vld [vmem:[#allocation10 + $0x15a0] sm:$0xff] }
 0xaad   :  { %4877 = vmatprep.subr.mxu0 %v3758_v55  ;;  %4671 = vmatpush1.msra.mxu1 %v3929_v13  ;;  %v3865_v28 = vld [vmem:[#allocation10 + $0x1040] sm:$0xff]  ;;  %v4032_v55 = vld [vmem:[#allocation10 + $0x1578] sm:$0xff] }
 0xaae   :  { %4878 = vmatpush1.msra.mxu0 %v3757_v21  ;;  %4672 = vmatprep.subr.mxu1 %v3924_v46  ;;  %v3860_v13 = vld [vmem:[#allocation10 + $0x1018] sm:$0xff]  ;;  %v4031_v21 = vld [vmem:[#allocation10 + $0x1570] sm:$0xff] }
 0xaaf   :  { %4879 = vmatprep.subr.mxu0 %v3752_v36  ;;  %4673 = vmatpush1.msra.mxu1 %v3923_v42  ;;  %v3859_v46 = vld [vmem:[#allocation10 + $0x1010] sm:$0xff]  ;;  %v4026_v36 = vld [vmem:[#allocation10 + $0x1548] sm:$0xff] }
 0xab0   :  { %4880 = vmatpush1.msra.mxu0 %v3751_v29  ;;  %4674 = vmatprep.subr.mxu1 %v4110_v35  ;;  %v3854_v42 = vld [vmem:[#allocation10 + $0xfe8] sm:$0xff]  ;;  %v4025_v29 = vld [vmem:[#allocation10 + $0x1540] sm:$0xff] }
 0xab1   :  { %4881 = vmatprep.subr.mxu0 %v3746_v34  ;;  %4675 = vmatpush2.msra.mxu1 %v4109_v48  ;;  %v3853_v35 = vld [vmem:[#allocation10 + $0xfe0] sm:$0xff]  ;;  %v4020_v34 = vld [vmem:[#allocation10 + $0x1518] sm:$0xff] }
 0xab2   :  { %4882 = vmatpush1.msra.mxu0 %v3745_v16  ;;  %4676 = vmatprep.subr.mxu1 %v4104_v58  ;;  %v3848_v48 = vld [vmem:[#allocation10 + $0xfb8] sm:$0xff]  ;;  %v4019_v16 = vld [vmem:[#allocation10 + $0x1510] sm:$0xff] }
 0xab3   :  { %4883 = vmatprep.subr.mxu0 %v3740_v9  ;;  %4677 = vmatpush2.msra.mxu1 %v4103_v11  ;;  %v3847_v58 = vld [vmem:[#allocation10 + $0xfb0] sm:$0xff]  ;;  %v3632_v9 = vld [vmem:[#allocation10 + $0x8f8] sm:$0xff]  ;;  %v3842_v11 = vld [vmem:[#allocation10 + $0xf88] sm:$0xff] }
 0xab4   :  { %4884 = vmatpush1.msra.mxu0 %v3739_v8  ;;  %4678 = vmatprep.subr.mxu1 %v4098_v5  ;;  %v3631_v8 = vld [vmem:[#allocation10 + $0x8f0] sm:$0xff]  ;;  %v3841_v5 = vld [vmem:[#allocation10 + $0xf80] sm:$0xff] }
 0xab5   :  { %4885 = vmatprep.subr.mxu0 %v3734_v0  ;;  %4679 = vmatpush2.msra.mxu1 %v4097_v20  ;;  %v3626_v0 = vld [vmem:[#allocation10 + $0x8c8] sm:$0xff]  ;;  %v3836_v20 = vld [vmem:[#allocation10 + $0xf58] sm:$0xff] }
 0xab6   :  { %4886 = vmatpush1.msra.mxu0 %v3733_v30  ;;  %4680 = vmatprep.subr.mxu1 %v4092_v25  ;;  %v3625_v30 = vld [vmem:[#allocation10 + $0x8c0] sm:$0xff]  ;;  %v3835_v25 = vld [vmem:[#allocation10 + $0xf50] sm:$0xff] }
 0xab7   :  { %4887 = vmatprep.subr.mxu0 %v3920_v17  ;;  %4681 = vmatpush2.msra.mxu1 %v4091_v7  ;;  %v3620_v17 = vld [vmem:[#allocation10 + $0x898] sm:$0xff]  ;;  %v3830_v7 = vld [vmem:[#allocation10 + $0xf28] sm:$0xff] }
 0xab8   :  { %4888 = vmatpush2.msra.mxu0 %v3919_v12  ;;  %4682 = vmatprep.subr.mxu1 %v4086_v10  ;;  %v3619_v12 = vld [vmem:[#allocation10 + $0x890] sm:$0xff]  ;;  %v3829_v10 = vld [vmem:[#allocation10 + $0xf20] sm:$0xff] }
 0xab9   :  { %4889 = vmatprep.subr.mxu0 %v3914_v1  ;;  %4683 = vmatpush2.msra.mxu1 %v4085_v26  ;;  %v3614_v1 = vld [vmem:[#allocation10 + $0x868] sm:$0xff]  ;;  %v3613_v26 = vld [vmem:[#allocation10 + $0x860] sm:$0xff] }
 0xaba   :  { %4890 = vmatpush2.msra.mxu0 %v3913_v49  ;;  %4684 = vmatprep.subr.mxu1 %v4080_v24  ;;  %v3608_v49 = vld [vmem:[#allocation10 + $0x838] sm:$0xff] }
 0xabb   :  { %4891 = vmatprep.subr.mxu0 %v3908_v60  ;;  %4685 = vmatpush2.msra.mxu1 %v4079_v6  ;;  %v5028_v24 = vld [vmem:[#allocation13 + $0xf8] sm:$0xff]  ;;  %v3602_v6 = vld [vmem:[#allocation10 + $0x808] sm:$0xff] }
 0xabc   :  { %4892 = vmatpush2.msra.mxu0 %v3907_v23  ;;  %4686 = vmatprep.subr.mxu1 %v4074_v15  ;;  %v5012_v60 = vld [vmem:[#allocation13 + $0x78] sm:$0xff]  ;;  %v5027_v23 = vld [vmem:[#allocation13 + $0xf0] sm:$0xff] }
 0xabd   :  { %4893 = vmatprep.subr.mxu0 %v3902_v50  ;;  %4687 = vmatpush2.msra.mxu1 %v4073_v38  ;;  %v3601_v15 = vld [vmem:[#allocation10 + $0x800] sm:$0xff]  ;;  %v5011_v50 = vld [vmem:[#allocation13 + $0x70] sm:$0xff] }
 0xabe   :  { %4894 = vmatpush2.msra.mxu0 %v3901_v45  ;;  %4688 = vmatprep.subr.mxu1 %v4068_v2  ;;  %v3596_v38 = vld [vmem:[#allocation10 + $0x7d8] sm:$0xff]  ;;  %v5026_v45 = vld [vmem:[#allocation13 + $0xe8] sm:$0xff] }
 0xabf   :  { %4895 = vmatprep.subr.mxu0 %v3896_v32  ;;  %4689 = vmatpush2.msra.mxu1 %v4067_v14  ;;  %v3595_v2 = vld [vmem:[#allocation10 + $0x7d0] sm:$0xff]  ;;  %v3590_v14 = vld [vmem:[#allocation10 + $0x7a8] sm:$0xff] }
 0xac0   :  { %4896 = vmatpush2.msra.mxu0 %v3895_v18  ;;  %4690 = vmatprep.subr.mxu1 %v4062_v19  ;;  %v5010_v32 = vld [vmem:[#allocation13 + $0x68] sm:$0xff]  ;;  %v5025_v18 = vld [vmem:[#allocation13 + $0xe0] sm:$0xff] }
 0xac1   :  { %4897 = vmatprep.subr.mxu0 %v3890_v27  ;;  %4691 = vmatpush2.msra.mxu1 %v4061_v3  ;;  %v5009_v19 = vld [vmem:[#allocation13 + $0x60] sm:$0xff]  ;;  %v3584_v27 = vld [vmem:[#allocation10 + $0x778] sm:$0xff] }
 0xac2   :  { %4898 = vmatpush2.msra.mxu0 %v3889_v56  ;;  %4692 = vmatprep.subr.mxu1 %v4056_v62  ;;  %v5024_v3 = vld [vmem:[#allocation13 + $0xd8] sm:$0xff]  ;;  %v3583_v56 = vld [vmem:[#allocation10 + $0x770] sm:$0xff] }
 0xac3   :  { %4899 = vmatprep.subr.mxu0 %v3884_v44  ;;  %4693 = vmatpush2.msra.mxu1 %v4055_v54  ;;  %v5008_v62 = vld [vmem:[#allocation13 + $0x58] sm:$0xff]  ;;  %v3578_v44 = vld [vmem:[#allocation10 + $0x748] sm:$0xff]  ;;  %v5023_v54 = vld [vmem:[#allocation13 + $0xd0] sm:$0xff] }
 0xac4   :  { %4900 = vmatpush2.msra.mxu0 %v3883_v31  ;;  %4694 = vmatprep.subr.mxu1 %v4050_v63  ;;  %v3577_v31 = vld [vmem:[#allocation10 + $0x740] sm:$0xff]  ;;  %v5007_v63 = vld [vmem:[#allocation13 + $0x50] sm:$0xff] }
 0xac5   :  { %4901 = vmatprep.subr.mxu0 %v3878_v41  ;;  %4695 = vmatpush2.msra.mxu1 %v4049_v43  ;;  %v3572_v41 = vld [vmem:[#allocation10 + $0x718] sm:$0xff]  ;;  %v5022_v43 = vld [vmem:[#allocation13 + $0xc8] sm:$0xff] }
 0xac6   :  { %4902 = vmatpush2.msra.mxu0 %v3877_v52  ;;  %4696 = vmatprep.subr.mxu1 %v4044_v4  ;;  %v3571_v52 = vld [vmem:[#allocation10 + $0x710] sm:$0xff] }
 0xac7   :  { %4903 = vmatprep.subr.mxu0 %v3872_v40  ;;  %4697 = vmatpush2.msra.mxu1 %v4043_v39  ;;  %v5006_v4 = vld [vmem:[#allocation13 + $0x48] sm:$0xff]  ;;  %v5021_v39 = vld [vmem:[#allocation13 + $0xc0] sm:$0xff] }
 0xac8   :  { %4904 = vmatpush2.msra.mxu0 %v3871_v22  ;;  %4698 = vmatprep.subr.mxu1 %v4038_v51  ;;  %v3566_v40 = vld [vmem:[#allocation10 + $0x6e8] sm:$0xff]  ;;  %v3565_v22 = vld [vmem:[#allocation10 + $0x6e0] sm:$0xff] }
 0xac9   :  { %4905 = vmatprep.subr.mxu0 %v3866_v57  ;;  %4699 = vmatpush2.msra.mxu1 %v4037_v59  ;;  %v5005_v51 = vld [vmem:[#allocation13 + $0x40] sm:$0xff]  ;;  %v3560_v57 = vld [vmem:[#allocation10 + $0x6b8] sm:$0xff] }
 0xaca   :  { %4906 = vmatpush2.msra.mxu0 %v3865_v28  ;;  %4700 = vmatprep.subr.mxu1 %v4032_v55  ;;  %v5020_v59 = vld [vmem:[#allocation13 + $0xb8] sm:$0xff]  ;;  %v3559_v28 = vld [vmem:[#allocation10 + $0x6b0] sm:$0xff] }
 0xacb   :  { %4907 = vmatprep.subr.mxu0 %v3860_v13  ;;  %4701 = vmatpush2.msra.mxu1 %v4031_v21  ;;  %v5004_v55 = vld [vmem:[#allocation13 + $0x38] sm:$0xff]  ;;  %v3554_v13 = vld [vmem:[#allocation10 + $0x688] sm:$0xff]  ;;  %v5019_v21 = vld [vmem:[#allocation13 + $0xb0] sm:$0xff] }
 0xacc   :  { %4908 = vmatpush2.msra.mxu0 %v3859_v46  ;;  %4702 = vmatprep.subr.mxu1 %v4026_v36  ;;  %v3553_v46 = vld [vmem:[#allocation10 + $0x680] sm:$0xff]  ;;  %v5003_v36 = vld [vmem:[#allocation13 + $0x30] sm:$0xff] }
 0xacd   :  { %4909 = vmatprep.subr.mxu0 %v3854_v42  ;;  %4703 = vmatpush2.msra.mxu1 %v4025_v29  ;;  %v3548_v42 = vld [vmem:[#allocation10 + $0x658] sm:$0xff]  ;;  %v5018_v29 = vld [vmem:[#allocation13 + $0xa8] sm:$0xff] }
 0xace   :  { %4910 = vmatpush2.msra.mxu0 %v3853_v35  ;;  %4704 = vmatprep.subr.mxu1 %v4020_v34  ;;  %v3547_v35 = vld [vmem:[#allocation10 + $0x650] sm:$0xff] }
 0xacf   :  { %4911 = vmatprep.subr.mxu0 %v3848_v48  ;;  %4705 = vmatpush2.msra.mxu1 %v4019_v16  ;;  %v5002_v34 = vld [vmem:[#allocation13 + $0x28] sm:$0xff]  ;;  %v5017_v16 = vld [vmem:[#allocation13 + $0xa0] sm:$0xff] }
 0xad0   :  { %4912 = vmatpush2.msra.mxu0 %v3847_v58  ;;  %4707 = vmatmul.mubr.f32.vlgmr.msra.gmra.mxu1 %v10020_v37  ;;  %v3542_v48 = vld [vmem:[#allocation10 + $0x628] sm:$0xff]  ;;  %v3541_v58 = vld [vmem:[#allocation10 + $0x620] sm:$0xff] }
 0xad1   :  { %4784 = vmatprep.subr.mxu1 %v3632_v9  ;;  %4913 = vmatprep.subr.mxu0 %v3842_v11  ;;  %v5001_v9 = vld [vmem:[#allocation13 + $0x20] sm:$0xff]  ;;  %v3728_v11 = vld [vmem:[#allocation10 + $0xbf8] sm:$0xff] }
 0xad2   :  { %4785 = vmatpush1.msra.mxu1 %v3631_v8  ;;  %4848 = vmatprep.mubr.f32.mxu1 %v11776_v53  ;;  %v3607_v53 = vld [vmem:[#allocation10 + $0x830] sm:$0xff]  ;;  %v5016_v8 = vld [vmem:[#allocation13 + $0x98] sm:$0xff] }
 0xad3   :  { %4914 = vmatpush2.msra.mxu0 %v3841_v5  ;;  %4786 = vmatprep.subr.mxu1 %v3626_v0  ;;  %v3727_v5 = vld [vmem:[#allocation10 + $0xbf0] sm:$0xff]  ;;  %v5000_v0 = vld [vmem:[#allocation13 + $0x18] sm:$0xff] }
 0xad4   :  { %4915 = vmatprep.subr.mxu0 %v3836_v20  ;;  %4787 = vmatpush1.msra.mxu1 %v3625_v30  ;;  %v3722_v20 = vld [vmem:[#allocation10 + $0xbc8] sm:$0xff]  ;;  %v5015_v30 = vld [vmem:[#allocation13 + $0x90] sm:$0xff] }
 0xad5   :  { %4916 = vmatpush2.msra.mxu0 %v3835_v25  ;;  %4788 = vmatprep.subr.mxu1 %v3620_v17  ;;  %v3721_v25 = vld [vmem:[#allocation10 + $0xbc0] sm:$0xff]  ;;  %v4999_v17 = vld [vmem:[#allocation13 + $0x10] sm:$0xff] }
 0xad6   :  { %4917 = vmatprep.subr.mxu0 %v3830_v7  ;;  %4789 = vmatpush1.msra.mxu1 %v3619_v12  ;;  %v3716_v7 = vld [vmem:[#allocation10 + $0xb98] sm:$0xff]  ;;  %v5014_v12 = vld [vmem:[#allocation13 + $0x88] sm:$0xff] }
 0xad7   :  { %4918 = vmatpush2.msra.mxu0 %v3829_v10  ;;  %4790 = vmatprep.subr.mxu1 %v3614_v1  ;;  %v3715_v10 = vld [vmem:[#allocation10 + $0xb90] sm:$0xff] }
 0xad8   :  { %4920 = vmatmul.mubr.f32.vlgmr.msra.gmra.mxu0 %v11779_v33  ;;  %4791 = vmatpush1.msra.mxu1 %v3613_v26  ;;  %v3589_v33 = vld [vmem:[#allocation10 + $0x7a0] sm:$0xff]  ;;  %v4998_v1 = vld [vmem:[#allocation13 + $0x8] sm:$0xff] }
 0xad9   :  { %4792 = vmatprep.subr.mxu1 %v3608_v49  ;;  %5389 = vmatprep.subr.mxu0 %v5028_v24  ;;  %v3710_v26 = vld [vmem:[#allocation10 + $0xb68] sm:$0xff]  ;;  %v3709_v24 = vld [vmem:[#allocation10 + $0xb60] sm:$0xff] }
 0xada   :  { %4793 = vmatpush1.msra.mxu1 %v3607_v53  ;;  %5390 = vmatpush3.msra.mxu0 %v5012_v60  ;;  %v5013_v49 = vld [vmem:[#allocation13 + $0x80] sm:$0xff]  ;;  %v3704_v60 = vld [vmem:[#allocation10 + $0xb38] sm:$0xff] }
 0xadb   :  { %4794 = vmatprep.subr.mxu1 %v3602_v6  ;;  %5391 = vmatprep.subr.mxu0 %v5027_v23  ;;  %v4997_v53 = vld [vmem:[#allocation13] sm:$0xff]  ;;  %v3703_v6 = vld [vmem:[#allocation10 + $0xb30] sm:$0xff] }
 0xadc   :  { %4795 = vmatpush1.msra.mxu1 %v3601_v15  ;;  %5392 = vmatpush3.msra.mxu0 %v5011_v50  ;;  %v3698_v23 = vld [vmem:[#allocation10 + $0xb08] sm:$0xff]  ;;  %v3697_v15 = vld [vmem:[#allocation10 + $0xb00] sm:$0xff]  ;;  %v3692_v50 = vld [vmem:[#allocation10 + $0xad8] sm:$0xff] }
 0xadd   :  { %4796 = vmatprep.subr.mxu1 %v3596_v38  ;;  %5393 = vmatprep.subr.mxu0 %v5026_v45  ;;  %v3691_v38 = vld [vmem:[#allocation10 + $0xad0] sm:$0xff]  ;;  %v3686_v45 = vld [vmem:[#allocation10 + $0xaa8] sm:$0xff] }
 0xade   :  { %4797 = vmatpush1.msra.mxu1 %v3595_v2  ;;  %5394 = vmatpush3.msra.mxu0 %v5010_v32  ;;  %v3685_v2 = vld [vmem:[#allocation10 + $0xaa0] sm:$0xff]  ;;  %v3680_v32 = vld [vmem:[#allocation10 + $0xa78] sm:$0xff] }
 0xadf   :  { %4798 = vmatprep.subr.mxu1 %v3590_v14  ;;  %5395 = vmatprep.subr.mxu0 %v5025_v18  ;;  %v3679_v14 = vld [vmem:[#allocation10 + $0xa70] sm:$0xff]  ;;  %v4211_v18 = vpop.f32.mrf.mxu0 }
 0xae0   :  { %4799 = vmatpush1.msra.mxu1 %v3589_v33  ;;  %5396 = vmatpush3.msra.mxu0 %v5009_v19  ;;  %v3674_v33 = vld [vmem:[#allocation10 + $0xa48] sm:$0xff]  ;;  %v3673_v19 = vld [vmem:[#allocation10 + $0xa40] sm:$0xff] }
 0xae1   :  { %4800 = vmatprep.subr.mxu1 %v3584_v27  ;;  %5397 = vmatprep.subr.mxu0 %v5024_v3  ;;  %v10053_v27 = vld [vmem:[#allocation12] sm:$0x3f]  ;;  %v3668_v3 = vld [vmem:[#allocation10 + $0xa18] sm:$0xff] }
 0xae2   :  { %4801 = vmatpush1.msra.mxu1 %v3583_v56  ;;  %5398 = vmatpush3.msra.mxu0 %v5008_v62  ;;  %v11780_v56 = vld [vmem:[#allocation154_spill] sm:$0xff] }
 0xae3   :  { %4802 = vmatprep.subr.mxu1 %v3578_v44  ;;  %5399 = vmatprep.subr.mxu0 %v5023_v54  ;;  %v4122_v62 = vrot.slane %v10053_v27, %v11780_v56  ;;  %v3667_v44 = vld [vmem:[#allocation10 + $0xa10] sm:$0xff]  ;;  %v4213_v54 = vpop.f32.mrf.mxu0  ;;  %v4112_v56 = vld [vmem:[#allocation10 + $0x17f8] sm:$0xff] }
 0xae4   :  { %4803 = vmatpush1.msra.mxu1 %v3577_v31  ;;  %5400 = vmatpush3.msra.mxu0 %v5007_v63  ;;  %v3662_v31 = vld [vmem:[#allocation10 + $0x9e8] sm:$0xff]  ;;  %v3661_v63 = vld [vmem:[#allocation10 + $0x9e0] sm:$0xff] }
 0xae5   :  { %4804 = vmatprep.subr.mxu1 %v3572_v41  ;;  %5401 = vmatprep.subr.mxu0 %v5022_v43  ;;  %v11781_v41 = vld [vmem:[#allocation152_spill] sm:$0xff] }
 0xae6   :  { %4805 = vmatpush1.msra.mxu1 %v3571_v52  ;;  %5402 = vmatpush3.msra.mxu0 %v5006_v4  ;;  %v4118_v43 = vrot.slane %v10053_v27, %v11781_v41  ;;  %v4282_v52 = vpop.f32.mrf.mxu1  ;;  %v4353_v4 = vpop.f32.mrf.mxu0  ;;  %v4094_v41 = vld [vmem:[#allocation10 + $0x1768] sm:$0xff] }
 0xae7   :  { %4806 = vmatprep.subr.mxu1 %v3566_v40  ;;  %5403 = vmatprep.subr.mxu0 %v5021_v39  ;;  %v3656_v40 = vld [vmem:[#allocation10 + $0x9b8] sm:$0xff]  ;;  %v4214_v39 = vadd.f32 %v4213_v54, %v4122_v62  ;;  %v4111_v62 = vld [vmem:[#allocation10 + $0x17f0] sm:$0xff]  ;;  %v4105_v54 = vld [vmem:[#allocation10 + $0x17c0] sm:$0xff] }
 0xae8   :  { %4807 = vmatpush1.msra.mxu1 %v3565_v22  ;;  %5404 = vmatpush3.msra.mxu0 %v5005_v51  ;;  %v3655_v22 = vld [vmem:[#allocation10 + $0x9b0] sm:$0xff]  ;;  %v3650_v51 = vld [vmem:[#allocation10 + $0x988] sm:$0xff] }
 0xae9   :  { %4808 = vmatprep.subr.mxu1 %v3560_v57  ;;  %5405 = vmatprep.subr.mxu0 %v5020_v59  ;;  %v3649_v57 = vld [vmem:[#allocation10 + $0x980] sm:$0xff]  ;;  %v4212_v59 = vadd.f32 %v4211_v18, %v4118_v43  ;;  %v3932_v18 = vld [vmem:[#allocation10 + $0x1258] sm:$0xff] }
 0xaea   :  { %4809 = vmatpush1.msra.mxu1 %v3559_v28  ;;  %5406 = vmatpush3.msra.mxu0 %v5004_v55  ;;  %v4284_v28 = vpop.f32.mrf.mxu1  ;;  %v4355_v55 = vpop.f32.mrf.mxu0  ;;  %v4093_v43 = vld [vmem:[#allocation10 + $0x1760] sm:$0xff] }
 0xaeb   :  { %4810 = vmatprep.subr.mxu1 %v3554_v13  ;;  %5407 = vmatprep.subr.mxu0 %v5019_v21  ;;  %v3644_v13 = vld [vmem:[#allocation10 + $0x958] sm:$0xff]  ;;  %v4285_v21 = vadd.f32 %v4284_v28, %v4214_v39  ;;  %v4081_v39 = vld [vmem:[#allocation10 + $0x1700] sm:$0xff] }
 0xaec   :  { %4811 = vmatpush1.msra.mxu1 %v3553_v46  ;;  %5408 = vmatpush3.msra.mxu0 %v5003_v36  ;;  %v3643_v46 = vld [vmem:[#allocation10 + $0x950] sm:$0xff]  ;;  %v3638_v36 = vld [vmem:[#allocation10 + $0x928] sm:$0xff]  ;;  %v4064_v28 = vld [vmem:[#allocation10 + $0x1678] sm:$0xff] }
 0xaed   :  { %4812 = vmatprep.subr.mxu1 %v3548_v42  ;;  %5409 = vmatprep.subr.mxu0 %v5018_v29  ;;  %v4356_v29 = vadd.f32 %v4355_v55, %v4285_v21  ;;  %v4063_v55 = vld [vmem:[#allocation10 + $0x1670] sm:$0xff]  ;;  %v4057_v21 = vld [vmem:[#allocation10 + $0x1640] sm:$0xff] }
 0xaee   :  { %4813 = vmatpush1.msra.mxu1 %v3547_v35  ;;  %5410 = vmatpush3.msra.mxu0 %v5002_v34  ;;  %v3637_v35 = vld [vmem:[#allocation10 + $0x920] sm:$0xff]  ;;  %v4283_v34 = vadd.f32 %v4282_v52, %v4212_v59  ;;  %v4088_v52 = vld [vmem:[#allocation10 + $0x1738] sm:$0xff] }
 0xaef   :  { %4814 = vmatprep.subr.mxu1 %v3542_v48  ;;  %5411 = vmatprep.subr.mxu0 %v5017_v16  ;;  %v4016_v48 = vld [vmem:[#allocation10 + $0x14f8] sm:$0xff]  ;;  %v4069_v59 = vld [vmem:[#allocation10 + $0x16a0] sm:$0xff] }
 0xaf0   :  { %4815 = vmatpush1.msra.mxu1 %v3541_v58  ;;  %5412 = vmatpush3.msra.mxu0 %v5001_v9  ;;  %v4015_v58 = vld [vmem:[#allocation10 + $0x14f0] sm:$0xff] }
 0xaf1   :  { %4816 = vmatprep.subr.mxu1 %v3728_v11  ;;  %5413 = vmatprep.subr.mxu0 %v5016_v8  ;;  %v4354_v11 = vadd.f32 %v4353_v4, %v4283_v34  ;;  %v4010_v8 = vld [vmem:[#allocation10 + $0x14c8] sm:$0xff]  ;;  %v4087_v4 = vld [vmem:[#allocation10 + $0x1730] sm:$0xff] }
 0xaf2   :  { %4817 = vmatpush2.msra.mxu1 %v3727_v5  ;;  %5414 = vmatpush3.msra.mxu0 %v5000_v0  ;;  %v4009_v5 = vld [vmem:[#allocation10 + $0x14c0] sm:$0xff]  ;;  %v4039_v34 = vld [vmem:[#allocation10 + $0x15b0] sm:$0xff] }
 0xaf3   :  { %4818 = vmatprep.subr.mxu1 %v3722_v20  ;;  %5415 = vmatprep.subr.mxu0 %v5015_v30  ;;  %v4004_v20 = vld [vmem:[#allocation10 + $0x1498] sm:$0xff]  ;;  %v4003_v30 = vld [vmem:[#allocation10 + $0x1490] sm:$0xff] }
 0xaf4   :  { %4819 = vmatpush2.msra.mxu1 %v3721_v25  ;;  %5416 = vmatpush3.msra.mxu0 %v4999_v17  ;;  %v3998_v25 = vld [vmem:[#allocation10 + $0x1468] sm:$0xff]  ;;  %v3997_v17 = vld [vmem:[#allocation10 + $0x1460] sm:$0xff] }
 0xaf5   :  { %4820 = vmatprep.subr.mxu1 %v3716_v7  ;;  %5417 = vmatprep.subr.mxu0 %v5014_v12  ;;  %v3992_v7 = vld [vmem:[#allocation10 + $0x1438] sm:$0xff]  ;;  %v3991_v12 = vld [vmem:[#allocation10 + $0x1430] sm:$0xff] }
 0xaf6   :  { %4821 = vmatpush2.msra.mxu1 %v3715_v10  ;;  %5418 = vmatpush3.msra.mxu0 %v4998_v1  ;;  %v3985_v10 = vld [vmem:[#allocation10 + $0x1400] sm:$0xff]  ;;  %v3980_v1 = vld [vmem:[#allocation10 + $0x13d8] sm:$0xff] }
 0xaf7   :  { %4822 = vmatprep.subr.mxu1 %v3710_v26  ;;  %5419 = vmatprep.subr.mxu0 %v5013_v49  ;;  %v3974_v26 = vld [vmem:[#allocation10 + $0x13a8] sm:$0xff]  ;;  %v3973_v49 = vld [vmem:[#allocation10 + $0x13a0] sm:$0xff] }
 0xaf8   :  { %4823 = vmatpush2.msra.mxu1 %v3709_v24  ;;  %5420 = vmatpush3.msra.mxu0 %v4997_v53  ;;  %v3968_v24 = vld [vmem:[#allocation10 + $0x1378] sm:$0xff]  ;;  %v3967_v53 = vld [vmem:[#allocation10 + $0x1370] sm:$0xff] }
 0xaf9   :  { %4824 = vmatprep.subr.mxu1 %v3704_v60  ;;  %v3962_v60 = vld [vmem:[#allocation10 + $0x1348] sm:$0xff] }
 0xafa   :  { %4825 = vmatpush2.msra.mxu1 %v3703_v6  ;;  %v3961_v6 = vld [vmem:[#allocation10 + $0x1340] sm:$0xff] }
 0xafb   :  { %4826 = vmatprep.subr.mxu1 %v3698_v23  ;;  %v3956_v23 = vld [vmem:[#allocation10 + $0x1318] sm:$0xff] }
 0xafc   :  { %4827 = vmatpush2.msra.mxu1 %v3697_v15  ;;  %v3955_v15 = vld [vmem:[#allocation10 + $0x1310] sm:$0xff] }
 0xafd   :  { %4828 = vmatprep.subr.mxu1 %v3692_v50  ;;  %v3950_v50 = vld [vmem:[#allocation10 + $0x12e8] sm:$0xff] }
 0xafe   :  { %4829 = vmatpush2.msra.mxu1 %v3691_v38  ;;  %v3949_v38 = vld [vmem:[#allocation10 + $0x12e0] sm:$0xff] }
 0xaff   :  { %4830 = vmatprep.subr.mxu1 %v3686_v45  ;;  %v3944_v45 = vld [vmem:[#allocation10 + $0x12b8] sm:$0xff] }
 0xb00   :  { %4831 = vmatpush2.msra.mxu1 %v3685_v2  ;;  %v3943_v2 = vld [vmem:[#allocation10 + $0x12b0] sm:$0xff] }
 0xb01   :  { %4832 = vmatprep.subr.mxu1 %v3680_v32  ;;  %v3938_v32 = vld [vmem:[#allocation10 + $0x1288] sm:$0xff] }
 0xb02   :  { %4833 = vmatpush2.msra.mxu1 %v3679_v14  ;;  %v3937_v14 = vld [vmem:[#allocation10 + $0x1280] sm:$0xff] }
 0xb03   :  { %4834 = vmatprep.subr.mxu1 %v3674_v33  ;;  %v3931_v33 = vld [vmem:[#allocation10 + $0x1250] sm:$0xff] }
 0xb04   :  { %4835 = vmatpush2.msra.mxu1 %v3673_v19  ;;  %v3926_v19 = vld [vmem:[#allocation10 + $0x1228] sm:$0xff] }
 0xb05   :  { %4836 = vmatprep.subr.mxu1 %v3668_v3  ;;  %v3925_v3 = vld [vmem:[#allocation10 + $0x1220] sm:$0xff] }
 0xb06   :  { %4837 = vmatpush2.msra.mxu1 %v3667_v44  ;;  %v4106_v44 = vld [vmem:[#allocation10 + $0x17c8] sm:$0xff] }
 0xb07   :  { %4838 = vmatprep.subr.mxu1 %v3662_v31  ;;  %v4100_v31 = vld [vmem:[#allocation10 + $0x1798] sm:$0xff] }
 0xb08   :  { %4839 = vmatpush2.msra.mxu1 %v3661_v63  ;;  %v4099_v63 = vld [vmem:[#allocation10 + $0x1790] sm:$0xff] }
 0xb09   :  { %4840 = vmatprep.subr.mxu1 %v3656_v40  ;;  %v4082_v40 = vld [vmem:[#allocation10 + $0x1708] sm:$0xff] }
 0xb0a   :  { %4841 = vmatpush2.msra.mxu1 %v3655_v22  ;;  %v4076_v22 = vld [vmem:[#allocation10 + $0x16d8] sm:$0xff] }
 0xb0b   :  { %4842 = vmatprep.subr.mxu1 %v3650_v51  ;;  %v4075_v51 = vld [vmem:[#allocation10 + $0x16d0] sm:$0xff] }
 0xb0c   :  { %4843 = vmatpush2.msra.mxu1 %v3649_v57  ;;  %v4424_v42 = vpop.f32.mrf.mxu1  ;;  %v4070_v57 = vld [vmem:[#allocation10 + $0x16a8] sm:$0xff] }
 0xb0d   :  { %4844 = vmatprep.subr.mxu1 %v3644_v13  ;;  %v4425_v0 = vadd.f32 %v4424_v42, %v4354_v11  ;;  %v4058_v13 = vld [vmem:[#allocation10 + $0x1648] sm:$0xff] }
 0xb0e   :  { %4845 = vmatpush2.msra.mxu1 %v3643_v46  ;;  %v4426_v16 = vpop.f32.mrf.mxu1  ;;  %v4052_v46 = vld [vmem:[#allocation10 + $0x1618] sm:$0xff]  ;;  %v4046_v42 = vld [vmem:[#allocation10 + $0x15e8] sm:$0xff] }
 0xb0f   :  { %4846 = vmatprep.subr.mxu1 %v3638_v36  ;;  %v4427_v9 = vadd.f32 %v4426_v16, %v4356_v29  ;;  %v4051_v36 = vld [vmem:[#allocation10 + $0x1610] sm:$0xff]  ;;  %v4045_v29 = vld [vmem:[#allocation10 + $0x15e0] sm:$0xff]  ;;  %v4022_v11 = vld [vmem:[#allocation10 + $0x1528] sm:$0xff] }
 0xb10   :  { %4847 = vmatpush2.msra.mxu1 %v3637_v35  ;;  %v4040_v35 = vld [vmem:[#allocation10 + $0x15b8] sm:$0xff]  ;;  %v4033_v16 = vld [vmem:[#allocation10 + $0x1580] sm:$0xff] }
 0xb11   :  { %4849 = vmatmul.mubr.f32.vlgmr.msra.gmra.mxu1 %v11778_v61  ;;  %4926 = vmatprep.subr.mxu1 %v4016_v48  ;;  %v3986_v61 = vld [vmem:[#allocation10 + $0x1408] sm:$0xff] }
 0xb12   :  { %4927 = vmatpush1.msra.mxu1 %v4015_v58  ;;  %4990 = vmatprep.mubr.f32.mxu1 %v10039_v47  ;;  %v3979_v47 = vld [vmem:[#allocation10 + $0x13d0] sm:$0xff]  ;;  %v4034_v48 = vld [vmem:[#allocation10 + $0x1588] sm:$0xff]  ;;  %v4028_v58 = vld [vmem:[#allocation10 + $0x1558] sm:$0xff] }
 0xb13   :  { %4928 = vmatprep.subr.mxu1 %v4010_v8  ;;  %5164 = vmatprep.mubr.f32.mxu0 %v4427_v9  ;;  %v4027_v9 = vld [vmem:[#allocation10 + $0x1550] sm:$0xff]  ;;  %v4021_v8 = vld [vmem:[#allocation10 + $0x1520] sm:$0xff] }
 0xb14   :  { %4929 = vmatpush1.msra.mxu1 %v4009_v5  ;;  %5165 = vmatmul.mubr.f32.vlgmr.msra.gmra.mxu0 %v4425_v0  ;;  %v5060_v5 = vld [vmem:[#allocation13 + $0x1f8] sm:$0xff] }
 0xb15   :  { %4930 = vmatprep.subr.mxu1 %v4004_v20  ;;  %v5044_v0 = vld [vmem:[#allocation13 + $0x178] sm:$0xff]  ;;  %v5059_v20 = vld [vmem:[#allocation13 + $0x1f0] sm:$0xff] }
 0xb16   :  { %4931 = vmatpush1.msra.mxu1 %v4003_v30  ;;  %v5043_v30 = vld [vmem:[#allocation13 + $0x170] sm:$0xff] }
 0xb17   :  { %4932 = vmatprep.subr.mxu1 %v3998_v25  ;;  %v5058_v25 = vld [vmem:[#allocation13 + $0x1e8] sm:$0xff] }
 0xb18   :  { %4933 = vmatpush1.msra.mxu1 %v3997_v17  ;;  %v5042_v17 = vld [vmem:[#allocation13 + $0x168] sm:$0xff] }
 0xb19   :  { %4934 = vmatprep.subr.mxu1 %v3992_v7  ;;  %v5057_v7 = vld [vmem:[#allocation13 + $0x1e0] sm:$0xff] }
 0xb1a   :  { %4935 = vmatpush1.msra.mxu1 %v3991_v12  ;;  %v5041_v12 = vld [vmem:[#allocation13 + $0x160] sm:$0xff] }
 0xb1b   :  { %4936 = vmatprep.subr.mxu1 %v3986_v61  ;;  %v5056_v61 = vld [vmem:[#allocation13 + $0x1d8] sm:$0xff] }
 0xb1c   :  { %4937 = vmatpush1.msra.mxu1 %v3985_v10  ;;  %v5040_v10 = vld [vmem:[#allocation13 + $0x158] sm:$0xff] }
 0xb1d   :  { %4938 = vmatprep.subr.mxu1 %v3980_v1  ;;  %v5055_v1 = vld [vmem:[#allocation13 + $0x1d0] sm:$0xff] }
 0xb1e   :  { %4939 = vmatpush1.msra.mxu1 %v3979_v47  ;;  %v5039_v47 = vld [vmem:[#allocation13 + $0x150] sm:$0xff] }
 0xb1f   :  { %4940 = vmatprep.subr.mxu1 %v3974_v26  ;;  %v5092_v26 = vld [vmem:[#allocation13 + $0x2f8] sm:$0xff] }
 0xb20   :  { %4941 = vmatpush1.msra.mxu1 %v3973_v49  ;;  %v5091_v49 = vld [vmem:[#allocation13 + $0x2f0] sm:$0xff]  ;;  %5459 = vmatprep.subr.mxu0 %v5092_v26 }
 0xb21   :  { %4942 = vmatprep.subr.mxu1 %v3968_v24  ;;  %v5054_v24 = vld [vmem:[#allocation13 + $0x1c8] sm:$0xff] }
 0xb22   :  { %4943 = vmatpush1.msra.mxu1 %v3967_v53  ;;  %v5075_v53 = vld [vmem:[#allocation13 + $0x270] sm:$0xff] }
 0xb23   :  { %4944 = vmatprep.subr.mxu1 %v3962_v60  ;;  %v5038_v60 = vld [vmem:[#allocation13 + $0x148] sm:$0xff] }
 0xb24   :  { %4945 = vmatpush1.msra.mxu1 %v3961_v6  ;;  %v5090_v6 = vld [vmem:[#allocation13 + $0x2e8] sm:$0xff] }
 0xb25   :  { %4946 = vmatprep.subr.mxu1 %v3956_v23  ;;  %v5053_v23 = vld [vmem:[#allocation13 + $0x1c0] sm:$0xff] }
 0xb26   :  { %4947 = vmatpush1.msra.mxu1 %v3955_v15  ;;  %v5074_v15 = vld [vmem:[#allocation13 + $0x268] sm:$0xff] }
 0xb27   :  { %4948 = vmatprep.subr.mxu1 %v3950_v50  ;;  %v5037_v50 = vld [vmem:[#allocation13 + $0x140] sm:$0xff] }
 0xb28   :  { %4949 = vmatpush1.msra.mxu1 %v3949_v38  ;;  %v5089_v38 = vld [vmem:[#allocation13 + $0x2e0] sm:$0xff] }
 0xb29   :  { %4950 = vmatprep.subr.mxu1 %v3944_v45  ;;  %v5052_v45 = vld [vmem:[#allocation13 + $0x1b8] sm:$0xff] }
 0xb2a   :  { %4951 = vmatpush1.msra.mxu1 %v3943_v2  ;;  %v5073_v2 = vld [vmem:[#allocation13 + $0x260] sm:$0xff] }
 0xb2b   :  { %4952 = vmatprep.subr.mxu1 %v3938_v32  ;;  %v5036_v32 = vld [vmem:[#allocation13 + $0x138] sm:$0xff] }
 0xb2c   :  { %4953 = vmatpush1.msra.mxu1 %v3937_v14  ;;  %v5088_v14 = vld [vmem:[#allocation13 + $0x2d8] sm:$0xff] }
 0xb2d   :  { %4954 = vmatprep.subr.mxu1 %v3932_v18  ;;  %v5051_v18 = vld [vmem:[#allocation13 + $0x1b0] sm:$0xff] }
 0xb2e   :  { %4955 = vmatpush1.msra.mxu1 %v3931_v33  ;;  %v5072_v33 = vld [vmem:[#allocation13 + $0x258] sm:$0xff] }
 0xb2f   :  { %4956 = vmatprep.subr.mxu1 %v3926_v19  ;;  %v5035_v19 = vld [vmem:[#allocation13 + $0x130] sm:$0xff] }
 0xb30   :  { %4957 = vmatpush1.msra.mxu1 %v3925_v3  ;;  %v5087_v3 = vld [vmem:[#allocation13 + $0x2d0] sm:$0xff] }
 0xb31   :  { %4958 = vmatprep.subr.mxu1 %v4112_v56  ;;  %v5050_v56 = vld [vmem:[#allocation13 + $0x1a8] sm:$0xff] }
 0xb32   :  { %4959 = vmatpush2.msra.mxu1 %v4111_v62  ;;  %v5071_v62 = vld [vmem:[#allocation13 + $0x250] sm:$0xff] }
 0xb33   :  { %4960 = vmatprep.subr.mxu1 %v4106_v44  ;;  %v5034_v44 = vld [vmem:[#allocation13 + $0x128] sm:$0xff] }
 0xb34   :  { %4961 = vmatpush2.msra.mxu1 %v4105_v54  ;;  %v5086_v54 = vld [vmem:[#allocation13 + $0x2c8] sm:$0xff] }
 0xb35   :  { %4962 = vmatprep.subr.mxu1 %v4100_v31  ;;  %v5049_v31 = vld [vmem:[#allocation13 + $0x1a0] sm:$0xff] }
 0xb36   :  { %4963 = vmatpush2.msra.mxu1 %v4099_v63  ;;  %v5070_v63 = vld [vmem:[#allocation13 + $0x248] sm:$0xff] }
 0xb37   :  { %4964 = vmatprep.subr.mxu1 %v4094_v41  ;;  %v5033_v41 = vld [vmem:[#allocation13 + $0x120] sm:$0xff] }
 0xb38   :  { %4965 = vmatpush2.msra.mxu1 %v4093_v43  ;;  %v5085_v43 = vld [vmem:[#allocation13 + $0x2c0] sm:$0xff] }
 0xb39   :  { %4966 = vmatprep.subr.mxu1 %v4088_v52  ;;  %v5048_v52 = vld [vmem:[#allocation13 + $0x198] sm:$0xff] }
 0xb3a   :  { %4967 = vmatpush2.msra.mxu1 %v4087_v4  ;;  %v5069_v4 = vld [vmem:[#allocation13 + $0x240] sm:$0xff] }
 0xb3b   :  { %4968 = vmatprep.subr.mxu1 %v4082_v40  ;;  %v5032_v40 = vld [vmem:[#allocation13 + $0x118] sm:$0xff] }
 0xb3c   :  { %4969 = vmatpush2.msra.mxu1 %v4081_v39  ;;  %v5084_v39 = vld [vmem:[#allocation13 + $0x2b8] sm:$0xff] }
 0xb3d   :  { %4970 = vmatprep.subr.mxu1 %v4076_v22  ;;  %v5047_v22 = vld [vmem:[#allocation13 + $0x190] sm:$0xff] }
 0xb3e   :  { %4971 = vmatpush2.msra.mxu1 %v4075_v51  ;;  %v5068_v51 = vld [vmem:[#allocation13 + $0x238] sm:$0xff] }
 0xb3f   :  { %4972 = vmatprep.subr.mxu1 %v4070_v57  ;;  %v5031_v57 = vld [vmem:[#allocation13 + $0x110] sm:$0xff] }
 0xb40   :  { %4973 = vmatpush2.msra.mxu1 %v4069_v59  ;;  %v5083_v59 = vld [vmem:[#allocation13 + $0x2b0] sm:$0xff] }
 0xb41   :  { %4974 = vmatprep.subr.mxu1 %v4064_v28  ;;  %v5046_v28 = vld [vmem:[#allocation13 + $0x188] sm:$0xff] }
 0xb42   :  { %4975 = vmatpush2.msra.mxu1 %v4063_v55  ;;  %v5067_v55 = vld [vmem:[#allocation13 + $0x230] sm:$0xff] }
 0xb43   :  { %4976 = vmatprep.subr.mxu1 %v4058_v13  ;;  %v5030_v13 = vld [vmem:[#allocation13 + $0x108] sm:$0xff] }
 0xb44   :  { %4977 = vmatpush2.msra.mxu1 %v4057_v21  ;;  %v5082_v21 = vld [vmem:[#allocation13 + $0x2a8] sm:$0xff] }
 0xb45   :  { %4978 = vmatprep.subr.mxu1 %v4052_v46  ;;  %v5045_v46 = vld [vmem:[#allocation13 + $0x180] sm:$0xff] }
 0xb46   :  { %4979 = vmatpush2.msra.mxu1 %v4051_v36  ;;  %v5066_v36 = vld [vmem:[#allocation13 + $0x228] sm:$0xff] }
 0xb47   :  { %4980 = vmatprep.subr.mxu1 %v4046_v42  ;;  %v5029_v42 = vld [vmem:[#allocation13 + $0x100] sm:$0xff] }
 0xb48   :  { %4981 = vmatpush2.msra.mxu1 %v4045_v29  ;;  %v5081_v29 = vld [vmem:[#allocation13 + $0x2a0] sm:$0xff] }
 0xb49   :  { %4982 = vmatprep.subr.mxu1 %v4040_v35  ;;  %v5065_v35 = vld [vmem:[#allocation13 + $0x220] sm:$0xff] }
 0xb4a   :  { %4983 = vmatpush2.msra.mxu1 %v4039_v34  ;;  %v5080_v34 = vld [vmem:[#allocation13 + $0x298] sm:$0xff] }
 0xb4b   :  { %4984 = vmatprep.subr.mxu1 %v4034_v48  ;;  %v5064_v48 = vld [vmem:[#allocation13 + $0x218] sm:$0xff] }
 0xb4c   :  { %4985 = vmatpush2.msra.mxu1 %v4033_v16  ;;  %v4495_v16 = vpop.f32.mrf.mxu0 }
 0xb4d   :  { %4986 = vmatprep.subr.mxu1 %v4028_v58 }
 0xb4e   :  { %4987 = vmatpush2.msra.mxu1 %v4027_v9  ;;  %v4566_v58 = vpop.f32.mrf.mxu1  ;;  %v11782_v9 = vld [vmem:[#allocation155_spill] sm:$0xff] }
 0xb4f   :  { %4988 = vmatprep.subr.mxu1 %v4022_v11  ;;  %v4130_v11 = vrot.slane %v10053_v27, %v11782_v9 }
 0xb50   :  { %4989 = vmatpush2.msra.mxu1 %v4021_v8  ;;  %v11783_v8 = vld [vmem:[#allocation153_spill] sm:$0xff] }
 0xb51   :  { %4991 = vmatmul.mubr.f32.vlgmr.msra.gmra.mxu1 %v10020_v37  ;;  %5424 = vmatprep.subr.mxu1 %v5060_v5  ;;  %v5076_v37 = vld [vmem:[#allocation13 + $0x278] sm:$0xff]  ;;  %v4126_v5 = vrot.slane %v10053_v27, %v11783_v8 }
 0xb52   :  { %5425 = vmatpush3.msra.mxu1 %v5044_v0  ;;  %5460 = vmatpush3.msra.mxu0 %v5076_v37  ;;  %v4497_v0 = vpop.f32.mrf.mxu0 }
 0xb53   :  { %5426 = vmatprep.subr.mxu1 %v5059_v20  ;;  %5461 = vmatprep.subr.mxu0 %v5091_v49  ;;  %v4568_v20 = vpop.f32.mrf.mxu1  ;;  %v5063_v49 = vld [vmem:[#allocation13 + $0x210] sm:$0xff] }
 0xb54   :  { %5427 = vmatpush3.msra.mxu1 %v5043_v30  ;;  %5462 = vmatpush3.msra.mxu0 %v5075_v53  ;;  %v4498_v30 = vadd.f32 %v4497_v0, %v4130_v11  ;;  %v5078_v53 = vld [vmem:[#allocation13 + $0x288] sm:$0xff] }
 0xb55   :  { %5428 = vmatprep.subr.mxu1 %v5058_v25  ;;  %5463 = vmatprep.subr.mxu0 %v5090_v6  ;;  %v4496_v25 = vadd.f32 %v4495_v16, %v4126_v5  ;;  %v5062_v6 = vld [vmem:[#allocation13 + $0x208] sm:$0xff] }
 0xb56   :  { %5429 = vmatpush3.msra.mxu1 %v5042_v17  ;;  %5464 = vmatpush3.msra.mxu0 %v5074_v15  ;;  %v4637_v17 = vpop.f32.mrf.mxu0  ;;  %v5061_v15 = vld [vmem:[#allocation13 + $0x200] sm:$0xff] }
 0xb57   :  { %5430 = vmatprep.subr.mxu1 %v5057_v7  ;;  %5465 = vmatprep.subr.mxu0 %v5089_v38  ;;  %v4569_v7 = vadd.f32 %v4568_v20, %v4498_v30 }
 0xb58   :  { %5431 = vmatpush3.msra.mxu1 %v5041_v12  ;;  %5466 = vmatpush3.msra.mxu0 %v5073_v2  ;;  %v4567_v12 = vadd.f32 %v4566_v58, %v4496_v25 }
 0xb59   :  { %5432 = vmatprep.subr.mxu1 %v5056_v61  ;;  %5467 = vmatprep.subr.mxu0 %v5088_v14  ;;  %v4639_v61 = vpop.f32.mrf.mxu0 }
 0xb5a   :  { %5433 = vmatpush3.msra.mxu1 %v5040_v10  ;;  %5468 = vmatpush3.msra.mxu0 %v5072_v33  ;;  %v4638_v26 = vadd.f32 %v4637_v17, %v4567_v12 }
 0xb5b   :  { %5434 = vmatprep.subr.mxu1 %v5055_v1  ;;  %5469 = vmatprep.subr.mxu0 %v5087_v3  ;;  %v4640_v1 = vadd.f32 %v4639_v61, %v4569_v7  ;;  %v4779_v2 = vpop.f32.mrf.mxu0 }
 0xb5c   :  { %5435 = vmatpush3.msra.mxu1 %v5039_v47  ;;  %5470 = vmatpush3.msra.mxu0 %v5071_v62  ;;  %v5079_v47 = vld [vmem:[#allocation13 + $0x290] sm:$0xff] }
 0xb5d   :  { %5436 = vmatprep.subr.mxu1 %v5054_v24  ;;  %5471 = vmatprep.subr.mxu0 %v5086_v54  ;;  %v4781_v33 = vpop.f32.mrf.mxu0 }
 0xb5e   :  { %5437 = vmatpush3.msra.mxu1 %v5038_v60  ;;  %5472 = vmatpush3.msra.mxu0 %v5070_v63 }
 0xb5f   :  { %5438 = vmatprep.subr.mxu1 %v5053_v23  ;;  %5473 = vmatprep.subr.mxu0 %v5085_v43  ;;  %v5077_v23 = vld [vmem:[#allocation13 + $0x280] sm:$0xff] }
 0xb60   :  { %5439 = vmatpush3.msra.mxu1 %v5037_v50  ;;  %5474 = vmatpush3.msra.mxu0 %v5069_v4  ;;  %v11784_v50 = vld [vmem:[#allocation151_spill] sm:$0xff] }
 0xb61   :  { %5440 = vmatprep.subr.mxu1 %v5052_v45  ;;  %5475 = vmatprep.subr.mxu0 %v5084_v39  ;;  %v4137_v38 = vsub.s32 5, %v11784_v50  ;;  %v4133_v45 = vsub.s32 4, %v11784_v50 }
 0xb62   :  { %5441 = vmatpush3.msra.mxu1 %v5036_v32  ;;  %5476 = vmatpush3.msra.mxu0 %v5068_v51 }
 0xb63   :  { %5442 = vmatprep.subr.mxu1 %v5051_v18  ;;  %5477 = vmatprep.subr.mxu0 %v5083_v59  ;;  %v4138_v14 = vrot.slane %v10053_v27, %v4137_v38  ;;  %v4134_v18 = vrot.slane %v10053_v27, %v4133_v45  ;;  %v5388_v59 = vld [vmem:[#allocation15] ss:$0 sm:$0xff] }
 0xb64   :  { %5443 = vmatpush3.msra.mxu1 %v5035_v19  ;;  %5478 = vmatpush3.msra.mxu0 %v5067_v55 }
 0xb65   :  { %5444 = vmatprep.subr.mxu1 %v5050_v56  ;;  %5479 = vmatprep.subr.mxu0 %v5082_v21  ;;  %v4782_v3 = vadd.f32 %v4781_v33, %v4138_v14  ;;  %v4780_v56 = vadd.f32 %v4779_v2, %v4134_v18 }
 0xb66   :  { %5445 = vmatpush3.msra.mxu1 %v5034_v44  ;;  %5480 = vmatpush3.msra.mxu0 %v5066_v36 }
 0xb67   :  { %5446 = vmatprep.subr.mxu1 %v5049_v31  ;;  %5481 = vmatprep.subr.mxu0 %v5081_v29 }
 0xb68   :  { %5447 = vmatpush3.msra.mxu1 %v5033_v41  ;;  %5482 = vmatpush3.msra.mxu0 %v5065_v35 }
 0xb69   :  { %5448 = vmatprep.subr.mxu1 %v5048_v52  ;;  %5483 = vmatprep.subr.mxu0 %v5080_v34 }
 0xb6a   :  { %5449 = vmatpush3.msra.mxu1 %v5032_v40  ;;  %5484 = vmatpush3.msra.mxu0 %v5064_v48 }
 0xb6b   :  { %5450 = vmatprep.subr.mxu1 %v5047_v22  ;;  %5485 = vmatprep.subr.mxu0 %v5079_v47 }
 0xb6c   :  { %5451 = vmatpush3.msra.mxu1 %v5031_v57  ;;  %5486 = vmatpush3.msra.mxu0 %v5063_v49 }
 0xb6d   :  { %5452 = vmatprep.subr.mxu1 %v5046_v28  ;;  %5487 = vmatprep.subr.mxu0 %v5078_v53 }
 0xb6e   :  { %5453 = vmatpush3.msra.mxu1 %v5030_v13  ;;  %5488 = vmatpush3.msra.mxu0 %v5062_v6 }
 0xb6f   :  { %5454 = vmatprep.subr.mxu1 %v5045_v46  ;;  %5489 = vmatprep.subr.mxu0 %v5077_v23 }
 0xb70   :  { %5455 = vmatpush3.msra.mxu1 %v5029_v42  ;;  %5490 = vmatpush3.msra.mxu0 %v5061_v15 }
 0xb90   :  { %v4708_v10 = vpop.f32.mrf.mxu1 }
 0xb91   :  { %v4709_v60 = vadd.f32 %v4708_v10, %v4638_v26 }
 0xb92   :  { %v4710_v37 = vpop.f32.mrf.mxu1 }
 0xb93   :  { %v4711_v24 = vadd.f32 %v4710_v37, %v4640_v1 }
 0xb95   :  { %5234 = vmatprep.mubr.f32.mxu1 %v4711_v24 }
 0xb96   :  { %5235 = vmatmul.mubr.f32.vlgmr.msra.gmra.mxu1 %v4709_v60 }
 0xb98   :  { %v4921_v62 = vpop.f32.mrf.mxu0 }
 0xb9a   :  { %v4923_v31 = vpop.f32.mrf.mxu0 }
 0xbd1   :  { %v4850_v32 = vpop.f32.mrf.mxu1 }
 0xbd2   :  { %v4851_v54 = vadd.f32 %v4850_v32, %v4780_v56 }
 0xbd3   :  { %v4852_v19 = vpop.f32.mrf.mxu1 }
 0xbd4   :  { %v4853_v44 = vadd.f32 %v4852_v19, %v4782_v3  ;;  %v4922_v43 = vadd.f32 %v4921_v62, %v4851_v54  ;;  %v5421_v39 = vpop.f32.mrf.mxu0 }
 0xbd6   :  { %v4924_v41 = vadd.f32 %v4923_v31, %v4853_v44  ;;  %v5422_v51 = vpop.f32.mrf.mxu0 }
 0xbd7   :  { %v5423_v57 = vadd.f32 %v5422_v51, %v5421_v39 }
 0xbd9   :  { %v5167_v13 = vadd.f32 %v5423_v57, %v5388_v59 }
 0xc11   :  { %v4992_v63 = vpop.f32.mrf.mxu1 }
 0xc12   :  { %v4993_v40 = vadd.f32 %v4992_v63, %v4922_v43 }
 0xc13   :  { %v4994_v52 = vpop.f32.mrf.mxu1 }
 0xc14   :  { %v4995_v4 = vadd.f32 %v4994_v52, %v4924_v41 }
 0xc16   :  { %5304 = vmatprep.mubr.f32.mxu0 %v4995_v4 }
 0xc17   :  { %5305 = vmatmul.mubr.f32.vlgmr.msra.gmra.mxu0 %v4993_v40 }
 0xc56   :  { %v5456_v22 = vpop.f32.mrf.mxu1 }
 0xc58   :  { %v5457_v27 = vpop.f32.mrf.mxu1 }
 0xc59   :  { %v5458_v28 = vadd.f32 %v5457_v27, %v5456_v22 }
 0xc5b   :  { %v5237_v46 = vadd.f32 %v5458_v28, %v5167_v13 }
 0xcd7   :  { %v5491_v55 = vpop.f32.mrf.mxu0 }
 0xcd9   :  { %v5492_v21 = vpop.f32.mrf.mxu0 }
 0xcda   :  { %v5493_v36 = vadd.f32 %v5492_v21, %v5491_v55 }
 0xcdc   :  { %v5307_v42 = vadd.f32 %v5493_v36, %v5237_v46 }
 0xcde   :  { %5310 = vst [vmem:[%s10083_s10] sm:$0xff] %v5307_v42 }
 0xcdf   :  { %5315 = vsyncpa [#allocation3], 1 }
 0xce0   :  { %5316 = vsyncpa [#allocation5], 1 }
 0xce1   :  { %5317 = vsyncpa [#allocation8], 1 }
 0xce2   :  { %5318 = vsyncpa [#allocation11], 1 }
 0xce3   :  { %5319 = vsyncpa [#allocation14], 1 }

</bundles_post_ra>
